<compile_context>
chip_gen: v5e
topology: v5e:2x2
jax: 0.10.0
libtpu: 0.0.40
codegen_flags: <defaults>
</compile_context>

<pallas_src>
import jax
import jax.numpy as jnp
from jax import lax
from jax.experimental import pallas as pl
from jax.experimental.pallas import tpu as pltpu

# Small, deterministic problem sizes consistent with the module.
N, CIN, H, W = 2, 4, 16, 16       # batch, in-channels, spatial
COUT = 8                          # feature channels
KH = KW = 3                       # conv kernel
NUM_CLASSES = 10
EPS = 1e-5

HW = H * W                        # 256
NHW = N * H * W                   # 512
KKC = KH * KW * CIN               # 36


def convnet_fused_kernel(xpad_ref, w_ref, shift_ref, wc_ref, bc_ref,
                         out_ref, patch_ref, feat_ref):
    """Fused features + classifier.

    xpad_ref : (N, H+2, W+2, CIN)        padded NHWC input
    w_ref    : (KH*KW*CIN, COUT)         HWIO-flattened conv weight, BN scale folded in
    shift_ref: (1, COUT)                 folded conv-bias + BN shift
    wc_ref   : (COUT, NUM_CLASSES, H*W)  classifier weight, (C,H,W) flatten order
    bc_ref   : (NUM_CLASSES, 1)          classifier bias (column)
    out_ref  : (NUM_CLASSES, N)          logits, transposed
    patch_ref: (N*H*W, KH*KW*CIN)        im2col scratch (VMEM)
    feat_ref : (N*H*W, COUT)             post-ReLU feature scratch (VMEM)
    """
    # --- features: im2col (9 static tap copies into VMEM scratch) ---
    for kh in range(KH):
        for kw in range(KW):
            off = (kh * KW + kw) * CIN
            tap = xpad_ref[:, kh:kh + H, kw:kw + W, :]          # (N, H, W, CIN)
            patch_ref[:, off:off + CIN] = tap.reshape(NHW, CIN)

    # Conv as ONE MXU matmul; BN scale already folded into w, bias into shift.
    acc = jnp.dot(patch_ref[...], w_ref[...],
                  preferred_element_type=jnp.float32)           # (NHW, COUT)
    feat_ref[...] = jnp.maximum(acc + shift_ref[...], 0.0)      # BN shift + ReLU

    # --- classifier: logits[c, n] = bc[c] + sum_k  wc[k, c, :] @ feat[n-block, k] ---
    # Decomposed over the (small, static) COUT axis so every operand is a clean
    # 2-D ref slice and no in-kernel reshape/transpose is required.
    for n in range(N):
        col = bc_ref[...]                                       # (NUM_CLASSES, 1)
        for k in range(COUT):
            col = col + jnp.dot(
                wc_ref[k],                                      # (NUM_CLASSES, HW)
                feat_ref[n * HW:(n + 1) * HW, k:k + 1],         # (HW, 1)
                preferred_element_type=jnp.float32)
        out_ref[:, n:n + 1] = col


def init_params(seed=97):
    """Deterministic synthetic parameters (shapes match the ConvNets layers)."""
    k = jax.random.PRNGKey(seed)
    k_w, k_b, k_g, k_be, k_m, k_v, k_wc, k_bc = jax.random.split(k, 8)
    w = 0.1 * jax.random.normal(k_w, (KH, KW, CIN, COUT), jnp.float32)   # HWIO
    b = 0.1 * jax.random.normal(k_b, (COUT,), jnp.float32)
    gamma = 1.0 + 0.1 * jax.random.normal(k_g, (COUT,), jnp.float32)
    beta = 0.1 * jax.random.normal(k_be, (COUT,), jnp.float32)
    running_mean = 0.1 * jax.random.normal(k_m, (COUT,), jnp.float32)
    running_var = 1.0 + 0.1 * jax.random.uniform(k_v, (COUT,), jnp.float32)
    # Classifier weight stored as (COUT, NUM_CLASSES, H, W): equivalent to a PyTorch
    # Linear weight applied to the (C, H, W)-flattened feature map.
    wc = 0.05 * jax.random.normal(k_wc, (COUT, NUM_CLASSES, H, W), jnp.float32)
    bc = 0.05 * jax.random.normal(k_bc, (NUM_CLASSES,), jnp.float32)
    return dict(w=w, b=b, gamma=gamma, beta=beta,
                running_mean=running_mean, running_var=running_var,
                wc=wc, bc=bc)


def convnet_forward(x_nchw, params):
    """Full forward pass. Trace-time glue (layout transpose, padding, BN folding,
    weight reshapes) is plain JAX; everything else runs in ONE fused Pallas kernel."""
    x = jnp.transpose(x_nchw, (0, 2, 3, 1)).astype(jnp.float32)       # NCHW -> NHWC
    xpad = jnp.pad(x, ((0, 0), (1, 1), (1, 1), (0, 0)))               # 'same' padding

    # Fold BatchNorm (eval mode) + conv bias into the conv weight/shift at trace time.
    # TODO(synk): training-mode batch statistics are not implemented (eval BN only).
    inv_std = 1.0 / jnp.sqrt(params["running_var"] + EPS)
    scale = params["gamma"] * inv_std                                  # (COUT,)
    w2d = params["w"].reshape(KKC, COUT) * scale[None, :]              # scale folded in
    shift = (params["beta"] - params["running_mean"] * scale
             + params["b"] * scale).reshape(1, COUT)                   # bias folded in

    wc_k = params["wc"].reshape(COUT, NUM_CLASSES, HW)
    bc_col = params["bc"].reshape(NUM_CLASSES, 1)

    vmem = pl.BlockSpec(memory_space=pltpu.MemorySpace.VMEM)
    logits_t = pl.pallas_call(
        convnet_fused_kernel,
        out_shape=jax.ShapeDtypeStruct((NUM_CLASSES, N), jnp.float32),
        in_specs=[vmem, vmem, vmem, vmem, vmem],
        out_specs=vmem,
        scratch_shapes=[pltpu.VMEM((NHW, KKC), jnp.float32),   # im2col patch matrix
                        pltpu.VMEM((NHW, COUT), jnp.float32)], # post-ReLU features
    )(xpad, w2d, shift, wc_k, bc_col)

    return logits_t.T                                                  # (N, NUM_CLASSES)


def reference_forward(x_nchw, params):
    """Pure-JAX reference for numerical validation."""
    x = jnp.transpose(x_nchw, (0, 2, 3, 1)).astype(jnp.float32)
    y = lax.conv_general_dilated(
        x, params["w"], window_strides=(1, 1), padding="SAME",
        dimension_numbers=("NHWC", "HWIO", "NHWC")) + params["b"]
    inv_std = 1.0 / jnp.sqrt(params["running_var"] + EPS)
    y = (y - params["running_mean"]) * inv_std * params["gamma"] + params["beta"]
    y = jnp.maximum(y, 0.0)                                            # (N, H, W, COUT)
    logits = jnp.einsum("nhwk,kchw->nc", y, params["wc"]) + params["bc"]
    return logits


if __name__ == "__main__":
    key = jax.random.PRNGKey(0)
    x = jax.random.normal(key, (N, CIN, H, W), jnp.float32)   # NCHW like PyTorch

    params = init_params(seed=97)

    logits = jax.jit(convnet_forward)(x, params)
    logits = jax.block_until_ready(logits)

    ref = reference_forward(x, params)
    assert logits.shape == (N, NUM_CLASSES)
    assert jnp.allclose(logits, ref, atol=1e-4, rtol=1e-4), "mismatch vs reference"

    print("KERNEL_OK")
</pallas_src>

<mosaic_0001>
module attributes {stable_mosaic.version = 11 : i64} {
  func.func @convnet_fused_kernel(%arg0: memref<2x18x18x4xf32, #tpu.memory_space<vmem>>, %arg1: memref<36x8xf32, #tpu.memory_space<vmem>>, %arg2: memref<1x8xf32, #tpu.memory_space<vmem>>, %arg3: memref<8x10x256xf32, #tpu.memory_space<vmem>>, %arg4: memref<10x1xf32, #tpu.memory_space<vmem>>, %arg5: memref<10x2xf32, #tpu.memory_space<vmem>>, %arg6: memref<512x36xf32, #tpu.memory_space<vmem>>, %arg7: memref<512x8xf32, #tpu.memory_space<vmem>>) attributes {dimension_semantics = [], scalar_prefetch = 0 : i64, scratch_operands = 2 : i64, tpu.core_type = #tpu.core_type<tc>} {
    %c0 = arith.constant 0 : index
    %c0_0 = arith.constant 0 : index
    %c0_1 = arith.constant 0 : index
    %c0_2 = arith.constant 0 : index
    %0 = vector.load %arg0[%c0, %c0_0, %c0_1, %c0_2] : memref<2x18x18x4xf32, #tpu.memory_space<vmem>>, vector<2x16x16x4xf32>
    %1 = vector.shape_cast %0 : vector<2x16x16x4xf32> to vector<512x4xf32>
    %c0_3 = arith.constant 0 : index
    %c0_4 = arith.constant 0 : index
    %2 = vector.load %arg6[%c0_3, %c0_4] : memref<512x36xf32, #tpu.memory_space<vmem>>, vector<512x4xf32>
    tpu.vector_store %arg6[%c0_3, %c0_4], %1 {strides = array<i32>} : memref<512x36xf32, #tpu.memory_space<vmem>>, vector<512x4xf32>,
    %c0_5 = arith.constant 0 : index
    %c0_6 = arith.constant 0 : index
    %c1 = arith.constant 1 : index
    %c0_7 = arith.constant 0 : index
    %3 = vector.load %arg0[%c0_5, %c0_6, %c1, %c0_7] : memref<2x18x18x4xf32, #tpu.memory_space<vmem>>, vector<2x16x16x4xf32>
    %4 = vector.shape_cast %3 : vector<2x16x16x4xf32> to vector<512x4xf32>
    %c0_8 = arith.constant 0 : index
    %c4 = arith.constant 4 : index
    %5 = vector.load %arg6[%c0_8, %c4] : memref<512x36xf32, #tpu.memory_space<vmem>>, vector<512x4xf32>
    tpu.vector_store %arg6[%c0_8, %c4], %4 {strides = array<i32>} : memref<512x36xf32, #tpu.memory_space<vmem>>, vector<512x4xf32>,
    %c0_9 = arith.constant 0 : index
    %c0_10 = arith.constant 0 : index
    %c2 = arith.constant 2 : index
    %c0_11 = arith.constant 0 : index
    %6 = vector.load %arg0[%c0_9, %c0_10, %c2, %c0_11] : memref<2x18x18x4xf32, #tpu.memory_space<vmem>>, vector<2x16x16x4xf32>
    %7 = vector.shape_cast %6 : vector<2x16x16x4xf32> to vector<512x4xf32>
    %c0_12 = arith.constant 0 : index
    %c8 = arith.constant 8 : index
    %8 = vector.load %arg6[%c0_12, %c8] : memref<512x36xf32, #tpu.memory_space<vmem>>, vector<512x4xf32>
    tpu.vector_store %arg6[%c0_12, %c8], %7 {strides = array<i32>} : memref<512x36xf32, #tpu.memory_space<vmem>>, vector<512x4xf32>,
    %c0_13 = arith.constant 0 : index
    %c1_14 = arith.constant 1 : index
    %c0_15 = arith.constant 0 : index
    %c0_16 = arith.constant 0 : index
    %9 = vector.load %arg0[%c0_13, %c1_14, %c0_15, %c0_16] : memref<2x18x18x4xf32, #tpu.memory_space<vmem>>, vector<2x16x16x4xf32>
    %10 = vector.shape_cast %9 : vector<2x16x16x4xf32> to vector<512x4xf32>
    %c0_17 = arith.constant 0 : index
    %c12 = arith.constant 12 : index
    %11 = vector.load %arg6[%c0_17, %c12] : memref<512x36xf32, #tpu.memory_space<vmem>>, vector<512x4xf32>
    tpu.vector_store %arg6[%c0_17, %c12], %10 {strides = array<i32>} : memref<512x36xf32, #tpu.memory_space<vmem>>, vector<512x4xf32>,
    %c0_18 = arith.constant 0 : index
    %c1_19 = arith.constant 1 : index
    %c1_20 = arith.constant 1 : index
    %c0_21 = arith.constant 0 : index
    %12 = vector.load %arg0[%c0_18, %c1_19, %c1_20, %c0_21] : memref<2x18x18x4xf32, #tpu.memory_space<vmem>>, vector<2x16x16x4xf32>
    %13 = vector.shape_cast %12 : vector<2x16x16x4xf32> to vector<512x4xf32>
    %c0_22 = arith.constant 0 : index
    %c16 = arith.constant 16 : index
    %14 = vector.load %arg6[%c0_22, %c16] : memref<512x36xf32, #tpu.memory_space<vmem>>, vector<512x4xf32>
    tpu.vector_store %arg6[%c0_22, %c16], %13 {strides = array<i32>} : memref<512x36xf32, #tpu.memory_space<vmem>>, vector<512x4xf32>,
    %c0_23 = arith.constant 0 : index
    %c1_24 = arith.constant 1 : index
    %c2_25 = arith.constant 2 : index
    %c0_26 = arith.constant 0 : index
    %15 = vector.load %arg0[%c0_23, %c1_24, %c2_25, %c0_26] : memref<2x18x18x4xf32, #tpu.memory_space<vmem>>, vector<2x16x16x4xf32>
    %16 = vector.shape_cast %15 : vector<2x16x16x4xf32> to vector<512x4xf32>
    %c0_27 = arith.constant 0 : index
    %c20 = arith.constant 20 : index
    %17 = vector.load %arg6[%c0_27, %c20] : memref<512x36xf32, #tpu.memory_space<vmem>>, vector<512x4xf32>
    tpu.vector_store %arg6[%c0_27, %c20], %16 {strides = array<i32>} : memref<512x36xf32, #tpu.memory_space<vmem>>, vector<512x4xf32>,
    %c0_28 = arith.constant 0 : index
    %c2_29 = arith.constant 2 : index
    %c0_30 = arith.constant 0 : index
    %c0_31 = arith.constant 0 : index
    %18 = vector.load %arg0[%c0_28, %c2_29, %c0_30, %c0_31] : memref<2x18x18x4xf32, #tpu.memory_space<vmem>>, vector<2x16x16x4xf32>
    %19 = vector.shape_cast %18 : vector<2x16x16x4xf32> to vector<512x4xf32>
    %c0_32 = arith.constant 0 : index
    %c24 = arith.constant 24 : index
    %20 = vector.load %arg6[%c0_32, %c24] : memref<512x36xf32, #tpu.memory_space<vmem>>, vector<512x4xf32>
    tpu.vector_store %arg6[%c0_32, %c24], %19 {strides = array<i32>} : memref<512x36xf32, #tpu.memory_space<vmem>>, vector<512x4xf32>,
    %c0_33 = arith.constant 0 : index
    %c2_34 = arith.constant 2 : index
    %c1_35 = arith.constant 1 : index
    %c0_36 = arith.constant 0 : index
    %21 = vector.load %arg0[%c0_33, %c2_34, %c1_35, %c0_36] : memref<2x18x18x4xf32, #tpu.memory_space<vmem>>, vector<2x16x16x4xf32>
    %22 = vector.shape_cast %21 : vector<2x16x16x4xf32> to vector<512x4xf32>
    %c0_37 = arith.constant 0 : index
    %c28 = arith.constant 28 : index
    %23 = vector.load %arg6[%c0_37, %c28] : memref<512x36xf32, #tpu.memory_space<vmem>>, vector<512x4xf32>
    tpu.vector_store %arg6[%c0_37, %c28], %22 {strides = array<i32>} : memref<512x36xf32, #tpu.memory_space<vmem>>, vector<512x4xf32>,
    %c0_38 = arith.constant 0 : index
    %c2_39 = arith.constant 2 : index
    %c2_40 = arith.constant 2 : index
    %c0_41 = arith.constant 0 : index
    %24 = vector.load %arg0[%c0_38, %c2_39, %c2_40, %c0_41] : memref<2x18x18x4xf32, #tpu.memory_space<vmem>>, vector<2x16x16x4xf32>
    %25 = vector.shape_cast %24 : vector<2x16x16x4xf32> to vector<512x4xf32>
    %c0_42 = arith.constant 0 : index
    %c32 = arith.constant 32 : index
    %26 = vector.load %arg6[%c0_42, %c32] : memref<512x36xf32, #tpu.memory_space<vmem>>, vector<512x4xf32>
    tpu.vector_store %arg6[%c0_42, %c32], %25 {strides = array<i32>} : memref<512x36xf32, #tpu.memory_space<vmem>>, vector<512x4xf32>,
    %c0_43 = arith.constant 0 : index
    %c0_44 = arith.constant 0 : index
    %27 = vector.load %arg6[%c0_43, %c0_44] : memref<512x36xf32, #tpu.memory_space<vmem>>, vector<512x36xf32>
    %c0_45 = arith.constant 0 : index
    %c0_46 = arith.constant 0 : index
    %28 = vector.load %arg1[%c0_45, %c0_46] : memref<36x8xf32, #tpu.memory_space<vmem>>, vector<36x8xf32>
    %cst = arith.constant dense<0.000000e+00> : vector<512x8xf32>
    %29 = tpu.matmul %27, %28, %cst {dimension_numbers = #tpu.dot_dimension_numbers<[1], [0], [0], [1], [0, 0, 1, 1], [], []>} : vector<512x36xf32>, vector<36x8xf32>, vector<512x8xf32> -> vector<512x8xf32>
    %c0_47 = arith.constant 0 : index
    %c0_48 = arith.constant 0 : index
    %30 = vector.load %arg2[%c0_47, %c0_48] : memref<1x8xf32, #tpu.memory_space<vmem>>, vector<1x8xf32>
    %31 = vector.broadcast %30 : vector<1x8xf32> to vector<512x8xf32>
    %32 = arith.addf %29, %31 : vector<512x8xf32>
    %cst_49 = arith.constant 0.000000e+00 : f32
    %33 = vector.broadcast %cst_49 : f32 to vector<512x8xf32>
    %34 = arith.maximumf %32, %33 : vector<512x8xf32>
    %c0_50 = arith.constant 0 : index
    %c0_51 = arith.constant 0 : index
    %35 = vector.load %arg7[%c0_50, %c0_51] : memref<512x8xf32, #tpu.memory_space<vmem>>, vector<512x8xf32>
    tpu.vector_store %arg7[%c0_50, %c0_51], %34 {strides = array<i32>} : memref<512x8xf32, #tpu.memory_space<vmem>>, vector<512x8xf32>,
    %c0_52 = arith.constant 0 : index
    %c0_53 = arith.constant 0 : index
    %36 = vector.load %arg4[%c0_52, %c0_53] : memref<10x1xf32, #tpu.memory_space<vmem>>, vector<10x1xf32>
    %c0_54 = arith.constant 0 : index
    %c0_55 = arith.constant 0 : index
    %c0_56 = arith.constant 0 : index
    %37 = vector.load %arg3[%c0_54, %c0_55, %c0_56] : memref<8x10x256xf32, #tpu.memory_space<vmem>>, vector<1x10x256xf32>
    %38 = vector.shape_cast %37 : vector<1x10x256xf32> to vector<10x256xf32>
    %c0_57 = arith.constant 0 : index
    %c0_58 = arith.constant 0 : index
    %39 = vector.load %arg7[%c0_57, %c0_58] : memref<512x8xf32, #tpu.memory_space<vmem>>, vector<256x1xf32>
    %cst_59 = arith.constant dense<0.000000e+00> : vector<10x1xf32>
    %40 = tpu.matmul %38, %39, %cst_59 {dimension_numbers = #tpu.dot_dimension_numbers<[1], [0], [0], [1], [0, 0, 1, 1], [], []>} : vector<10x256xf32>, vector<256x1xf32>, vector<10x1xf32> -> vector<10x1xf32>
    %41 = arith.addf %36, %40 : vector<10x1xf32>
    %c1_60 = arith.constant 1 : index
    %c0_61 = arith.constant 0 : index
    %c0_62 = arith.constant 0 : index
    %42 = vector.load %arg3[%c1_60, %c0_61, %c0_62] : memref<8x10x256xf32, #tpu.memory_space<vmem>>, vector<1x10x256xf32>
    %43 = vector.shape_cast %42 : vector<1x10x256xf32> to vector<10x256xf32>
    %c0_63 = arith.constant 0 : index
    %c1_64 = arith.constant 1 : index
    %44 = vector.load %arg7[%c0_63, %c1_64] : memref<512x8xf32, #tpu.memory_space<vmem>>, vector<256x1xf32>
    %cst_65 = arith.constant dense<0.000000e+00> : vector<10x1xf32>
    %45 = tpu.matmul %43, %44, %cst_65 {dimension_numbers = #tpu.dot_dimension_numbers<[1], [0], [0], [1], [0, 0, 1, 1], [], []>} : vector<10x256xf32>, vector<256x1xf32>, vector<10x1xf32> -> vector<10x1xf32>
    %46 = arith.addf %41, %45 : vector<10x1xf32>
    %c2_66 = arith.constant 2 : index
    %c0_67 = arith.constant 0 : index
    %c0_68 = arith.constant 0 : index
    %47 = vector.load %arg3[%c2_66, %c0_67, %c0_68] : memref<8x10x256xf32, #tpu.memory_space<vmem>>, vector<1x10x256xf32>
    %48 = vector.shape_cast %47 : vector<1x10x256xf32> to vector<10x256xf32>
    %c0_69 = arith.constant 0 : index
    %c2_70 = arith.constant 2 : index
    %49 = vector.load %arg7[%c0_69, %c2_70] : memref<512x8xf32, #tpu.memory_space<vmem>>, vector<256x1xf32>
    %cst_71 = arith.constant dense<0.000000e+00> : vector<10x1xf32>
    %50 = tpu.matmul %48, %49, %cst_71 {dimension_numbers = #tpu.dot_dimension_numbers<[1], [0], [0], [1], [0, 0, 1, 1], [], []>} : vector<10x256xf32>, vector<256x1xf32>, vector<10x1xf32> -> vector<10x1xf32>
    %51 = arith.addf %46, %50 : vector<10x1xf32>
    %c3 = arith.constant 3 : index
    %c0_72 = arith.constant 0 : index
    %c0_73 = arith.constant 0 : index
    %52 = vector.load %arg3[%c3, %c0_72, %c0_73] : memref<8x10x256xf32, #tpu.memory_space<vmem>>, vector<1x10x256xf32>
    %53 = vector.shape_cast %52 : vector<1x10x256xf32> to vector<10x256xf32>
    %c0_74 = arith.constant 0 : index
    %c3_75 = arith.constant 3 : index
    %54 = vector.load %arg7[%c0_74, %c3_75] : memref<512x8xf32, #tpu.memory_space<vmem>>, vector<256x1xf32>
    %cst_76 = arith.constant dense<0.000000e+00> : vector<10x1xf32>
    %55 = tpu.matmul %53, %54, %cst_76 {dimension_numbers = #tpu.dot_dimension_numbers<[1], [0], [0], [1], [0, 0, 1, 1], [], []>} : vector<10x256xf32>, vector<256x1xf32>, vector<10x1xf32> -> vector<10x1xf32>
    %56 = arith.addf %51, %55 : vector<10x1xf32>
    %c4_77 = arith.constant 4 : index
    %c0_78 = arith.constant 0 : index
    %c0_79 = arith.constant 0 : index
    %57 = vector.load %arg3[%c4_77, %c0_78, %c0_79] : memref<8x10x256xf32, #tpu.memory_space<vmem>>, vector<1x10x256xf32>
    %58 = vector.shape_cast %57 : vector<1x10x256xf32> to vector<10x256xf32>
    %c0_80 = arith.constant 0 : index
    %c4_81 = arith.constant 4 : index
    %59 = vector.load %arg7[%c0_80, %c4_81] : memref<512x8xf32, #tpu.memory_space<vmem>>, vector<256x1xf32>
    %cst_82 = arith.constant dense<0.000000e+00> : vector<10x1xf32>
    %60 = tpu.matmul %58, %59, %cst_82 {dimension_numbers = #tpu.dot_dimension_numbers<[1], [0], [0], [1], [0, 0, 1, 1], [], []>} : vector<10x256xf32>, vector<256x1xf32>, vector<10x1xf32> -> vector<10x1xf32>
    %61 = arith.addf %56, %60 : vector<10x1xf32>
    %c5 = arith.constant 5 : index
    %c0_83 = arith.constant 0 : index
    %c0_84 = arith.constant 0 : index
    %62 = vector.load %arg3[%c5, %c0_83, %c0_84] : memref<8x10x256xf32, #tpu.memory_space<vmem>>, vector<1x10x256xf32>
    %63 = vector.shape_cast %62 : vector<1x10x256xf32> to vector<10x256xf32>
    %c0_85 = arith.constant 0 : index
    %c5_86 = arith.constant 5 : index
    %64 = vector.load %arg7[%c0_85, %c5_86] : memref<512x8xf32, #tpu.memory_space<vmem>>, vector<256x1xf32>
    %cst_87 = arith.constant dense<0.000000e+00> : vector<10x1xf32>
    %65 = tpu.matmul %63, %64, %cst_87 {dimension_numbers = #tpu.dot_dimension_numbers<[1], [0], [0], [1], [0, 0, 1, 1], [], []>} : vector<10x256xf32>, vector<256x1xf32>, vector<10x1xf32> -> vector<10x1xf32>
    %66 = arith.addf %61, %65 : vector<10x1xf32>
    %c6 = arith.constant 6 : index
    %c0_88 = arith.constant 0 : index
    %c0_89 = arith.constant 0 : index
    %67 = vector.load %arg3[%c6, %c0_88, %c0_89] : memref<8x10x256xf32, #tpu.memory_space<vmem>>, vector<1x10x256xf32>
    %68 = vector.shape_cast %67 : vector<1x10x256xf32> to vector<10x256xf32>
    %c0_90 = arith.constant 0 : index
    %c6_91 = arith.constant 6 : index
    %69 = vector.load %arg7[%c0_90, %c6_91] : memref<512x8xf32, #tpu.memory_space<vmem>>, vector<256x1xf32>
    %cst_92 = arith.constant dense<0.000000e+00> : vector<10x1xf32>
    %70 = tpu.matmul %68, %69, %cst_92 {dimension_numbers = #tpu.dot_dimension_numbers<[1], [0], [0], [1], [0, 0, 1, 1], [], []>} : vector<10x256xf32>, vector<256x1xf32>, vector<10x1xf32> -> vector<10x1xf32>
    %71 = arith.addf %66, %70 : vector<10x1xf32>
    %c7 = arith.constant 7 : index
    %c0_93 = arith.constant 0 : index
    %c0_94 = arith.constant 0 : index
    %72 = vector.load %arg3[%c7, %c0_93, %c0_94] : memref<8x10x256xf32, #tpu.memory_space<vmem>>, vector<1x10x256xf32>
    %73 = vector.shape_cast %72 : vector<1x10x256xf32> to vector<10x256xf32>
    %c0_95 = arith.constant 0 : index
    %c7_96 = arith.constant 7 : index
    %74 = vector.load %arg7[%c0_95, %c7_96] : memref<512x8xf32, #tpu.memory_space<vmem>>, vector<256x1xf32>
    %cst_97 = arith.constant dense<0.000000e+00> : vector<10x1xf32>
    %75 = tpu.matmul %73, %74, %cst_97 {dimension_numbers = #tpu.dot_dimension_numbers<[1], [0], [0], [1], [0, 0, 1, 1], [], []>} : vector<10x256xf32>, vector<256x1xf32>, vector<10x1xf32> -> vector<10x1xf32>
    %76 = arith.addf %71, %75 : vector<10x1xf32>
    %c0_98 = arith.constant 0 : index
    %c0_99 = arith.constant 0 : index
    %77 = vector.load %arg5[%c0_98, %c0_99] : memref<10x2xf32, #tpu.memory_space<vmem>>, vector<10x1xf32>
    tpu.vector_store %arg5[%c0_98, %c0_99], %76 {strides = array<i32>} : memref<10x2xf32, #tpu.memory_space<vmem>>, vector<10x1xf32>,
    %c0_100 = arith.constant 0 : index
    %c0_101 = arith.constant 0 : index
    %78 = vector.load %arg4[%c0_100, %c0_101] : memref<10x1xf32, #tpu.memory_space<vmem>>, vector<10x1xf32>
    %c0_102 = arith.constant 0 : index
    %c0_103 = arith.constant 0 : index
    %c0_104 = arith.constant 0 : index
    %79 = vector.load %arg3[%c0_102, %c0_103, %c0_104] : memref<8x10x256xf32, #tpu.memory_space<vmem>>, vector<1x10x256xf32>
    %80 = vector.shape_cast %79 : vector<1x10x256xf32> to vector<10x256xf32>
    %c256 = arith.constant 256 : index
    %c0_105 = arith.constant 0 : index
    %81 = vector.load %arg7[%c256, %c0_105] : memref<512x8xf32, #tpu.memory_space<vmem>>, vector<256x1xf32>
    %cst_106 = arith.constant dense<0.000000e+00> : vector<10x1xf32>
    %82 = tpu.matmul %80, %81, %cst_106 {dimension_numbers = #tpu.dot_dimension_numbers<[1], [0], [0], [1], [0, 0, 1, 1], [], []>} : vector<10x256xf32>, vector<256x1xf32>, vector<10x1xf32> -> vector<10x1xf32>
    %83 = arith.addf %78, %82 : vector<10x1xf32>
    %c1_107 = arith.constant 1 : index
    %c0_108 = arith.constant 0 : index
    %c0_109 = arith.constant 0 : index
    %84 = vector.load %arg3[%c1_107, %c0_108, %c0_109] : memref<8x10x256xf32, #tpu.memory_space<vmem>>, vector<1x10x256xf32>
    %85 = vector.shape_cast %84 : vector<1x10x256xf32> to vector<10x256xf32>
    %c256_110 = arith.constant 256 : index
    %c1_111 = arith.constant 1 : index
    %86 = vector.load %arg7[%c256_110, %c1_111] : memref<512x8xf32, #tpu.memory_space<vmem>>, vector<256x1xf32>
    %cst_112 = arith.constant dense<0.000000e+00> : vector<10x1xf32>
    %87 = tpu.matmul %85, %86, %cst_112 {dimension_numbers = #tpu.dot_dimension_numbers<[1], [0], [0], [1], [0, 0, 1, 1], [], []>} : vector<10x256xf32>, vector<256x1xf32>, vector<10x1xf32> -> vector<10x1xf32>
    %88 = arith.addf %83, %87 : vector<10x1xf32>
    %c2_113 = arith.constant 2 : index
    %c0_114 = arith.constant 0 : index
    %c0_115 = arith.constant 0 : index
    %89 = vector.load %arg3[%c2_113, %c0_114, %c0_115] : memref<8x10x256xf32, #tpu.memory_space<vmem>>, vector<1x10x256xf32>
    %90 = vector.shape_cast %89 : vector<1x10x256xf32> to vector<10x256xf32>
    %c256_116 = arith.constant 256 : index
    %c2_117 = arith.constant 2 : index
    %91 = vector.load %arg7[%c256_116, %c2_117] : memref<512x8xf32, #tpu.memory_space<vmem>>, vector<256x1xf32>
    %cst_118 = arith.constant dense<0.000000e+00> : vector<10x1xf32>
    %92 = tpu.matmul %90, %91, %cst_118 {dimension_numbers = #tpu.dot_dimension_numbers<[1], [0], [0], [1], [0, 0, 1, 1], [], []>} : vector<10x256xf32>, vector<256x1xf32>, vector<10x1xf32> -> vector<10x1xf32>
    %93 = arith.addf %88, %92 : vector<10x1xf32>
    %c3_119 = arith.constant 3 : index
    %c0_120 = arith.constant 0 : index
    %c0_121 = arith.constant 0 : index
    %94 = vector.load %arg3[%c3_119, %c0_120, %c0_121] : memref<8x10x256xf32, #tpu.memory_space<vmem>>, vector<1x10x256xf32>
    %95 = vector.shape_cast %94 : vector<1x10x256xf32> to vector<10x256xf32>
    %c256_122 = arith.constant 256 : index
    %c3_123 = arith.constant 3 : index
    %96 = vector.load %arg7[%c256_122, %c3_123] : memref<512x8xf32, #tpu.memory_space<vmem>>, vector<256x1xf32>
    %cst_124 = arith.constant dense<0.000000e+00> : vector<10x1xf32>
    %97 = tpu.matmul %95, %96, %cst_124 {dimension_numbers = #tpu.dot_dimension_numbers<[1], [0], [0], [1], [0, 0, 1, 1], [], []>} : vector<10x256xf32>, vector<256x1xf32>, vector<10x1xf32> -> vector<10x1xf32>
    %98 = arith.addf %93, %97 : vector<10x1xf32>
    %c4_125 = arith.constant 4 : index
    %c0_126 = arith.constant 0 : index
    %c0_127 = arith.constant 0 : index
    %99 = vector.load %arg3[%c4_125, %c0_126, %c0_127] : memref<8x10x256xf32, #tpu.memory_space<vmem>>, vector<1x10x256xf32>
    %100 = vector.shape_cast %99 : vector<1x10x256xf32> to vector<10x256xf32>
    %c256_128 = arith.constant 256 : index
    %c4_129 = arith.constant 4 : index
    %101 = vector.load %arg7[%c256_128, %c4_129] : memref<512x8xf32, #tpu.memory_space<vmem>>, vector<256x1xf32>
    %cst_130 = arith.constant dense<0.000000e+00> : vector<10x1xf32>
    %102 = tpu.matmul %100, %101, %cst_130 {dimension_numbers = #tpu.dot_dimension_numbers<[1], [0], [0], [1], [0, 0, 1, 1], [], []>} : vector<10x256xf32>, vector<256x1xf32>, vector<10x1xf32> -> vector<10x1xf32>
    %103 = arith.addf %98, %102 : vector<10x1xf32>
    %c5_131 = arith.constant 5 : index
    %c0_132 = arith.constant 0 : index
    %c0_133 = arith.constant 0 : index
    %104 = vector.load %arg3[%c5_131, %c0_132, %c0_133] : memref<8x10x256xf32, #tpu.memory_space<vmem>>, vector<1x10x256xf32>
    %105 = vector.shape_cast %104 : vector<1x10x256xf32> to vector<10x256xf32>
    %c256_134 = arith.constant 256 : index
    %c5_135 = arith.constant 5 : index
    %106 = vector.load %arg7[%c256_134, %c5_135] : memref<512x8xf32, #tpu.memory_space<vmem>>, vector<256x1xf32>
    %cst_136 = arith.constant dense<0.000000e+00> : vector<10x1xf32>
    %107 = tpu.matmul %105, %106, %cst_136 {dimension_numbers = #tpu.dot_dimension_numbers<[1], [0], [0], [1], [0, 0, 1, 1], [], []>} : vector<10x256xf32>, vector<256x1xf32>, vector<10x1xf32> -> vector<10x1xf32>
    %108 = arith.addf %103, %107 : vector<10x1xf32>
    %c6_137 = arith.constant 6 : index
    %c0_138 = arith.constant 0 : index
    %c0_139 = arith.constant 0 : index
    %109 = vector.load %arg3[%c6_137, %c0_138, %c0_139] : memref<8x10x256xf32, #tpu.memory_space<vmem>>, vector<1x10x256xf32>
    %110 = vector.shape_cast %109 : vector<1x10x256xf32> to vector<10x256xf32>
    %c256_140 = arith.constant 256 : index
    %c6_141 = arith.constant 6 : index
    %111 = vector.load %arg7[%c256_140, %c6_141] : memref<512x8xf32, #tpu.memory_space<vmem>>, vector<256x1xf32>
    %cst_142 = arith.constant dense<0.000000e+00> : vector<10x1xf32>
    %112 = tpu.matmul %110, %111, %cst_142 {dimension_numbers = #tpu.dot_dimension_numbers<[1], [0], [0], [1], [0, 0, 1, 1], [], []>} : vector<10x256xf32>, vector<256x1xf32>, vector<10x1xf32> -> vector<10x1xf32>
    %113 = arith.addf %108, %112 : vector<10x1xf32>
    %c7_143 = arith.constant 7 : index
    %c0_144 = arith.constant 0 : index
    %c0_145 = arith.constant 0 : index
    %114 = vector.load %arg3[%c7_143, %c0_144, %c0_145] : memref<8x10x256xf32, #tpu.memory_space<vmem>>, vector<1x10x256xf32>
    %115 = vector.shape_cast %114 : vector<1x10x256xf32> to vector<10x256xf32>
    %c256_146 = arith.constant 256 : index
    %c7_147 = arith.constant 7 : index
    %116 = vector.load %arg7[%c256_146, %c7_147] : memref<512x8xf32, #tpu.memory_space<vmem>>, vector<256x1xf32>
    %cst_148 = arith.constant dense<0.000000e+00> : vector<10x1xf32>
    %117 = tpu.matmul %115, %116, %cst_148 {dimension_numbers = #tpu.dot_dimension_numbers<[1], [0], [0], [1], [0, 0, 1, 1], [], []>} : vector<10x256xf32>, vector<256x1xf32>, vector<10x1xf32> -> vector<10x1xf32>
    %118 = arith.addf %113, %117 : vector<10x1xf32>
    %c0_149 = arith.constant 0 : index
    %c1_150 = arith.constant 1 : index
    %119 = vector.load %arg5[%c0_149, %c1_150] : memref<10x2xf32, #tpu.memory_space<vmem>>, vector<10x1xf32>
    tpu.vector_store %arg5[%c0_149, %c1_150], %118 {strides = array<i32>} : memref<10x2xf32, #tpu.memory_space<vmem>>, vector<10x1xf32>,
    return
  }
}

</mosaic_0001>

<bundles_post_ra>
// kernel: convnet_forward.1
= control target key start
LH: loop header
LB: loop body
LE: loop exit
PB: predicated region body
PF: predicated region fallthrough
CT: control target
= control target key end

     0   :  { %s7875_s22 = smov 4   ;;  %vm84_vm0 = vcmask 31744   ;;  %vm469_vm1 = vcmask 64544   ;;  %s7876_s20 = smov 8   ;;  %vm854_vm2 = vcmask 97344   ;;  %vm1240_vm3 = vcmask 130144   ;;  %s12697_s0 = inlined_call_operand.vmem [shape: f32[2,18,18,4], index: 0, kind: input, shape index: {}]   ;;  %s12698_s1 = inlined_call_operand.vmem [shape: f32[36,8], index: 1, kind: input, shape index: {}]   ;;  %s12699_s2 = inlined_call_operand.vmem [shape: f32[1,8], index: 2, kind: input, shape index: {}]   ;;  %s12700_s3 = inlined_call_operand.vmem [shape: f32[8,10,256], index: 3, kind: input, shape index: {}]   ;;  %s12701_s4 = inlined_call_operand.vmem [shape: f32[10,1], index: 4, kind: input, shape index: {}]   ;;  %s12702_s5 = inlined_call_operand.vmem [shape: f32[10,2], index: 5, kind: output, shape index: {}]  }
   0x1   :  { %v151_v0 = vld [vmem:[%s12697_s0 + $0x19] sm:$0xff]  ;;  %v149_v1 = vld [vmem:[%s12697_s0 + $0x1] sm:$0xff]  ;;  %v153_v2 = vld [vmem:[%s12697_s0 + $0x31] sm:$0xff]  ;;  %s7877_s18 = smov 12   ;;  %s7878_s8 = smov 16   ;;  %vm1625_vm4 = vcmask 162944  }
   0x2   :  { %281 = vrot.lane.b32.xlu1 %v151_v0, %s7875_s22  ;;  %277 = vrot.lane.b32.xlu0 %v149_v1, %s7875_s22  ;;  %v152_v3 = vld [vmem:[%s12697_s0 + $0x21] sm:$0xff]  ;;  %v150_v4 = vld [vmem:[%s12697_s0 + $0x9] sm:$0xff]  ;;  %s7879_s15 = smov 20   ;;  %vm2010_vm5 = vcmask 195744   ;;  %s7880_s21 = smov 24   ;;  %vm2396_vm6 = vcmask 228544  }
   0x3   :  { %285 = vrot.lane.b32.xlu2 %v153_v2, %s7875_s22  ;;  %v154_v5 = vld [vmem:[%s12697_s0 + $0x39] sm:$0xff]  ;;  %v156_v6 = vld [vmem:[%s12697_s0 + $0x51] sm:$0xff]  ;;  %v155_v7 = vld [vmem:[%s12697_s0 + $0x49] sm:$0xff]  ;;  %vm2781_vm7 = vcmask 261344   ;;  %s7882_s16 = smov 32   ;;  %vm3497_vm8 = vcmask 1043456  }
   0x4   :  { %v157_v8 = vld [vmem:[%s12697_s0 + $0x61] sm:$0xff]  ;;  %v159_v9 = vld [vmem:[%s12697_s0 + $0x79] sm:$0xff]  ;;  %v158_v10 = vld [vmem:[%s12697_s0 + $0x69] sm:$0xff]  ;;  %vm3166_vm9 = vcmask 294144   ;;  %vm3304_vm10 = vcmask 293888   ;;  %vm3774_vm11 = vcmask 64512  }
   0x5   :  { %v160_v11 = vld [vmem:[%s12697_s0 + $0x81] sm:$0xff]  ;;  %v162_v12 = vld [vmem:[%s12697_s0 + $0x99] sm:$0xff]  ;;  %v161_v13 = vld [vmem:[%s12697_s0 + $0x91] sm:$0xff]  ;;  %s7887_s29 = smov 123   ;;  %s7888_s7 = smov 122   ;;  %vm5000_vm12 = vcmask 7168  }
   0x6   :  { %v163_v14 = vld [vmem:[%s12697_s0 + $0xa9] sm:$0xff]  ;;  %v165_v15 = vld [vmem:[%s12697_s0 + $0xc1] sm:$0xff]  ;;  %v164_v16 = vld [vmem:[%s12697_s0 + $0xb1] sm:$0xff]  ;;  %vm5002_vm13 = vcmask 1024   ;;  %vm6168_vm14 = vcmask 9224   ;;  %vm6166_vm15 = vcmask 15368  }
   0x7   :  { %v166_v17 = vld [vmem:[%s12697_s0 + $0xc9] sm:$0xff]  ;;  %v168_v18 = vld [vmem:[%s12697_s0 + $0xe1] sm:$0xff]  ;;  %v167_v19 = vld [vmem:[%s12697_s0 + $0xd9] sm:$0xff] }
   0x8   :  { %v169_v20 = vld [vmem:[%s12697_s0 + $0xf1] sm:$0xff]  ;;  %v171_v21 = vld [vmem:[%s12697_s0 + $0x109] sm:$0xff]  ;;  %v170_v22 = vld [vmem:[%s12697_s0 + $0xf9] sm:$0xff] }
   0x9   :  { %v172_v23 = vld [vmem:[%s12697_s0 + $0x111] sm:$0xff]  ;;  %v174_v24 = vld [vmem:[%s12697_s0 + $0x129] sm:$0xff]  ;;  %v173_v25 = vld [vmem:[%s12697_s0 + $0x121] sm:$0xff] }
   0xa   :  { %283 = vrot.lane.b32.xlu1 %v152_v3, %s7875_s22  ;;  %279 = vrot.lane.b32.xlu0 %v150_v4, %s7875_s22  ;;  %v175_v26 = vld [vmem:[%s12697_s0 + $0x139] sm:$0xff]  ;;  %v177_v27 = vld [vmem:[%s12697_s0 + $0x151] sm:$0xff] }
   0xb   :  { %287 = vrot.lane.b32.xlu2 %v154_v5, %s7875_s22  ;;  %v176_v28 = vld [vmem:[%s12697_s0 + $0x141] sm:$0xff]  ;;  %v178_v29 = vld [vmem:[%s12697_s0 + $0x159] sm:$0xff]  ;;  %v180_v30 = vld [vmem:[%s12697_s0 + $0x171] sm:$0xff] }
   0xc   :  { %v179_v31 = vld [vmem:[%s12697_s0 + $0x169] sm:$0xff]  ;;  %v181_v32 = vld [vmem:[%s12697_s0 + $0x1b1] sm:$0xff]  ;;  %v182_v35 = vld [vmem:[%s12697_s0 + $0x1b9] sm:$0xff] }
   0xd   :  { %v8055_v33 = vld [vmem:[%s12697_s0 + $0x18] sm:$0xff]  ;;  %v183_v34 = vld [vmem:[%s12697_s0 + $0x1c9] sm:$0xff]  ;;  %v8081_v38 = vld [vmem:[%s12697_s0 + $0x20] sm:$0xff] }
   0xe   :  { %87 = vst.msk [vmem:[#allocation2 + $0x10] sm:$0xff] %vm84_vm0, %v8055_v33  ;;  %v184_v36 = vld [vmem:[%s12697_s0 + $0x1d1] sm:$0xff]  ;;  %v20_v39 = vld [vmem:[%s12697_s0] sm:$0xff]  ;;  %v186_v41 = vld [vmem:[%s12697_s0 + $0x1e9] sm:$0xff] }
   0xf   :  { %v8074_v37 = vld [vmem:[%s12697_s0 + $0x30] sm:$0xff]  ;;  %88 = vst.msk [vmem:[#allocation2 + $0x18] sm:$0xff] %vm84_vm0, %v8081_v38  ;;  %v185_v42 = vld [vmem:[%s12697_s0 + $0x1e1] sm:$0xff]  ;;  %v187_v43 = vld [vmem:[%s12697_s0 + $0x1f9] sm:$0xff] }
  0x10   :  { %89 = vst.msk [vmem:[#allocation2 + $0x20] sm:$0xff] %vm84_vm0, %v8074_v37  ;;  %v8105_v44 = vld [vmem:[%s12697_s0 + $0x38] sm:$0xff]  ;;  %v8112_v45 = vld [vmem:[%s12697_s0 + $0x50] sm:$0xff]  ;;  %v21_v46 = vld [vmem:[%s12697_s0 + $0x8] sm:$0xff] }
  0x11   :  { %85 = vst.msk [vmem:[#allocation2] sm:$0xff] %vm84_vm0, %v20_v39  ;;  %v189_v48 = vld [vmem:[%s12697_s0 + $0x211] sm:$0xff]  ;;  %v188_v49 = vld [vmem:[%s12697_s0 + $0x201] sm:$0xff]  ;;  %v190_v50 = vld [vmem:[%s12697_s0 + $0x219] sm:$0xff] }
  0x12   :  { %291 = vrot.lane.b32.xlu1 %v156_v6, %s7875_s22  ;;  %289 = vrot.lane.b32.xlu0 %v155_v7, %s7875_s22  ;;  %90 = vst.msk [vmem:[#allocation2 + $0x28] sm:$0xff] %vm84_vm0, %v8105_v44  ;;  %v8136_v51 = vld [vmem:[%s12697_s0 + $0x60] sm:$0xff]  ;;  %v8143_v52 = vld [vmem:[%s12697_s0 + $0x78] sm:$0xff] }
  0x13   :  { %293 = vrot.lane.b32.xlu2 %v157_v8, %s7875_s22  ;;  %92 = vst.msk [vmem:[#allocation2 + $0x38] sm:$0xff] %vm84_vm0, %v8112_v45  ;;  %v8148_v53 = vld [vmem:[%s12697_s0 + $0x48] sm:$0xff]  ;;  %v192_v55 = vld [vmem:[%s12697_s0 + $0x231] sm:$0xff]  ;;  %v8170_v58 = vld [vmem:[%s12697_s0 + $0x80] sm:$0xff] }
  0x14   :  { %86 = vst.msk [vmem:[#allocation2 + $0x8] sm:$0xff] %vm84_vm0, %v21_v46  ;;  %v191_v56 = vld [vmem:[%s12697_s0 + $0x229] sm:$0xff]  ;;  %v193_v57 = vld [vmem:[%s12697_s0 + $0x241] sm:$0xff]  ;;  %v8177_v59 = vld [vmem:[%s12697_s0 + $0x98] sm:$0xff] }
  0x15   :  { %93 = vst.msk [vmem:[#allocation2 + $0x40] sm:$0xff] %vm84_vm0, %v8136_v51  ;;  %v8186_v62 = vld [vmem:[%s12697_s0 + $0x68] sm:$0xff]  ;;  %v195_v0 = vld [vmem:[%s12697_s0 + $0x259] sm:$0xff]  ;;  %v8222_v7 = vld [vmem:[%s12697_s0 + $0x90] sm:$0xff] }
  0x16   :  { %95 = vst.msk [vmem:[#allocation2 + $0x50] sm:$0xff] %vm84_vm0, %v8143_v52  ;;  %v194_v1 = vld [vmem:[%s12697_s0 + $0x249] sm:$0xff]  ;;  %v196_v2 = vld [vmem:[%s12697_s0 + $0x261] sm:$0xff] }
  0x17   :  { %91 = vst.msk [vmem:[#allocation2 + $0x30] sm:$0xff] %vm84_vm0, %v8148_v53  ;;  %v8206_v3 = vld [vmem:[%s12697_s0 + $0xa8] sm:$0xff]  ;;  %v8213_v4 = vld [vmem:[%s12697_s0 + $0xc0] sm:$0xff] }
  0x18   :  { %96 = vst.msk [vmem:[#allocation2 + $0x58] sm:$0xff] %vm84_vm0, %v8170_v58  ;;  %v207_v39 = vld [vmem:[%s12697_s0 + $0x2e9] sm:$0xff] }
  0x19   :  { %98 = vst.msk [vmem:[#allocation2 + $0x68] sm:$0xff] %vm84_vm0, %v8177_v59 }
  0x1a   :  { %297 = vrot.lane.b32.xlu1 %v159_v9, %s7875_s22  ;;  %295 = vrot.lane.b32.xlu0 %v158_v10, %s7875_s22  ;;  %94 = vst.msk [vmem:[#allocation2 + $0x48] sm:$0xff] %vm84_vm0, %v8186_v62  ;;  %v198_v9 = vld [vmem:[%s12697_s0 + $0x279] sm:$0xff]  ;;  %v197_v10 = vld [vmem:[%s12697_s0 + $0x271] sm:$0xff] }
  0x1b   :  { %299 = vrot.lane.b32.xlu2 %v160_v11, %s7875_s22  ;;  %99 = vst.msk [vmem:[#allocation2 + $0x70] sm:$0xff] %vm84_vm0, %v8206_v3  ;;  %v199_v11 = vld [vmem:[%s12697_s0 + $0x289] sm:$0xff] }
  0x1c   :  { %101 = vst.msk [vmem:[#allocation2 + $0x80] sm:$0xff] %vm84_vm0, %v8213_v4 }
  0x1d   :  { %97 = vst.msk [vmem:[#allocation2 + $0x60] sm:$0xff] %vm84_vm0, %v8222_v7 }
  0x22   :  { %303 = vrot.lane.b32.xlu1 %v162_v12, %s7875_s22  ;;  %301 = vrot.lane.b32.xlu0 %v161_v13, %s7875_s22  ;;  %v8242_v12 = vld [vmem:[%s12697_s0 + $0xc8] sm:$0xff]  ;;  %v8249_v13 = vld [vmem:[%s12697_s0 + $0xe0] sm:$0xff] }
  0x23   :  { %305 = vrot.lane.b32.xlu2 %v163_v14, %s7875_s22  ;;  %102 = vst.msk [vmem:[#allocation2 + $0x88] sm:$0xff] %vm84_vm0, %v8242_v12 }
  0x24   :  { %104 = vst.msk [vmem:[#allocation2 + $0x98] sm:$0xff] %vm84_vm0, %v8249_v13 }
  0x2a   :  { %309 = vrot.lane.b32.xlu1 %v165_v15, %s7875_s22  ;;  %307 = vrot.lane.b32.xlu0 %v164_v16, %s7875_s22  ;;  %v8258_v16 = vld [vmem:[%s12697_s0 + $0xb0] sm:$0xff] }
  0x2b   :  { %311 = vrot.lane.b32.xlu2 %v166_v17, %s7875_s22  ;;  %100 = vst.msk [vmem:[#allocation2 + $0x78] sm:$0xff] %vm84_vm0, %v8258_v16 }
  0x32   :  { %315 = vrot.lane.b32.xlu1 %v168_v18, %s7875_s22  ;;  %313 = vrot.lane.b32.xlu0 %v167_v19, %s7875_s22  ;;  %v201_v18 = vld [vmem:[%s12697_s0 + $0x2a1] sm:$0xff]  ;;  %v200_v19 = vld [vmem:[%s12697_s0 + $0x291] sm:$0xff] }
  0x33   :  { %317 = vrot.lane.b32.xlu2 %v169_v20, %s7875_s22  ;;  %v202_v20 = vld [vmem:[%s12697_s0 + $0x2a9] sm:$0xff] }
  0x3a   :  { %321 = vrot.lane.b32.xlu1 %v171_v21, %s7875_s22  ;;  %319 = vrot.lane.b32.xlu0 %v170_v22, %s7875_s22  ;;  %v8278_v21 = vld [vmem:[%s12697_s0 + $0xf0] sm:$0xff]  ;;  %v8285_v22 = vld [vmem:[%s12697_s0 + $0x108] sm:$0xff] }
  0x3b   :  { %323 = vrot.lane.b32.xlu2 %v172_v23, %s7875_s22  ;;  %105 = vst.msk [vmem:[#allocation2 + $0xa0] sm:$0xff] %vm84_vm0, %v8278_v21 }
  0x3c   :  { %107 = vst.msk [vmem:[#allocation2 + $0xb0] sm:$0xff] %vm84_vm0, %v8285_v22 }
  0x42   :  { %327 = vrot.lane.b32.xlu1 %v174_v24, %s7875_s22  ;;  %325 = vrot.lane.b32.xlu0 %v173_v25, %s7875_s22  ;;  %v8294_v25 = vld [vmem:[%s12697_s0 + $0xd8] sm:$0xff] }
  0x43   :  { %329 = vrot.lane.b32.xlu2 %v175_v26, %s7875_s22  ;;  %103 = vst.msk [vmem:[#allocation2 + $0x90] sm:$0xff] %vm84_vm0, %v8294_v25 }
  0x4a   :  { %333 = vrot.lane.b32.xlu1 %v177_v27, %s7875_s22  ;;  %331 = vrot.lane.b32.xlu0 %v176_v28, %s7875_s22  ;;  %v204_v27 = vld [vmem:[%s12697_s0 + $0x2c1] sm:$0xff]  ;;  %v203_v28 = vld [vmem:[%s12697_s0 + $0x2b9] sm:$0xff] }
  0x4b   :  { %335 = vrot.lane.b32.xlu2 %v178_v29, %s7875_s22  ;;  %v205_v29 = vld [vmem:[%s12697_s0 + $0x2d1] sm:$0xff] }
  0x52   :  { %339 = vrot.lane.b32.xlu1 %v180_v30, %s7875_s22  ;;  %337 = vrot.lane.b32.xlu0 %v179_v31, %s7875_s22  ;;  %v8314_v30 = vld [vmem:[%s12697_s0 + $0x110] sm:$0xff]  ;;  %v8321_v31 = vld [vmem:[%s12697_s0 + $0x128] sm:$0xff] }
  0x53   :  { %341 = vrot.lane.b32.xlu2 %v181_v32, %s7875_s22  ;;  %108 = vst.msk [vmem:[#allocation2 + $0xb8] sm:$0xff] %vm84_vm0, %v8314_v30 }
  0x54   :  { %110 = vst.msk [vmem:[#allocation2 + $0xc8] sm:$0xff] %vm84_vm0, %v8321_v31 }
  0x5a   :  { %345 = vrot.lane.b32.xlu1 %v183_v34, %s7875_s22  ;;  %343 = vrot.lane.b32.xlu0 %v182_v35, %s7875_s22  ;;  %v8330_v35 = vld [vmem:[%s12697_s0 + $0xf8] sm:$0xff] }
  0x5b   :  { %347 = vrot.lane.b32.xlu2 %v184_v36, %s7875_s22  ;;  %106 = vst.msk [vmem:[#allocation2 + $0xa8] sm:$0xff] %vm84_vm0, %v8330_v35 }
  0x5d   :  { %v286_v40 = vpop.permute.xlu2 %285 }
  0x5e   :  { %474 = vst.msk [vmem:[#allocation2 + $0x20] sm:$0xff] %vm469_vm1, %v286_v40  ;;  %v206_v40 = vld [vmem:[%s12697_s0 + $0x2d9] sm:$0xff] }
  0x62   :  { %351 = vrot.lane.b32.xlu1 %v186_v41, %s7875_s22  ;;  %349 = vrot.lane.b32.xlu0 %v185_v42, %s7875_s22  ;;  %v208_v41 = vld [vmem:[%s12697_s0 + $0x2f1] sm:$0xff] }
  0x63   :  { %353 = vrot.lane.b32.xlu2 %v187_v43, %s7875_s22  ;;  %v8350_v42 = vld [vmem:[%s12697_s0 + $0x138] sm:$0xff]  ;;  %v8357_v43 = vld [vmem:[%s12697_s0 + $0x150] sm:$0xff] }
  0x64   :  { %111 = vst.msk [vmem:[#allocation2 + $0xd0] sm:$0xff] %vm84_vm0, %v8350_v42 }
  0x65   :  { %v288_v47 = vpop.permute.xlu2 %287  ;;  %113 = vst.msk [vmem:[#allocation2 + $0xe0] sm:$0xff] %vm84_vm0, %v8357_v43 }
  0x66   :  { %475 = vst.msk [vmem:[#allocation2 + $0x28] sm:$0xff] %vm469_vm1, %v288_v47 }
  0x6a   :  { %357 = vrot.lane.b32.xlu1 %v189_v48, %s7875_s22  ;;  %355 = vrot.lane.b32.xlu0 %v188_v49, %s7875_s22  ;;  %v8366_v48 = vld [vmem:[%s12697_s0 + $0x120] sm:$0xff] }
  0x6b   :  { %359 = vrot.lane.b32.xlu2 %v190_v50, %s7875_s22  ;;  %v210_v50 = vld [vmem:[%s12697_s0 + $0x309] sm:$0xff]  ;;  %109 = vst.msk [vmem:[#allocation2 + $0xc0] sm:$0xff] %vm84_vm0, %v8366_v48 }
  0x6d   :  { %v294_v54 = vpop.permute.xlu2 %293 }
  0x6e   :  { %478 = vst.msk [vmem:[#allocation2 + $0x40] sm:$0xff] %vm469_vm1, %v294_v54  ;;  %v209_v54 = vld [vmem:[%s12697_s0 + $0x301] sm:$0xff] }
  0x72   :  { %363 = vrot.lane.b32.xlu1 %v192_v55, %s7875_s22  ;;  %361 = vrot.lane.b32.xlu0 %v191_v56, %s7875_s22  ;;  %v211_v55 = vld [vmem:[%s12697_s0 + $0x319] sm:$0xff] }
  0x73   :  { %365 = vrot.lane.b32.xlu2 %v193_v57, %s7875_s22  ;;  %v8386_v56 = vld [vmem:[%s12697_s0 + $0x158] sm:$0xff]  ;;  %v8393_v57 = vld [vmem:[%s12697_s0 + $0x170] sm:$0xff] }
  0x74   :  { %v282_v60 = vpop.permute.xlu1 %281  ;;  %v278_v61 = vpop.permute.xlu0 %277  ;;  %114 = vst.msk [vmem:[#allocation2 + $0xe8] sm:$0xff] %vm84_vm0, %v8386_v56 }
  0x75   :  { %472 = vst.msk [vmem:[#allocation2 + $0x10] sm:$0xff] %vm469_vm1, %v282_v60  ;;  %v300_v63 = vpop.permute.xlu2 %299 }
  0x76   :  { %470 = vst.msk [vmem:[#allocation2] sm:$0xff] %vm469_vm1, %v278_v61 }
  0x77   :  { %481 = vst.msk [vmem:[#allocation2 + $0x58] sm:$0xff] %vm469_vm1, %v300_v63  ;;  %v8402_v63 = vld [vmem:[%s12697_s0 + $0x140] sm:$0xff] }
  0x78   :  { %116 = vst.msk [vmem:[#allocation2 + $0xf8] sm:$0xff] %vm84_vm0, %v8393_v57 }
  0x79   :  { %112 = vst.msk [vmem:[#allocation2 + $0xd8] sm:$0xff] %vm84_vm0, %v8402_v63 }
  0x7a   :  { %369 = vrot.lane.b32.xlu1 %v195_v0, %s7875_s22  ;;  %367 = vrot.lane.b32.xlu0 %v194_v1, %s7875_s22  ;;  %v534_v1 = vld [vmem:[%s12697_s0 + $0x2] sm:$0xff] }
  0x7b   :  { %371 = vrot.lane.b32.xlu2 %v196_v2, %s7875_s22  ;;  %v212_v2 = vld [vmem:[%s12697_s0 + $0x321] sm:$0xff] }
  0x7c   :  { %v284_v5 = vpop.permute.xlu1 %283  ;;  %v280_v6 = vpop.permute.xlu0 %279 }
  0x7d   :  { %473 = vst.msk [vmem:[#allocation2 + $0x18] sm:$0xff] %vm469_vm1, %v284_v5  ;;  %v306_v8 = vpop.permute.xlu2 %305  ;;  %v535_v5 = vld [vmem:[%s12697_s0 + $0xa] sm:$0xff] }
  0x7e   :  { %471 = vst.msk [vmem:[#allocation2 + $0x8] sm:$0xff] %vm469_vm1, %v280_v6  ;;  %v52_v6 = vld [vmem:[%s12697_s0 + $0x1b0] sm:$0xff] }
  0x7f   :  { %484 = vst.msk [vmem:[#allocation2 + $0x70] sm:$0xff] %vm469_vm1, %v306_v8  ;;  %v8426_v8 = vld [vmem:[%s12697_s0 + $0x1c8] sm:$0xff] }
  0x80   :  { %117 = vst.msk [vmem:[#allocation2 + $0x100] sm:$0xff] %vm84_vm0, %v52_v6  ;;  %v547_v6 = vld [vmem:[%s12697_s0 + $0x9a] sm:$0xff] }
  0x81   :  { %119 = vst.msk [vmem:[#allocation2 + $0x110] sm:$0xff] %vm84_vm0, %v8426_v8 }
  0x82   :  { %375 = vrot.lane.b32.xlu1 %v198_v9, %s7875_s22  ;;  %373 = vrot.lane.b32.xlu0 %v197_v10, %s7875_s22 }
  0x83   :  { %377 = vrot.lane.b32.xlu2 %v199_v11, %s7875_s22  ;;  %v8435_v11 = vld [vmem:[%s12697_s0 + $0x168] sm:$0xff] }
  0x84   :  { %v292_v14 = vpop.permute.xlu1 %291  ;;  %v290_v15 = vpop.permute.xlu0 %289  ;;  %115 = vst.msk [vmem:[#allocation2 + $0xf0] sm:$0xff] %vm84_vm0, %v8435_v11 }
  0x85   :  { %477 = vst.msk [vmem:[#allocation2 + $0x38] sm:$0xff] %vm469_vm1, %v292_v14  ;;  %v312_v17 = vpop.permute.xlu2 %311 }
  0x86   :  { %476 = vst.msk [vmem:[#allocation2 + $0x30] sm:$0xff] %vm469_vm1, %v290_v15  ;;  %v537_v15 = vld [vmem:[%s12697_s0 + $0x22] sm:$0xff] }
  0x87   :  { %487 = vst.msk [vmem:[#allocation2 + $0x88] sm:$0xff] %vm469_vm1, %v312_v17  ;;  %v536_v17 = vld [vmem:[%s12697_s0 + $0x1a] sm:$0xff] }
  0x8a   :  { %381 = vrot.lane.b32.xlu1 %v201_v18, %s7875_s22  ;;  %379 = vrot.lane.b32.xlu0 %v200_v19, %s7875_s22  ;;  %v538_v18 = vld [vmem:[%s12697_s0 + $0x32] sm:$0xff] }
  0x8b   :  { %383 = vrot.lane.b32.xlu2 %v202_v20, %s7875_s22  ;;  %v8455_v19 = vld [vmem:[%s12697_s0 + $0x1d0] sm:$0xff]  ;;  %v8462_v20 = vld [vmem:[%s12697_s0 + $0x1e8] sm:$0xff] }
  0x8c   :  { %v298_v23 = vpop.permute.xlu1 %297  ;;  %v296_v24 = vpop.permute.xlu0 %295  ;;  %120 = vst.msk [vmem:[#allocation2 + $0x118] sm:$0xff] %vm84_vm0, %v8455_v19 }
  0x8d   :  { %480 = vst.msk [vmem:[#allocation2 + $0x50] sm:$0xff] %vm469_vm1, %v298_v23  ;;  %v318_v26 = vpop.permute.xlu2 %317 }
  0x8e   :  { %479 = vst.msk [vmem:[#allocation2 + $0x48] sm:$0xff] %vm469_vm1, %v296_v24 }
  0x8f   :  { %490 = vst.msk [vmem:[#allocation2 + $0xa0] sm:$0xff] %vm469_vm1, %v318_v26  ;;  %v53_v26 = vld [vmem:[%s12697_s0 + $0x1b8] sm:$0xff] }
  0x90   :  { %122 = vst.msk [vmem:[#allocation2 + $0x128] sm:$0xff] %vm84_vm0, %v8462_v20 }
  0x91   :  { %118 = vst.msk [vmem:[#allocation2 + $0x108] sm:$0xff] %vm84_vm0, %v53_v26  ;;  %v550_v26 = vld [vmem:[%s12697_s0 + $0xc2] sm:$0xff] }
  0x92   :  { %387 = vrot.lane.b32.xlu1 %v204_v27, %s7875_s22  ;;  %385 = vrot.lane.b32.xlu0 %v203_v28, %s7875_s22  ;;  %v540_v28 = vld [vmem:[%s12697_s0 + $0x4a] sm:$0xff] }
  0x93   :  { %389 = vrot.lane.b32.xlu2 %v205_v29, %s7875_s22  ;;  %v539_v29 = vld [vmem:[%s12697_s0 + $0x3a] sm:$0xff] }
  0x94   :  { %v304_v32 = vpop.permute.xlu1 %303  ;;  %v302_v34 = vpop.permute.xlu0 %301 }
  0x95   :  { %483 = vst.msk [vmem:[#allocation2 + $0x68] sm:$0xff] %vm469_vm1, %v304_v32  ;;  %v324_v36 = vpop.permute.xlu2 %323  ;;  %v541_v32 = vld [vmem:[%s12697_s0 + $0x52] sm:$0xff] }
  0x96   :  { %482 = vst.msk [vmem:[#allocation2 + $0x60] sm:$0xff] %vm469_vm1, %v302_v34  ;;  %v8488_v34 = vld [vmem:[%s12697_s0 + $0x1f8] sm:$0xff] }
  0x97   :  { %493 = vst.msk [vmem:[#allocation2 + $0xb8] sm:$0xff] %vm469_vm1, %v324_v36  ;;  %v8495_v36 = vld [vmem:[%s12697_s0 + $0x210] sm:$0xff] }
  0x98   :  { %123 = vst.msk [vmem:[#allocation2 + $0x130] sm:$0xff] %vm84_vm0, %v8488_v34 }
  0x99   :  { %125 = vst.msk [vmem:[#allocation2 + $0x140] sm:$0xff] %vm84_vm0, %v8495_v36 }
  0x9a   :  { %393 = vrot.lane.b32.xlu1 %v207_v39, %s7875_s22  ;;  %391 = vrot.lane.b32.xlu0 %v206_v40, %s7875_s22 }
  0x9b   :  { %395 = vrot.lane.b32.xlu2 %v208_v41, %s7875_s22  ;;  %v8504_v41 = vld [vmem:[%s12697_s0 + $0x1e0] sm:$0xff] }
  0x9c   :  { %v310_v46 = vpop.permute.xlu1 %309  ;;  %v308_v47 = vpop.permute.xlu0 %307  ;;  %121 = vst.msk [vmem:[#allocation2 + $0x120] sm:$0xff] %vm84_vm0, %v8504_v41 }
  0x9d   :  { %486 = vst.msk [vmem:[#allocation2 + $0x80] sm:$0xff] %vm469_vm1, %v310_v46  ;;  %v330_v49 = vpop.permute.xlu2 %329 }
  0x9e   :  { %485 = vst.msk [vmem:[#allocation2 + $0x78] sm:$0xff] %vm469_vm1, %v308_v47  ;;  %v543_v47 = vld [vmem:[%s12697_s0 + $0x6a] sm:$0xff] }
  0x9f   :  { %496 = vst.msk [vmem:[#allocation2 + $0xd0] sm:$0xff] %vm469_vm1, %v330_v49  ;;  %v542_v49 = vld [vmem:[%s12697_s0 + $0x62] sm:$0xff] }
  0xa2   :  { %399 = vrot.lane.b32.xlu1 %v210_v50, %s7875_s22  ;;  %397 = vrot.lane.b32.xlu0 %v209_v54, %s7875_s22  ;;  %v544_v50 = vld [vmem:[%s12697_s0 + $0x7a] sm:$0xff] }
  0xa3   :  { %401 = vrot.lane.b32.xlu2 %v211_v55, %s7875_s22  ;;  %v8524_v54 = vld [vmem:[%s12697_s0 + $0x218] sm:$0xff]  ;;  %v8531_v55 = vld [vmem:[%s12697_s0 + $0x230] sm:$0xff] }
  0xa4   :  { %v316_v60 = vpop.permute.xlu1 %315  ;;  %v314_v61 = vpop.permute.xlu0 %313  ;;  %126 = vst.msk [vmem:[#allocation2 + $0x148] sm:$0xff] %vm84_vm0, %v8524_v54 }
  0xa5   :  { %489 = vst.msk [vmem:[#allocation2 + $0x98] sm:$0xff] %vm469_vm1, %v316_v60  ;;  %v336_v0 = vpop.permute.xlu2 %335 }
  0xa6   :  { %488 = vst.msk [vmem:[#allocation2 + $0x90] sm:$0xff] %vm469_vm1, %v314_v61 }
  0xa7   :  { %499 = vst.msk [vmem:[#allocation2 + $0xe8] sm:$0xff] %vm469_vm1, %v336_v0  ;;  %v8540_v0 = vld [vmem:[%s12697_s0 + $0x200] sm:$0xff] }
  0xa8   :  { %128 = vst.msk [vmem:[#allocation2 + $0x158] sm:$0xff] %vm84_vm0, %v8531_v55 }
  0xa9   :  { %124 = vst.msk [vmem:[#allocation2 + $0x138] sm:$0xff] %vm84_vm0, %v8540_v0 }
  0xaa   :  { %662 = vrot.lane.b32.xlu1 %v534_v1, %s7876_s20  ;;  %403 = vrot.lane.b32.xlu0 %v212_v2, %s7875_s22  ;;  %v546_v2 = vld [vmem:[%s12697_s0 + $0x92] sm:$0xff] }
  0xab   :  { %664 = vrot.lane.b32.xlu2 %v535_v5, %s7876_s20  ;;  %v545_v5 = vld [vmem:[%s12697_s0 + $0x82] sm:$0xff] }
  0xac   :  { %v322_v9 = vpop.permute.xlu1 %321  ;;  %v320_v10 = vpop.permute.xlu0 %319 }
  0xad   :  { %492 = vst.msk [vmem:[#allocation2 + $0xb0] sm:$0xff] %vm469_vm1, %v322_v9  ;;  %v342_v14 = vpop.permute.xlu2 %341  ;;  %v8560_v9 = vld [vmem:[%s12697_s0 + $0x240] sm:$0xff] }
  0xae   :  { %491 = vst.msk [vmem:[#allocation2 + $0xa8] sm:$0xff] %vm469_vm1, %v320_v10  ;;  %v8567_v10 = vld [vmem:[%s12697_s0 + $0x258] sm:$0xff] }
  0xaf   :  { %502 = vst.msk [vmem:[#allocation2 + $0x100] sm:$0xff] %vm469_vm1, %v342_v14 }
  0xb0   :  { %129 = vst.msk [vmem:[#allocation2 + $0x160] sm:$0xff] %vm84_vm0, %v8560_v9 }
  0xb1   :  { %131 = vst.msk [vmem:[#allocation2 + $0x170] sm:$0xff] %vm84_vm0, %v8567_v10 }
  0xb2   :  { %668 = vrot.lane.b32.xlu1 %v537_v15, %s7876_s20  ;;  %666 = vrot.lane.b32.xlu0 %v536_v17, %s7876_s20  ;;  %v8576_v17 = vld [vmem:[%s12697_s0 + $0x228] sm:$0xff] }
  0xb3   :  { %670 = vrot.lane.b32.xlu2 %v538_v18, %s7876_s20  ;;  %127 = vst.msk [vmem:[#allocation2 + $0x150] sm:$0xff] %vm84_vm0, %v8576_v17 }
  0xb4   :  { %v328_v23 = vpop.permute.xlu1 %327  ;;  %v326_v24 = vpop.permute.xlu0 %325 }
  0xb5   :  { %495 = vst.msk [vmem:[#allocation2 + $0xc8] sm:$0xff] %vm469_vm1, %v328_v23  ;;  %v348_v27 = vpop.permute.xlu2 %347  ;;  %v549_v23 = vld [vmem:[%s12697_s0 + $0xb2] sm:$0xff] }
  0xb6   :  { %494 = vst.msk [vmem:[#allocation2 + $0xc0] sm:$0xff] %vm469_vm1, %v326_v24  ;;  %v548_v24 = vld [vmem:[%s12697_s0 + $0xaa] sm:$0xff] }
  0xb7   :  { %505 = vst.msk [vmem:[#allocation2 + $0x118] sm:$0xff] %vm469_vm1, %v348_v27  ;;  %v8596_v27 = vld [vmem:[%s12697_s0 + $0x260] sm:$0xff] }
  0xb8   :  { %132 = vst.msk [vmem:[#allocation2 + $0x178] sm:$0xff] %vm84_vm0, %v8596_v27 }
  0xba   :  { %674 = vrot.lane.b32.xlu1 %v540_v28, %s7876_s20  ;;  %672 = vrot.lane.b32.xlu0 %v539_v29, %s7876_s20  ;;  %v8603_v28 = vld [vmem:[%s12697_s0 + $0x278] sm:$0xff] }
  0xbb   :  { %676 = vrot.lane.b32.xlu2 %v541_v32, %s7876_s20  ;;  %134 = vst.msk [vmem:[#allocation2 + $0x188] sm:$0xff] %vm84_vm0, %v8603_v28 }
  0xbc   :  { %v334_v39 = vpop.permute.xlu1 %333  ;;  %v332_v40 = vpop.permute.xlu0 %331 }
  0xbd   :  { %498 = vst.msk [vmem:[#allocation2 + $0xe0] sm:$0xff] %vm469_vm1, %v334_v39  ;;  %v354_v46 = vpop.permute.xlu2 %353  ;;  %v8612_v39 = vld [vmem:[%s12697_s0 + $0x248] sm:$0xff] }
  0xbe   :  { %497 = vst.msk [vmem:[#allocation2 + $0xd8] sm:$0xff] %vm469_vm1, %v332_v40 }
  0xbf   :  { %508 = vst.msk [vmem:[#allocation2 + $0x130] sm:$0xff] %vm469_vm1, %v354_v46  ;;  %v552_v46 = vld [vmem:[%s12697_s0 + $0xda] sm:$0xff] }
  0xc0   :  { %130 = vst.msk [vmem:[#allocation2 + $0x168] sm:$0xff] %vm84_vm0, %v8612_v39 }
  0xc2   :  { %680 = vrot.lane.b32.xlu1 %v543_v47, %s7876_s20  ;;  %678 = vrot.lane.b32.xlu0 %v542_v49, %s7876_s20  ;;  %v551_v47 = vld [vmem:[%s12697_s0 + $0xca] sm:$0xff]  ;;  %v553_v49 = vld [vmem:[%s12697_s0 + $0xe2] sm:$0xff] }
  0xc3   :  { %682 = vrot.lane.b32.xlu2 %v544_v50, %s7876_s20  ;;  %v8632_v50 = vld [vmem:[%s12697_s0 + $0x288] sm:$0xff] }
  0xc4   :  { %v340_v60 = vpop.permute.xlu1 %339  ;;  %v338_v61 = vpop.permute.xlu0 %337  ;;  %135 = vst.msk [vmem:[#allocation2 + $0x190] sm:$0xff] %vm84_vm0, %v8632_v50 }
  0xc5   :  { %501 = vst.msk [vmem:[#allocation2 + $0xf8] sm:$0xff] %vm469_vm1, %v340_v60  ;;  %v360_v1 = vpop.permute.xlu2 %359  ;;  %v8639_v60 = vld [vmem:[%s12697_s0 + $0x2a0] sm:$0xff] }
  0xc6   :  { %500 = vst.msk [vmem:[#allocation2 + $0xf0] sm:$0xff] %vm469_vm1, %v338_v61 }
  0xc7   :  { %511 = vst.msk [vmem:[#allocation2 + $0x148] sm:$0xff] %vm469_vm1, %v360_v1 }
  0xc8   :  { %137 = vst.msk [vmem:[#allocation2 + $0x1a0] sm:$0xff] %vm84_vm0, %v8639_v60 }
  0xca   :  { %686 = vrot.lane.b32.xlu1 %v546_v2, %s7876_s20  ;;  %684 = vrot.lane.b32.xlu0 %v545_v5, %s7876_s20  ;;  %v8648_v2 = vld [vmem:[%s12697_s0 + $0x270] sm:$0xff] }
  0xcb   :  { %688 = vrot.lane.b32.xlu2 %v547_v6, %s7876_s20  ;;  %v555_v6 = vld [vmem:[%s12697_s0 + $0xfa] sm:$0xff]  ;;  %133 = vst.msk [vmem:[#allocation2 + $0x180] sm:$0xff] %vm84_vm0, %v8648_v2 }
  0xcc   :  { %v346_v14 = vpop.permute.xlu1 %345  ;;  %v344_v15 = vpop.permute.xlu0 %343 }
  0xcd   :  { %504 = vst.msk [vmem:[#allocation2 + $0x110] sm:$0xff] %vm469_vm1, %v346_v14  ;;  %v366_v18 = vpop.permute.xlu2 %365  ;;  %v554_v14 = vld [vmem:[%s12697_s0 + $0xf2] sm:$0xff] }
  0xce   :  { %503 = vst.msk [vmem:[#allocation2 + $0x108] sm:$0xff] %vm469_vm1, %v344_v15  ;;  %v556_v15 = vld [vmem:[%s12697_s0 + $0x10a] sm:$0xff] }
  0xcf   :  { %514 = vst.msk [vmem:[#allocation2 + $0x160] sm:$0xff] %vm469_vm1, %v366_v18  ;;  %v8668_v18 = vld [vmem:[%s12697_s0 + $0x2a8] sm:$0xff] }
  0xd0   :  { %138 = vst.msk [vmem:[#allocation2 + $0x1a8] sm:$0xff] %vm84_vm0, %v8668_v18 }
  0xd2   :  { %692 = vrot.lane.b32.xlu1 %v549_v23, %s7876_s20  ;;  %690 = vrot.lane.b32.xlu0 %v548_v24, %s7876_s20  ;;  %v8675_v23 = vld [vmem:[%s12697_s0 + $0x2c0] sm:$0xff] }
  0xd3   :  { %694 = vrot.lane.b32.xlu2 %v550_v26, %s7876_s20  ;;  %140 = vst.msk [vmem:[#allocation2 + $0x1b8] sm:$0xff] %vm84_vm0, %v8675_v23 }
  0xd4   :  { %v352_v29 = vpop.permute.xlu1 %351  ;;  %v350_v32 = vpop.permute.xlu0 %349 }
  0xd5   :  { %507 = vst.msk [vmem:[#allocation2 + $0x128] sm:$0xff] %vm469_vm1, %v352_v29  ;;  %v372_v40 = vpop.permute.xlu2 %371  ;;  %v8684_v29 = vld [vmem:[%s12697_s0 + $0x290] sm:$0xff] }
  0xd6   :  { %506 = vst.msk [vmem:[#allocation2 + $0x120] sm:$0xff] %vm469_vm1, %v350_v32 }
  0xd7   :  { %517 = vst.msk [vmem:[#allocation2 + $0x178] sm:$0xff] %vm469_vm1, %v372_v40  ;;  %v558_v40 = vld [vmem:[%s12697_s0 + $0x122] sm:$0xff] }
  0xd8   :  { %136 = vst.msk [vmem:[#allocation2 + $0x198] sm:$0xff] %vm84_vm0, %v8684_v29 }
  0xda   :  { %698 = vrot.lane.b32.xlu1 %v552_v46, %s7876_s20  ;;  %696 = vrot.lane.b32.xlu0 %v551_v47, %s7876_s20  ;;  %v557_v46 = vld [vmem:[%s12697_s0 + $0x112] sm:$0xff]  ;;  %v559_v47 = vld [vmem:[%s12697_s0 + $0x12a] sm:$0xff] }
  0xdb   :  { %700 = vrot.lane.b32.xlu2 %v553_v49, %s7876_s20  ;;  %v8704_v49 = vld [vmem:[%s12697_s0 + $0x2d0] sm:$0xff] }
  0xdc   :  { %v358_v61 = vpop.permute.xlu1 %357  ;;  %v356_v1 = vpop.permute.xlu0 %355  ;;  %141 = vst.msk [vmem:[#allocation2 + $0x1c0] sm:$0xff] %vm84_vm0, %v8704_v49 }
  0xdd   :  { %510 = vst.msk [vmem:[#allocation2 + $0x140] sm:$0xff] %vm469_vm1, %v358_v61  ;;  %v378_v5 = vpop.permute.xlu2 %377  ;;  %v8711_v61 = vld [vmem:[%s12697_s0 + $0x2e8] sm:$0xff] }
  0xde   :  { %509 = vst.msk [vmem:[#allocation2 + $0x138] sm:$0xff] %vm469_vm1, %v356_v1 }
  0xdf   :  { %520 = vst.msk [vmem:[#allocation2 + $0x190] sm:$0xff] %vm469_vm1, %v378_v5 }
  0xe0   :  { %143 = vst.msk [vmem:[#allocation2 + $0x1d0] sm:$0xff] %vm84_vm0, %v8711_v61 }
  0xe2   :  { %704 = vrot.lane.b32.xlu1 %v555_v6, %s7876_s20  ;;  %702 = vrot.lane.b32.xlu0 %v554_v14, %s7876_s20  ;;  %v8720_v6 = vld [vmem:[%s12697_s0 + $0x2b8] sm:$0xff] }
  0xe3   :  { %706 = vrot.lane.b32.xlu2 %v556_v15, %s7876_s20  ;;  %v561_v15 = vld [vmem:[%s12697_s0 + $0x142] sm:$0xff]  ;;  %139 = vst.msk [vmem:[#allocation2 + $0x1b0] sm:$0xff] %vm84_vm0, %v8720_v6 }
  0xe4   :  { %v364_v24 = vpop.permute.xlu1 %363  ;;  %v362_v26 = vpop.permute.xlu0 %361 }
  0xe5   :  { %513 = vst.msk [vmem:[#allocation2 + $0x158] sm:$0xff] %vm469_vm1, %v364_v24  ;;  %v384_v32 = vpop.permute.xlu2 %383  ;;  %v560_v24 = vld [vmem:[%s12697_s0 + $0x13a] sm:$0xff] }
  0xe6   :  { %512 = vst.msk [vmem:[#allocation2 + $0x150] sm:$0xff] %vm469_vm1, %v362_v26  ;;  %v562_v26 = vld [vmem:[%s12697_s0 + $0x152] sm:$0xff] }
  0xe7   :  { %523 = vst.msk [vmem:[#allocation2 + $0x1a8] sm:$0xff] %vm469_vm1, %v384_v32  ;;  %v8740_v32 = vld [vmem:[%s12697_s0 + $0x2f0] sm:$0xff] }
  0xe8   :  { %144 = vst.msk [vmem:[#allocation2 + $0x1d8] sm:$0xff] %vm84_vm0, %v8740_v32 }
  0xea   :  { %710 = vrot.lane.b32.xlu1 %v558_v40, %s7876_s20  ;;  %708 = vrot.lane.b32.xlu0 %v557_v46, %s7876_s20  ;;  %v8747_v40 = vld [vmem:[%s12697_s0 + $0x308] sm:$0xff] }
  0xeb   :  { %712 = vrot.lane.b32.xlu2 %v559_v47, %s7876_s20  ;;  %12713 = vst [vmem:[#allocation4_spill] sm:$0xff] %v8747_v40 }
  0xec   :  { %v370_v1 = vpop.permute.xlu1 %369  ;;  %v368_v5 = vpop.permute.xlu0 %367  ;;  %146 = vst.msk [vmem:[#allocation2 + $0x1e8] sm:$0xff] %vm84_vm0, %v8747_v40  ;;  %v572_v40 = vld [vmem:[%s12697_s0 + $0x1fa] sm:$0xff] }
  0xed   :  { %516 = vst.msk [vmem:[#allocation2 + $0x170] sm:$0xff] %vm469_vm1, %v370_v1  ;;  %v390_v14 = vpop.permute.xlu2 %389  ;;  %v8756_v1 = vld [vmem:[%s12697_s0 + $0x2d8] sm:$0xff] }
  0xee   :  { %515 = vst.msk [vmem:[#allocation2 + $0x168] sm:$0xff] %vm469_vm1, %v368_v5 }
  0xef   :  { %526 = vst.msk [vmem:[#allocation2 + $0x1c0] sm:$0xff] %vm469_vm1, %v390_v14  ;;  %v564_v14 = vld [vmem:[%s12697_s0 + $0x16a] sm:$0xff] }
  0xf0   :  { %142 = vst.msk [vmem:[#allocation2 + $0x1c8] sm:$0xff] %vm84_vm0, %v8756_v1 }
  0xf2   :  { %716 = vrot.lane.b32.xlu1 %v561_v15, %s7876_s20  ;;  %714 = vrot.lane.b32.xlu0 %v560_v24, %s7876_s20  ;;  %v563_v15 = vld [vmem:[%s12697_s0 + $0x15a] sm:$0xff]  ;;  %v565_v24 = vld [vmem:[%s12697_s0 + $0x172] sm:$0xff] }
  0xf3   :  { %718 = vrot.lane.b32.xlu2 %v562_v26, %s7876_s20  ;;  %v8776_v26 = vld [vmem:[%s12697_s0 + $0x318] sm:$0xff] }
  0xf4   :  { %v376_v46 = vpop.permute.xlu1 %375  ;;  %v374_v47 = vpop.permute.xlu0 %373  ;;  %12714 = vst [vmem:[#allocation5_spill] sm:$0xff] %v8776_v26 }
  0xf5   :  { %519 = vst.msk [vmem:[#allocation2 + $0x188] sm:$0xff] %vm469_vm1, %v376_v46  ;;  %v396_v5 = vpop.permute.xlu2 %395  ;;  %v8783_v46 = vld [vmem:[%s12697_s0 + $0x300] sm:$0xff] }
  0xf6   :  { %518 = vst.msk [vmem:[#allocation2 + $0x180] sm:$0xff] %vm469_vm1, %v374_v47 }
  0xf7   :  { %529 = vst.msk [vmem:[#allocation2 + $0x1d8] sm:$0xff] %vm469_vm1, %v396_v5 }
  0xf8   :  { %147 = vst.msk [vmem:[#allocation2 + $0x1f0] sm:$0xff] %vm84_vm0, %v8776_v26  ;;  %v566_v26 = vld [vmem:[%s12697_s0 + $0x1b2] sm:$0xff] }
  0xf9   :  { %12715 = vst [vmem:[#allocation6_spill] sm:$0xff] %v8783_v46 }
  0xfa   :  { %722 = vrot.lane.b32.xlu1 %v564_v14, %s7876_s20  ;;  %720 = vrot.lane.b32.xlu0 %v563_v15, %s7876_s20  ;;  %145 = vst.msk [vmem:[#allocation2 + $0x1e0] sm:$0xff] %vm84_vm0, %v8783_v46  ;;  %v567_v15 = vld [vmem:[%s12697_s0 + $0x1ba] sm:$0xff] }
  0xfb   :  { %724 = vrot.lane.b32.xlu2 %v565_v24, %s7876_s20  ;;  %v568_v24 = vld [vmem:[%s12697_s0 + $0x1ca] sm:$0xff] }
  0xfc   :  { %v382_v47 = vpop.permute.xlu1 %381  ;;  %v380_v5 = vpop.permute.xlu0 %379 }
  0xfd   :  { %522 = vst.msk [vmem:[#allocation2 + $0x1a0] sm:$0xff] %vm469_vm1, %v382_v47  ;;  %v402_v14 = vpop.permute.xlu2 %401  ;;  %v8805_v47 = vld [vmem:[%s12697_s0 + $0x320] sm:$0xff] }
  0xfe   :  { %521 = vst.msk [vmem:[#allocation2 + $0x198] sm:$0xff] %vm469_vm1, %v380_v5 }
  0xff   :  { %532 = vst.msk [vmem:[#allocation2 + $0x1f0] sm:$0xff] %vm469_vm1, %v402_v14 }
 0x100   :  { %12716 = vst [vmem:[#allocation7_spill] sm:$0xff] %v8805_v47 }
 0x101   :  { %148 = vst.msk [vmem:[#allocation2 + $0x1f8] sm:$0xff] %vm84_vm0, %v8805_v47 }
 0x102   :  { %728 = vrot.lane.b32.xlu1 %v567_v15, %s7876_s20  ;;  %726 = vrot.lane.b32.xlu0 %v566_v26, %s7876_s20  ;;  %v570_v26 = vld [vmem:[%s12697_s0 + $0x1e2] sm:$0xff]  ;;  %v569_v15 = vld [vmem:[%s12697_s0 + $0x1d2] sm:$0xff] }
 0x103   :  { %730 = vrot.lane.b32.xlu2 %v568_v24, %s7876_s20  ;;  %v571_v24 = vld [vmem:[%s12697_s0 + $0x1ea] sm:$0xff] }
 0x104   :  { %v388_v5 = vpop.permute.xlu1 %387  ;;  %v386_v46 = vpop.permute.xlu0 %385 }
 0x105   :  { %525 = vst.msk [vmem:[#allocation2 + $0x1b8] sm:$0xff] %vm469_vm1, %v388_v5  ;;  %v665_v14 = vpop.permute.xlu2 %664 }
 0x106   :  { %524 = vst.msk [vmem:[#allocation2 + $0x1b0] sm:$0xff] %vm469_vm1, %v386_v46 }
 0x107   :  { %856 = vst.msk [vmem:[#allocation2 + $0x8] sm:$0xff] %vm854_vm2, %v665_v14  ;;  %v573_v14 = vld [vmem:[%s12697_s0 + $0x202] sm:$0xff] }
 0x10a   :  { %734 = vrot.lane.b32.xlu1 %v570_v26, %s7876_s20  ;;  %732 = vrot.lane.b32.xlu0 %v569_v15, %s7876_s20  ;;  %v574_v26 = vld [vmem:[%s12697_s0 + $0x212] sm:$0xff] }
 0x10b   :  { %736 = vrot.lane.b32.xlu2 %v571_v24, %s7876_s20 }
 0x10c   :  { %v394_v46 = vpop.permute.xlu1 %393  ;;  %v392_v5 = vpop.permute.xlu0 %391 }
 0x10d   :  { %528 = vst.msk [vmem:[#allocation2 + $0x1d0] sm:$0xff] %vm469_vm1, %v394_v46  ;;  %v671_v47 = vpop.permute.xlu2 %670 }
 0x10e   :  { %527 = vst.msk [vmem:[#allocation2 + $0x1c8] sm:$0xff] %vm469_vm1, %v392_v5  ;;  %v575_v5 = vld [vmem:[%s12697_s0 + $0x21a] sm:$0xff] }
 0x10f   :  { %859 = vst.msk [vmem:[#allocation2 + $0x20] sm:$0xff] %vm854_vm2, %v671_v47  ;;  %v576_v47 = vld [vmem:[%s12697_s0 + $0x22a] sm:$0xff] }
 0x112   :  { %740 = vrot.lane.b32.xlu1 %v573_v14, %s7876_s20  ;;  %738 = vrot.lane.b32.xlu0 %v572_v40, %s7876_s20  ;;  %v577_v40 = vld [vmem:[%s12697_s0 + $0x232] sm:$0xff] }
 0x113   :  { %742 = vrot.lane.b32.xlu2 %v574_v26, %s7876_s20 }
 0x114   :  { %v400_v15 = vpop.permute.xlu1 %399  ;;  %v398_v24 = vpop.permute.xlu0 %397 }
 0x115   :  { %531 = vst.msk [vmem:[#allocation2 + $0x1e8] sm:$0xff] %vm469_vm1, %v400_v15  ;;  %v677_v46 = vpop.permute.xlu2 %676 }
 0x116   :  { %530 = vst.msk [vmem:[#allocation2 + $0x1e0] sm:$0xff] %vm469_vm1, %v398_v24  ;;  %v579_v24 = vld [vmem:[%s12697_s0 + $0x24a] sm:$0xff] }
 0x117   :  { %862 = vst.msk [vmem:[#allocation2 + $0x38] sm:$0xff] %vm854_vm2, %v677_v46  ;;  %v578_v46 = vld [vmem:[%s12697_s0 + $0x242] sm:$0xff] }
 0x11a   :  { %746 = vrot.lane.b32.xlu1 %v576_v47, %s7876_s20  ;;  %744 = vrot.lane.b32.xlu0 %v575_v5, %s7876_s20  ;;  %v580_v47 = vld [vmem:[%s12697_s0 + $0x25a] sm:$0xff] }
 0x11b   :  { %748 = vrot.lane.b32.xlu2 %v577_v40, %s7876_s20 }
 0x11c   :  { %v663_v14 = vpop.permute.xlu1 %662  ;;  %v404_v26 = vpop.permute.xlu0 %403 }
 0x11d   :  { %855 = vst.msk [vmem:[#allocation2] sm:$0xff] %vm854_vm2, %v663_v14  ;;  %v683_v15 = vpop.permute.xlu2 %682 }
 0x11e   :  { %533 = vst.msk [vmem:[#allocation2 + $0x1f8] sm:$0xff] %vm469_vm1, %v404_v26  ;;  %v582_v26 = vld [vmem:[%s12697_s0 + $0x272] sm:$0xff] }
 0x11f   :  { %865 = vst.msk [vmem:[#allocation2 + $0x50] sm:$0xff] %vm854_vm2, %v683_v15  ;;  %v581_v15 = vld [vmem:[%s12697_s0 + $0x262] sm:$0xff] }
 0x122   :  { %752 = vrot.lane.b32.xlu1 %v579_v24, %s7876_s20  ;;  %750 = vrot.lane.b32.xlu0 %v578_v46, %s7876_s20  ;;  %v583_v24 = vld [vmem:[%s12697_s0 + $0x27a] sm:$0xff] }
 0x123   :  { %754 = vrot.lane.b32.xlu2 %v580_v47, %s7876_s20 }
 0x124   :  { %v669_v5 = vpop.permute.xlu1 %668  ;;  %v667_v40 = vpop.permute.xlu0 %666 }
 0x125   :  { %858 = vst.msk [vmem:[#allocation2 + $0x18] sm:$0xff] %vm854_vm2, %v669_v5  ;;  %v689_v14 = vpop.permute.xlu2 %688 }
 0x126   :  { %857 = vst.msk [vmem:[#allocation2 + $0x10] sm:$0xff] %vm854_vm2, %v667_v40  ;;  %v585_v40 = vld [vmem:[%s12697_s0 + $0x292] sm:$0xff] }
 0x127   :  { %868 = vst.msk [vmem:[#allocation2 + $0x68] sm:$0xff] %vm854_vm2, %v689_v14  ;;  %v584_v14 = vld [vmem:[%s12697_s0 + $0x28a] sm:$0xff] }
 0x12a   :  { %758 = vrot.lane.b32.xlu1 %v582_v26, %s7876_s20  ;;  %756 = vrot.lane.b32.xlu0 %v581_v15, %s7876_s20  ;;  %v586_v26 = vld [vmem:[%s12697_s0 + $0x2a2] sm:$0xff] }
 0x12b   :  { %760 = vrot.lane.b32.xlu2 %v583_v24, %s7876_s20 }
 0x12c   :  { %v675_v46 = vpop.permute.xlu1 %674  ;;  %v673_v47 = vpop.permute.xlu0 %672 }
 0x12d   :  { %861 = vst.msk [vmem:[#allocation2 + $0x30] sm:$0xff] %vm854_vm2, %v675_v46  ;;  %v695_v5 = vpop.permute.xlu2 %694 }
 0x12e   :  { %860 = vst.msk [vmem:[#allocation2 + $0x28] sm:$0xff] %vm854_vm2, %v673_v47  ;;  %v588_v47 = vld [vmem:[%s12697_s0 + $0x2ba] sm:$0xff] }
 0x12f   :  { %871 = vst.msk [vmem:[#allocation2 + $0x80] sm:$0xff] %vm854_vm2, %v695_v5  ;;  %v587_v5 = vld [vmem:[%s12697_s0 + $0x2aa] sm:$0xff] }
 0x132   :  { %764 = vrot.lane.b32.xlu1 %v585_v40, %s7876_s20  ;;  %762 = vrot.lane.b32.xlu0 %v584_v14, %s7876_s20  ;;  %v589_v40 = vld [vmem:[%s12697_s0 + $0x2c2] sm:$0xff] }
 0x133   :  { %766 = vrot.lane.b32.xlu2 %v586_v26, %s7876_s20 }
 0x134   :  { %v681_v15 = vpop.permute.xlu1 %680  ;;  %v679_v24 = vpop.permute.xlu0 %678 }
 0x135   :  { %864 = vst.msk [vmem:[#allocation2 + $0x48] sm:$0xff] %vm854_vm2, %v681_v15  ;;  %v701_v46 = vpop.permute.xlu2 %700 }
 0x136   :  { %863 = vst.msk [vmem:[#allocation2 + $0x40] sm:$0xff] %vm854_vm2, %v679_v24  ;;  %v591_v24 = vld [vmem:[%s12697_s0 + $0x2da] sm:$0xff] }
 0x137   :  { %874 = vst.msk [vmem:[#allocation2 + $0x98] sm:$0xff] %vm854_vm2, %v701_v46  ;;  %v590_v46 = vld [vmem:[%s12697_s0 + $0x2d2] sm:$0xff] }
 0x13a   :  { %770 = vrot.lane.b32.xlu1 %v588_v47, %s7876_s20  ;;  %768 = vrot.lane.b32.xlu0 %v587_v5, %s7876_s20  ;;  %v592_v47 = vld [vmem:[%s12697_s0 + $0x2ea] sm:$0xff] }
 0x13b   :  { %772 = vrot.lane.b32.xlu2 %v589_v40, %s7876_s20 }
 0x13c   :  { %v687_v14 = vpop.permute.xlu1 %686  ;;  %v685_v26 = vpop.permute.xlu0 %684 }
 0x13d   :  { %867 = vst.msk [vmem:[#allocation2 + $0x60] sm:$0xff] %vm854_vm2, %v687_v14  ;;  %v707_v15 = vpop.permute.xlu2 %706 }
 0x13e   :  { %866 = vst.msk [vmem:[#allocation2 + $0x58] sm:$0xff] %vm854_vm2, %v685_v26  ;;  %v594_v26 = vld [vmem:[%s12697_s0 + $0x302] sm:$0xff] }
 0x13f   :  { %877 = vst.msk [vmem:[#allocation2 + $0xb0] sm:$0xff] %vm854_vm2, %v707_v15  ;;  %v593_v15 = vld [vmem:[%s12697_s0 + $0x2f2] sm:$0xff] }
 0x142   :  { %776 = vrot.lane.b32.xlu1 %v591_v24, %s7876_s20  ;;  %774 = vrot.lane.b32.xlu0 %v590_v46, %s7876_s20  ;;  %v595_v24 = vld [vmem:[%s12697_s0 + $0x30a] sm:$0xff] }
 0x143   :  { %778 = vrot.lane.b32.xlu2 %v592_v47, %s7876_s20 }
 0x144   :  { %v693_v5 = vpop.permute.xlu1 %692  ;;  %v691_v40 = vpop.permute.xlu0 %690 }
 0x145   :  { %870 = vst.msk [vmem:[#allocation2 + $0x78] sm:$0xff] %vm854_vm2, %v693_v5  ;;  %v713_v14 = vpop.permute.xlu2 %712 }
 0x146   :  { %869 = vst.msk [vmem:[#allocation2 + $0x70] sm:$0xff] %vm854_vm2, %v691_v40  ;;  %v597_v40 = vld [vmem:[%s12697_s0 + $0x322] sm:$0xff] }
 0x147   :  { %880 = vst.msk [vmem:[#allocation2 + $0xc8] sm:$0xff] %vm854_vm2, %v713_v14  ;;  %v596_v14 = vld [vmem:[%s12697_s0 + $0x31a] sm:$0xff] }
 0x14a   :  { %782 = vrot.lane.b32.xlu1 %v594_v26, %s7876_s20  ;;  %780 = vrot.lane.b32.xlu0 %v593_v15, %s7876_s20 }
 0x14b   :  { %784 = vrot.lane.b32.xlu2 %v595_v24, %s7876_s20 }
 0x14c   :  { %v699_v46 = vpop.permute.xlu1 %698  ;;  %v697_v47 = vpop.permute.xlu0 %696 }
 0x14d   :  { %873 = vst.msk [vmem:[#allocation2 + $0x90] sm:$0xff] %vm854_vm2, %v699_v46  ;;  %v719_v5 = vpop.permute.xlu2 %718 }
 0x14e   :  { %872 = vst.msk [vmem:[#allocation2 + $0x88] sm:$0xff] %vm854_vm2, %v697_v47 }
 0x14f   :  { %883 = vst.msk [vmem:[#allocation2 + $0xe0] sm:$0xff] %vm854_vm2, %v719_v5  ;;  %v6204_v5 = vld [vmem:[%s12697_s0 + $0x180] sm:$0xff] }
 0x152   :  { %788 = vrot.lane.b32.xlu1 %v597_v40, %s7876_s20  ;;  %786 = vrot.lane.b32.xlu0 %v596_v14, %s7876_s20  ;;  %v6205_v40 = vld [vmem:[%s12697_s0 + $0x188] sm:$0xff]  ;;  %s7889_s20 = smov 121  }
 0x153   :  { %1048 = vrot.lane.b32.xlu2 %v8055_v33, %s7877_s18 }
 0x154   :  { %v705_v26 = vpop.permute.xlu1 %704  ;;  %v703_v15 = vpop.permute.xlu0 %702 }
 0x155   :  { %876 = vst.msk [vmem:[#allocation2 + $0xa8] sm:$0xff] %vm854_vm2, %v705_v26  ;;  %v725_v24 = vpop.permute.xlu2 %724 }
 0x156   :  { %875 = vst.msk [vmem:[#allocation2 + $0xa0] sm:$0xff] %vm854_vm2, %v703_v15  ;;  %v12717_v15 = vld [vmem:[#allocation4_spill] sm:$0xff] }
 0x157   :  { %886 = vst.msk [vmem:[#allocation2 + $0xf8] sm:$0xff] %vm854_vm2, %v725_v24 }
 0x15a   :  { %1052 = vrot.lane.b32.xlu1 %v8074_v37, %s7877_s18  ;;  %1050 = vrot.lane.b32.xlu0 %v8081_v38, %s7877_s18 }
 0x15b   :  { %1054 = vrot.lane.b32.xlu2 %v8105_v44, %s7877_s18 }
 0x15c   :  { %v711_v46 = vpop.permute.xlu1 %710  ;;  %v709_v47 = vpop.permute.xlu0 %708 }
 0x15d   :  { %879 = vst.msk [vmem:[#allocation2 + $0xc0] sm:$0xff] %vm854_vm2, %v711_v46  ;;  %v731_v33 = vpop.permute.xlu2 %730  ;;  %v12719_v46 = vld [vmem:[#allocation5_spill] sm:$0xff] }
 0x15e   :  { %878 = vst.msk [vmem:[#allocation2 + $0xb8] sm:$0xff] %vm854_vm2, %v709_v47  ;;  %v6236_v47 = vld [vmem:[%s12697_s0 + $0x330] sm:$0xff] }
 0x15f   :  { %889 = vst.msk [vmem:[#allocation2 + $0x110] sm:$0xff] %vm854_vm2, %v731_v33  ;;  %v6237_v33 = vld [vmem:[%s12697_s0 + $0x338] sm:$0xff] }
 0x162   :  { %1058 = vrot.lane.b32.xlu1 %v8112_v45, %s7877_s18  ;;  %1056 = vrot.lane.b32.xlu0 %v8148_v53, %s7877_s18 }
 0x163   :  { %1060 = vrot.lane.b32.xlu2 %v8136_v51, %s7877_s18 }
 0x164   :  { %v717_v37 = vpop.permute.xlu1 %716  ;;  %v715_v38 = vpop.permute.xlu0 %714 }
 0x165   :  { %882 = vst.msk [vmem:[#allocation2 + $0xd8] sm:$0xff] %vm854_vm2, %v717_v37  ;;  %v737_v44 = vpop.permute.xlu2 %736  ;;  %v12720_v37 = vld [vmem:[#allocation7_spill] sm:$0xff] }
 0x166   :  { %881 = vst.msk [vmem:[#allocation2 + $0xd0] sm:$0xff] %vm854_vm2, %v715_v38 }
 0x167   :  { %892 = vst.msk [vmem:[#allocation2 + $0x128] sm:$0xff] %vm854_vm2, %v737_v44 }
 0x16a   :  { %1064 = vrot.lane.b32.xlu1 %v8143_v52, %s7877_s18  ;;  %1062 = vrot.lane.b32.xlu0 %v8186_v62, %s7877_s18 }
 0x16b   :  { %1066 = vrot.lane.b32.xlu2 %v8170_v58, %s7877_s18 }
 0x16c   :  { %v723_v45 = vpop.permute.xlu1 %722  ;;  %v721_v53 = vpop.permute.xlu0 %720 }
 0x16d   :  { %885 = vst.msk [vmem:[#allocation2 + $0xf0] sm:$0xff] %vm854_vm2, %v723_v45  ;;  %v743_v51 = vpop.permute.xlu2 %742 }
 0x16e   :  { %884 = vst.msk [vmem:[#allocation2 + $0xe8] sm:$0xff] %vm854_vm2, %v721_v53  ;;  %v6239_v53 = vld [vmem:[%s12697_s0 + $0x21] sm:$0xff] }
 0x16f   :  { %895 = vst.msk [vmem:[#allocation2 + $0x140] sm:$0xff] %vm854_vm2, %v743_v51  ;;  %v6238_v51 = vld [vmem:[%s12697_s0 + $0x19] sm:$0xff] }
 0x172   :  { %1070 = vrot.lane.b32.xlu1 %v8177_v59, %s7877_s18  ;;  %1068 = vrot.lane.b32.xlu0 %v8222_v7, %s7877_s18 }
 0x173   :  { %1072 = vrot.lane.b32.xlu2 %v8206_v3, %s7877_s18 }
 0x174   :  { %v729_v52 = vpop.permute.xlu1 %728  ;;  %v727_v62 = vpop.permute.xlu0 %726 }
 0x175   :  { %888 = vst.msk [vmem:[#allocation2 + $0x108] sm:$0xff] %vm854_vm2, %v729_v52  ;;  %v749_v58 = vpop.permute.xlu2 %748  ;;  %v6240_v52 = vld [vmem:[%s12697_s0 + $0x31] sm:$0xff] }
 0x176   :  { %887 = vst.msk [vmem:[#allocation2 + $0x100] sm:$0xff] %vm854_vm2, %v727_v62 }
 0x177   :  { %898 = vst.msk [vmem:[#allocation2 + $0x158] sm:$0xff] %vm854_vm2, %v749_v58 }
 0x17a   :  { %1076 = vrot.lane.b32.xlu1 %v8213_v4, %s7877_s18  ;;  %1074 = vrot.lane.b32.xlu0 %v8258_v16, %s7877_s18 }
 0x17b   :  { %1078 = vrot.lane.b32.xlu2 %v8242_v12, %s7877_s18 }
 0x17c   :  { %v735_v59 = vpop.permute.xlu1 %734  ;;  %v733_v7 = vpop.permute.xlu0 %732 }
 0x17d   :  { %891 = vst.msk [vmem:[#allocation2 + $0x120] sm:$0xff] %vm854_vm2, %v735_v59  ;;  %v755_v3 = vpop.permute.xlu2 %754 }
 0x17e   :  { %890 = vst.msk [vmem:[#allocation2 + $0x118] sm:$0xff] %vm854_vm2, %v733_v7  ;;  %v6242_v7 = vld [vmem:[%s12697_s0 + $0x49] sm:$0xff] }
 0x17f   :  { %901 = vst.msk [vmem:[#allocation2 + $0x170] sm:$0xff] %vm854_vm2, %v755_v3  ;;  %v6241_v3 = vld [vmem:[%s12697_s0 + $0x39] sm:$0xff] }
 0x182   :  { %1082 = vrot.lane.b32.xlu1 %v8249_v13, %s7877_s18  ;;  %1080 = vrot.lane.b32.xlu0 %v8294_v25, %s7877_s18 }
 0x183   :  { %1084 = vrot.lane.b32.xlu2 %v8278_v21, %s7877_s18 }
 0x184   :  { %v741_v4 = vpop.permute.xlu1 %740  ;;  %v739_v16 = vpop.permute.xlu0 %738 }
 0x185   :  { %894 = vst.msk [vmem:[#allocation2 + $0x138] sm:$0xff] %vm854_vm2, %v741_v4  ;;  %v761_v12 = vpop.permute.xlu2 %760  ;;  %v6243_v4 = vld [vmem:[%s12697_s0 + $0x51] sm:$0xff] }
 0x186   :  { %893 = vst.msk [vmem:[#allocation2 + $0x130] sm:$0xff] %vm854_vm2, %v739_v16 }
 0x187   :  { %904 = vst.msk [vmem:[#allocation2 + $0x188] sm:$0xff] %vm854_vm2, %v761_v12 }
 0x18a   :  { %1088 = vrot.lane.b32.xlu1 %v8285_v22, %s7877_s18  ;;  %1086 = vrot.lane.b32.xlu0 %v8330_v35, %s7877_s18 }
 0x18b   :  { %1090 = vrot.lane.b32.xlu2 %v8314_v30, %s7877_s18 }
 0x18c   :  { %v747_v13 = vpop.permute.xlu1 %746  ;;  %v745_v25 = vpop.permute.xlu0 %744 }
 0x18d   :  { %897 = vst.msk [vmem:[#allocation2 + $0x150] sm:$0xff] %vm854_vm2, %v747_v13  ;;  %v767_v21 = vpop.permute.xlu2 %766 }
 0x18e   :  { %896 = vst.msk [vmem:[#allocation2 + $0x148] sm:$0xff] %vm854_vm2, %v745_v25  ;;  %v6245_v25 = vld [vmem:[%s12697_s0 + $0x69] sm:$0xff] }
 0x18f   :  { %907 = vst.msk [vmem:[#allocation2 + $0x1a0] sm:$0xff] %vm854_vm2, %v767_v21  ;;  %v6244_v21 = vld [vmem:[%s12697_s0 + $0x61] sm:$0xff] }
 0x192   :  { %1094 = vrot.lane.b32.xlu1 %v8321_v31, %s7877_s18  ;;  %1092 = vrot.lane.b32.xlu0 %v8366_v48, %s7877_s18 }
 0x193   :  { %1096 = vrot.lane.b32.xlu2 %v8350_v42, %s7877_s18 }
 0x194   :  { %v753_v22 = vpop.permute.xlu1 %752  ;;  %v751_v35 = vpop.permute.xlu0 %750 }
 0x195   :  { %900 = vst.msk [vmem:[#allocation2 + $0x168] sm:$0xff] %vm854_vm2, %v753_v22  ;;  %v773_v30 = vpop.permute.xlu2 %772  ;;  %v6246_v22 = vld [vmem:[%s12697_s0 + $0x79] sm:$0xff] }
 0x196   :  { %899 = vst.msk [vmem:[#allocation2 + $0x160] sm:$0xff] %vm854_vm2, %v751_v35 }
 0x197   :  { %910 = vst.msk [vmem:[#allocation2 + $0x1b8] sm:$0xff] %vm854_vm2, %v773_v30 }
 0x19a   :  { %1100 = vrot.lane.b32.xlu1 %v8357_v43, %s7877_s18  ;;  %1098 = vrot.lane.b32.xlu0 %v8402_v63, %s7877_s18 }
 0x19b   :  { %1102 = vrot.lane.b32.xlu2 %v8386_v56, %s7877_s18 }
 0x19c   :  { %v759_v31 = vpop.permute.xlu1 %758  ;;  %v757_v48 = vpop.permute.xlu0 %756 }
 0x19d   :  { %903 = vst.msk [vmem:[#allocation2 + $0x180] sm:$0xff] %vm854_vm2, %v759_v31  ;;  %v779_v42 = vpop.permute.xlu2 %778 }
 0x19e   :  { %902 = vst.msk [vmem:[#allocation2 + $0x178] sm:$0xff] %vm854_vm2, %v757_v48  ;;  %v6248_v48 = vld [vmem:[%s12697_s0 + $0x91] sm:$0xff] }
 0x19f   :  { %913 = vst.msk [vmem:[#allocation2 + $0x1d0] sm:$0xff] %vm854_vm2, %v779_v42  ;;  %v6247_v42 = vld [vmem:[%s12697_s0 + $0x81] sm:$0xff] }
 0x1a2   :  { %1106 = vrot.lane.b32.xlu1 %v8393_v57, %s7877_s18  ;;  %1104 = vrot.lane.b32.xlu0 %v8435_v11, %s7877_s18 }
 0x1a3   :  { %1108 = vrot.lane.b32.xlu2 %v6204_v5, %s7877_s18  ;;  %v6249_v5 = vld [vmem:[%s12697_s0 + $0x99] sm:$0xff] }
 0x1a4   :  { %v765_v43 = vpop.permute.xlu1 %764  ;;  %v763_v63 = vpop.permute.xlu0 %762 }
 0x1a5   :  { %906 = vst.msk [vmem:[#allocation2 + $0x198] sm:$0xff] %vm854_vm2, %v765_v43  ;;  %v785_v56 = vpop.permute.xlu2 %784 }
 0x1a6   :  { %905 = vst.msk [vmem:[#allocation2 + $0x190] sm:$0xff] %vm854_vm2, %v763_v63 }
 0x1a7   :  { %916 = vst.msk [vmem:[#allocation2 + $0x1e8] sm:$0xff] %vm854_vm2, %v785_v56 }
 0x1aa   :  { %1112 = vrot.lane.b32.xlu1 %v8426_v8, %s7877_s18  ;;  %1110 = vrot.lane.b32.xlu0 %v6205_v40, %s7877_s18  ;;  %v6251_v40 = vld [vmem:[%s12697_s0 + $0xb1] sm:$0xff] }
 0x1ab   :  { %1114 = vrot.lane.b32.xlu2 %v8455_v19, %s7877_s18 }
 0x1ac   :  { %v771_v57 = vpop.permute.xlu1 %770  ;;  %v769_v11 = vpop.permute.xlu0 %768 }
 0x1ad   :  { %909 = vst.msk [vmem:[#allocation2 + $0x1b0] sm:$0xff] %vm854_vm2, %v771_v57  ;;  %v1049_v14 = vpop.permute.xlu2 %1048  ;;  %v6250_v57 = vld [vmem:[%s12697_s0 + $0xa9] sm:$0xff] }
 0x1ae   :  { %908 = vst.msk [vmem:[#allocation2 + $0x1a8] sm:$0xff] %vm854_vm2, %v769_v11  ;;  %v6252_v11 = vld [vmem:[%s12697_s0 + $0xc1] sm:$0xff] }
 0x1af   :  { %1241 = vst.msk [vmem:[#allocation2] sm:$0xff] %vm1240_vm3, %v1049_v14 }
 0x1b2   :  { %1118 = vrot.lane.b32.xlu1 %v8462_v20, %s7877_s18  ;;  %1116 = vrot.lane.b32.xlu0 %v8504_v41, %s7877_s18 }
 0x1b3   :  { %1120 = vrot.lane.b32.xlu2 %v8488_v34, %s7877_s18 }
 0x1b4   :  { %v777_v8 = vpop.permute.xlu1 %776  ;;  %v775_v26 = vpop.permute.xlu0 %774 }
 0x1b5   :  { %912 = vst.msk [vmem:[#allocation2 + $0x1c8] sm:$0xff] %vm854_vm2, %v777_v8  ;;  %v1055_v19 = vpop.permute.xlu2 %1054 }
 0x1b6   :  { %911 = vst.msk [vmem:[#allocation2 + $0x1c0] sm:$0xff] %vm854_vm2, %v775_v26 }
 0x1b7   :  { %1244 = vst.msk [vmem:[#allocation2 + $0x18] sm:$0xff] %vm1240_vm3, %v1055_v19  ;;  %v6254_v19 = vld [vmem:[%s12697_s0 + $0xd9] sm:$0xff] }
 0x1ba   :  { %1124 = vrot.lane.b32.xlu1 %v8495_v36, %s7877_s18  ;;  %1122 = vrot.lane.b32.xlu0 %v8540_v0, %s7877_s18 }
 0x1bb   :  { %1126 = vrot.lane.b32.xlu2 %v8524_v54, %s7877_s18 }
 0x1bc   :  { %v783_v20 = vpop.permute.xlu1 %782  ;;  %v781_v41 = vpop.permute.xlu0 %780 }
 0x1bd   :  { %915 = vst.msk [vmem:[#allocation2 + $0x1e0] sm:$0xff] %vm854_vm2, %v783_v20  ;;  %v1061_v34 = vpop.permute.xlu2 %1060  ;;  %v6253_v20 = vld [vmem:[%s12697_s0 + $0xc9] sm:$0xff] }
 0x1be   :  { %914 = vst.msk [vmem:[#allocation2 + $0x1d8] sm:$0xff] %vm854_vm2, %v781_v41  ;;  %v6255_v41 = vld [vmem:[%s12697_s0 + $0xe1] sm:$0xff] }
 0x1bf   :  { %1247 = vst.msk [vmem:[#allocation2 + $0x30] sm:$0xff] %vm1240_vm3, %v1061_v34 }
 0x1c2   :  { %1130 = vrot.lane.b32.xlu1 %v8531_v55, %s7877_s18  ;;  %1128 = vrot.lane.b32.xlu0 %v8576_v17, %s7877_s18 }
 0x1c3   :  { %1132 = vrot.lane.b32.xlu2 %v8560_v9, %s7877_s18 }
 0x1c4   :  { %v789_v36 = vpop.permute.xlu1 %788  ;;  %v787_v0 = vpop.permute.xlu0 %786 }
 0x1c5   :  { %918 = vst.msk [vmem:[#allocation2 + $0x1f8] sm:$0xff] %vm854_vm2, %v789_v36  ;;  %v1067_v54 = vpop.permute.xlu2 %1066 }
 0x1c6   :  { %917 = vst.msk [vmem:[#allocation2 + $0x1f0] sm:$0xff] %vm854_vm2, %v787_v0 }
 0x1c7   :  { %1250 = vst.msk [vmem:[#allocation2 + $0x48] sm:$0xff] %vm1240_vm3, %v1067_v54  ;;  %v6257_v54 = vld [vmem:[%s12697_s0 + $0xf9] sm:$0xff] }
 0x1ca   :  { %1136 = vrot.lane.b32.xlu1 %v8567_v10, %s7877_s18  ;;  %1134 = vrot.lane.b32.xlu0 %v8612_v39, %s7877_s18 }
 0x1cb   :  { %1138 = vrot.lane.b32.xlu2 %v8596_v27, %s7877_s18 }
 0x1cc   :  { %v1053_v55 = vpop.permute.xlu1 %1052  ;;  %v1051_v17 = vpop.permute.xlu0 %1050 }
 0x1cd   :  { %1243 = vst.msk [vmem:[#allocation2 + $0x10] sm:$0xff] %vm1240_vm3, %v1053_v55  ;;  %v1073_v9 = vpop.permute.xlu2 %1072  ;;  %v6256_v55 = vld [vmem:[%s12697_s0 + $0xf1] sm:$0xff] }
 0x1ce   :  { %1242 = vst.msk [vmem:[#allocation2 + $0x8] sm:$0xff] %vm1240_vm3, %v1051_v17  ;;  %v6258_v17 = vld [vmem:[%s12697_s0 + $0x109] sm:$0xff] }
 0x1cf   :  { %1253 = vst.msk [vmem:[#allocation2 + $0x60] sm:$0xff] %vm1240_vm3, %v1073_v9 }
 0x1d2   :  { %1142 = vrot.lane.b32.xlu1 %v8603_v28, %s7877_s18  ;;  %1140 = vrot.lane.b32.xlu0 %v8648_v2, %s7877_s18 }
 0x1d3   :  { %1144 = vrot.lane.b32.xlu2 %v8632_v50, %s7877_s18 }
 0x1d4   :  { %v1059_v10 = vpop.permute.xlu1 %1058  ;;  %v1057_v39 = vpop.permute.xlu0 %1056 }
 0x1d5   :  { %1246 = vst.msk [vmem:[#allocation2 + $0x28] sm:$0xff] %vm1240_vm3, %v1059_v10  ;;  %v1079_v27 = vpop.permute.xlu2 %1078 }
 0x1d6   :  { %1245 = vst.msk [vmem:[#allocation2 + $0x20] sm:$0xff] %vm1240_vm3, %v1057_v39 }
 0x1d7   :  { %1256 = vst.msk [vmem:[#allocation2 + $0x78] sm:$0xff] %vm1240_vm3, %v1079_v27  ;;  %v6260_v27 = vld [vmem:[%s12697_s0 + $0x121] sm:$0xff] }
 0x1da   :  { %1148 = vrot.lane.b32.xlu1 %v8639_v60, %s7877_s18  ;;  %1146 = vrot.lane.b32.xlu0 %v8684_v29, %s7877_s18 }
 0x1db   :  { %1150 = vrot.lane.b32.xlu2 %v8668_v18, %s7877_s18 }
 0x1dc   :  { %v1065_v28 = vpop.permute.xlu1 %1064  ;;  %v1063_v2 = vpop.permute.xlu0 %1062 }
 0x1dd   :  { %1249 = vst.msk [vmem:[#allocation2 + $0x40] sm:$0xff] %vm1240_vm3, %v1065_v28  ;;  %v1085_v50 = vpop.permute.xlu2 %1084  ;;  %v6259_v28 = vld [vmem:[%s12697_s0 + $0x111] sm:$0xff] }
 0x1de   :  { %1248 = vst.msk [vmem:[#allocation2 + $0x38] sm:$0xff] %vm1240_vm3, %v1063_v2  ;;  %v6261_v2 = vld [vmem:[%s12697_s0 + $0x129] sm:$0xff] }
 0x1df   :  { %1259 = vst.msk [vmem:[#allocation2 + $0x90] sm:$0xff] %vm1240_vm3, %v1085_v50 }
 0x1e2   :  { %1154 = vrot.lane.b32.xlu1 %v8675_v23, %s7877_s18  ;;  %1152 = vrot.lane.b32.xlu0 %v8720_v6, %s7877_s18 }
 0x1e3   :  { %1156 = vrot.lane.b32.xlu2 %v8704_v49, %s7877_s18 }
 0x1e4   :  { %v1071_v60 = vpop.permute.xlu1 %1070  ;;  %v1069_v29 = vpop.permute.xlu0 %1068 }
 0x1e5   :  { %1252 = vst.msk [vmem:[#allocation2 + $0x58] sm:$0xff] %vm1240_vm3, %v1071_v60  ;;  %v1091_v18 = vpop.permute.xlu2 %1090 }
 0x1e6   :  { %1251 = vst.msk [vmem:[#allocation2 + $0x50] sm:$0xff] %vm1240_vm3, %v1069_v29 }
 0x1e7   :  { %1262 = vst.msk [vmem:[#allocation2 + $0xa8] sm:$0xff] %vm1240_vm3, %v1091_v18  ;;  %v6263_v18 = vld [vmem:[%s12697_s0 + $0x141] sm:$0xff] }
 0x1ea   :  { %1160 = vrot.lane.b32.xlu1 %v8711_v61, %s7877_s18  ;;  %1158 = vrot.lane.b32.xlu0 %v8756_v1, %s7877_s18  ;;  %v12718_v61 = vld [vmem:[#allocation6_spill] sm:$0xff] }
 0x1eb   :  { %1162 = vrot.lane.b32.xlu2 %v8740_v32, %s7877_s18 }
 0x1ec   :  { %v1077_v23 = vpop.permute.xlu1 %1076  ;;  %v1075_v6 = vpop.permute.xlu0 %1074 }
 0x1ed   :  { %1255 = vst.msk [vmem:[#allocation2 + $0x70] sm:$0xff] %vm1240_vm3, %v1077_v23  ;;  %v1097_v49 = vpop.permute.xlu2 %1096  ;;  %v6262_v23 = vld [vmem:[%s12697_s0 + $0x139] sm:$0xff] }
 0x1ee   :  { %1254 = vst.msk [vmem:[#allocation2 + $0x68] sm:$0xff] %vm1240_vm3, %v1075_v6  ;;  %v6264_v6 = vld [vmem:[%s12697_s0 + $0x151] sm:$0xff] }
 0x1ef   :  { %1265 = vst.msk [vmem:[#allocation2 + $0xc0] sm:$0xff] %vm1240_vm3, %v1097_v49 }
 0x1f2   :  { %1166 = vrot.lane.b32.xlu1 %v12717_v15, %s7877_s18  ;;  %1164 = vrot.lane.b32.xlu0 %v12718_v61, %s7877_s18 }
 0x1f3   :  { %1168 = vrot.lane.b32.xlu2 %v12719_v46, %s7877_s18  ;;  %v6267_v46 = vld [vmem:[%s12697_s0 + $0x171] sm:$0xff] }
 0x1f4   :  { %v1083_v24 = vpop.permute.xlu1 %1082  ;;  %v1081_v1 = vpop.permute.xlu0 %1080 }
 0x1f5   :  { %1258 = vst.msk [vmem:[#allocation2 + $0x88] sm:$0xff] %vm1240_vm3, %v1083_v24  ;;  %v1103_v32 = vpop.permute.xlu2 %1102  ;;  %v6266_v24 = vld [vmem:[%s12697_s0 + $0x169] sm:$0xff] }
 0x1f6   :  { %1257 = vst.msk [vmem:[#allocation2 + $0x80] sm:$0xff] %vm1240_vm3, %v1081_v1  ;;  %v6265_v1 = vld [vmem:[%s12697_s0 + $0x159] sm:$0xff] }
 0x1f7   :  { %1268 = vst.msk [vmem:[#allocation2 + $0xd8] sm:$0xff] %vm1240_vm3, %v1103_v32 }
 0x1fa   :  { %1172 = vrot.lane.b32.xlu1 %v6236_v47, %s7877_s18  ;;  %1170 = vrot.lane.b32.xlu0 %v12720_v37, %s7877_s18  ;;  %v6269_v37 = vld [vmem:[%s12697_s0 + $0x189] sm:$0xff] }
 0x1fb   :  { %1174 = vrot.lane.b32.xlu2 %v6237_v33, %s7877_s18 }
 0x1fc   :  { %v1089_v38 = vpop.permute.xlu1 %1088  ;;  %v1087_v44 = vpop.permute.xlu0 %1086 }
 0x1fd   :  { %1261 = vst.msk [vmem:[#allocation2 + $0xa0] sm:$0xff] %vm1240_vm3, %v1089_v38  ;;  %v1109_v45 = vpop.permute.xlu2 %1108  ;;  %v6268_v38 = vld [vmem:[%s12697_s0 + $0x181] sm:$0xff] }
 0x1fe   :  { %1260 = vst.msk [vmem:[#allocation2 + $0x98] sm:$0xff] %vm1240_vm3, %v1087_v44  ;;  %v6270_v44 = vld [vmem:[%s12697_s0 + $0x1c9] sm:$0xff] }
 0x1ff   :  { %1271 = vst.msk [vmem:[#allocation2 + $0xf0] sm:$0xff] %vm1240_vm3, %v1109_v45 }
 0x202   :  { %1435 = vrot.lane.b32.xlu1 %v6239_v53, %s7878_s8  ;;  %1433 = vrot.lane.b32.xlu0 %v6238_v51, %s7878_s8 }
 0x203   :  { %1437 = vrot.lane.b32.xlu2 %v6240_v52, %s7878_s8  ;;  %v6272_v52 = vld [vmem:[%s12697_s0 + $0x1e1] sm:$0xff] }
 0x204   :  { %v1095_v62 = vpop.permute.xlu1 %1094  ;;  %v1093_v58 = vpop.permute.xlu0 %1092 }
 0x205   :  { %1264 = vst.msk [vmem:[#allocation2 + $0xb8] sm:$0xff] %vm1240_vm3, %v1095_v62  ;;  %v1115_v59 = vpop.permute.xlu2 %1114  ;;  %v6271_v62 = vld [vmem:[%s12697_s0 + $0x1d1] sm:$0xff] }
 0x206   :  { %1263 = vst.msk [vmem:[#allocation2 + $0xb0] sm:$0xff] %vm1240_vm3, %v1093_v58  ;;  %v6273_v58 = vld [vmem:[%s12697_s0 + $0x1e9] sm:$0xff] }
 0x207   :  { %1274 = vst.msk [vmem:[#allocation2 + $0x108] sm:$0xff] %vm1240_vm3, %v1115_v59 }
 0x20a   :  { %1441 = vrot.lane.b32.xlu1 %v6242_v7, %s7878_s8  ;;  %1439 = vrot.lane.b32.xlu0 %v6241_v3, %s7878_s8 }
 0x20b   :  { %1443 = vrot.lane.b32.xlu2 %v6243_v4, %s7878_s8  ;;  %v6275_v4 = vld [vmem:[%s12697_s0 + $0x201] sm:$0xff] }
 0x20c   :  { %v1101_v16 = vpop.permute.xlu1 %1100  ;;  %v1099_v12 = vpop.permute.xlu0 %1098 }
 0x20d   :  { %1267 = vst.msk [vmem:[#allocation2 + $0xd0] sm:$0xff] %vm1240_vm3, %v1101_v16  ;;  %v1121_v13 = vpop.permute.xlu2 %1120  ;;  %v6274_v16 = vld [vmem:[%s12697_s0 + $0x1f9] sm:$0xff] }
 0x20e   :  { %1266 = vst.msk [vmem:[#allocation2 + $0xc8] sm:$0xff] %vm1240_vm3, %v1099_v12  ;;  %v6276_v12 = vld [vmem:[%s12697_s0 + $0x211] sm:$0xff] }
 0x20f   :  { %1277 = vst.msk [vmem:[#allocation2 + $0x120] sm:$0xff] %vm1240_vm3, %v1121_v13 }
 0x212   :  { %1447 = vrot.lane.b32.xlu1 %v6245_v25, %s7878_s8  ;;  %1445 = vrot.lane.b32.xlu0 %v6244_v21, %s7878_s8 }
 0x213   :  { %1449 = vrot.lane.b32.xlu2 %v6246_v22, %s7878_s8  ;;  %v6278_v22 = vld [vmem:[%s12697_s0 + $0x229] sm:$0xff] }
 0x214   :  { %v1107_v35 = vpop.permute.xlu1 %1106  ;;  %v1105_v30 = vpop.permute.xlu0 %1104 }
 0x215   :  { %1270 = vst.msk [vmem:[#allocation2 + $0xe8] sm:$0xff] %vm1240_vm3, %v1107_v35  ;;  %v1127_v31 = vpop.permute.xlu2 %1126  ;;  %v6277_v35 = vld [vmem:[%s12697_s0 + $0x219] sm:$0xff] }
 0x216   :  { %1269 = vst.msk [vmem:[#allocation2 + $0xe0] sm:$0xff] %vm1240_vm3, %v1105_v30  ;;  %v6279_v30 = vld [vmem:[%s12697_s0 + $0x231] sm:$0xff] }
 0x217   :  { %1280 = vst.msk [vmem:[#allocation2 + $0x138] sm:$0xff] %vm1240_vm3, %v1127_v31 }
 0x21a   :  { %1453 = vrot.lane.b32.xlu1 %v6248_v48, %s7878_s8  ;;  %1451 = vrot.lane.b32.xlu0 %v6247_v42, %s7878_s8 }
 0x21b   :  { %1455 = vrot.lane.b32.xlu2 %v6249_v5, %s7878_s8  ;;  %v6281_v5 = vld [vmem:[%s12697_s0 + $0x249] sm:$0xff] }
 0x21c   :  { %v1113_v43 = vpop.permute.xlu1 %1112  ;;  %v1111_v63 = vpop.permute.xlu0 %1110 }
 0x21d   :  { %1273 = vst.msk [vmem:[#allocation2 + $0x100] sm:$0xff] %vm1240_vm3, %v1113_v43  ;;  %v1133_v56 = vpop.permute.xlu2 %1132  ;;  %v6280_v43 = vld [vmem:[%s12697_s0 + $0x241] sm:$0xff] }
 0x21e   :  { %1272 = vst.msk [vmem:[#allocation2 + $0xf8] sm:$0xff] %vm1240_vm3, %v1111_v63  ;;  %v6282_v63 = vld [vmem:[%s12697_s0 + $0x259] sm:$0xff] }
 0x21f   :  { %1283 = vst.msk [vmem:[#allocation2 + $0x150] sm:$0xff] %vm1240_vm3, %v1133_v56 }
 0x222   :  { %1459 = vrot.lane.b32.xlu1 %v6251_v40, %s7878_s8  ;;  %1457 = vrot.lane.b32.xlu0 %v6250_v57, %s7878_s8 }
 0x223   :  { %1461 = vrot.lane.b32.xlu2 %v6252_v11, %s7878_s8  ;;  %v6284_v11 = vld [vmem:[%s12697_s0 + $0x271] sm:$0xff] }
 0x224   :  { %v1119_v14 = vpop.permute.xlu1 %1118  ;;  %v1117_v8 = vpop.permute.xlu0 %1116 }
 0x225   :  { %1276 = vst.msk [vmem:[#allocation2 + $0x118] sm:$0xff] %vm1240_vm3, %v1119_v14  ;;  %v1139_v26 = vpop.permute.xlu2 %1138  ;;  %v6283_v14 = vld [vmem:[%s12697_s0 + $0x261] sm:$0xff] }
 0x226   :  { %1275 = vst.msk [vmem:[#allocation2 + $0x110] sm:$0xff] %vm1240_vm3, %v1117_v8  ;;  %v6285_v8 = vld [vmem:[%s12697_s0 + $0x279] sm:$0xff] }
 0x227   :  { %1286 = vst.msk [vmem:[#allocation2 + $0x168] sm:$0xff] %vm1240_vm3, %v1139_v26 }
 0x22a   :  { %1465 = vrot.lane.b32.xlu1 %v6254_v19, %s7878_s8  ;;  %1463 = vrot.lane.b32.xlu0 %v6253_v20, %s7878_s8 }
 0x22b   :  { %1467 = vrot.lane.b32.xlu2 %v6255_v41, %s7878_s8  ;;  %v6287_v41 = vld [vmem:[%s12697_s0 + $0x291] sm:$0xff] }
 0x22c   :  { %v1125_v34 = vpop.permute.xlu1 %1124  ;;  %v1123_v36 = vpop.permute.xlu0 %1122 }
 0x22d   :  { %1279 = vst.msk [vmem:[#allocation2 + $0x130] sm:$0xff] %vm1240_vm3, %v1125_v34  ;;  %v1145_v0 = vpop.permute.xlu2 %1144  ;;  %v6286_v34 = vld [vmem:[%s12697_s0 + $0x289] sm:$0xff] }
 0x22e   :  { %1278 = vst.msk [vmem:[#allocation2 + $0x128] sm:$0xff] %vm1240_vm3, %v1123_v36  ;;  %v6288_v36 = vld [vmem:[%s12697_s0 + $0x2a1] sm:$0xff] }
 0x22f   :  { %1289 = vst.msk [vmem:[#allocation2 + $0x180] sm:$0xff] %vm1240_vm3, %v1145_v0 }
 0x232   :  { %1471 = vrot.lane.b32.xlu1 %v6257_v54, %s7878_s8  ;;  %1469 = vrot.lane.b32.xlu0 %v6256_v55, %s7878_s8 }
 0x233   :  { %1473 = vrot.lane.b32.xlu2 %v6258_v17, %s7878_s8  ;;  %v6290_v17 = vld [vmem:[%s12697_s0 + $0x2b9] sm:$0xff] }
 0x234   :  { %v1131_v9 = vpop.permute.xlu1 %1130  ;;  %v1129_v10 = vpop.permute.xlu0 %1128 }
 0x235   :  { %1282 = vst.msk [vmem:[#allocation2 + $0x148] sm:$0xff] %vm1240_vm3, %v1131_v9  ;;  %v1151_v39 = vpop.permute.xlu2 %1150  ;;  %v6289_v9 = vld [vmem:[%s12697_s0 + $0x2a9] sm:$0xff] }
 0x236   :  { %1281 = vst.msk [vmem:[#allocation2 + $0x140] sm:$0xff] %vm1240_vm3, %v1129_v10  ;;  %v6291_v10 = vld [vmem:[%s12697_s0 + $0x2c1] sm:$0xff] }
 0x237   :  { %1292 = vst.msk [vmem:[#allocation2 + $0x198] sm:$0xff] %vm1240_vm3, %v1151_v39 }
 0x23a   :  { %1477 = vrot.lane.b32.xlu1 %v6260_v27, %s7878_s8  ;;  %1475 = vrot.lane.b32.xlu0 %v6259_v28, %s7878_s8 }
 0x23b   :  { %1479 = vrot.lane.b32.xlu2 %v6261_v2, %s7878_s8  ;;  %v6293_v2 = vld [vmem:[%s12697_s0 + $0x2d9] sm:$0xff] }
 0x23c   :  { %v1137_v50 = vpop.permute.xlu1 %1136  ;;  %v1135_v60 = vpop.permute.xlu0 %1134 }
 0x23d   :  { %1285 = vst.msk [vmem:[#allocation2 + $0x160] sm:$0xff] %vm1240_vm3, %v1137_v50  ;;  %v1157_v29 = vpop.permute.xlu2 %1156  ;;  %v6292_v50 = vld [vmem:[%s12697_s0 + $0x2d1] sm:$0xff] }
 0x23e   :  { %1284 = vst.msk [vmem:[#allocation2 + $0x158] sm:$0xff] %vm1240_vm3, %v1135_v60  ;;  %v6294_v60 = vld [vmem:[%s12697_s0 + $0x2e9] sm:$0xff] }
 0x23f   :  { %1295 = vst.msk [vmem:[#allocation2 + $0x1b0] sm:$0xff] %vm1240_vm3, %v1157_v29 }
 0x242   :  { %1483 = vrot.lane.b32.xlu1 %v6263_v18, %s7878_s8  ;;  %1481 = vrot.lane.b32.xlu0 %v6262_v23, %s7878_s8 }
 0x243   :  { %1485 = vrot.lane.b32.xlu2 %v6264_v6, %s7878_s8  ;;  %v6296_v6 = vld [vmem:[%s12697_s0 + $0x301] sm:$0xff] }
 0x244   :  { %v1143_v49 = vpop.permute.xlu1 %1142  ;;  %v1141_v15 = vpop.permute.xlu0 %1140 }
 0x245   :  { %1288 = vst.msk [vmem:[#allocation2 + $0x178] sm:$0xff] %vm1240_vm3, %v1143_v49  ;;  %v1163_v61 = vpop.permute.xlu2 %1162  ;;  %v6295_v49 = vld [vmem:[%s12697_s0 + $0x2f1] sm:$0xff] }
 0x246   :  { %1287 = vst.msk [vmem:[#allocation2 + $0x170] sm:$0xff] %vm1240_vm3, %v1141_v15  ;;  %v6297_v15 = vld [vmem:[%s12697_s0 + $0x309] sm:$0xff] }
 0x247   :  { %1298 = vst.msk [vmem:[#allocation2 + $0x1c8] sm:$0xff] %vm1240_vm3, %v1163_v61 }
 0x24a   :  { %1489 = vrot.lane.b32.xlu1 %v6266_v24, %s7878_s8  ;;  %1487 = vrot.lane.b32.xlu0 %v6265_v1, %s7878_s8 }
 0x24b   :  { %1491 = vrot.lane.b32.xlu2 %v6267_v46, %s7878_s8  ;;  %v6299_v46 = vld [vmem:[%s12697_s0 + $0x321] sm:$0xff] }
 0x24c   :  { %v1149_v32 = vpop.permute.xlu1 %1148  ;;  %v1147_v47 = vpop.permute.xlu0 %1146 }
 0x24d   :  { %1291 = vst.msk [vmem:[#allocation2 + $0x190] sm:$0xff] %vm1240_vm3, %v1149_v32  ;;  %v1169_v33 = vpop.permute.xlu2 %1168  ;;  %v6298_v32 = vld [vmem:[%s12697_s0 + $0x319] sm:$0xff] }
 0x24e   :  { %1290 = vst.msk [vmem:[#allocation2 + $0x188] sm:$0xff] %vm1240_vm3, %v1147_v47  ;;  %v6300_v47 = vld [vmem:[%s12697_s0 + $0x331] sm:$0xff] }
 0x24f   :  { %1301 = vst.msk [vmem:[#allocation2 + $0x1e0] sm:$0xff] %vm1240_vm3, %v1169_v33 }
 0x252   :  { %1495 = vrot.lane.b32.xlu1 %v6269_v37, %s7878_s8  ;;  %1493 = vrot.lane.b32.xlu0 %v6268_v38, %s7878_s8 }
 0x253   :  { %1497 = vrot.lane.b32.xlu2 %v6270_v44, %s7878_s8  ;;  %v6302_v44 = vld [vmem:[%s12697_s0 + $0x1a] sm:$0xff] }
 0x254   :  { %v1155_v45 = vpop.permute.xlu1 %1154  ;;  %v1153_v53 = vpop.permute.xlu0 %1152 }
 0x255   :  { %1294 = vst.msk [vmem:[#allocation2 + $0x1a8] sm:$0xff] %vm1240_vm3, %v1155_v45  ;;  %v1175_v51 = vpop.permute.xlu2 %1174  ;;  %v6301_v45 = vld [vmem:[%s12697_s0 + $0x339] sm:$0xff] }
 0x256   :  { %1293 = vst.msk [vmem:[#allocation2 + $0x1a0] sm:$0xff] %vm1240_vm3, %v1153_v53  ;;  %v6303_v53 = vld [vmem:[%s12697_s0 + $0x22] sm:$0xff] }
 0x257   :  { %1304 = vst.msk [vmem:[#allocation2 + $0x1f8] sm:$0xff] %vm1240_vm3, %v1175_v51 }
 0x25a   :  { %1501 = vrot.lane.b32.xlu1 %v6272_v52, %s7878_s8  ;;  %1499 = vrot.lane.b32.xlu0 %v6271_v62, %s7878_s8 }
 0x25b   :  { %1503 = vrot.lane.b32.xlu2 %v6273_v58, %s7878_s8  ;;  %v6305_v58 = vld [vmem:[%s12697_s0 + $0x3a] sm:$0xff] }
 0x25c   :  { %v1161_v59 = vpop.permute.xlu1 %1160  ;;  %v1159_v7 = vpop.permute.xlu0 %1158 }
 0x25d   :  { %1297 = vst.msk [vmem:[#allocation2 + $0x1c0] sm:$0xff] %vm1240_vm3, %v1161_v59  ;;  %v1438_v3 = vpop.permute.xlu2 %1437  ;;  %v6304_v59 = vld [vmem:[%s12697_s0 + $0x32] sm:$0xff] }
 0x25e   :  { %1296 = vst.msk [vmem:[#allocation2 + $0x1b8] sm:$0xff] %vm1240_vm3, %v1159_v7  ;;  %v6306_v7 = vld [vmem:[%s12697_s0 + $0x4a] sm:$0xff] }
 0x25f   :  { %1628 = vst.msk [vmem:[#allocation2 + $0x10] sm:$0xff] %vm1625_vm4, %v1438_v3 }
 0x262   :  { %1507 = vrot.lane.b32.xlu1 %v6275_v4, %s7878_s8  ;;  %1505 = vrot.lane.b32.xlu0 %v6274_v16, %s7878_s8 }
 0x263   :  { %1509 = vrot.lane.b32.xlu2 %v6276_v12, %s7878_s8  ;;  %v6308_v12 = vld [vmem:[%s12697_s0 + $0x62] sm:$0xff] }
 0x264   :  { %v1167_v13 = vpop.permute.xlu1 %1166  ;;  %v1165_v25 = vpop.permute.xlu0 %1164 }
 0x265   :  { %1300 = vst.msk [vmem:[#allocation2 + $0x1d8] sm:$0xff] %vm1240_vm3, %v1167_v13  ;;  %v1444_v21 = vpop.permute.xlu2 %1443  ;;  %v6307_v13 = vld [vmem:[%s12697_s0 + $0x52] sm:$0xff] }
 0x266   :  { %1299 = vst.msk [vmem:[#allocation2 + $0x1d0] sm:$0xff] %vm1240_vm3, %v1165_v25  ;;  %v6309_v25 = vld [vmem:[%s12697_s0 + $0x6a] sm:$0xff] }
 0x267   :  { %1631 = vst.msk [vmem:[#allocation2 + $0x28] sm:$0xff] %vm1625_vm4, %v1444_v21 }
 0x26a   :  { %1513 = vrot.lane.b32.xlu1 %v6278_v22, %s7878_s8  ;;  %1511 = vrot.lane.b32.xlu0 %v6277_v35, %s7878_s8 }
 0x26b   :  { %1515 = vrot.lane.b32.xlu2 %v6279_v30, %s7878_s8  ;;  %v6311_v30 = vld [vmem:[%s12697_s0 + $0x82] sm:$0xff] }
 0x26c   :  { %v1173_v31 = vpop.permute.xlu1 %1172  ;;  %v1171_v48 = vpop.permute.xlu0 %1170 }
 0x26d   :  { %1303 = vst.msk [vmem:[#allocation2 + $0x1f0] sm:$0xff] %vm1240_vm3, %v1173_v31  ;;  %v1450_v42 = vpop.permute.xlu2 %1449  ;;  %v6310_v31 = vld [vmem:[%s12697_s0 + $0x7a] sm:$0xff] }
 0x26e   :  { %1302 = vst.msk [vmem:[#allocation2 + $0x1e8] sm:$0xff] %vm1240_vm3, %v1171_v48  ;;  %v6312_v48 = vld [vmem:[%s12697_s0 + $0x92] sm:$0xff] }
 0x26f   :  { %1634 = vst.msk [vmem:[#allocation2 + $0x40] sm:$0xff] %vm1625_vm4, %v1450_v42 }
 0x272   :  { %1519 = vrot.lane.b32.xlu1 %v6281_v5, %s7878_s8  ;;  %1517 = vrot.lane.b32.xlu0 %v6280_v43, %s7878_s8 }
 0x273   :  { %1521 = vrot.lane.b32.xlu2 %v6282_v63, %s7878_s8  ;;  %v6314_v63 = vld [vmem:[%s12697_s0 + $0xaa] sm:$0xff] }
 0x274   :  { %v1436_v56 = vpop.permute.xlu1 %1435  ;;  %v1434_v40 = vpop.permute.xlu0 %1433 }
 0x275   :  { %1627 = vst.msk [vmem:[#allocation2 + $0x8] sm:$0xff] %vm1625_vm4, %v1436_v56  ;;  %v1456_v57 = vpop.permute.xlu2 %1455  ;;  %v6313_v56 = vld [vmem:[%s12697_s0 + $0x9a] sm:$0xff] }
 0x276   :  { %1626 = vst.msk [vmem:[#allocation2] sm:$0xff] %vm1625_vm4, %v1434_v40  ;;  %v6315_v40 = vld [vmem:[%s12697_s0 + $0xb2] sm:$0xff] }
 0x277   :  { %1637 = vst.msk [vmem:[#allocation2 + $0x58] sm:$0xff] %vm1625_vm4, %v1456_v57 }
 0x27a   :  { %1525 = vrot.lane.b32.xlu1 %v6284_v11, %s7878_s8  ;;  %1523 = vrot.lane.b32.xlu0 %v6283_v14, %s7878_s8 }
 0x27b   :  { %1527 = vrot.lane.b32.xlu2 %v6285_v8, %s7878_s8  ;;  %v6317_v8 = vld [vmem:[%s12697_s0 + $0xca] sm:$0xff] }
 0x27c   :  { %v1442_v26 = vpop.permute.xlu1 %1441  ;;  %v1440_v19 = vpop.permute.xlu0 %1439 }
 0x27d   :  { %1630 = vst.msk [vmem:[#allocation2 + $0x20] sm:$0xff] %vm1625_vm4, %v1442_v26  ;;  %v1462_v20 = vpop.permute.xlu2 %1461  ;;  %v6316_v26 = vld [vmem:[%s12697_s0 + $0xc2] sm:$0xff] }
 0x27e   :  { %1629 = vst.msk [vmem:[#allocation2 + $0x18] sm:$0xff] %vm1625_vm4, %v1440_v19  ;;  %v6318_v19 = vld [vmem:[%s12697_s0 + $0xda] sm:$0xff] }
 0x27f   :  { %1640 = vst.msk [vmem:[#allocation2 + $0x70] sm:$0xff] %vm1625_vm4, %v1462_v20 }
 0x282   :  { %1531 = vrot.lane.b32.xlu1 %v6287_v41, %s7878_s8  ;;  %1529 = vrot.lane.b32.xlu0 %v6286_v34, %s7878_s8 }
 0x283   :  { %1533 = vrot.lane.b32.xlu2 %v6288_v36, %s7878_s8  ;;  %v6320_v36 = vld [vmem:[%s12697_s0 + $0xf2] sm:$0xff] }
 0x284   :  { %v1448_v0 = vpop.permute.xlu1 %1447  ;;  %v1446_v54 = vpop.permute.xlu0 %1445 }
 0x285   :  { %1633 = vst.msk [vmem:[#allocation2 + $0x38] sm:$0xff] %vm1625_vm4, %v1448_v0  ;;  %v1468_v55 = vpop.permute.xlu2 %1467  ;;  %v6319_v0 = vld [vmem:[%s12697_s0 + $0xe2] sm:$0xff] }
 0x286   :  { %1632 = vst.msk [vmem:[#allocation2 + $0x30] sm:$0xff] %vm1625_vm4, %v1446_v54  ;;  %v6321_v54 = vld [vmem:[%s12697_s0 + $0xfa] sm:$0xff] }
 0x287   :  { %1643 = vst.msk [vmem:[#allocation2 + $0x88] sm:$0xff] %vm1625_vm4, %v1468_v55 }
 0x28a   :  { %1537 = vrot.lane.b32.xlu1 %v6290_v17, %s7878_s8  ;;  %1535 = vrot.lane.b32.xlu0 %v6289_v9, %s7878_s8 }
 0x28b   :  { %1539 = vrot.lane.b32.xlu2 %v6291_v10, %s7878_s8  ;;  %v6323_v10 = vld [vmem:[%s12697_s0 + $0x112] sm:$0xff] }
 0x28c   :  { %v1454_v39 = vpop.permute.xlu1 %1453  ;;  %v1452_v27 = vpop.permute.xlu0 %1451 }
 0x28d   :  { %1636 = vst.msk [vmem:[#allocation2 + $0x50] sm:$0xff] %vm1625_vm4, %v1454_v39  ;;  %v1474_v28 = vpop.permute.xlu2 %1473  ;;  %v6322_v39 = vld [vmem:[%s12697_s0 + $0x10a] sm:$0xff] }
 0x28e   :  { %1635 = vst.msk [vmem:[#allocation2 + $0x48] sm:$0xff] %vm1625_vm4, %v1452_v27  ;;  %v6324_v27 = vld [vmem:[%s12697_s0 + $0x122] sm:$0xff] }
 0x28f   :  { %1646 = vst.msk [vmem:[#allocation2 + $0xa0] sm:$0xff] %vm1625_vm4, %v1474_v28 }
 0x292   :  { %1543 = vrot.lane.b32.xlu1 %v6293_v2, %s7878_s8  ;;  %1541 = vrot.lane.b32.xlu0 %v6292_v50, %s7878_s8 }
 0x293   :  { %1545 = vrot.lane.b32.xlu2 %v6294_v60, %s7878_s8  ;;  %v6326_v60 = vld [vmem:[%s12697_s0 + $0x13a] sm:$0xff] }
 0x294   :  { %v1460_v29 = vpop.permute.xlu1 %1459  ;;  %v1458_v18 = vpop.permute.xlu0 %1457 }
 0x295   :  { %1639 = vst.msk [vmem:[#allocation2 + $0x68] sm:$0xff] %vm1625_vm4, %v1460_v29  ;;  %v1480_v23 = vpop.permute.xlu2 %1479  ;;  %v6325_v29 = vld [vmem:[%s12697_s0 + $0x12a] sm:$0xff] }
 0x296   :  { %1638 = vst.msk [vmem:[#allocation2 + $0x60] sm:$0xff] %vm1625_vm4, %v1458_v18  ;;  %v6327_v18 = vld [vmem:[%s12697_s0 + $0x142] sm:$0xff] }
 0x297   :  { %1649 = vst.msk [vmem:[#allocation2 + $0xb8] sm:$0xff] %vm1625_vm4, %v1480_v23 }
 0x29a   :  { %1549 = vrot.lane.b32.xlu1 %v6296_v6, %s7878_s8  ;;  %1547 = vrot.lane.b32.xlu0 %v6295_v49, %s7878_s8 }
 0x29b   :  { %1551 = vrot.lane.b32.xlu2 %v6297_v15, %s7878_s8  ;;  %v6329_v15 = vld [vmem:[%s12697_s0 + $0x15a] sm:$0xff] }
 0x29c   :  { %v1466_v61 = vpop.permute.xlu1 %1465  ;;  %v1464_v24 = vpop.permute.xlu0 %1463 }
 0x29d   :  { %1642 = vst.msk [vmem:[#allocation2 + $0x80] sm:$0xff] %vm1625_vm4, %v1466_v61  ;;  %v1486_v1 = vpop.permute.xlu2 %1485  ;;  %v6328_v61 = vld [vmem:[%s12697_s0 + $0x152] sm:$0xff] }
 0x29e   :  { %1641 = vst.msk [vmem:[#allocation2 + $0x78] sm:$0xff] %vm1625_vm4, %v1464_v24  ;;  %v6330_v24 = vld [vmem:[%s12697_s0 + $0x16a] sm:$0xff] }
 0x29f   :  { %1652 = vst.msk [vmem:[#allocation2 + $0xd0] sm:$0xff] %vm1625_vm4, %v1486_v1 }
 0x2a2   :  { %1555 = vrot.lane.b32.xlu1 %v6299_v46, %s7878_s8  ;;  %1553 = vrot.lane.b32.xlu0 %v6298_v32, %s7878_s8 }
 0x2a3   :  { %1557 = vrot.lane.b32.xlu2 %v6300_v47, %s7878_s8  ;;  %v6332_v47 = vld [vmem:[%s12697_s0 + $0x182] sm:$0xff] }
 0x2a4   :  { %v1472_v33 = vpop.permute.xlu1 %1471  ;;  %v1470_v37 = vpop.permute.xlu0 %1469 }
 0x2a5   :  { %1645 = vst.msk [vmem:[#allocation2 + $0x98] sm:$0xff] %vm1625_vm4, %v1472_v33  ;;  %v1492_v38 = vpop.permute.xlu2 %1491  ;;  %v6331_v33 = vld [vmem:[%s12697_s0 + $0x172] sm:$0xff] }
 0x2a6   :  { %1644 = vst.msk [vmem:[#allocation2 + $0x90] sm:$0xff] %vm1625_vm4, %v1470_v37  ;;  %v6333_v37 = vld [vmem:[%s12697_s0 + $0x18a] sm:$0xff] }
 0x2a7   :  { %1655 = vst.msk [vmem:[#allocation2 + $0xe8] sm:$0xff] %vm1625_vm4, %v1492_v38 }
 0x2aa   :  { %1818 = vrot.lane.b32.xlu1 %v6302_v44, %s7879_s15  ;;  %1559 = vrot.lane.b32.xlu0 %v6301_v45, %s7878_s8 }
 0x2ab   :  { %1820 = vrot.lane.b32.xlu2 %v6303_v53, %s7879_s15  ;;  %v6335_v53 = vld [vmem:[%s12697_s0 + $0x1d2] sm:$0xff] }
 0x2ac   :  { %v1478_v51 = vpop.permute.xlu1 %1477  ;;  %v1476_v52 = vpop.permute.xlu0 %1475 }
 0x2ad   :  { %1648 = vst.msk [vmem:[#allocation2 + $0xb0] sm:$0xff] %vm1625_vm4, %v1478_v51  ;;  %v1498_v62 = vpop.permute.xlu2 %1497  ;;  %v6334_v51 = vld [vmem:[%s12697_s0 + $0x1ca] sm:$0xff] }
 0x2ae   :  { %1647 = vst.msk [vmem:[#allocation2 + $0xa8] sm:$0xff] %vm1625_vm4, %v1476_v52  ;;  %v6336_v52 = vld [vmem:[%s12697_s0 + $0x1e2] sm:$0xff] }
 0x2af   :  { %1658 = vst.msk [vmem:[#allocation2 + $0x100] sm:$0xff] %vm1625_vm4, %v1498_v62 }
 0x2b2   :  { %1824 = vrot.lane.b32.xlu1 %v6305_v58, %s7879_s15  ;;  %1822 = vrot.lane.b32.xlu0 %v6304_v59, %s7879_s15 }
 0x2b3   :  { %1826 = vrot.lane.b32.xlu2 %v6306_v7, %s7879_s15  ;;  %v6338_v7 = vld [vmem:[%s12697_s0 + $0x1fa] sm:$0xff] }
 0x2b4   :  { %v1484_v3 = vpop.permute.xlu1 %1483  ;;  %v1482_v4 = vpop.permute.xlu0 %1481 }
 0x2b5   :  { %1651 = vst.msk [vmem:[#allocation2 + $0xc8] sm:$0xff] %vm1625_vm4, %v1484_v3  ;;  %v1504_v16 = vpop.permute.xlu2 %1503  ;;  %v6337_v3 = vld [vmem:[%s12697_s0 + $0x1ea] sm:$0xff] }
 0x2b6   :  { %1650 = vst.msk [vmem:[#allocation2 + $0xc0] sm:$0xff] %vm1625_vm4, %v1482_v4  ;;  %v6339_v4 = vld [vmem:[%s12697_s0 + $0x202] sm:$0xff] }
 0x2b7   :  { %1661 = vst.msk [vmem:[#allocation2 + $0x118] sm:$0xff] %vm1625_vm4, %v1504_v16 }
 0x2ba   :  { %1830 = vrot.lane.b32.xlu1 %v6308_v12, %s7879_s15  ;;  %1828 = vrot.lane.b32.xlu0 %v6307_v13, %s7879_s15 }
 0x2bb   :  { %1832 = vrot.lane.b32.xlu2 %v6309_v25, %s7879_s15  ;;  %v6341_v25 = vld [vmem:[%s12697_s0 + $0x21a] sm:$0xff] }
 0x2bc   :  { %v1490_v21 = vpop.permute.xlu1 %1489  ;;  %v1488_v22 = vpop.permute.xlu0 %1487 }
 0x2bd   :  { %1654 = vst.msk [vmem:[#allocation2 + $0xe0] sm:$0xff] %vm1625_vm4, %v1490_v21  ;;  %v1510_v35 = vpop.permute.xlu2 %1509  ;;  %v6340_v21 = vld [vmem:[%s12697_s0 + $0x212] sm:$0xff] }
 0x2be   :  { %1653 = vst.msk [vmem:[#allocation2 + $0xd8] sm:$0xff] %vm1625_vm4, %v1488_v22  ;;  %v6342_v22 = vld [vmem:[%s12697_s0 + $0x22a] sm:$0xff] }
 0x2bf   :  { %1664 = vst.msk [vmem:[#allocation2 + $0x130] sm:$0xff] %vm1625_vm4, %v1510_v35 }
 0x2c2   :  { %1836 = vrot.lane.b32.xlu1 %v6311_v30, %s7879_s15  ;;  %1834 = vrot.lane.b32.xlu0 %v6310_v31, %s7879_s15 }
 0x2c3   :  { %1838 = vrot.lane.b32.xlu2 %v6312_v48, %s7879_s15  ;;  %v6344_v48 = vld [vmem:[%s12697_s0 + $0x242] sm:$0xff] }
 0x2c4   :  { %v1496_v42 = vpop.permute.xlu1 %1495  ;;  %v1494_v5 = vpop.permute.xlu0 %1493 }
 0x2c5   :  { %1657 = vst.msk [vmem:[#allocation2 + $0xf8] sm:$0xff] %vm1625_vm4, %v1496_v42  ;;  %v1516_v43 = vpop.permute.xlu2 %1515  ;;  %v6343_v42 = vld [vmem:[%s12697_s0 + $0x232] sm:$0xff] }
 0x2c6   :  { %1656 = vst.msk [vmem:[#allocation2 + $0xf0] sm:$0xff] %vm1625_vm4, %v1494_v5  ;;  %v6345_v5 = vld [vmem:[%s12697_s0 + $0x24a] sm:$0xff] }
 0x2c7   :  { %1667 = vst.msk [vmem:[#allocation2 + $0x148] sm:$0xff] %vm1625_vm4, %v1516_v43 }
 0x2ca   :  { %1842 = vrot.lane.b32.xlu1 %v6314_v63, %s7879_s15  ;;  %1840 = vrot.lane.b32.xlu0 %v6313_v56, %s7879_s15 }
 0x2cb   :  { %1844 = vrot.lane.b32.xlu2 %v6315_v40, %s7879_s15  ;;  %v6347_v40 = vld [vmem:[%s12697_s0 + $0x262] sm:$0xff] }
 0x2cc   :  { %v1502_v57 = vpop.permute.xlu1 %1501  ;;  %v1500_v11 = vpop.permute.xlu0 %1499 }
 0x2cd   :  { %1660 = vst.msk [vmem:[#allocation2 + $0x110] sm:$0xff] %vm1625_vm4, %v1502_v57  ;;  %v1522_v14 = vpop.permute.xlu2 %1521  ;;  %v6346_v57 = vld [vmem:[%s12697_s0 + $0x25a] sm:$0xff] }
 0x2ce   :  { %1659 = vst.msk [vmem:[#allocation2 + $0x108] sm:$0xff] %vm1625_vm4, %v1500_v11  ;;  %v6348_v11 = vld [vmem:[%s12697_s0 + $0x272] sm:$0xff] }
 0x2cf   :  { %1670 = vst.msk [vmem:[#allocation2 + $0x160] sm:$0xff] %vm1625_vm4, %v1522_v14 }
 0x2d2   :  { %1848 = vrot.lane.b32.xlu1 %v6317_v8, %s7879_s15  ;;  %1846 = vrot.lane.b32.xlu0 %v6316_v26, %s7879_s15 }
 0x2d3   :  { %1850 = vrot.lane.b32.xlu2 %v6318_v19, %s7879_s15  ;;  %v6350_v19 = vld [vmem:[%s12697_s0 + $0x28a] sm:$0xff] }
 0x2d4   :  { %v1508_v20 = vpop.permute.xlu1 %1507  ;;  %v1506_v41 = vpop.permute.xlu0 %1505 }
 0x2d5   :  { %1663 = vst.msk [vmem:[#allocation2 + $0x128] sm:$0xff] %vm1625_vm4, %v1508_v20  ;;  %v1528_v34 = vpop.permute.xlu2 %1527  ;;  %v6349_v20 = vld [vmem:[%s12697_s0 + $0x27a] sm:$0xff] }
 0x2d6   :  { %1662 = vst.msk [vmem:[#allocation2 + $0x120] sm:$0xff] %vm1625_vm4, %v1506_v41  ;;  %v6351_v41 = vld [vmem:[%s12697_s0 + $0x292] sm:$0xff] }
 0x2d7   :  { %1673 = vst.msk [vmem:[#allocation2 + $0x178] sm:$0xff] %vm1625_vm4, %v1528_v34 }
 0x2da   :  { %1854 = vrot.lane.b32.xlu1 %v6320_v36, %s7879_s15  ;;  %1852 = vrot.lane.b32.xlu0 %v6319_v0, %s7879_s15 }
 0x2db   :  { %1856 = vrot.lane.b32.xlu2 %v6321_v54, %s7879_s15  ;;  %v6353_v54 = vld [vmem:[%s12697_s0 + $0x2aa] sm:$0xff] }
 0x2dc   :  { %v1514_v55 = vpop.permute.xlu1 %1513  ;;  %v1512_v17 = vpop.permute.xlu0 %1511 }
 0x2dd   :  { %1666 = vst.msk [vmem:[#allocation2 + $0x140] sm:$0xff] %vm1625_vm4, %v1514_v55  ;;  %v1534_v9 = vpop.permute.xlu2 %1533  ;;  %v6352_v55 = vld [vmem:[%s12697_s0 + $0x2a2] sm:$0xff] }
 0x2de   :  { %1665 = vst.msk [vmem:[#allocation2 + $0x138] sm:$0xff] %vm1625_vm4, %v1512_v17  ;;  %v6354_v17 = vld [vmem:[%s12697_s0 + $0x2ba] sm:$0xff] }
 0x2df   :  { %1676 = vst.msk [vmem:[#allocation2 + $0x190] sm:$0xff] %vm1625_vm4, %v1534_v9 }
 0x2e2   :  { %1860 = vrot.lane.b32.xlu1 %v6323_v10, %s7879_s15  ;;  %1858 = vrot.lane.b32.xlu0 %v6322_v39, %s7879_s15 }
 0x2e3   :  { %1862 = vrot.lane.b32.xlu2 %v6324_v27, %s7879_s15  ;;  %v6356_v27 = vld [vmem:[%s12697_s0 + $0x2d2] sm:$0xff] }
 0x2e4   :  { %v1520_v28 = vpop.permute.xlu1 %1519  ;;  %v1518_v2 = vpop.permute.xlu0 %1517 }
 0x2e5   :  { %1669 = vst.msk [vmem:[#allocation2 + $0x158] sm:$0xff] %vm1625_vm4, %v1520_v28  ;;  %v1540_v50 = vpop.permute.xlu2 %1539  ;;  %v6355_v28 = vld [vmem:[%s12697_s0 + $0x2c2] sm:$0xff] }
 0x2e6   :  { %1668 = vst.msk [vmem:[#allocation2 + $0x150] sm:$0xff] %vm1625_vm4, %v1518_v2  ;;  %v6357_v2 = vld [vmem:[%s12697_s0 + $0x2da] sm:$0xff] }
 0x2e7   :  { %1679 = vst.msk [vmem:[#allocation2 + $0x1a8] sm:$0xff] %vm1625_vm4, %v1540_v50 }
 0x2ea   :  { %1866 = vrot.lane.b32.xlu1 %v6326_v60, %s7879_s15  ;;  %1864 = vrot.lane.b32.xlu0 %v6325_v29, %s7879_s15 }
 0x2eb   :  { %1868 = vrot.lane.b32.xlu2 %v6327_v18, %s7879_s15  ;;  %v6359_v18 = vld [vmem:[%s12697_s0 + $0x2f2] sm:$0xff] }
 0x2ec   :  { %v1526_v23 = vpop.permute.xlu1 %1525  ;;  %v1524_v6 = vpop.permute.xlu0 %1523 }
 0x2ed   :  { %1672 = vst.msk [vmem:[#allocation2 + $0x170] sm:$0xff] %vm1625_vm4, %v1526_v23  ;;  %v1546_v49 = vpop.permute.xlu2 %1545  ;;  %v6358_v23 = vld [vmem:[%s12697_s0 + $0x2ea] sm:$0xff] }
 0x2ee   :  { %1671 = vst.msk [vmem:[#allocation2 + $0x168] sm:$0xff] %vm1625_vm4, %v1524_v6  ;;  %v6360_v6 = vld [vmem:[%s12697_s0 + $0x302] sm:$0xff] }
 0x2ef   :  { %1682 = vst.msk [vmem:[#allocation2 + $0x1c0] sm:$0xff] %vm1625_vm4, %v1546_v49 }
 0x2f2   :  { %1872 = vrot.lane.b32.xlu1 %v6329_v15, %s7879_s15  ;;  %1870 = vrot.lane.b32.xlu0 %v6328_v61, %s7879_s15 }
 0x2f3   :  { %1874 = vrot.lane.b32.xlu2 %v6330_v24, %s7879_s15  ;;  %v6362_v24 = vld [vmem:[%s12697_s0 + $0x31a] sm:$0xff] }
 0x2f4   :  { %v1532_v1 = vpop.permute.xlu1 %1531  ;;  %v1530_v46 = vpop.permute.xlu0 %1529 }
 0x2f5   :  { %1675 = vst.msk [vmem:[#allocation2 + $0x188] sm:$0xff] %vm1625_vm4, %v1532_v1  ;;  %v1552_v32 = vpop.permute.xlu2 %1551  ;;  %v6361_v1 = vld [vmem:[%s12697_s0 + $0x30a] sm:$0xff] }
 0x2f6   :  { %1674 = vst.msk [vmem:[#allocation2 + $0x180] sm:$0xff] %vm1625_vm4, %v1530_v46  ;;  %v6363_v46 = vld [vmem:[%s12697_s0 + $0x322] sm:$0xff] }
 0x2f7   :  { %1685 = vst.msk [vmem:[#allocation2 + $0x1d8] sm:$0xff] %vm1625_vm4, %v1552_v32 }
 0x2fa   :  { %1878 = vrot.lane.b32.xlu1 %v6332_v47, %s7879_s15  ;;  %1876 = vrot.lane.b32.xlu0 %v6331_v33, %s7879_s15 }
 0x2fb   :  { %1880 = vrot.lane.b32.xlu2 %v6333_v37, %s7879_s15  ;;  %v6365_v37 = vld [vmem:[%s12697_s0 + $0x33a] sm:$0xff] }
 0x2fc   :  { %v1538_v38 = vpop.permute.xlu1 %1537  ;;  %v1536_v44 = vpop.permute.xlu0 %1535 }
 0x2fd   :  { %1678 = vst.msk [vmem:[#allocation2 + $0x1a0] sm:$0xff] %vm1625_vm4, %v1538_v38  ;;  %v1558_v45 = vpop.permute.xlu2 %1557  ;;  %v6364_v38 = vld [vmem:[%s12697_s0 + $0x332] sm:$0xff] }
 0x2fe   :  { %1677 = vst.msk [vmem:[#allocation2 + $0x198] sm:$0xff] %vm1625_vm4, %v1536_v44  ;;  %v6366_v44 = vld [vmem:[%s12697_s0 + $0x30] sm:$0xff] }
 0x2ff   :  { %1688 = vst.msk [vmem:[#allocation2 + $0x1f0] sm:$0xff] %vm1625_vm4, %v1558_v45 }
 0x302   :  { %1884 = vrot.lane.b32.xlu1 %v6335_v53, %s7879_s15  ;;  %1882 = vrot.lane.b32.xlu0 %v6334_v51, %s7879_s15 }
 0x303   :  { %1886 = vrot.lane.b32.xlu2 %v6336_v52, %s7879_s15  ;;  %v6368_v52 = vld [vmem:[%s12697_s0 + $0x48] sm:$0xff] }
 0x304   :  { %v1544_v62 = vpop.permute.xlu1 %1543  ;;  %v1542_v58 = vpop.permute.xlu0 %1541 }
 0x305   :  { %1681 = vst.msk [vmem:[#allocation2 + $0x1b8] sm:$0xff] %vm1625_vm4, %v1544_v62  ;;  %v1821_v59 = vpop.permute.xlu2 %1820  ;;  %v6367_v62 = vld [vmem:[%s12697_s0 + $0x38] sm:$0xff] }
 0x306   :  { %1680 = vst.msk [vmem:[#allocation2 + $0x1b0] sm:$0xff] %vm1625_vm4, %v1542_v58  ;;  %v6369_v58 = vld [vmem:[%s12697_s0 + $0x50] sm:$0xff] }
 0x307   :  { %2012 = vst.msk [vmem:[#allocation2 + $0x8] sm:$0xff] %vm2010_vm5, %v1821_v59 }
 0x30a   :  { %1890 = vrot.lane.b32.xlu1 %v6338_v7, %s7879_s15  ;;  %1888 = vrot.lane.b32.xlu0 %v6337_v3, %s7879_s15 }
 0x30b   :  { %1892 = vrot.lane.b32.xlu2 %v6339_v4, %s7879_s15  ;;  %v6371_v4 = vld [vmem:[%s12697_s0 + $0x68] sm:$0xff] }
 0x30c   :  { %v1550_v16 = vpop.permute.xlu1 %1549  ;;  %v1548_v12 = vpop.permute.xlu0 %1547 }
 0x30d   :  { %1684 = vst.msk [vmem:[#allocation2 + $0x1d0] sm:$0xff] %vm1625_vm4, %v1550_v16  ;;  %v1827_v13 = vpop.permute.xlu2 %1826  ;;  %v6370_v16 = vld [vmem:[%s12697_s0 + $0x60] sm:$0xff] }
 0x30e   :  { %1683 = vst.msk [vmem:[#allocation2 + $0x1c8] sm:$0xff] %vm1625_vm4, %v1548_v12  ;;  %v6372_v12 = vld [vmem:[%s12697_s0 + $0x78] sm:$0xff] }
 0x30f   :  { %2015 = vst.msk [vmem:[#allocation2 + $0x20] sm:$0xff] %vm2010_vm5, %v1827_v13 }
 0x312   :  { %1896 = vrot.lane.b32.xlu1 %v6341_v25, %s7879_s15  ;;  %1894 = vrot.lane.b32.xlu0 %v6340_v21, %s7879_s15 }
 0x313   :  { %1898 = vrot.lane.b32.xlu2 %v6342_v22, %s7879_s15  ;;  %v6374_v22 = vld [vmem:[%s12697_s0 + $0x90] sm:$0xff] }
 0x314   :  { %v1556_v35 = vpop.permute.xlu1 %1555  ;;  %v1554_v30 = vpop.permute.xlu0 %1553 }
 0x315   :  { %1687 = vst.msk [vmem:[#allocation2 + $0x1e8] sm:$0xff] %vm1625_vm4, %v1556_v35  ;;  %v1833_v31 = vpop.permute.xlu2 %1832  ;;  %v6373_v35 = vld [vmem:[%s12697_s0 + $0x80] sm:$0xff] }
 0x316   :  { %1686 = vst.msk [vmem:[#allocation2 + $0x1e0] sm:$0xff] %vm1625_vm4, %v1554_v30  ;;  %v6375_v30 = vld [vmem:[%s12697_s0 + $0x98] sm:$0xff] }
 0x317   :  { %2018 = vst.msk [vmem:[#allocation2 + $0x38] sm:$0xff] %vm2010_vm5, %v1833_v31 }
 0x31a   :  { %1902 = vrot.lane.b32.xlu1 %v6344_v48, %s7879_s15  ;;  %1900 = vrot.lane.b32.xlu0 %v6343_v42, %s7879_s15 }
 0x31b   :  { %1904 = vrot.lane.b32.xlu2 %v6345_v5, %s7879_s15  ;;  %v6377_v5 = vld [vmem:[%s12697_s0 + $0xb0] sm:$0xff] }
 0x31c   :  { %v1819_v43 = vpop.permute.xlu1 %1818  ;;  %v1560_v63 = vpop.permute.xlu0 %1559 }
 0x31d   :  { %2011 = vst.msk [vmem:[#allocation2] sm:$0xff] %vm2010_vm5, %v1819_v43  ;;  %v1839_v56 = vpop.permute.xlu2 %1838  ;;  %v6376_v43 = vld [vmem:[%s12697_s0 + $0xa8] sm:$0xff] }
 0x31e   :  { %1689 = vst.msk [vmem:[#allocation2 + $0x1f8] sm:$0xff] %vm1625_vm4, %v1560_v63  ;;  %v6378_v63 = vld [vmem:[%s12697_s0 + $0xc0] sm:$0xff] }
 0x31f   :  { %2021 = vst.msk [vmem:[#allocation2 + $0x50] sm:$0xff] %vm2010_vm5, %v1839_v56 }
 0x322   :  { %1908 = vrot.lane.b32.xlu1 %v6347_v40, %s7879_s15  ;;  %1906 = vrot.lane.b32.xlu0 %v6346_v57, %s7879_s15 }
 0x323   :  { %1910 = vrot.lane.b32.xlu2 %v6348_v11, %s7879_s15  ;;  %v6380_v11 = vld [vmem:[%s12697_s0 + $0xd8] sm:$0xff] }
 0x324   :  { %v1825_v14 = vpop.permute.xlu1 %1824  ;;  %v1823_v8 = vpop.permute.xlu0 %1822 }
 0x325   :  { %2014 = vst.msk [vmem:[#allocation2 + $0x18] sm:$0xff] %vm2010_vm5, %v1825_v14  ;;  %v1845_v26 = vpop.permute.xlu2 %1844  ;;  %v6379_v14 = vld [vmem:[%s12697_s0 + $0xc8] sm:$0xff] }
 0x326   :  { %2013 = vst.msk [vmem:[#allocation2 + $0x10] sm:$0xff] %vm2010_vm5, %v1823_v8  ;;  %v6381_v8 = vld [vmem:[%s12697_s0 + $0xe0] sm:$0xff] }
 0x327   :  { %2024 = vst.msk [vmem:[#allocation2 + $0x68] sm:$0xff] %vm2010_vm5, %v1845_v26 }
 0x32a   :  { %1914 = vrot.lane.b32.xlu1 %v6350_v19, %s7879_s15  ;;  %1912 = vrot.lane.b32.xlu0 %v6349_v20, %s7879_s15 }
 0x32b   :  { %1916 = vrot.lane.b32.xlu2 %v6351_v41, %s7879_s15  ;;  %v6383_v41 = vld [vmem:[%s12697_s0 + $0xf8] sm:$0xff] }
 0x32c   :  { %v1831_v34 = vpop.permute.xlu1 %1830  ;;  %v1829_v36 = vpop.permute.xlu0 %1828 }
 0x32d   :  { %2017 = vst.msk [vmem:[#allocation2 + $0x30] sm:$0xff] %vm2010_vm5, %v1831_v34  ;;  %v1851_v0 = vpop.permute.xlu2 %1850  ;;  %v6382_v34 = vld [vmem:[%s12697_s0 + $0xf0] sm:$0xff] }
 0x32e   :  { %2016 = vst.msk [vmem:[#allocation2 + $0x28] sm:$0xff] %vm2010_vm5, %v1829_v36  ;;  %v6384_v36 = vld [vmem:[%s12697_s0 + $0x108] sm:$0xff] }
 0x32f   :  { %2027 = vst.msk [vmem:[#allocation2 + $0x80] sm:$0xff] %vm2010_vm5, %v1851_v0 }
 0x332   :  { %1920 = vrot.lane.b32.xlu1 %v6353_v54, %s7879_s15  ;;  %1918 = vrot.lane.b32.xlu0 %v6352_v55, %s7879_s15 }
 0x333   :  { %1922 = vrot.lane.b32.xlu2 %v6354_v17, %s7879_s15  ;;  %v6386_v17 = vld [vmem:[%s12697_s0 + $0x120] sm:$0xff] }
 0x334   :  { %v1837_v9 = vpop.permute.xlu1 %1836  ;;  %v1835_v10 = vpop.permute.xlu0 %1834 }
 0x335   :  { %2020 = vst.msk [vmem:[#allocation2 + $0x48] sm:$0xff] %vm2010_vm5, %v1837_v9  ;;  %v1857_v39 = vpop.permute.xlu2 %1856  ;;  %v6385_v9 = vld [vmem:[%s12697_s0 + $0x110] sm:$0xff] }
 0x336   :  { %2019 = vst.msk [vmem:[#allocation2 + $0x40] sm:$0xff] %vm2010_vm5, %v1835_v10  ;;  %v6387_v10 = vld [vmem:[%s12697_s0 + $0x128] sm:$0xff] }
 0x337   :  { %2030 = vst.msk [vmem:[#allocation2 + $0x98] sm:$0xff] %vm2010_vm5, %v1857_v39 }
 0x33a   :  { %1926 = vrot.lane.b32.xlu1 %v6356_v27, %s7879_s15  ;;  %1924 = vrot.lane.b32.xlu0 %v6355_v28, %s7879_s15 }
 0x33b   :  { %1928 = vrot.lane.b32.xlu2 %v6357_v2, %s7879_s15  ;;  %v6389_v2 = vld [vmem:[%s12697_s0 + $0x140] sm:$0xff] }
 0x33c   :  { %v1843_v50 = vpop.permute.xlu1 %1842  ;;  %v1841_v60 = vpop.permute.xlu0 %1840 }
 0x33d   :  { %2023 = vst.msk [vmem:[#allocation2 + $0x60] sm:$0xff] %vm2010_vm5, %v1843_v50  ;;  %v1863_v29 = vpop.permute.xlu2 %1862  ;;  %v6388_v50 = vld [vmem:[%s12697_s0 + $0x138] sm:$0xff] }
 0x33e   :  { %2022 = vst.msk [vmem:[#allocation2 + $0x58] sm:$0xff] %vm2010_vm5, %v1841_v60  ;;  %v6390_v60 = vld [vmem:[%s12697_s0 + $0x150] sm:$0xff] }
 0x33f   :  { %2033 = vst.msk [vmem:[#allocation2 + $0xb0] sm:$0xff] %vm2010_vm5, %v1863_v29 }
 0x342   :  { %1932 = vrot.lane.b32.xlu1 %v6359_v18, %s7879_s15  ;;  %1930 = vrot.lane.b32.xlu0 %v6358_v23, %s7879_s15 }
 0x343   :  { %1934 = vrot.lane.b32.xlu2 %v6360_v6, %s7879_s15  ;;  %v6392_v6 = vld [vmem:[%s12697_s0 + $0x168] sm:$0xff] }
 0x344   :  { %v1849_v49 = vpop.permute.xlu1 %1848  ;;  %v1847_v15 = vpop.permute.xlu0 %1846 }
 0x345   :  { %2026 = vst.msk [vmem:[#allocation2 + $0x78] sm:$0xff] %vm2010_vm5, %v1849_v49  ;;  %v1869_v61 = vpop.permute.xlu2 %1868  ;;  %v6391_v49 = vld [vmem:[%s12697_s0 + $0x158] sm:$0xff] }
 0x346   :  { %2025 = vst.msk [vmem:[#allocation2 + $0x70] sm:$0xff] %vm2010_vm5, %v1847_v15  ;;  %v6393_v15 = vld [vmem:[%s12697_s0 + $0x170] sm:$0xff] }
 0x347   :  { %2036 = vst.msk [vmem:[#allocation2 + $0xc8] sm:$0xff] %vm2010_vm5, %v1869_v61 }
 0x34a   :  { %1938 = vrot.lane.b32.xlu1 %v6362_v24, %s7879_s15  ;;  %1936 = vrot.lane.b32.xlu0 %v6361_v1, %s7879_s15 }
 0x34b   :  { %1940 = vrot.lane.b32.xlu2 %v6363_v46, %s7879_s15  ;;  %v6395_v46 = vld [vmem:[%s12697_s0 + $0x188] sm:$0xff] }
 0x34c   :  { %v1855_v32 = vpop.permute.xlu1 %1854  ;;  %v1853_v47 = vpop.permute.xlu0 %1852 }
 0x34d   :  { %2029 = vst.msk [vmem:[#allocation2 + $0x90] sm:$0xff] %vm2010_vm5, %v1855_v32  ;;  %v1875_v33 = vpop.permute.xlu2 %1874  ;;  %v6394_v32 = vld [vmem:[%s12697_s0 + $0x180] sm:$0xff] }
 0x34e   :  { %2028 = vst.msk [vmem:[#allocation2 + $0x88] sm:$0xff] %vm2010_vm5, %v1853_v47  ;;  %v6396_v47 = vld [vmem:[%s12697_s0 + $0x198] sm:$0xff] }
 0x34f   :  { %2039 = vst.msk [vmem:[#allocation2 + $0xe0] sm:$0xff] %vm2010_vm5, %v1875_v33 }
 0x352   :  { %1944 = vrot.lane.b32.xlu1 %v6365_v37, %s7879_s15  ;;  %1942 = vrot.lane.b32.xlu0 %v6364_v38, %s7879_s15 }
 0x353   :  { %2204 = vrot.lane.b32.xlu2 %v6366_v44, %s7880_s21  ;;  %v6398_v44 = vld [vmem:[%s12697_s0 + $0x1e0] sm:$0xff] }
 0x354   :  { %v1861_v45 = vpop.permute.xlu1 %1860  ;;  %v1859_v53 = vpop.permute.xlu0 %1858 }
 0x355   :  { %2032 = vst.msk [vmem:[#allocation2 + $0xa8] sm:$0xff] %vm2010_vm5, %v1861_v45  ;;  %v1881_v51 = vpop.permute.xlu2 %1880  ;;  %v6397_v45 = vld [vmem:[%s12697_s0 + $0x1a0] sm:$0xff] }
 0x356   :  { %2031 = vst.msk [vmem:[#allocation2 + $0xa0] sm:$0xff] %vm2010_vm5, %v1859_v53  ;;  %v6399_v53 = vld [vmem:[%s12697_s0 + $0x1e8] sm:$0xff] }
 0x357   :  { %2042 = vst.msk [vmem:[#allocation2 + $0xf8] sm:$0xff] %vm2010_vm5, %v1881_v51 }
 0x35a   :  { %2208 = vrot.lane.b32.xlu1 %v6368_v52, %s7880_s21  ;;  %2206 = vrot.lane.b32.xlu0 %v6367_v62, %s7880_s21 }
 0x35b   :  { %2210 = vrot.lane.b32.xlu2 %v6369_v58, %s7880_s21  ;;  %v6401_v58 = vld [vmem:[%s12697_s0 + $0x200] sm:$0xff] }
 0x35c   :  { %v1867_v59 = vpop.permute.xlu1 %1866  ;;  %v1865_v7 = vpop.permute.xlu0 %1864 }
 0x35d   :  { %2035 = vst.msk [vmem:[#allocation2 + $0xc0] sm:$0xff] %vm2010_vm5, %v1867_v59  ;;  %v1887_v3 = vpop.permute.xlu2 %1886  ;;  %v6400_v59 = vld [vmem:[%s12697_s0 + $0x1f8] sm:$0xff] }
 0x35e   :  { %2034 = vst.msk [vmem:[#allocation2 + $0xb8] sm:$0xff] %vm2010_vm5, %v1865_v7  ;;  %v6402_v7 = vld [vmem:[%s12697_s0 + $0x210] sm:$0xff] }
 0x35f   :  { %2045 = vst.msk [vmem:[#allocation2 + $0x110] sm:$0xff] %vm2010_vm5, %v1887_v3 }
 0x362   :  { %2214 = vrot.lane.b32.xlu1 %v6371_v4, %s7880_s21  ;;  %2212 = vrot.lane.b32.xlu0 %v6370_v16, %s7880_s21 }
 0x363   :  { %2216 = vrot.lane.b32.xlu2 %v6372_v12, %s7880_s21  ;;  %v6404_v12 = vld [vmem:[%s12697_s0 + $0x228] sm:$0xff] }
 0x364   :  { %v1873_v13 = vpop.permute.xlu1 %1872  ;;  %v1871_v25 = vpop.permute.xlu0 %1870 }
 0x365   :  { %2038 = vst.msk [vmem:[#allocation2 + $0xd8] sm:$0xff] %vm2010_vm5, %v1873_v13  ;;  %v1893_v21 = vpop.permute.xlu2 %1892  ;;  %v6403_v13 = vld [vmem:[%s12697_s0 + $0x218] sm:$0xff] }
 0x366   :  { %2037 = vst.msk [vmem:[#allocation2 + $0xd0] sm:$0xff] %vm2010_vm5, %v1871_v25  ;;  %v6405_v25 = vld [vmem:[%s12697_s0 + $0x230] sm:$0xff] }
 0x367   :  { %2048 = vst.msk [vmem:[#allocation2 + $0x128] sm:$0xff] %vm2010_vm5, %v1893_v21 }
 0x36a   :  { %2220 = vrot.lane.b32.xlu1 %v6374_v22, %s7880_s21  ;;  %2218 = vrot.lane.b32.xlu0 %v6373_v35, %s7880_s21 }
 0x36b   :  { %2222 = vrot.lane.b32.xlu2 %v6375_v30, %s7880_s21  ;;  %v6407_v30 = vld [vmem:[%s12697_s0 + $0x248] sm:$0xff] }
 0x36c   :  { %v1879_v31 = vpop.permute.xlu1 %1878  ;;  %v1877_v48 = vpop.permute.xlu0 %1876 }
 0x36d   :  { %2041 = vst.msk [vmem:[#allocation2 + $0xf0] sm:$0xff] %vm2010_vm5, %v1879_v31  ;;  %v1899_v42 = vpop.permute.xlu2 %1898  ;;  %v6406_v31 = vld [vmem:[%s12697_s0 + $0x240] sm:$0xff] }
 0x36e   :  { %2040 = vst.msk [vmem:[#allocation2 + $0xe8] sm:$0xff] %vm2010_vm5, %v1877_v48  ;;  %v6408_v48 = vld [vmem:[%s12697_s0 + $0x258] sm:$0xff] }
 0x36f   :  { %2051 = vst.msk [vmem:[#allocation2 + $0x140] sm:$0xff] %vm2010_vm5, %v1899_v42 }
 0x372   :  { %2226 = vrot.lane.b32.xlu1 %v6377_v5, %s7880_s21  ;;  %2224 = vrot.lane.b32.xlu0 %v6376_v43, %s7880_s21 }
 0x373   :  { %2228 = vrot.lane.b32.xlu2 %v6378_v63, %s7880_s21  ;;  %v6410_v63 = vld [vmem:[%s12697_s0 + $0x270] sm:$0xff] }
 0x374   :  { %v1885_v56 = vpop.permute.xlu1 %1884  ;;  %v1883_v40 = vpop.permute.xlu0 %1882 }
 0x375   :  { %2044 = vst.msk [vmem:[#allocation2 + $0x108] sm:$0xff] %vm2010_vm5, %v1885_v56  ;;  %v1905_v57 = vpop.permute.xlu2 %1904  ;;  %v6409_v56 = vld [vmem:[%s12697_s0 + $0x260] sm:$0xff] }
 0x376   :  { %2043 = vst.msk [vmem:[#allocation2 + $0x100] sm:$0xff] %vm2010_vm5, %v1883_v40  ;;  %v6411_v40 = vld [vmem:[%s12697_s0 + $0x278] sm:$0xff] }
 0x377   :  { %2054 = vst.msk [vmem:[#allocation2 + $0x158] sm:$0xff] %vm2010_vm5, %v1905_v57 }
 0x37a   :  { %2232 = vrot.lane.b32.xlu1 %v6380_v11, %s7880_s21  ;;  %2230 = vrot.lane.b32.xlu0 %v6379_v14, %s7880_s21 }
 0x37b   :  { %2234 = vrot.lane.b32.xlu2 %v6381_v8, %s7880_s21  ;;  %v6413_v8 = vld [vmem:[%s12697_s0 + $0x290] sm:$0xff] }
 0x37c   :  { %v1891_v26 = vpop.permute.xlu1 %1890  ;;  %v1889_v19 = vpop.permute.xlu0 %1888 }
 0x37d   :  { %2047 = vst.msk [vmem:[#allocation2 + $0x120] sm:$0xff] %vm2010_vm5, %v1891_v26  ;;  %v1911_v20 = vpop.permute.xlu2 %1910  ;;  %v6412_v26 = vld [vmem:[%s12697_s0 + $0x288] sm:$0xff] }
 0x37e   :  { %2046 = vst.msk [vmem:[#allocation2 + $0x118] sm:$0xff] %vm2010_vm5, %v1889_v19  ;;  %v6414_v19 = vld [vmem:[%s12697_s0 + $0x2a0] sm:$0xff] }
 0x37f   :  { %2057 = vst.msk [vmem:[#allocation2 + $0x170] sm:$0xff] %vm2010_vm5, %v1911_v20 }
 0x382   :  { %2238 = vrot.lane.b32.xlu1 %v6383_v41, %s7880_s21  ;;  %2236 = vrot.lane.b32.xlu0 %v6382_v34, %s7880_s21 }
 0x383   :  { %2240 = vrot.lane.b32.xlu2 %v6384_v36, %s7880_s21  ;;  %v6416_v36 = vld [vmem:[%s12697_s0 + $0x2b8] sm:$0xff] }
 0x384   :  { %v1897_v0 = vpop.permute.xlu1 %1896  ;;  %v1895_v54 = vpop.permute.xlu0 %1894 }
 0x385   :  { %2050 = vst.msk [vmem:[#allocation2 + $0x138] sm:$0xff] %vm2010_vm5, %v1897_v0  ;;  %v1917_v55 = vpop.permute.xlu2 %1916  ;;  %v6415_v0 = vld [vmem:[%s12697_s0 + $0x2a8] sm:$0xff] }
 0x386   :  { %2049 = vst.msk [vmem:[#allocation2 + $0x130] sm:$0xff] %vm2010_vm5, %v1895_v54  ;;  %v6417_v54 = vld [vmem:[%s12697_s0 + $0x2c0] sm:$0xff] }
 0x387   :  { %2060 = vst.msk [vmem:[#allocation2 + $0x188] sm:$0xff] %vm2010_vm5, %v1917_v55 }
 0x38a   :  { %2244 = vrot.lane.b32.xlu1 %v6386_v17, %s7880_s21  ;;  %2242 = vrot.lane.b32.xlu0 %v6385_v9, %s7880_s21 }
 0x38b   :  { %2246 = vrot.lane.b32.xlu2 %v6387_v10, %s7880_s21  ;;  %v6419_v10 = vld [vmem:[%s12697_s0 + $0x2d8] sm:$0xff] }
 0x38c   :  { %v1903_v39 = vpop.permute.xlu1 %1902  ;;  %v1901_v27 = vpop.permute.xlu0 %1900 }
 0x38d   :  { %2053 = vst.msk [vmem:[#allocation2 + $0x150] sm:$0xff] %vm2010_vm5, %v1903_v39  ;;  %v1923_v28 = vpop.permute.xlu2 %1922  ;;  %v6418_v39 = vld [vmem:[%s12697_s0 + $0x2d0] sm:$0xff] }
 0x38e   :  { %2052 = vst.msk [vmem:[#allocation2 + $0x148] sm:$0xff] %vm2010_vm5, %v1901_v27  ;;  %v6420_v27 = vld [vmem:[%s12697_s0 + $0x2e8] sm:$0xff] }
 0x38f   :  { %2063 = vst.msk [vmem:[#allocation2 + $0x1a0] sm:$0xff] %vm2010_vm5, %v1923_v28 }
 0x392   :  { %2250 = vrot.lane.b32.xlu1 %v6389_v2, %s7880_s21  ;;  %2248 = vrot.lane.b32.xlu0 %v6388_v50, %s7880_s21 }
 0x393   :  { %2252 = vrot.lane.b32.xlu2 %v6390_v60, %s7880_s21  ;;  %v6422_v60 = vld [vmem:[%s12697_s0 + $0x300] sm:$0xff] }
 0x394   :  { %v1909_v29 = vpop.permute.xlu1 %1908  ;;  %v1907_v18 = vpop.permute.xlu0 %1906 }
 0x395   :  { %2056 = vst.msk [vmem:[#allocation2 + $0x168] sm:$0xff] %vm2010_vm5, %v1909_v29  ;;  %v1929_v23 = vpop.permute.xlu2 %1928  ;;  %v6421_v29 = vld [vmem:[%s12697_s0 + $0x2f0] sm:$0xff] }
 0x396   :  { %2055 = vst.msk [vmem:[#allocation2 + $0x160] sm:$0xff] %vm2010_vm5, %v1907_v18  ;;  %v6423_v18 = vld [vmem:[%s12697_s0 + $0x308] sm:$0xff] }
 0x397   :  { %2066 = vst.msk [vmem:[#allocation2 + $0x1b8] sm:$0xff] %vm2010_vm5, %v1929_v23 }
 0x39a   :  { %2256 = vrot.lane.b32.xlu1 %v6392_v6, %s7880_s21  ;;  %2254 = vrot.lane.b32.xlu0 %v6391_v49, %s7880_s21 }
 0x39b   :  { %2258 = vrot.lane.b32.xlu2 %v6393_v15, %s7880_s21  ;;  %v6425_v15 = vld [vmem:[%s12697_s0 + $0x320] sm:$0xff] }
 0x39c   :  { %v1915_v61 = vpop.permute.xlu1 %1914  ;;  %v1913_v24 = vpop.permute.xlu0 %1912 }
 0x39d   :  { %2059 = vst.msk [vmem:[#allocation2 + $0x180] sm:$0xff] %vm2010_vm5, %v1915_v61  ;;  %v1935_v1 = vpop.permute.xlu2 %1934  ;;  %v6424_v61 = vld [vmem:[%s12697_s0 + $0x318] sm:$0xff] }
 0x39e   :  { %2058 = vst.msk [vmem:[#allocation2 + $0x178] sm:$0xff] %vm2010_vm5, %v1913_v24  ;;  %v6426_v24 = vld [vmem:[%s12697_s0 + $0x330] sm:$0xff] }
 0x39f   :  { %2069 = vst.msk [vmem:[#allocation2 + $0x1d0] sm:$0xff] %vm2010_vm5, %v1935_v1 }
 0x3a2   :  { %2262 = vrot.lane.b32.xlu1 %v6395_v46, %s7880_s21  ;;  %2260 = vrot.lane.b32.xlu0 %v6394_v32, %s7880_s21 }
 0x3a3   :  { %2264 = vrot.lane.b32.xlu2 %v6396_v47, %s7880_s21  ;;  %v6428_v47 = vld [vmem:[%s12697_s0 + $0x348] sm:$0xff] }
 0x3a4   :  { %v1921_v33 = vpop.permute.xlu1 %1920  ;;  %v1919_v37 = vpop.permute.xlu0 %1918 }
 0x3a5   :  { %2062 = vst.msk [vmem:[#allocation2 + $0x198] sm:$0xff] %vm2010_vm5, %v1921_v33  ;;  %v1941_v38 = vpop.permute.xlu2 %1940  ;;  %v6427_v33 = vld [vmem:[%s12697_s0 + $0x338] sm:$0xff] }
 0x3a6   :  { %2061 = vst.msk [vmem:[#allocation2 + $0x190] sm:$0xff] %vm2010_vm5, %v1919_v37  ;;  %v6429_v37 = vld [vmem:[%s12697_s0 + $0x350] sm:$0xff] }
 0x3a7   :  { %2072 = vst.msk [vmem:[#allocation2 + $0x1e8] sm:$0xff] %vm2010_vm5, %v1941_v38 }
 0x3aa   :  { %2268 = vrot.lane.b32.xlu1 %v6398_v44, %s7880_s21  ;;  %2266 = vrot.lane.b32.xlu0 %v6397_v45, %s7880_s21 }
 0x3ab   :  { %2270 = vrot.lane.b32.xlu2 %v6399_v53, %s7880_s21  ;;  %v6431_v53 = vld [vmem:[%s12697_s0 + $0x39] sm:$0xff] }
 0x3ac   :  { %v1927_v51 = vpop.permute.xlu1 %1926  ;;  %v1925_v52 = vpop.permute.xlu0 %1924 }
 0x3ad   :  { %2065 = vst.msk [vmem:[#allocation2 + $0x1b0] sm:$0xff] %vm2010_vm5, %v1927_v51  ;;  %v2205_v62 = vpop.permute.xlu2 %2204  ;;  %v6430_v51 = vld [vmem:[%s12697_s0 + $0x31] sm:$0xff] }
 0x3ae   :  { %2064 = vst.msk [vmem:[#allocation2 + $0x1a8] sm:$0xff] %vm2010_vm5, %v1925_v52  ;;  %v6432_v52 = vld [vmem:[%s12697_s0 + $0x49] sm:$0xff] }
 0x3af   :  { %2397 = vst.msk [vmem:[#allocation2] sm:$0xff] %vm2396_vm6, %v2205_v62 }
 0x3b2   :  { %2274 = vrot.lane.b32.xlu1 %v6401_v58, %s7880_s21  ;;  %2272 = vrot.lane.b32.xlu0 %v6400_v59, %s7880_s21 }
 0x3b3   :  { %2276 = vrot.lane.b32.xlu2 %v6402_v7, %s7880_s21  ;;  %v6434_v7 = vld [vmem:[%s12697_s0 + $0x61] sm:$0xff] }
 0x3b4   :  { %v1933_v3 = vpop.permute.xlu1 %1932  ;;  %v1931_v4 = vpop.permute.xlu0 %1930 }
 0x3b5   :  { %2068 = vst.msk [vmem:[#allocation2 + $0x1c8] sm:$0xff] %vm2010_vm5, %v1933_v3  ;;  %v2211_v16 = vpop.permute.xlu2 %2210  ;;  %v6433_v3 = vld [vmem:[%s12697_s0 + $0x51] sm:$0xff] }
 0x3b6   :  { %2067 = vst.msk [vmem:[#allocation2 + $0x1c0] sm:$0xff] %vm2010_vm5, %v1931_v4  ;;  %v6435_v4 = vld [vmem:[%s12697_s0 + $0x69] sm:$0xff] }
 0x3b7   :  { %2400 = vst.msk [vmem:[#allocation2 + $0x18] sm:$0xff] %vm2396_vm6, %v2211_v16 }
 0x3ba   :  { %2280 = vrot.lane.b32.xlu1 %v6404_v12, %s7880_s21  ;;  %2278 = vrot.lane.b32.xlu0 %v6403_v13, %s7880_s21 }
 0x3bb   :  { %2282 = vrot.lane.b32.xlu2 %v6405_v25, %s7880_s21  ;;  %v6437_v25 = vld [vmem:[%s12697_s0 + $0x81] sm:$0xff] }
 0x3bc   :  { %v1939_v21 = vpop.permute.xlu1 %1938  ;;  %v1937_v22 = vpop.permute.xlu0 %1936 }
 0x3bd   :  { %2071 = vst.msk [vmem:[#allocation2 + $0x1e0] sm:$0xff] %vm2010_vm5, %v1939_v21  ;;  %v2217_v35 = vpop.permute.xlu2 %2216  ;;  %v6436_v21 = vld [vmem:[%s12697_s0 + $0x79] sm:$0xff] }
 0x3be   :  { %2070 = vst.msk [vmem:[#allocation2 + $0x1d8] sm:$0xff] %vm2010_vm5, %v1937_v22  ;;  %v6438_v22 = vld [vmem:[%s12697_s0 + $0x91] sm:$0xff] }
 0x3bf   :  { %2403 = vst.msk [vmem:[#allocation2 + $0x30] sm:$0xff] %vm2396_vm6, %v2217_v35 }
 0x3c2   :  { %2286 = vrot.lane.b32.xlu1 %v6407_v30, %s7880_s21  ;;  %2284 = vrot.lane.b32.xlu0 %v6406_v31, %s7880_s21 }
 0x3c3   :  { %2288 = vrot.lane.b32.xlu2 %v6408_v48, %s7880_s21  ;;  %v6440_v48 = vld [vmem:[%s12697_s0 + $0xa9] sm:$0xff] }
 0x3c4   :  { %v1945_v42 = vpop.permute.xlu1 %1944  ;;  %v1943_v5 = vpop.permute.xlu0 %1942 }
 0x3c5   :  { %2074 = vst.msk [vmem:[#allocation2 + $0x1f8] sm:$0xff] %vm2010_vm5, %v1945_v42  ;;  %v2223_v43 = vpop.permute.xlu2 %2222  ;;  %v6439_v42 = vld [vmem:[%s12697_s0 + $0x99] sm:$0xff] }
 0x3c6   :  { %2073 = vst.msk [vmem:[#allocation2 + $0x1f0] sm:$0xff] %vm2010_vm5, %v1943_v5  ;;  %v6441_v5 = vld [vmem:[%s12697_s0 + $0xb1] sm:$0xff] }
 0x3c7   :  { %2406 = vst.msk [vmem:[#allocation2 + $0x48] sm:$0xff] %vm2396_vm6, %v2223_v43 }
 0x3ca   :  { %2292 = vrot.lane.b32.xlu1 %v6410_v63, %s7880_s21  ;;  %2290 = vrot.lane.b32.xlu0 %v6409_v56, %s7880_s21 }
 0x3cb   :  { %2294 = vrot.lane.b32.xlu2 %v6411_v40, %s7880_s21  ;;  %v6443_v40 = vld [vmem:[%s12697_s0 + $0xc9] sm:$0xff] }
 0x3cc   :  { %v2209_v57 = vpop.permute.xlu1 %2208  ;;  %v2207_v11 = vpop.permute.xlu0 %2206 }
 0x3cd   :  { %2399 = vst.msk [vmem:[#allocation2 + $0x10] sm:$0xff] %vm2396_vm6, %v2209_v57  ;;  %v2229_v14 = vpop.permute.xlu2 %2228  ;;  %v6442_v57 = vld [vmem:[%s12697_s0 + $0xc1] sm:$0xff] }
 0x3ce   :  { %2398 = vst.msk [vmem:[#allocation2 + $0x8] sm:$0xff] %vm2396_vm6, %v2207_v11  ;;  %v6444_v11 = vld [vmem:[%s12697_s0 + $0xd9] sm:$0xff] }
 0x3cf   :  { %2409 = vst.msk [vmem:[#allocation2 + $0x60] sm:$0xff] %vm2396_vm6, %v2229_v14 }
 0x3d2   :  { %2298 = vrot.lane.b32.xlu1 %v6413_v8, %s7880_s21  ;;  %2296 = vrot.lane.b32.xlu0 %v6412_v26, %s7880_s21 }
 0x3d3   :  { %2300 = vrot.lane.b32.xlu2 %v6414_v19, %s7880_s21  ;;  %v6446_v19 = vld [vmem:[%s12697_s0 + $0xf1] sm:$0xff] }
 0x3d4   :  { %v2215_v20 = vpop.permute.xlu1 %2214  ;;  %v2213_v41 = vpop.permute.xlu0 %2212 }
 0x3d5   :  { %2402 = vst.msk [vmem:[#allocation2 + $0x28] sm:$0xff] %vm2396_vm6, %v2215_v20  ;;  %v2235_v34 = vpop.permute.xlu2 %2234  ;;  %v6445_v20 = vld [vmem:[%s12697_s0 + $0xe1] sm:$0xff] }
 0x3d6   :  { %2401 = vst.msk [vmem:[#allocation2 + $0x20] sm:$0xff] %vm2396_vm6, %v2213_v41  ;;  %v6447_v41 = vld [vmem:[%s12697_s0 + $0xf9] sm:$0xff] }
 0x3d7   :  { %2412 = vst.msk [vmem:[#allocation2 + $0x78] sm:$0xff] %vm2396_vm6, %v2235_v34 }
 0x3da   :  { %2304 = vrot.lane.b32.xlu1 %v6416_v36, %s7880_s21  ;;  %2302 = vrot.lane.b32.xlu0 %v6415_v0, %s7880_s21 }
 0x3db   :  { %2306 = vrot.lane.b32.xlu2 %v6417_v54, %s7880_s21  ;;  %v6449_v54 = vld [vmem:[%s12697_s0 + $0x111] sm:$0xff] }
 0x3dc   :  { %v2221_v55 = vpop.permute.xlu1 %2220  ;;  %v2219_v17 = vpop.permute.xlu0 %2218 }
 0x3dd   :  { %2405 = vst.msk [vmem:[#allocation2 + $0x40] sm:$0xff] %vm2396_vm6, %v2221_v55  ;;  %v2241_v9 = vpop.permute.xlu2 %2240  ;;  %v6448_v55 = vld [vmem:[%s12697_s0 + $0x109] sm:$0xff] }
 0x3de   :  { %2404 = vst.msk [vmem:[#allocation2 + $0x38] sm:$0xff] %vm2396_vm6, %v2219_v17  ;;  %v6450_v17 = vld [vmem:[%s12697_s0 + $0x121] sm:$0xff] }
 0x3df   :  { %2415 = vst.msk [vmem:[#allocation2 + $0x90] sm:$0xff] %vm2396_vm6, %v2241_v9 }
 0x3e2   :  { %2310 = vrot.lane.b32.xlu1 %v6419_v10, %s7880_s21  ;;  %2308 = vrot.lane.b32.xlu0 %v6418_v39, %s7880_s21 }
 0x3e3   :  { %2312 = vrot.lane.b32.xlu2 %v6420_v27, %s7880_s21  ;;  %v6452_v27 = vld [vmem:[%s12697_s0 + $0x139] sm:$0xff] }
 0x3e4   :  { %v2227_v28 = vpop.permute.xlu1 %2226  ;;  %v2225_v2 = vpop.permute.xlu0 %2224 }
 0x3e5   :  { %2408 = vst.msk [vmem:[#allocation2 + $0x58] sm:$0xff] %vm2396_vm6, %v2227_v28  ;;  %v2247_v50 = vpop.permute.xlu2 %2246  ;;  %v6451_v28 = vld [vmem:[%s12697_s0 + $0x129] sm:$0xff] }
 0x3e6   :  { %2407 = vst.msk [vmem:[#allocation2 + $0x50] sm:$0xff] %vm2396_vm6, %v2225_v2  ;;  %v6453_v2 = vld [vmem:[%s12697_s0 + $0x141] sm:$0xff] }
 0x3e7   :  { %2418 = vst.msk [vmem:[#allocation2 + $0xa8] sm:$0xff] %vm2396_vm6, %v2247_v50 }
 0x3ea   :  { %2316 = vrot.lane.b32.xlu1 %v6422_v60, %s7880_s21  ;;  %2314 = vrot.lane.b32.xlu0 %v6421_v29, %s7880_s21 }
 0x3eb   :  { %2318 = vrot.lane.b32.xlu2 %v6423_v18, %s7880_s21  ;;  %v6455_v18 = vld [vmem:[%s12697_s0 + $0x159] sm:$0xff] }
 0x3ec   :  { %v2233_v23 = vpop.permute.xlu1 %2232  ;;  %v2231_v6 = vpop.permute.xlu0 %2230 }
 0x3ed   :  { %2411 = vst.msk [vmem:[#allocation2 + $0x70] sm:$0xff] %vm2396_vm6, %v2233_v23  ;;  %v2253_v49 = vpop.permute.xlu2 %2252  ;;  %v6454_v23 = vld [vmem:[%s12697_s0 + $0x151] sm:$0xff] }
 0x3ee   :  { %2410 = vst.msk [vmem:[#allocation2 + $0x68] sm:$0xff] %vm2396_vm6, %v2231_v6  ;;  %v6456_v6 = vld [vmem:[%s12697_s0 + $0x169] sm:$0xff] }
 0x3ef   :  { %2421 = vst.msk [vmem:[#allocation2 + $0xc0] sm:$0xff] %vm2396_vm6, %v2253_v49 }
 0x3f2   :  { %2322 = vrot.lane.b32.xlu1 %v6425_v15, %s7880_s21  ;;  %2320 = vrot.lane.b32.xlu0 %v6424_v61, %s7880_s21 }
 0x3f3   :  { %2324 = vrot.lane.b32.xlu2 %v6426_v24, %s7880_s21  ;;  %v6458_v24 = vld [vmem:[%s12697_s0 + $0x181] sm:$0xff] }
 0x3f4   :  { %v2239_v1 = vpop.permute.xlu1 %2238  ;;  %v2237_v46 = vpop.permute.xlu0 %2236 }
 0x3f5   :  { %2414 = vst.msk [vmem:[#allocation2 + $0x88] sm:$0xff] %vm2396_vm6, %v2239_v1  ;;  %v2259_v32 = vpop.permute.xlu2 %2258  ;;  %v6457_v1 = vld [vmem:[%s12697_s0 + $0x171] sm:$0xff] }
 0x3f6   :  { %2413 = vst.msk [vmem:[#allocation2 + $0x80] sm:$0xff] %vm2396_vm6, %v2237_v46  ;;  %v6459_v46 = vld [vmem:[%s12697_s0 + $0x189] sm:$0xff] }
 0x3f7   :  { %2424 = vst.msk [vmem:[#allocation2 + $0xd8] sm:$0xff] %vm2396_vm6, %v2259_v32 }
 0x3fa   :  { %2328 = vrot.lane.b32.xlu1 %v6428_v47, %s7880_s21  ;;  %2326 = vrot.lane.b32.xlu0 %v6427_v33, %s7880_s21 }
 0x3fb   :  { %2330 = vrot.lane.b32.xlu2 %v6429_v37, %s7880_s21  ;;  %s7881_s21 = smov 28   ;;  %v6461_v37 = vld [vmem:[%s12697_s0 + $0x1a1] sm:$0xff] }
 0x3fc   :  { %v2245_v38 = vpop.permute.xlu1 %2244  ;;  %v2243_v44 = vpop.permute.xlu0 %2242 }
 0x3fd   :  { %2417 = vst.msk [vmem:[#allocation2 + $0xa0] sm:$0xff] %vm2396_vm6, %v2245_v38  ;;  %v2265_v45 = vpop.permute.xlu2 %2264  ;;  %v6460_v38 = vld [vmem:[%s12697_s0 + $0x199] sm:$0xff] }
 0x3fe   :  { %2416 = vst.msk [vmem:[#allocation2 + $0x98] sm:$0xff] %vm2396_vm6, %v2243_v44  ;;  %v6462_v44 = vld [vmem:[%s12697_s0 + $0x1e1] sm:$0xff] }
 0x3ff   :  { %2427 = vst.msk [vmem:[#allocation2 + $0xf0] sm:$0xff] %vm2396_vm6, %v2265_v45 }
 0x402   :  { %2591 = vrot.lane.b32.xlu1 %v6431_v53, %s7881_s21  ;;  %2589 = vrot.lane.b32.xlu0 %v6430_v51, %s7881_s21 }
 0x403   :  { %2593 = vrot.lane.b32.xlu2 %v6432_v52, %s7881_s21  ;;  %v6464_v52 = vld [vmem:[%s12697_s0 + $0x1f9] sm:$0xff] }
 0x404   :  { %v2251_v62 = vpop.permute.xlu1 %2250  ;;  %v2249_v58 = vpop.permute.xlu0 %2248 }
 0x405   :  { %2420 = vst.msk [vmem:[#allocation2 + $0xb8] sm:$0xff] %vm2396_vm6, %v2251_v62  ;;  %v2271_v59 = vpop.permute.xlu2 %2270  ;;  %v6463_v62 = vld [vmem:[%s12697_s0 + $0x1e9] sm:$0xff] }
 0x406   :  { %2419 = vst.msk [vmem:[#allocation2 + $0xb0] sm:$0xff] %vm2396_vm6, %v2249_v58  ;;  %v6465_v58 = vld [vmem:[%s12697_s0 + $0x201] sm:$0xff] }
 0x407   :  { %2430 = vst.msk [vmem:[#allocation2 + $0x108] sm:$0xff] %vm2396_vm6, %v2271_v59 }
 0x40a   :  { %2597 = vrot.lane.b32.xlu1 %v6434_v7, %s7881_s21  ;;  %2595 = vrot.lane.b32.xlu0 %v6433_v3, %s7881_s21 }
 0x40b   :  { %2599 = vrot.lane.b32.xlu2 %v6435_v4, %s7881_s21  ;;  %v6467_v4 = vld [vmem:[%s12697_s0 + $0x219] sm:$0xff] }
 0x40c   :  { %v2257_v16 = vpop.permute.xlu1 %2256  ;;  %v2255_v12 = vpop.permute.xlu0 %2254 }
 0x40d   :  { %2423 = vst.msk [vmem:[#allocation2 + $0xd0] sm:$0xff] %vm2396_vm6, %v2257_v16  ;;  %v2277_v13 = vpop.permute.xlu2 %2276  ;;  %v6466_v16 = vld [vmem:[%s12697_s0 + $0x211] sm:$0xff] }
 0x40e   :  { %2422 = vst.msk [vmem:[#allocation2 + $0xc8] sm:$0xff] %vm2396_vm6, %v2255_v12  ;;  %v6468_v12 = vld [vmem:[%s12697_s0 + $0x229] sm:$0xff] }
 0x40f   :  { %2433 = vst.msk [vmem:[#allocation2 + $0x120] sm:$0xff] %vm2396_vm6, %v2277_v13 }
 0x412   :  { %2603 = vrot.lane.b32.xlu1 %v6437_v25, %s7881_s21  ;;  %2601 = vrot.lane.b32.xlu0 %v6436_v21, %s7881_s21 }
 0x413   :  { %2605 = vrot.lane.b32.xlu2 %v6438_v22, %s7881_s21  ;;  %v6470_v22 = vld [vmem:[%s12697_s0 + $0x241] sm:$0xff] }
 0x414   :  { %v2263_v35 = vpop.permute.xlu1 %2262  ;;  %v2261_v30 = vpop.permute.xlu0 %2260 }
 0x415   :  { %2426 = vst.msk [vmem:[#allocation2 + $0xe8] sm:$0xff] %vm2396_vm6, %v2263_v35  ;;  %v2283_v31 = vpop.permute.xlu2 %2282  ;;  %v6469_v35 = vld [vmem:[%s12697_s0 + $0x231] sm:$0xff] }
 0x416   :  { %2425 = vst.msk [vmem:[#allocation2 + $0xe0] sm:$0xff] %vm2396_vm6, %v2261_v30  ;;  %v6471_v30 = vld [vmem:[%s12697_s0 + $0x249] sm:$0xff] }
 0x417   :  { %2436 = vst.msk [vmem:[#allocation2 + $0x138] sm:$0xff] %vm2396_vm6, %v2283_v31 }
 0x41a   :  { %2609 = vrot.lane.b32.xlu1 %v6440_v48, %s7881_s21  ;;  %2607 = vrot.lane.b32.xlu0 %v6439_v42, %s7881_s21 }
 0x41b   :  { %2611 = vrot.lane.b32.xlu2 %v6441_v5, %s7881_s21  ;;  %v6473_v5 = vld [vmem:[%s12697_s0 + $0x261] sm:$0xff] }
 0x41c   :  { %v2269_v43 = vpop.permute.xlu1 %2268  ;;  %v2267_v63 = vpop.permute.xlu0 %2266 }
 0x41d   :  { %2429 = vst.msk [vmem:[#allocation2 + $0x100] sm:$0xff] %vm2396_vm6, %v2269_v43  ;;  %v2289_v56 = vpop.permute.xlu2 %2288  ;;  %v6472_v43 = vld [vmem:[%s12697_s0 + $0x259] sm:$0xff] }
 0x41e   :  { %2428 = vst.msk [vmem:[#allocation2 + $0xf8] sm:$0xff] %vm2396_vm6, %v2267_v63  ;;  %v6474_v63 = vld [vmem:[%s12697_s0 + $0x271] sm:$0xff] }
 0x41f   :  { %2439 = vst.msk [vmem:[#allocation2 + $0x150] sm:$0xff] %vm2396_vm6, %v2289_v56 }
 0x422   :  { %2615 = vrot.lane.b32.xlu1 %v6443_v40, %s7881_s21  ;;  %2613 = vrot.lane.b32.xlu0 %v6442_v57, %s7881_s21 }
 0x423   :  { %2617 = vrot.lane.b32.xlu2 %v6444_v11, %s7881_s21  ;;  %v6476_v11 = vld [vmem:[%s12697_s0 + $0x289] sm:$0xff] }
 0x424   :  { %v2275_v14 = vpop.permute.xlu1 %2274  ;;  %v2273_v8 = vpop.permute.xlu0 %2272 }
 0x425   :  { %2432 = vst.msk [vmem:[#allocation2 + $0x118] sm:$0xff] %vm2396_vm6, %v2275_v14  ;;  %v2295_v26 = vpop.permute.xlu2 %2294  ;;  %v6475_v14 = vld [vmem:[%s12697_s0 + $0x279] sm:$0xff] }
 0x426   :  { %2431 = vst.msk [vmem:[#allocation2 + $0x110] sm:$0xff] %vm2396_vm6, %v2273_v8  ;;  %v6477_v8 = vld [vmem:[%s12697_s0 + $0x291] sm:$0xff] }
 0x427   :  { %2442 = vst.msk [vmem:[#allocation2 + $0x168] sm:$0xff] %vm2396_vm6, %v2295_v26 }
 0x42a   :  { %2621 = vrot.lane.b32.xlu1 %v6446_v19, %s7881_s21  ;;  %2619 = vrot.lane.b32.xlu0 %v6445_v20, %s7881_s21 }
 0x42b   :  { %2623 = vrot.lane.b32.xlu2 %v6447_v41, %s7881_s21  ;;  %v6479_v41 = vld [vmem:[%s12697_s0 + $0x2a9] sm:$0xff] }
 0x42c   :  { %v2281_v34 = vpop.permute.xlu1 %2280  ;;  %v2279_v36 = vpop.permute.xlu0 %2278 }
 0x42d   :  { %2435 = vst.msk [vmem:[#allocation2 + $0x130] sm:$0xff] %vm2396_vm6, %v2281_v34  ;;  %v2301_v0 = vpop.permute.xlu2 %2300  ;;  %v6478_v34 = vld [vmem:[%s12697_s0 + $0x2a1] sm:$0xff] }
 0x42e   :  { %2434 = vst.msk [vmem:[#allocation2 + $0x128] sm:$0xff] %vm2396_vm6, %v2279_v36  ;;  %v6480_v36 = vld [vmem:[%s12697_s0 + $0x2b9] sm:$0xff] }
 0x42f   :  { %2445 = vst.msk [vmem:[#allocation2 + $0x180] sm:$0xff] %vm2396_vm6, %v2301_v0 }
 0x432   :  { %2627 = vrot.lane.b32.xlu1 %v6449_v54, %s7881_s21  ;;  %2625 = vrot.lane.b32.xlu0 %v6448_v55, %s7881_s21 }
 0x433   :  { %2629 = vrot.lane.b32.xlu2 %v6450_v17, %s7881_s21  ;;  %v6482_v17 = vld [vmem:[%s12697_s0 + $0x2d1] sm:$0xff] }
 0x434   :  { %v2287_v9 = vpop.permute.xlu1 %2286  ;;  %v2285_v10 = vpop.permute.xlu0 %2284 }
 0x435   :  { %2438 = vst.msk [vmem:[#allocation2 + $0x148] sm:$0xff] %vm2396_vm6, %v2287_v9  ;;  %v2307_v39 = vpop.permute.xlu2 %2306  ;;  %v6481_v9 = vld [vmem:[%s12697_s0 + $0x2c1] sm:$0xff] }
 0x436   :  { %2437 = vst.msk [vmem:[#allocation2 + $0x140] sm:$0xff] %vm2396_vm6, %v2285_v10  ;;  %v6483_v10 = vld [vmem:[%s12697_s0 + $0x2d9] sm:$0xff] }
 0x437   :  { %2448 = vst.msk [vmem:[#allocation2 + $0x198] sm:$0xff] %vm2396_vm6, %v2307_v39 }
 0x43a   :  { %2633 = vrot.lane.b32.xlu1 %v6452_v27, %s7881_s21  ;;  %2631 = vrot.lane.b32.xlu0 %v6451_v28, %s7881_s21 }
 0x43b   :  { %2635 = vrot.lane.b32.xlu2 %v6453_v2, %s7881_s21  ;;  %v6485_v2 = vld [vmem:[%s12697_s0 + $0x2f1] sm:$0xff] }
 0x43c   :  { %v2293_v50 = vpop.permute.xlu1 %2292  ;;  %v2291_v60 = vpop.permute.xlu0 %2290 }
 0x43d   :  { %2441 = vst.msk [vmem:[#allocation2 + $0x160] sm:$0xff] %vm2396_vm6, %v2293_v50  ;;  %v2313_v29 = vpop.permute.xlu2 %2312  ;;  %v6484_v50 = vld [vmem:[%s12697_s0 + $0x2e9] sm:$0xff] }
 0x43e   :  { %2440 = vst.msk [vmem:[#allocation2 + $0x158] sm:$0xff] %vm2396_vm6, %v2291_v60  ;;  %v6486_v60 = vld [vmem:[%s12697_s0 + $0x301] sm:$0xff] }
 0x43f   :  { %2451 = vst.msk [vmem:[#allocation2 + $0x1b0] sm:$0xff] %vm2396_vm6, %v2313_v29 }
 0x442   :  { %2639 = vrot.lane.b32.xlu1 %v6455_v18, %s7881_s21  ;;  %2637 = vrot.lane.b32.xlu0 %v6454_v23, %s7881_s21 }
 0x443   :  { %2641 = vrot.lane.b32.xlu2 %v6456_v6, %s7881_s21  ;;  %v6488_v6 = vld [vmem:[%s12697_s0 + $0x319] sm:$0xff] }
 0x444   :  { %v2299_v49 = vpop.permute.xlu1 %2298  ;;  %v2297_v15 = vpop.permute.xlu0 %2296 }
 0x445   :  { %2444 = vst.msk [vmem:[#allocation2 + $0x178] sm:$0xff] %vm2396_vm6, %v2299_v49  ;;  %v2319_v61 = vpop.permute.xlu2 %2318  ;;  %v6487_v49 = vld [vmem:[%s12697_s0 + $0x309] sm:$0xff] }
 0x446   :  { %2443 = vst.msk [vmem:[#allocation2 + $0x170] sm:$0xff] %vm2396_vm6, %v2297_v15  ;;  %v6489_v15 = vld [vmem:[%s12697_s0 + $0x321] sm:$0xff] }
 0x447   :  { %2454 = vst.msk [vmem:[#allocation2 + $0x1c8] sm:$0xff] %vm2396_vm6, %v2319_v61 }
 0x44a   :  { %2645 = vrot.lane.b32.xlu1 %v6458_v24, %s7881_s21  ;;  %2643 = vrot.lane.b32.xlu0 %v6457_v1, %s7881_s21 }
 0x44b   :  { %2647 = vrot.lane.b32.xlu2 %v6459_v46, %s7881_s21  ;;  %v6491_v46 = vld [vmem:[%s12697_s0 + $0x339] sm:$0xff] }
 0x44c   :  { %v2305_v32 = vpop.permute.xlu1 %2304  ;;  %v2303_v47 = vpop.permute.xlu0 %2302 }
 0x44d   :  { %2447 = vst.msk [vmem:[#allocation2 + $0x190] sm:$0xff] %vm2396_vm6, %v2305_v32  ;;  %v2325_v33 = vpop.permute.xlu2 %2324  ;;  %v6490_v32 = vld [vmem:[%s12697_s0 + $0x331] sm:$0xff] }
 0x44e   :  { %2446 = vst.msk [vmem:[#allocation2 + $0x188] sm:$0xff] %vm2396_vm6, %v2303_v47  ;;  %v6492_v47 = vld [vmem:[%s12697_s0 + $0x349] sm:$0xff] }
 0x44f   :  { %2457 = vst.msk [vmem:[#allocation2 + $0x1e0] sm:$0xff] %vm2396_vm6, %v2325_v33 }
 0x452   :  { %2651 = vrot.lane.b32.xlu1 %v6461_v37, %s7881_s21  ;;  %2649 = vrot.lane.b32.xlu0 %v6460_v38, %s7881_s21 }
 0x453   :  { %2653 = vrot.lane.b32.xlu2 %v6462_v44, %s7881_s21  ;;  %v6494_v44 = vld [vmem:[%s12697_s0 + $0x32] sm:$0xff] }
 0x454   :  { %v2311_v45 = vpop.permute.xlu1 %2310  ;;  %v2309_v53 = vpop.permute.xlu0 %2308 }
 0x455   :  { %2450 = vst.msk [vmem:[#allocation2 + $0x1a8] sm:$0xff] %vm2396_vm6, %v2311_v45  ;;  %v2331_v51 = vpop.permute.xlu2 %2330  ;;  %v6493_v45 = vld [vmem:[%s12697_s0 + $0x351] sm:$0xff] }
 0x456   :  { %2449 = vst.msk [vmem:[#allocation2 + $0x1a0] sm:$0xff] %vm2396_vm6, %v2309_v53  ;;  %v6495_v53 = vld [vmem:[%s12697_s0 + $0x3a] sm:$0xff] }
 0x457   :  { %2460 = vst.msk [vmem:[#allocation2 + $0x1f8] sm:$0xff] %vm2396_vm6, %v2331_v51 }
 0x45a   :  { %2657 = vrot.lane.b32.xlu1 %v6464_v52, %s7881_s21  ;;  %2655 = vrot.lane.b32.xlu0 %v6463_v62, %s7881_s21 }
 0x45b   :  { %2659 = vrot.lane.b32.xlu2 %v6465_v58, %s7881_s21  ;;  %v6496_v58 = vld [vmem:[%s12697_s0 + $0x4a] sm:$0xff] }
 0x45c   :  { %v2317_v59 = vpop.permute.xlu1 %2316  ;;  %v2315_v7 = vpop.permute.xlu0 %2314 }
 0x45d   :  { %2453 = vst.msk [vmem:[#allocation2 + $0x1c0] sm:$0xff] %vm2396_vm6, %v2317_v59  ;;  %v2594_v3 = vpop.permute.xlu2 %2593  ;;  %v6497_v59 = vld [vmem:[%s12697_s0 + $0x52] sm:$0xff] }
 0x45e   :  { %2452 = vst.msk [vmem:[#allocation2 + $0x1b8] sm:$0xff] %vm2396_vm6, %v2315_v7 }
 0x45f   :  { %2784 = vst.msk [vmem:[#allocation2 + $0x10] sm:$0xff] %vm2781_vm7, %v2594_v3 }
 0x462   :  { %2663 = vrot.lane.b32.xlu1 %v6467_v4, %s7881_s21  ;;  %2661 = vrot.lane.b32.xlu0 %v6466_v16, %s7881_s21  ;;  %v6499_v16 = vld [vmem:[%s12697_s0 + $0x6a] sm:$0xff] }
 0x463   :  { %2665 = vrot.lane.b32.xlu2 %v6468_v12, %s7881_s21  ;;  %v6500_v12 = vld [vmem:[%s12697_s0 + $0x7a] sm:$0xff] }
 0x464   :  { %v2323_v13 = vpop.permute.xlu1 %2322  ;;  %v2321_v25 = vpop.permute.xlu0 %2320 }
 0x465   :  { %2456 = vst.msk [vmem:[#allocation2 + $0x1d8] sm:$0xff] %vm2396_vm6, %v2323_v13  ;;  %v2600_v21 = vpop.permute.xlu2 %2599 }
 0x466   :  { %2455 = vst.msk [vmem:[#allocation2 + $0x1d0] sm:$0xff] %vm2396_vm6, %v2321_v25 }
 0x467   :  { %2787 = vst.msk [vmem:[#allocation2 + $0x28] sm:$0xff] %vm2781_vm7, %v2600_v21  ;;  %v6498_v21 = vld [vmem:[%s12697_s0 + $0x62] sm:$0xff] }
 0x46a   :  { %2669 = vrot.lane.b32.xlu1 %v6470_v22, %s7881_s21  ;;  %2667 = vrot.lane.b32.xlu0 %v6469_v35, %s7881_s21 }
 0x46b   :  { %2671 = vrot.lane.b32.xlu2 %v6471_v30, %s7881_s21 }
 0x46c   :  { %v2329_v31 = vpop.permute.xlu1 %2328  ;;  %v2327_v48 = vpop.permute.xlu0 %2326 }
 0x46d   :  { %2459 = vst.msk [vmem:[#allocation2 + $0x1f0] sm:$0xff] %vm2396_vm6, %v2329_v31  ;;  %v2606_v42 = vpop.permute.xlu2 %2605  ;;  %v6502_v31 = vld [vmem:[%s12697_s0 + $0x92] sm:$0xff] }
 0x46e   :  { %2458 = vst.msk [vmem:[#allocation2 + $0x1e8] sm:$0xff] %vm2396_vm6, %v2327_v48 }
 0x46f   :  { %2790 = vst.msk [vmem:[#allocation2 + $0x40] sm:$0xff] %vm2781_vm7, %v2606_v42 }
 0x472   :  { %2675 = vrot.lane.b32.xlu1 %v6473_v5, %s7881_s21  ;;  %2673 = vrot.lane.b32.xlu0 %v6472_v43, %s7881_s21  ;;  %v6503_v43 = vld [vmem:[%s12697_s0 + $0x9a] sm:$0xff] }
 0x473   :  { %2677 = vrot.lane.b32.xlu2 %v6474_v63, %s7881_s21 }
 0x474   :  { %v2592_v56 = vpop.permute.xlu1 %2591  ;;  %v2590_v40 = vpop.permute.xlu0 %2589 }
 0x475   :  { %2783 = vst.msk [vmem:[#allocation2 + $0x8] sm:$0xff] %vm2781_vm7, %v2592_v56  ;;  %v2612_v57 = vpop.permute.xlu2 %2611 }
 0x476   :  { %2782 = vst.msk [vmem:[#allocation2] sm:$0xff] %vm2781_vm7, %v2590_v40 }
 0x477   :  { %2793 = vst.msk [vmem:[#allocation2 + $0x58] sm:$0xff] %vm2781_vm7, %v2612_v57  ;;  %v6501_v57 = vld [vmem:[%s12697_s0 + $0x82] sm:$0xff] }
 0x47a   :  { %2681 = vrot.lane.b32.xlu1 %v6476_v11, %s7881_s21  ;;  %2679 = vrot.lane.b32.xlu0 %v6475_v14, %s7881_s21 }
 0x47b   :  { %2683 = vrot.lane.b32.xlu2 %v6477_v8, %s7881_s21 }
 0x47c   :  { %v2598_v26 = vpop.permute.xlu1 %2597  ;;  %v2596_v19 = vpop.permute.xlu0 %2595 }
 0x47d   :  { %2786 = vst.msk [vmem:[#allocation2 + $0x20] sm:$0xff] %vm2781_vm7, %v2598_v26  ;;  %v2618_v20 = vpop.permute.xlu2 %2617  ;;  %v6505_v26 = vld [vmem:[%s12697_s0 + $0xb2] sm:$0xff] }
 0x47e   :  { %2785 = vst.msk [vmem:[#allocation2 + $0x18] sm:$0xff] %vm2781_vm7, %v2596_v19 }
 0x47f   :  { %2796 = vst.msk [vmem:[#allocation2 + $0x70] sm:$0xff] %vm2781_vm7, %v2618_v20 }
 0x482   :  { %2687 = vrot.lane.b32.xlu1 %v6479_v41, %s7881_s21  ;;  %2685 = vrot.lane.b32.xlu0 %v6478_v34, %s7881_s21  ;;  %v6506_v34 = vld [vmem:[%s12697_s0 + $0xc2] sm:$0xff] }
 0x483   :  { %2689 = vrot.lane.b32.xlu2 %v6480_v36, %s7881_s21 }
 0x484   :  { %v2604_v0 = vpop.permute.xlu1 %2603  ;;  %v2602_v54 = vpop.permute.xlu0 %2601 }
 0x485   :  { %2789 = vst.msk [vmem:[#allocation2 + $0x38] sm:$0xff] %vm2781_vm7, %v2604_v0  ;;  %v2624_v55 = vpop.permute.xlu2 %2623 }
 0x486   :  { %2788 = vst.msk [vmem:[#allocation2 + $0x30] sm:$0xff] %vm2781_vm7, %v2602_v54 }
 0x487   :  { %2799 = vst.msk [vmem:[#allocation2 + $0x88] sm:$0xff] %vm2781_vm7, %v2624_v55  ;;  %v6504_v55 = vld [vmem:[%s12697_s0 + $0xaa] sm:$0xff] }
 0x48a   :  { %2693 = vrot.lane.b32.xlu1 %v6482_v17, %s7881_s21  ;;  %2691 = vrot.lane.b32.xlu0 %v6481_v9, %s7881_s21 }
 0x48b   :  { %2695 = vrot.lane.b32.xlu2 %v6483_v10, %s7881_s21 }
 0x48c   :  { %v2610_v39 = vpop.permute.xlu1 %2609  ;;  %v2608_v27 = vpop.permute.xlu0 %2607 }
 0x48d   :  { %2792 = vst.msk [vmem:[#allocation2 + $0x50] sm:$0xff] %vm2781_vm7, %v2610_v39  ;;  %v2630_v28 = vpop.permute.xlu2 %2629  ;;  %v6508_v39 = vld [vmem:[%s12697_s0 + $0xda] sm:$0xff] }
 0x48e   :  { %2791 = vst.msk [vmem:[#allocation2 + $0x48] sm:$0xff] %vm2781_vm7, %v2608_v27  ;;  %v3299_v27 = vld [vmem:[%s12698_s1 + $0x20] sm:$0xf] }
 0x48f   :  { %2802 = vst.msk [vmem:[#allocation2 + $0xa0] sm:$0xff] %vm2781_vm7, %v2630_v28  ;;  %6558 = vmatpush.msk.msra.mxu0 %vm3497_vm8, %v3299_v27  ;;  %6679 = vmatpush.msk.msra.mxu1 %vm3497_vm8, %v3299_v27 }
 0x490   :  { %6680 = vmatpush.msk.msra.mxu3 %vm3497_vm8, %v3299_v27 }
 0x492   :  { %2699 = vrot.lane.b32.xlu1 %v6485_v2, %s7881_s21  ;;  %2697 = vrot.lane.b32.xlu0 %v6484_v50, %s7881_s21 }
 0x493   :  { %2701 = vrot.lane.b32.xlu2 %v6486_v60, %s7881_s21  ;;  %v3298_v60 = vld [vmem:[%s12698_s1 + $0x18] sm:$0xff] }
 0x494   :  { %v2616_v29 = vpop.permute.xlu1 %2615  ;;  %v2614_v18 = vpop.permute.xlu0 %2613  ;;  %3513 = vmatpush.msra.mxu0 %v3298_v60  ;;  %6681 = vmatpush.msra.mxu1 %v3298_v60 }
 0x495   :  { %2795 = vst.msk [vmem:[#allocation2 + $0x68] sm:$0xff] %vm2781_vm7, %v2616_v29  ;;  %v2636_v23 = vpop.permute.xlu2 %2635  ;;  %v3297_v29 = vld [vmem:[%s12698_s1 + $0x10] sm:$0xff]  ;;  %6682 = vmatpush.msra.mxu3 %v3298_v60 }
 0x496   :  { %2794 = vst.msk [vmem:[#allocation2 + $0x60] sm:$0xff] %vm2781_vm7, %v2614_v18  ;;  %3514 = vmatpush.msra.mxu0 %v3297_v29  ;;  %6683 = vmatpush.msra.mxu1 %v3297_v29 }
 0x497   :  { %2805 = vst.msk [vmem:[#allocation2 + $0xb8] sm:$0xff] %vm2781_vm7, %v2636_v23  ;;  %v6509_v23 = vld [vmem:[%s12697_s0 + $0xe2] sm:$0xff]  ;;  %6684 = vmatpush.msra.mxu3 %v3297_v29 }
 0x49a   :  { %2705 = vrot.lane.b32.xlu1 %v6488_v6, %s7881_s21  ;;  %2703 = vrot.lane.b32.xlu0 %v6487_v49, %s7881_s21  ;;  %v3296_v6 = vld [vmem:[%s12698_s1 + $0x8] sm:$0xff]  ;;  %v3295_v49 = vld [vmem:[%s12698_s1] sm:$0xff]  ;;  %s7886_s1 = smov 124  }
 0x49b   :  { %2707 = vrot.lane.b32.xlu2 %v6489_v15, %s7881_s21  ;;  %3515 = vmatpush.msra.mxu0 %v3296_v6 }
 0x49c   :  { %v2622_v61 = vpop.permute.xlu1 %2621  ;;  %v2620_v24 = vpop.permute.xlu0 %2619  ;;  %6685 = vmatpush.msra.mxu1 %v3296_v6  ;;  %6686 = vmatpush.msra.mxu3 %v3296_v6  ;;  %v6538_v6 = vld [vmem:[%s12697_s0 + $0x272] sm:$0xff] }
 0x49d   :  { %2798 = vst.msk [vmem:[#allocation2 + $0x80] sm:$0xff] %vm2781_vm7, %v2622_v61  ;;  %v2642_v1 = vpop.permute.xlu2 %2641  ;;  %3516 = vmatpush.msra.mxu0 %v3295_v49 }
 0x49e   :  { %2797 = vst.msk [vmem:[#allocation2 + $0x78] sm:$0xff] %vm2781_vm7, %v2620_v24  ;;  %6687 = vmatpush.msra.mxu1 %v3295_v49  ;;  %v6507_v24 = vld [vmem:[%s12697_s0 + $0xca] sm:$0xff]  ;;  %6688 = vmatpush.msra.mxu3 %v3295_v49 }
 0x49f   :  { %2808 = vst.msk [vmem:[#allocation2 + $0xd0] sm:$0xff] %vm2781_vm7, %v2642_v1 }
 0x4a2   :  { %2711 = vrot.lane.b32.xlu1 %v6491_v46, %s7881_s21  ;;  %2709 = vrot.lane.b32.xlu0 %v6490_v32, %s7881_s21 }
 0x4a3   :  { %2713 = vrot.lane.b32.xlu2 %v6492_v47, %s7881_s21  ;;  %v6511_v47 = vld [vmem:[%s12697_s0 + $0xfa] sm:$0xff] }
 0x4a4   :  { %v2628_v33 = vpop.permute.xlu1 %2627  ;;  %v2626_v37 = vpop.permute.xlu0 %2625 }
 0x4a5   :  { %2801 = vst.msk [vmem:[#allocation2 + $0x98] sm:$0xff] %vm2781_vm7, %v2628_v33  ;;  %v2648_v38 = vpop.permute.xlu2 %2647 }
 0x4a6   :  { %2800 = vst.msk [vmem:[#allocation2 + $0x90] sm:$0xff] %vm2781_vm7, %v2626_v37 }
 0x4a7   :  { %2811 = vst.msk [vmem:[#allocation2 + $0xe8] sm:$0xff] %vm2781_vm7, %v2648_v38  ;;  %v6510_v38 = vld [vmem:[%s12697_s0 + $0xf2] sm:$0xff] }
 0x4aa   :  { %2974 = vrot.lane.b32.xlu1 %v6494_v44, %s7882_s16  ;;  %2715 = vrot.lane.b32.xlu0 %v6493_v45, %s7881_s21  ;;  %v6512_v44 = vld [vmem:[%s12697_s0 + $0x10a] sm:$0xff] }
 0x4ab   :  { %2976 = vrot.lane.b32.xlu2 %v6495_v53, %s7882_s16 }
 0x4ac   :  { %v2634_v51 = vpop.permute.xlu1 %2633  ;;  %v2632_v52 = vpop.permute.xlu0 %2631 }
 0x4ad   :  { %2804 = vst.msk [vmem:[#allocation2 + $0xb0] sm:$0xff] %vm2781_vm7, %v2634_v51  ;;  %v2654_v62 = vpop.permute.xlu2 %2653 }
 0x4ae   :  { %2803 = vst.msk [vmem:[#allocation2 + $0xa8] sm:$0xff] %vm2781_vm7, %v2632_v52  ;;  %v6513_v52 = vld [vmem:[%s12697_s0 + $0x112] sm:$0xff] }
 0x4af   :  { %2814 = vst.msk [vmem:[#allocation2 + $0x100] sm:$0xff] %vm2781_vm7, %v2654_v62 }
 0x4b2   :  { %2978 = vrot.lane.b32.xlu0 %v6496_v58, %s7882_s16  ;;  %2980 = vrot.lane.b32.xlu1 %v6497_v59, %s7882_s16 }
 0x4b3   :  { %2982 = vrot.lane.b32.xlu2 %v6498_v21, %s7882_s16 }
 0x4b4   :  { %v2640_v7 = vpop.permute.xlu1 %2639  ;;  %v2638_v3 = vpop.permute.xlu0 %2637 }
 0x4b5   :  { %2807 = vst.msk [vmem:[#allocation2 + $0xc8] sm:$0xff] %vm2781_vm7, %v2640_v7  ;;  %v2660_v4 = vpop.permute.xlu2 %2659  ;;  %v6516_v7 = vld [vmem:[%s12697_s0 + $0x13a] sm:$0xff] }
 0x4b6   :  { %2806 = vst.msk [vmem:[#allocation2 + $0xc0] sm:$0xff] %vm2781_vm7, %v2638_v3  ;;  %v6514_v3 = vld [vmem:[%s12697_s0 + $0x122] sm:$0xff] }
 0x4b7   :  { %2817 = vst.msk [vmem:[#allocation2 + $0x118] sm:$0xff] %vm2781_vm7, %v2660_v4 }
 0x4ba   :  { %2984 = vrot.lane.b32.xlu0 %v6499_v16, %s7882_s16  ;;  %2986 = vrot.lane.b32.xlu1 %v6500_v12, %s7882_s16 }
 0x4bb   :  { %2988 = vrot.lane.b32.xlu2 %v6501_v57, %s7882_s16  ;;  %v6523_v57 = vld [vmem:[%s12697_s0 + $0x18a] sm:$0xff] }
 0x4bc   :  { %v2646_v13 = vpop.permute.xlu1 %2645  ;;  %v2644_v25 = vpop.permute.xlu0 %2643 }
 0x4bd   :  { %2810 = vst.msk [vmem:[#allocation2 + $0xe0] sm:$0xff] %vm2781_vm7, %v2646_v13  ;;  %v2666_v22 = vpop.permute.xlu2 %2665  ;;  %v6519_v13 = vld [vmem:[%s12697_s0 + $0x15a] sm:$0xff] }
 0x4be   :  { %2809 = vst.msk [vmem:[#allocation2 + $0xd8] sm:$0xff] %vm2781_vm7, %v2644_v25  ;;  %v6515_v25 = vld [vmem:[%s12697_s0 + $0x12a] sm:$0xff] }
 0x4bf   :  { %2820 = vst.msk [vmem:[#allocation2 + $0x130] sm:$0xff] %vm2781_vm7, %v2666_v22 }
 0x4c2   :  { %2990 = vrot.lane.b32.xlu0 %v6502_v31, %s7882_s16  ;;  %2992 = vrot.lane.b32.xlu1 %v6503_v43, %s7882_s16 }
 0x4c3   :  { %2994 = vrot.lane.b32.xlu2 %v6504_v55, %s7882_s16 }
 0x4c4   :  { %v2652_v35 = vpop.permute.xlu1 %2651  ;;  %v2650_v30 = vpop.permute.xlu0 %2649 }
 0x4c5   :  { %2813 = vst.msk [vmem:[#allocation2 + $0xf8] sm:$0xff] %vm2781_vm7, %v2652_v35  ;;  %v2672_v48 = vpop.permute.xlu2 %2671  ;;  %v6522_v35 = vld [vmem:[%s12697_s0 + $0x182] sm:$0xff] }
 0x4c6   :  { %2812 = vst.msk [vmem:[#allocation2 + $0xf0] sm:$0xff] %vm2781_vm7, %v2650_v30  ;;  %v6517_v30 = vld [vmem:[%s12697_s0 + $0x142] sm:$0xff] }
 0x4c7   :  { %2823 = vst.msk [vmem:[#allocation2 + $0x148] sm:$0xff] %vm2781_vm7, %v2672_v48 }
 0x4ca   :  { %2996 = vrot.lane.b32.xlu0 %v6505_v26, %s7882_s16  ;;  %2998 = vrot.lane.b32.xlu1 %v6506_v34, %s7882_s16  ;;  %v6521_v26 = vld [vmem:[%s12697_s0 + $0x172] sm:$0xff]  ;;  %v6534_v34 = vld [vmem:[%s12697_s0 + $0x242] sm:$0xff] }
 0x4cb   :  { %3000 = vrot.lane.b32.xlu2 %v6507_v24, %s7882_s16  ;;  %v6546_v24 = vld [vmem:[%s12697_s0 + $0x2d2] sm:$0xff] }
 0x4cc   :  { %v2658_v42 = vpop.permute.xlu1 %2657  ;;  %v2656_v5 = vpop.permute.xlu0 %2655 }
 0x4cd   :  { %2816 = vst.msk [vmem:[#allocation2 + $0x110] sm:$0xff] %vm2781_vm7, %v2658_v42  ;;  %v2678_v63 = vpop.permute.xlu2 %2677  ;;  %v6525_v42 = vld [vmem:[%s12697_s0 + $0x1a2] sm:$0xff] }
 0x4ce   :  { %2815 = vst.msk [vmem:[#allocation2 + $0x108] sm:$0xff] %vm2781_vm7, %v2656_v5  ;;  %v6520_v5 = vld [vmem:[%s12697_s0 + $0x16a] sm:$0xff] }
 0x4cf   :  { %2826 = vst.msk [vmem:[#allocation2 + $0x160] sm:$0xff] %vm2781_vm7, %v2678_v63 }
 0x4d2   :  { %3002 = vrot.lane.b32.xlu0 %v6508_v39, %s7882_s16  ;;  %3004 = vrot.lane.b32.xlu1 %v6509_v23, %s7882_s16  ;;  %v6533_v23 = vld [vmem:[%s12697_s0 + $0x232] sm:$0xff] }
 0x4d3   :  { %3006 = vrot.lane.b32.xlu2 %v6510_v38, %s7882_s16  ;;  %v6544_v38 = vld [vmem:[%s12697_s0 + $0x2ba] sm:$0xff] }
 0x4d4   :  { %v2664_v56 = vpop.permute.xlu1 %2663  ;;  %v2662_v40 = vpop.permute.xlu0 %2661 }
 0x4d5   :  { %2819 = vst.msk [vmem:[#allocation2 + $0x128] sm:$0xff] %vm2781_vm7, %v2664_v56  ;;  %v2684_v11 = vpop.permute.xlu2 %2683  ;;  %v6528_v56 = vld [vmem:[%s12697_s0 + $0x1fa] sm:$0xff] }
 0x4d6   :  { %2818 = vst.msk [vmem:[#allocation2 + $0x120] sm:$0xff] %vm2781_vm7, %v2662_v40  ;;  %v6518_v40 = vld [vmem:[%s12697_s0 + $0x152] sm:$0xff] }
 0x4d7   :  { %2829 = vst.msk [vmem:[#allocation2 + $0x178] sm:$0xff] %vm2781_vm7, %v2684_v11 }
 0x4da   :  { %3008 = vrot.lane.b32.xlu0 %v6511_v47, %s7882_s16  ;;  %3010 = vrot.lane.b32.xlu1 %v6512_v44, %s7882_s16 }
 0x4db   :  { %3012 = vrot.lane.b32.xlu2 %v6513_v52, %s7882_s16  ;;  %v6542_v52 = vld [vmem:[%s12697_s0 + $0x2a2] sm:$0xff] }
 0x4dc   :  { %v2670_v14 = vpop.permute.xlu1 %2669  ;;  %v2668_v8 = vpop.permute.xlu0 %2667 }
 0x4dd   :  { %2822 = vst.msk [vmem:[#allocation2 + $0x140] sm:$0xff] %vm2781_vm7, %v2670_v14  ;;  %v2690_v19 = vpop.permute.xlu2 %2689 }
 0x4de   :  { %2821 = vst.msk [vmem:[#allocation2 + $0x138] sm:$0xff] %vm2781_vm7, %v2668_v8  ;;  %v6531_v8 = vld [vmem:[%s12697_s0 + $0x21a] sm:$0xff] }
 0x4df   :  { %2832 = vst.msk [vmem:[#allocation2 + $0x190] sm:$0xff] %vm2781_vm7, %v2690_v19  ;;  %v6526_v19 = vld [vmem:[%s12697_s0 + $0x1e2] sm:$0xff] }
 0x4e2   :  { %3014 = vrot.lane.b32.xlu0 %v6514_v3, %s7882_s16  ;;  %3016 = vrot.lane.b32.xlu1 %v6515_v25, %s7882_s16  ;;  %v6555_v3 = vld [vmem:[%s12697_s0 + $0x33a] sm:$0xff]  ;;  %v6548_v25 = vld [vmem:[%s12697_s0 + $0x2ea] sm:$0xff] }
 0x4e3   :  { %3018 = vrot.lane.b32.xlu2 %v6516_v7, %s7882_s16 }
 0x4e4   :  { %v2676_v20 = vpop.permute.xlu1 %2675  ;;  %v2674_v41 = vpop.permute.xlu0 %2673 }
 0x4e5   :  { %2825 = vst.msk [vmem:[#allocation2 + $0x158] sm:$0xff] %vm2781_vm7, %v2676_v20  ;;  %v2696_v36 = vpop.permute.xlu2 %2695 }
 0x4e6   :  { %2824 = vst.msk [vmem:[#allocation2 + $0x150] sm:$0xff] %vm2781_vm7, %v2674_v41 }
 0x4e7   :  { %2835 = vst.msk [vmem:[#allocation2 + $0x1a8] sm:$0xff] %vm2781_vm7, %v2696_v36  ;;  %v6524_v36 = vld [vmem:[%s12697_s0 + $0x19a] sm:$0xff] }
 0x4ea   :  { %3020 = vrot.lane.b32.xlu0 %v6517_v30, %s7882_s16  ;;  %3022 = vrot.lane.b32.xlu1 %v6518_v40, %s7882_s16 }
 0x4eb   :  { %3024 = vrot.lane.b32.xlu2 %v6519_v13, %s7882_s16 }
 0x4ec   :  { %v2682_v0 = vpop.permute.xlu1 %2681  ;;  %v2680_v54 = vpop.permute.xlu0 %2679 }
 0x4ed   :  { %2828 = vst.msk [vmem:[#allocation2 + $0x170] sm:$0xff] %vm2781_vm7, %v2682_v0  ;;  %v2702_v17 = vpop.permute.xlu2 %2701  ;;  %v6529_v0 = vld [vmem:[%s12697_s0 + $0x202] sm:$0xff] }
 0x4ee   :  { %2827 = vst.msk [vmem:[#allocation2 + $0x168] sm:$0xff] %vm2781_vm7, %v2680_v54 }
 0x4ef   :  { %2838 = vst.msk [vmem:[#allocation2 + $0x1c0] sm:$0xff] %vm2781_vm7, %v2702_v17  ;;  %v6537_v17 = vld [vmem:[%s12697_s0 + $0x262] sm:$0xff] }
 0x4f2   :  { %3026 = vrot.lane.b32.xlu0 %v6520_v5, %s7882_s16  ;;  %3028 = vrot.lane.b32.xlu1 %v6521_v26, %s7882_s16 }
 0x4f3   :  { %3030 = vrot.lane.b32.xlu2 %v6522_v35, %s7882_s16 }
 0x4f4   :  { %v2688_v9 = vpop.permute.xlu1 %2687  ;;  %v2686_v10 = vpop.permute.xlu0 %2685 }
 0x4f5   :  { %2831 = vst.msk [vmem:[#allocation2 + $0x188] sm:$0xff] %vm2781_vm7, %v2688_v9  ;;  %v2708_v28 = vpop.permute.xlu2 %2707  ;;  %v6527_v9 = vld [vmem:[%s12697_s0 + $0x1ea] sm:$0xff] }
 0x4f6   :  { %2830 = vst.msk [vmem:[#allocation2 + $0x180] sm:$0xff] %vm2781_vm7, %v2686_v10  ;;  %v6532_v10 = vld [vmem:[%s12697_s0 + $0x22a] sm:$0xff] }
 0x4f7   :  { %2841 = vst.msk [vmem:[#allocation2 + $0x1d8] sm:$0xff] %vm2781_vm7, %v2708_v28  ;;  %v6540_v28 = vld [vmem:[%s12697_s0 + $0x28a] sm:$0xff] }
 0x4fa   :  { %3032 = vrot.lane.b32.xlu0 %v6523_v57, %s7882_s16  ;;  %3034 = vrot.lane.b32.xlu1 %v6524_v36, %s7882_s16 }
 0x4fb   :  { %3036 = vrot.lane.b32.xlu2 %v6525_v42, %s7882_s16  ;;  %v6556_v42 = vld [vmem:[%s12697_s0 + $0x34a] sm:$0xff] }
 0x4fc   :  { %v2694_v2 = vpop.permute.xlu1 %2693  ;;  %v2692_v50 = vpop.permute.xlu0 %2691 }
 0x4fd   :  { %2834 = vst.msk [vmem:[#allocation2 + $0x1a0] sm:$0xff] %vm2781_vm7, %v2694_v2  ;;  %v2714_v18 = vpop.permute.xlu2 %2713  ;;  %v6530_v2 = vld [vmem:[%s12697_s0 + $0x212] sm:$0xff] }
 0x4fe   :  { %2833 = vst.msk [vmem:[#allocation2 + $0x198] sm:$0xff] %vm2781_vm7, %v2692_v50  ;;  %v6535_v50 = vld [vmem:[%s12697_s0 + $0x24a] sm:$0xff] }
 0x4ff   :  { %2844 = vst.msk [vmem:[#allocation2 + $0x1f0] sm:$0xff] %vm2781_vm7, %v2714_v18  ;;  %v6543_v18 = vld [vmem:[%s12697_s0 + $0x2aa] sm:$0xff] }
 0x502   :  { %3038 = vrot.lane.b32.xlu0 %v6526_v19, %s7882_s16  ;;  %3040 = vrot.lane.b32.xlu1 %v6527_v9, %s7882_s16 }
 0x503   :  { %3042 = vrot.lane.b32.xlu2 %v6528_v56, %s7882_s16 }
 0x504   :  { %v2700_v15 = vpop.permute.xlu1 %2699  ;;  %v2698_v61 = vpop.permute.xlu0 %2697 }
 0x505   :  { %2837 = vst.msk [vmem:[#allocation2 + $0x1b8] sm:$0xff] %vm2781_vm7, %v2700_v15  ;;  %v2977_v1 = vpop.permute.xlu2 %2976 }
 0x506   :  { %2836 = vst.msk [vmem:[#allocation2 + $0x1b0] sm:$0xff] %vm2781_vm7, %v2698_v61 }
 0x507   :  { %3168 = vst.msk [vmem:[#allocation2 + $0x8] sm:$0xff] %vm3166_vm9, %v2977_v1  ;;  %v6536_v1 = vld [vmem:[%s12697_s0 + $0x25a] sm:$0xff] }
 0x50a   :  { %3044 = vrot.lane.b32.xlu0 %v6529_v0, %s7882_s16  ;;  %3046 = vrot.lane.b32.xlu1 %v6530_v2, %s7882_s16 }
 0x50b   :  { %3048 = vrot.lane.b32.xlu2 %v6531_v8, %s7882_s16 }
 0x50c   :  { %v2706_v46 = vpop.permute.xlu1 %2705  ;;  %v2704_v32 = vpop.permute.xlu0 %2703 }
 0x50d   :  { %2840 = vst.msk [vmem:[#allocation2 + $0x1d0] sm:$0xff] %vm2781_vm7, %v2706_v46  ;;  %v2983_v45 = vpop.permute.xlu2 %2982  ;;  %v6541_v46 = vld [vmem:[%s12697_s0 + $0x292] sm:$0xff] }
 0x50e   :  { %2839 = vst.msk [vmem:[#allocation2 + $0x1c8] sm:$0xff] %vm2781_vm7, %v2704_v32  ;;  %v3232_v4 = vld [vmem:[#allocation2 + $0x8] sm:$0xff] }
 0x50f   :  { %3171 = vst.msk [vmem:[#allocation2 + $0x20] sm:$0xff] %vm3166_vm9, %v2983_v45 }
 0x512   :  { %3050 = vrot.lane.b32.xlu0 %v6532_v10, %s7882_s16  ;;  %3052 = vrot.lane.b32.xlu1 %v6533_v23, %s7882_s16 }
 0x513   :  { %3054 = vrot.lane.b32.xlu2 %v6534_v34, %s7882_s16  ;;  %v6557_v34 = vld [vmem:[%s12697_s0 + $0x352] sm:$0xff] }
 0x514   :  { %v2712_v33 = vpop.permute.xlu1 %2711  ;;  %v2710_v37 = vpop.permute.xlu0 %2709 }
 0x515   :  { %2843 = vst.msk [vmem:[#allocation2 + $0x1e8] sm:$0xff] %vm2781_vm7, %v2712_v33  ;;  %v2989_v21 = vpop.permute.xlu2 %2988  ;;  %v6549_v33 = vld [vmem:[%s12697_s0 + $0x2f2] sm:$0xff] }
 0x516   :  { %2842 = vst.msk [vmem:[#allocation2 + $0x1e0] sm:$0xff] %vm2781_vm7, %v2710_v37  ;;  %v3235_v63 = vld [vmem:[#allocation2 + $0x20] sm:$0xff] }
 0x517   :  { %3174 = vst.msk [vmem:[#allocation2 + $0x38] sm:$0xff] %vm3166_vm9, %v2989_v21  ;;  %v6539_v37 = vld [vmem:[%s12697_s0 + $0x27a] sm:$0xff]  ;;  %v6553_v21 = vld [vmem:[%s12697_s0 + $0x322] sm:$0xff] }
 0x51a   :  { %3056 = vrot.lane.b32.xlu0 %v6535_v50, %s7882_s16  ;;  %3058 = vrot.lane.b32.xlu1 %v6536_v1, %s7882_s16 }
 0x51b   :  { %3060 = vrot.lane.b32.xlu2 %v6537_v17, %s7882_s16 }
 0x51c   :  { %v2975_v53 = vpop.permute.xlu1 %2974  ;;  %v2716_v51 = vpop.permute.xlu0 %2715 }
 0x51d   :  { %3167 = vst.msk [vmem:[#allocation2] sm:$0xff] %vm3166_vm9, %v2975_v53  ;;  %v2995_v11 = vpop.permute.xlu2 %2994 }
 0x51e   :  { %2845 = vst.msk [vmem:[#allocation2 + $0x1f8] sm:$0xff] %vm2781_vm7, %v2716_v51  ;;  %v3238_v55 = vld [vmem:[#allocation2 + $0x38] sm:$0xff] }
 0x51f   :  { %3177 = vst.msk [vmem:[#allocation2 + $0x50] sm:$0xff] %vm3166_vm9, %v2995_v11  ;;  %v6552_v51 = vld [vmem:[%s12697_s0 + $0x31a] sm:$0xff]  ;;  %v6554_v11 = vld [vmem:[%s12697_s0 + $0x332] sm:$0xff] }
 0x522   :  { %3062 = vrot.lane.b32.xlu0 %v6538_v6, %s7882_s16  ;;  %3064 = vrot.lane.b32.xlu1 %v6539_v37, %s7882_s16 }
 0x523   :  { %3066 = vrot.lane.b32.xlu2 %v6540_v28, %s7882_s16 }
 0x524   :  { %v3231_v62 = vld [vmem:[#allocation2] sm:$0xff]  ;;  %v2979_v58 = vpop.permute.xlu0 %2978  ;;  %v2981_v59 = vpop.permute.xlu1 %2980 }
 0x525   :  { %6559 = vmatmul.msk.f32.vlgmr.msra.gmra.mxu0 %vm3304_vm10, %v3231_v62  ;;  %3169 = vst.msk [vmem:[#allocation2 + $0x10] sm:$0xff] %vm3166_vm9, %v2979_v58  ;;  %v3001_v39 = vpop.permute.xlu2 %3000  ;;  %v6547_v62 = vld [vmem:[%s12697_s0 + $0x2da] sm:$0xff] }
 0x526   :  { %3170 = vst.msk [vmem:[#allocation2 + $0x18] sm:$0xff] %vm3166_vm9, %v2981_v59  ;;  %v3241_v61 = vld [vmem:[#allocation2 + $0x50] sm:$0xff] }
 0x527   :  { %3180 = vst.msk [vmem:[#allocation2 + $0x68] sm:$0xff] %vm3166_vm9, %v3001_v39 }
 0x52a   :  { %3068 = vrot.lane.b32.xlu0 %v6541_v46, %s7882_s16  ;;  %3070 = vrot.lane.b32.xlu1 %v6542_v52, %s7882_s16 }
 0x52b   :  { %3072 = vrot.lane.b32.xlu2 %v6543_v18, %s7882_s16 }
 0x52c   :  { %v2985_v16 = vpop.permute.xlu0 %2984  ;;  %v2987_v12 = vpop.permute.xlu1 %2986  ;;  %v3233_v22 = vld [vmem:[#allocation2 + $0x10] sm:$0xff] }
 0x52d   :  { %6560 = vmatmul.msk.f32.gmra.mxu0 %vm3304_vm10, %v3232_v4  ;;  %3172 = vst.msk [vmem:[#allocation2 + $0x28] sm:$0xff] %vm3166_vm9, %v2985_v16  ;;  %v3234_v48 = vld [vmem:[#allocation2 + $0x18] sm:$0xff]  ;;  %v3007_v49 = vpop.permute.xlu2 %3006  ;;  %v6545_v4 = vld [vmem:[%s12697_s0 + $0x2c2] sm:$0xff] }
 0x52e   :  { %3173 = vst.msk [vmem:[#allocation2 + $0x30] sm:$0xff] %vm3166_vm9, %v2987_v12  ;;  %v3244_v58 = vld [vmem:[#allocation2 + $0x68] sm:$0xff] }
 0x52f   :  { %3183 = vst.msk [vmem:[#allocation2 + $0x80] sm:$0xff] %vm3166_vm9, %v3007_v49  ;;  %v6550_v16 = vld [vmem:[%s12697_s0 + $0x302] sm:$0xff] }
 0x532   :  { %3074 = vrot.lane.b32.xlu0 %v6544_v38, %s7882_s16  ;;  %3076 = vrot.lane.b32.xlu1 %v6545_v4, %s7882_s16 }
 0x533   :  { %3078 = vrot.lane.b32.xlu2 %v6546_v24, %s7882_s16 }
 0x534   :  { %v2991_v31 = vpop.permute.xlu0 %2990  ;;  %v2993_v43 = vpop.permute.xlu1 %2992  ;;  %v3236_v14 = vld [vmem:[#allocation2 + $0x28] sm:$0xff] }
 0x535   :  { %6561 = vmatmul.msk.f32.gmra.mxu0 %vm3304_vm10, %v3233_v22  ;;  %3175 = vst.msk [vmem:[#allocation2 + $0x40] sm:$0xff] %vm3166_vm9, %v2991_v31  ;;  %v3237_v41 = vld [vmem:[#allocation2 + $0x30] sm:$0xff]  ;;  %v3013_v32 = vpop.permute.xlu2 %3012  ;;  %v10776_v31 = vld [vmem:[%s12699_s2] ss:$0 sm:$0xff] }
 0x536   :  { %3176 = vst.msk [vmem:[#allocation2 + $0x48] sm:$0xff] %vm3166_vm9, %v2993_v43  ;;  %v3247_v43 = vld [vmem:[#allocation2 + $0x80] sm:$0xff] }
 0x537   :  { %3186 = vst.msk [vmem:[#allocation2 + $0x98] sm:$0xff] %vm3166_vm9, %v3013_v32 }
 0x53a   :  { %3080 = vrot.lane.b32.xlu0 %v6547_v62, %s7882_s16  ;;  %3082 = vrot.lane.b32.xlu1 %v6548_v25, %s7882_s16 }
 0x53b   :  { %3084 = vrot.lane.b32.xlu2 %v6549_v33, %s7882_s16 }
 0x53c   :  { %v2997_v20 = vpop.permute.xlu0 %2996  ;;  %v2999_v54 = vpop.permute.xlu1 %2998  ;;  %v3239_v27 = vld [vmem:[#allocation2 + $0x40] sm:$0xff] }
 0x53d   :  { %6562 = vmatmul.msk.f32.gmra.mxu0 %vm3304_vm10, %v3234_v48  ;;  %3178 = vst.msk [vmem:[#allocation2 + $0x58] sm:$0xff] %vm3166_vm9, %v2997_v20  ;;  %v3240_v29 = vld [vmem:[#allocation2 + $0x48] sm:$0xff]  ;;  %v3019_v45 = vpop.permute.xlu2 %3018 }
 0x53e   :  { %3179 = vst.msk [vmem:[#allocation2 + $0x60] sm:$0xff] %vm3166_vm9, %v2999_v54  ;;  %v6551_v48 = vld [vmem:[%s12697_s0 + $0x30a] sm:$0xff]  ;;  %s7883_s0 = smov 127   ;;  %v3250_v2 = vld [vmem:[#allocation2 + $0x98] sm:$0xff] }
 0x53f   :  { %3189 = vst.msk [vmem:[#allocation2 + $0xb0] sm:$0xff] %vm3166_vm9, %v3019_v45 }
 0x542   :  { %3086 = vrot.lane.b32.xlu0 %v6550_v16, %s7882_s16  ;;  %3088 = vrot.lane.b32.xlu1 %v6551_v48, %s7882_s16 }
 0x543   :  { %3090 = vrot.lane.b32.xlu2 %v6552_v51, %s7882_s16 }
 0x544   :  { %v3003_v60 = vpop.permute.xlu0 %3002  ;;  %v3005_v15 = vpop.permute.xlu1 %3004  ;;  %v3242_v47 = vld [vmem:[#allocation2 + $0x58] sm:$0xff] }
 0x545   :  { %6563 = vmatmul.msk.f32.gmra.mxu0 %vm3304_vm10, %v3235_v63  ;;  %3181 = vst.msk [vmem:[#allocation2 + $0x70] sm:$0xff] %vm3166_vm9, %v3003_v60  ;;  %v3243_v44 = vld [vmem:[#allocation2 + $0x60] sm:$0xff]  ;;  %v3025_v59 = vpop.permute.xlu2 %3024 }
 0x546   :  { %3182 = vst.msk [vmem:[#allocation2 + $0x78] sm:$0xff] %vm3166_vm9, %v3005_v15 }
 0x547   :  { %3192 = vst.msk [vmem:[#allocation2 + $0xc8] sm:$0xff] %vm3166_vm9, %v3025_v59 }
 0x54a   :  { %3092 = vrot.lane.b32.xlu0 %v6553_v21, %s7882_s16  ;;  %3094 = vrot.lane.b32.xlu1 %v6554_v11, %s7882_s16 }
 0x54b   :  { %3096 = vrot.lane.b32.xlu2 %v6555_v3, %s7882_s16 }
 0x54c   :  { %v3009_v53 = vpop.permute.xlu0 %3008  ;;  %v3011_v7 = vpop.permute.xlu1 %3010  ;;  %v3245_v12 = vld [vmem:[#allocation2 + $0x70] sm:$0xff] }
 0x54d   :  { %6564 = vmatmul.msk.f32.gmra.mxu0 %vm3304_vm10, %v3236_v14  ;;  %3184 = vst.msk [vmem:[#allocation2 + $0x88] sm:$0xff] %vm3166_vm9, %v3009_v53  ;;  %v3031_v13 = vpop.permute.xlu2 %3030  ;;  %v3246_v22 = vld [vmem:[#allocation2 + $0x78] sm:$0xff] }
 0x54e   :  { %3185 = vst.msk [vmem:[#allocation2 + $0x90] sm:$0xff] %vm3166_vm9, %v3011_v7 }
 0x54f   :  { %3195 = vst.msk [vmem:[#allocation2 + $0xe0] sm:$0xff] %vm3166_vm9, %v3031_v13 }
 0x552   :  { %3098 = vrot.lane.b32.xlu0 %v6556_v42, %s7882_s16  ;;  %3100 = vrot.lane.b32.xlu1 %v6557_v34, %s7882_s16  ;;  %s7884_s16 = smov 126  }
 0x554   :  { %v3015_v30 = vpop.permute.xlu0 %3014  ;;  %v3017_v40 = vpop.permute.xlu1 %3016  ;;  %v3248_v8 = vld [vmem:[#allocation2 + $0x88] sm:$0xff] }
 0x555   :  { %6565 = vmatmul.msk.f32.gmra.mxu0 %vm3304_vm10, %v3237_v41  ;;  %v3037_v35 = vpop.permute.xlu2 %3036  ;;  %3187 = vst.msk [vmem:[#allocation2 + $0xa0] sm:$0xff] %vm3166_vm9, %v3015_v30  ;;  %v3249_v0 = vld [vmem:[#allocation2 + $0x90] sm:$0xff] }
 0x556   :  { %3198 = vst.msk [vmem:[#allocation2 + $0xf8] sm:$0xff] %vm3166_vm9, %v3037_v35 }
 0x557   :  { %3188 = vst.msk [vmem:[#allocation2 + $0xa8] sm:$0xff] %vm3166_vm9, %v3017_v40 }
 0x55c   :  { %v3021_v20 = vpop.permute.xlu0 %3020  ;;  %v3251_v49 = vld [vmem:[#allocation2 + $0xa0] sm:$0xff] }
 0x55d   :  { %6566 = vmatmul.msk.f32.gmra.mxu0 %vm3304_vm10, %v3238_v55  ;;  %v3043_v56 = vpop.permute.xlu2 %3042  ;;  %3190 = vst.msk [vmem:[#allocation2 + $0xb8] sm:$0xff] %vm3166_vm9, %v3021_v20 }
 0x55e   :  { %3201 = vst.msk [vmem:[#allocation2 + $0x110] sm:$0xff] %vm3166_vm9, %v3043_v56  ;;  %v3252_v38 = vld [vmem:[#allocation2 + $0xa8] sm:$0xff] }
 0x564   :  { %v3027_v17 = vpop.permute.xlu0 %3026 }
 0x565   :  { %6567 = vmatmul.msk.f32.gmra.mxu0 %vm3304_vm10, %v3239_v27  ;;  %v3049_v19 = vpop.permute.xlu2 %3048  ;;  %3193 = vst.msk [vmem:[#allocation2 + $0xd0] sm:$0xff] %vm3166_vm9, %v3027_v17 }
 0x566   :  { %3204 = vst.msk [vmem:[#allocation2 + $0x128] sm:$0xff] %vm3166_vm9, %v3049_v19 }
 0x56c   :  { %v3033_v18 = vpop.permute.xlu0 %3032 }
 0x56d   :  { %6568 = vmatmul.msk.f32.gmra.mxu0 %vm3304_vm10, %v3240_v29  ;;  %v3055_v55 = vpop.permute.xlu2 %3054  ;;  %v3023_v29 = vpop.permute.xlu1 %3022  ;;  %3196 = vst.msk [vmem:[#allocation2 + $0xe8] sm:$0xff] %vm3166_vm9, %v3033_v18 }
 0x56e   :  { %3207 = vst.msk [vmem:[#allocation2 + $0x140] sm:$0xff] %vm3166_vm9, %v3055_v55 }
 0x56f   :  { %3191 = vst.msk [vmem:[#allocation2 + $0xc0] sm:$0xff] %vm3166_vm9, %v3023_v29 }
 0x574   :  { %v3039_v1 = vpop.permute.xlu0 %3038 }
 0x575   :  { %6569 = vmatmul.msk.f32.gmra.mxu0 %vm3304_vm10, %v3241_v61  ;;  %v3061_v60 = vpop.permute.xlu2 %3060  ;;  %v3029_v24 = vpop.permute.xlu1 %3028  ;;  %3199 = vst.msk [vmem:[#allocation2 + $0x100] sm:$0xff] %vm3166_vm9, %v3039_v1 }
 0x576   :  { %3210 = vst.msk [vmem:[#allocation2 + $0x158] sm:$0xff] %vm3166_vm9, %v3061_v60 }
 0x577   :  { %3194 = vst.msk [vmem:[#allocation2 + $0xd8] sm:$0xff] %vm3166_vm9, %v3029_v24 }
 0x57c   :  { %v3045_v51 = vpop.permute.xlu0 %3044 }
 0x57d   :  { %6570 = vmatmul.msk.f32.gmra.mxu0 %vm3304_vm10, %v3242_v47  ;;  %v3067_v61 = vpop.permute.xlu2 %3066  ;;  %v3035_v53 = vpop.permute.xlu1 %3034  ;;  %3202 = vst.msk [vmem:[#allocation2 + $0x118] sm:$0xff] %vm3166_vm9, %v3045_v51 }
 0x57e   :  { %3213 = vst.msk [vmem:[#allocation2 + $0x170] sm:$0xff] %vm3166_vm9, %v3067_v61 }
 0x57f   :  { %3197 = vst.msk [vmem:[#allocation2 + $0xf0] sm:$0xff] %vm3166_vm9, %v3035_v53 }
 0x584   :  { %v3051_v4 = vpop.permute.xlu0 %3050 }
 0x585   :  { %6571 = vmatmul.msk.f32.gmra.mxu0 %vm3304_vm10, %v3243_v44  ;;  %v3073_v45 = vpop.permute.xlu2 %3072  ;;  %v3041_v3 = vpop.permute.xlu1 %3040  ;;  %3205 = vst.msk [vmem:[#allocation2 + $0x130] sm:$0xff] %vm3166_vm9, %v3051_v4 }
 0x586   :  { %3216 = vst.msk [vmem:[#allocation2 + $0x188] sm:$0xff] %vm3166_vm9, %v3073_v45 }
 0x587   :  { %3200 = vst.msk [vmem:[#allocation2 + $0x108] sm:$0xff] %vm3166_vm9, %v3041_v3 }
 0x58c   :  { %v3057_v42 = vpop.permute.xlu0 %3056 }
 0x58d   :  { %6572 = vmatmul.msk.f32.gmra.mxu0 %vm3304_vm10, %v3244_v58  ;;  %v3253_v58 = vld [vmem:[#allocation2 + $0xb0] sm:$0xff]  ;;  %v3079_v7 = vpop.permute.xlu2 %3078  ;;  %v3047_v48 = vpop.permute.xlu1 %3046  ;;  %3208 = vst.msk [vmem:[#allocation2 + $0x148] sm:$0xff] %vm3166_vm9, %v3057_v42 }
 0x58e   :  { %3219 = vst.msk [vmem:[#allocation2 + $0x1a0] sm:$0xff] %vm3166_vm9, %v3079_v7 }
 0x58f   :  { %3203 = vst.msk [vmem:[#allocation2 + $0x120] sm:$0xff] %vm3166_vm9, %v3047_v48 }
 0x594   :  { %v3063_v11 = vpop.permute.xlu0 %3062 }
 0x595   :  { %6573 = vmatmul.msk.f32.gmra.mxu0 %vm3304_vm10, %v3245_v12  ;;  %v3085_v30 = vpop.permute.xlu2 %3084  ;;  %3211 = vst.msk [vmem:[#allocation2 + $0x160] sm:$0xff] %vm3166_vm9, %v3063_v11 }
 0x596   :  { %3222 = vst.msk [vmem:[#allocation2 + $0x1b8] sm:$0xff] %vm3166_vm9, %v3085_v30 }
 0x59d   :  { %6574 = vmatmul.msk.f32.gmra.mxu0 %vm3304_vm10, %v3246_v22  ;;  %v3254_v22 = vld [vmem:[#allocation2 + $0xb8] sm:$0xff]  ;;  %v3091_v40 = vpop.permute.xlu2 %3090 }
 0x59e   :  { %3225 = vst.msk [vmem:[#allocation2 + $0x1d0] sm:$0xff] %vm3166_vm9, %v3091_v40  ;;  %v3262_v40 = vld [vmem:[#allocation2 + $0xf8] sm:$0xff] }
 0x5a2   :  { %v3518_v5 = vpop.f32.mrf.mxu0 }
 0x5a3   :  { %v3519_v63 = vadd.f32 %v10776_v31, %v3518_v5 }
 0x5a5   :  { %v3710_v57 = vmax.f32 %v3519_v63, 0.0  ;;  %6575 = vmatmul.msk.f32.gmra.mxu0 %vm3304_vm10, %v3247_v43  ;;  %v3255_v63 = vld [vmem:[#allocation2 + $0xc0] sm:$0xff] }
 0x5a7   :  { %3775 = vst.msk [vmem:[#allocation3] sm:$0xff] %vm3774_vm11, %v3710_v57  ;;  %v3053_v57 = vpop.permute.xlu1 %3052 }
 0x5a8   :  { %3206 = vst.msk [vmem:[#allocation2 + $0x138] sm:$0xff] %vm3166_vm9, %v3053_v57 }
 0x5aa   :  { %v3521_v14 = vpop.f32.mrf.mxu0 }
 0x5ab   :  { %v3522_v26 = vadd.f32 %v10776_v31, %v3521_v14 }
 0x5ad   :  { %v3711_v41 = vmax.f32 %v3522_v26, 0.0  ;;  %6576 = vmatmul.msk.f32.gmra.mxu0 %vm3304_vm10, %v3248_v8 }
 0x5ae   :  { %v10808_v10 = vld [vmem:[#allocation3] sm:$0xff] }
 0x5af   :  { %3776 = vst.msk [vmem:[#allocation3 + $0x8] sm:$0xff] %vm3774_vm11, %v3711_v41  ;;  %v3256_v41 = vld [vmem:[#allocation2 + $0xc8] sm:$0xff] }
 0x5b2   :  { %v3524_v36 = vpop.f32.mrf.mxu0 }
 0x5b3   :  { %v3525_v54 = vadd.f32 %v10776_v31, %v3524_v36  ;;  %v3097_v36 = vpop.permute.xlu2 %3096 }
 0x5b4   :  { %3228 = vst.msk [vmem:[#allocation2 + $0x1e8] sm:$0xff] %vm3166_vm9, %v3097_v36 }
 0x5b5   :  { %v3712_v9 = vmax.f32 %v3525_v54, 0.0  ;;  %6577 = vmatmul.msk.f32.gmra.mxu0 %vm3304_vm10, %v3249_v0  ;;  %v3059_v0 = vpop.permute.xlu1 %3058  ;;  %v3069_v54 = vpop.permute.xlu0 %3068 }
 0x5b6   :  { %v10810_v39 = vld [vmem:[#allocation3 + $0x8] sm:$0xff]  ;;  %3209 = vst.msk [vmem:[#allocation2 + $0x150] sm:$0xff] %vm3166_vm9, %v3059_v0 }
 0x5b7   :  { %3777 = vst.msk [vmem:[#allocation3 + $0x10] sm:$0xff] %vm3774_vm11, %v3712_v9  ;;  %v10815_v27 = vpack.i.bf16 %v10810_v39, %v10808_v10  ;;  %v3257_v9 = vld [vmem:[#allocation2 + $0xd0] sm:$0xff] }
 0x5b8   :  { %3214 = vst.msk [vmem:[#allocation2 + $0x178] sm:$0xff] %vm3166_vm9, %v3069_v54 }
 0x5b9   :  { %6706 = vrot.lane.b32.xlu2 %v10815_v27, %s7883_s0 }
 0x5ba   :  { %v3527_v28 = vpop.f32.mrf.mxu0 }
 0x5bb   :  { %v3528_v50 = vadd.f32 %v10776_v31, %v3527_v28 }
 0x5bd   :  { %v3713_v23 = vmax.f32 %v3528_v50, 0.0  ;;  %6578 = vmatmul.msk.f32.gmra.mxu0 %vm3304_vm10, %v3250_v2  ;;  %v3065_v2 = vpop.permute.xlu1 %3064  ;;  %v3075_v50 = vpop.permute.xlu0 %3074 }
 0x5be   :  { %v10829_v32 = vld [vmem:[#allocation3 + $0x10] sm:$0xff]  ;;  %3212 = vst.msk [vmem:[#allocation2 + $0x168] sm:$0xff] %vm3166_vm9, %v3065_v2 }
 0x5bf   :  { %3778 = vst.msk [vmem:[#allocation3 + $0x18] sm:$0xff] %vm3774_vm11, %v3713_v23 }
 0x5c0   :  { %3217 = vst.msk [vmem:[#allocation2 + $0x190] sm:$0xff] %vm3166_vm9, %v3075_v50  ;;  %v3264_v50 = vld [vmem:[#allocation2 + $0x108] sm:$0xff] }
 0x5c2   :  { %v3530_v6 = vpop.f32.mrf.mxu0 }
 0x5c3   :  { %v3531_v15 = vadd.f32 %v10776_v31, %v3530_v6 }
 0x5c5   :  { %v3714_v46 = vmax.f32 %v3531_v15, 0.0  ;;  %6579 = vmatmul.msk.f32.gmra.mxu0 %vm3304_vm10, %v3251_v49  ;;  %v3258_v49 = vld [vmem:[#allocation2 + $0xd8] sm:$0xff]  ;;  %v3071_v61 = vpop.permute.xlu1 %3070  ;;  %v3081_v24 = vpop.permute.xlu0 %3080 }
 0x5c6   :  { %v10831_v47 = vld [vmem:[#allocation3 + $0x18] sm:$0xff]  ;;  %3215 = vst.msk [vmem:[#allocation2 + $0x180] sm:$0xff] %vm3166_vm9, %v3071_v61 }
 0x5c7   :  { %3779 = vst.msk [vmem:[#allocation3 + $0x20] sm:$0xff] %vm3774_vm11, %v3714_v46  ;;  %v10837_v33 = vpack.i.bf16 %v10831_v47, %v10829_v32 }
 0x5c8   :  { %3220 = vst.msk [vmem:[#allocation2 + $0x1a8] sm:$0xff] %vm3166_vm9, %v3081_v24  ;;  %v3265_v24 = vld [vmem:[#allocation2 + $0x110] sm:$0xff] }
 0x5c9   :  { %6711 = vrot.lane.b32.xlu0 %v10837_v33, %s7883_s0 }
 0x5ca   :  { %v3533_v37 = vpop.f32.mrf.mxu0 }
 0x5cb   :  { %v3534_v44 = vadd.f32 %v10776_v31, %v3533_v37  ;;  %v3259_v37 = vld [vmem:[#allocation2 + $0xe0] sm:$0xff] }
 0x5cd   :  { %v3715_v52 = vmax.f32 %v3534_v44, 0.0  ;;  %6580 = vmatmul.msk.f32.gmra.mxu0 %vm3304_vm10, %v3252_v38  ;;  %v3077_v44 = vpop.permute.xlu1 %3076  ;;  %v3087_v45 = vpop.permute.xlu0 %3086 }
 0x5ce   :  { %v10851_v12 = vld [vmem:[#allocation3 + $0x20] sm:$0xff]  ;;  %3218 = vst.msk [vmem:[#allocation2 + $0x198] sm:$0xff] %vm3166_vm9, %v3077_v44 }
 0x5cf   :  { %3780 = vst.msk [vmem:[#allocation3 + $0x28] sm:$0xff] %vm3774_vm11, %v3715_v52 }
 0x5d0   :  { %3223 = vst.msk [vmem:[#allocation2 + $0x1c0] sm:$0xff] %vm3166_vm9, %v3087_v45 }
 0x5d2   :  { %v3536_v62 = vpop.f32.mrf.mxu0 }
 0x5d3   :  { %v3537_v59 = vadd.f32 %v10776_v31, %v3536_v62 }
 0x5d5   :  { %v3716_v16 = vmax.f32 %v3537_v59, 0.0  ;;  %6581 = vmatmul.msk.f32.gmra.mxu0 %vm3304_vm10, %v3253_v58  ;;  %v3260_v59 = vld [vmem:[#allocation2 + $0xe8] sm:$0xff]  ;;  %v3083_v3 = vpop.permute.xlu1 %3082  ;;  %v3093_v4 = vpop.permute.xlu0 %3092 }
 0x5d6   :  { %v10853_v13 = vld [vmem:[#allocation3 + $0x28] sm:$0xff]  ;;  %3221 = vst.msk [vmem:[#allocation2 + $0x1b0] sm:$0xff] %vm3166_vm9, %v3083_v3 }
 0x5d7   :  { %3781 = vst.msk [vmem:[#allocation3 + $0x30] sm:$0xff] %vm3774_vm11, %v3716_v16  ;;  %v10859_v25 = vpack.i.bf16 %v10853_v13, %v10851_v12 }
 0x5d8   :  { %3226 = vst.msk [vmem:[#allocation2 + $0x1d8] sm:$0xff] %vm3166_vm9, %v3093_v4 }
 0x5d9   :  { %6716 = vrot.lane.b32.xlu1 %v10859_v25, %s7883_s0 }
 0x5da   :  { %v3539_v21 = vpop.f32.mrf.mxu0 }
 0x5db   :  { %v3540_v35 = vadd.f32 %v10776_v31, %v3539_v21 }
 0x5dd   :  { %v3717_v5 = vmax.f32 %v3540_v35, 0.0  ;;  %6582 = vmatmul.msk.f32.gmra.mxu0 %vm3304_vm10, %v3254_v22  ;;  %v3261_v22 = vld [vmem:[#allocation2 + $0xf0] sm:$0xff]  ;;  %v3089_v30 = vpop.permute.xlu1 %3088  ;;  %v3099_v48 = vpop.permute.xlu0 %3098 }
 0x5de   :  { %v10873_v8 = vld [vmem:[#allocation3 + $0x30] sm:$0xff]  ;;  %3224 = vst.msk [vmem:[#allocation2 + $0x1c8] sm:$0xff] %vm3166_vm9, %v3089_v30 }
 0x5df   :  { %3782 = vst.msk [vmem:[#allocation3 + $0x38] sm:$0xff] %vm3774_vm11, %v3717_v5 }
 0x5e0   :  { %3229 = vst.msk [vmem:[#allocation2 + $0x1f0] sm:$0xff] %vm3166_vm9, %v3099_v48 }
 0x5e2   :  { %v3542_v43 = vpop.f32.mrf.mxu0 }
 0x5e3   :  { %v3543_v56 = vadd.f32 %v10776_v31, %v3542_v43 }
 0x5e5   :  { %v3718_v14 = vmax.f32 %v3543_v56, 0.0  ;;  %6583 = vmatmul.msk.f32.gmra.mxu0 %vm3304_vm10, %v3255_v63  ;;  %v3095_v11 = vpop.permute.xlu1 %3094  ;;  %v3288_v3 = vld [vmem:[#allocation2 + $0x1c8] sm:$0xff] }
 0x5e6   :  { %v10875_v26 = vld [vmem:[#allocation3 + $0x38] sm:$0xff]  ;;  %3227 = vst.msk [vmem:[#allocation2 + $0x1e0] sm:$0xff] %vm3166_vm9, %v3095_v11 }
 0x5e7   :  { %3783 = vst.msk [vmem:[#allocation3 + $0x40] sm:$0xff] %vm3774_vm11, %v3718_v14  ;;  %v10881_v19 = vpack.i.bf16 %v10875_v26, %v10873_v8  ;;  %v3290_v11 = vld [vmem:[#allocation2 + $0x1d8] sm:$0xff] }
 0x5e9   :  { %6721 = vrot.lane.b32.xlu2 %v10881_v19, %s7883_s0 }
 0x5ea   :  { %v3545_v20 = vpop.f32.mrf.mxu0 }
 0x5eb   :  { %v3546_v34 = vadd.f32 %v10776_v31, %v3545_v20 }
 0x5ed   :  { %v3719_v55 = vmax.f32 %v3546_v34, 0.0  ;;  %6584 = vmatmul.msk.f32.gmra.mxu0 %vm3304_vm10, %v3256_v41  ;;  %v3101_v34 = vpop.permute.xlu1 %3100 }
 0x5ee   :  { %v10895_v29 = vld [vmem:[#allocation3 + $0x40] sm:$0xff]  ;;  %3230 = vst.msk [vmem:[#allocation2 + $0x1f8] sm:$0xff] %vm3166_vm9, %v3101_v34 }
 0x5ef   :  { %3784 = vst.msk [vmem:[#allocation3 + $0x48] sm:$0xff] %vm3774_vm11, %v3719_v55  ;;  %v3263_v55 = vld [vmem:[#allocation2 + $0x100] sm:$0xff] }
 0x5f2   :  { %v3548_v17 = vpop.f32.mrf.mxu0 }
 0x5f3   :  { %v3549_v28 = vadd.f32 %v10776_v31, %v3548_v17 }
 0x5f5   :  { %v3720_v60 = vmax.f32 %v3549_v28, 0.0  ;;  %6585 = vmatmul.msk.f32.gmra.mxu0 %vm3304_vm10, %v3257_v9 }
 0x5f6   :  { %v10897_v18 = vld [vmem:[#allocation3 + $0x48] sm:$0xff] }
 0x5f7   :  { %3785 = vst.msk [vmem:[#allocation3 + $0x50] sm:$0xff] %vm3774_vm11, %v3720_v60  ;;  %v10902_v23 = vpack.i.bf16 %v10897_v18, %v10895_v29 }
 0x5f9   :  { %6726 = vrot.lane.b32.xlu0 %v10902_v23, %s7883_s0 }
 0x5fa   :  { %v3551_v6 = vpop.f32.mrf.mxu0 }
 0x5fb   :  { %v3552_v15 = vadd.f32 %v10776_v31, %v3551_v6 }
 0x5fd   :  { %v3721_v1 = vmax.f32 %v3552_v15, 0.0  ;;  %6586 = vmatmul.msk.f32.gmra.mxu0 %vm3304_vm10, %v3258_v49 }
 0x5fe   :  { %v3855_v51 = vld [vmem:[#allocation3 + $0x50] sm:$0xff] }
 0x5ff   :  { %3786 = vst.msk [vmem:[#allocation3 + $0x58] sm:$0xff] %vm3774_vm11, %v3721_v1 }
 0x602   :  { %v3554_v46 = vpop.f32.mrf.mxu0 }
 0x603   :  { %v3555_v38 = vadd.f32 %v10776_v31, %v3554_v46 }
 0x605   :  { %v3722_v53 = vmax.f32 %v3555_v38, 0.0  ;;  %6587 = vmatmul.msk.f32.gmra.mxu0 %vm3304_vm10, %v3259_v37  ;;  %v3266_v37 = vld [vmem:[#allocation2 + $0x118] sm:$0xff] }
 0x606   :  { %v3856_v52 = vld [vmem:[#allocation3 + $0x58] sm:$0xff] }
 0x607   :  { %3787 = vst.msk [vmem:[#allocation3 + $0x60] sm:$0xff] %vm3774_vm11, %v3722_v53  ;;  %v10916_v62 = vpack.i.bf16 %v3856_v52, %v3855_v51 }
 0x609   :  { %6731 = vrot.lane.b32.xlu1 %v10916_v62, %s7883_s0 }
 0x60a   :  { %v3557_v58 = vpop.f32.mrf.mxu0 }
 0x60b   :  { %v3558_v7 = vadd.f32 %v10776_v31, %v3557_v58 }
 0x60d   :  { %v3723_v16 = vmax.f32 %v3558_v7, 0.0  ;;  %6588 = vmatmul.msk.f32.gmra.mxu0 %vm3304_vm10, %v3260_v59 }
 0x60e   :  { %v3857_v5 = vld [vmem:[#allocation3 + $0x60] sm:$0xff] }
 0x60f   :  { %3788 = vst.msk [vmem:[#allocation3 + $0x68] sm:$0xff] %vm3774_vm11, %v3723_v16 }
 0x612   :  { %v3560_v21 = vpop.f32.mrf.mxu0 }
 0x613   :  { %v3561_v35 = vadd.f32 %v10776_v31, %v3560_v21  ;;  %v3269_v21 = vld [vmem:[#allocation2 + $0x130] sm:$0xff] }
 0x615   :  { %v3724_v42 = vmax.f32 %v3561_v35, 0.0  ;;  %6589 = vmatmul.msk.f32.gmra.mxu0 %vm3304_vm10, %v3261_v22 }
 0x616   :  { %v3858_v43 = vld [vmem:[#allocation3 + $0x68] sm:$0xff] }
 0x617   :  { %3789 = vst.msk [vmem:[#allocation3 + $0x70] sm:$0xff] %vm3774_vm11, %v3724_v42  ;;  %v10930_v63 = vpack.i.bf16 %v3858_v43, %v3857_v5  ;;  %v3289_v42 = vld [vmem:[#allocation2 + $0x1d0] sm:$0xff] }
 0x619   :  { %6736 = vrot.lane.b32.xlu2 %v10930_v63, %s7883_s0 }
 0x61a   :  { %v3563_v56 = vpop.f32.mrf.mxu0 }
 0x61b   :  { %v3564_v57 = vadd.f32 %v10776_v31, %v3563_v56 }
 0x61d   :  { %v3725_v14 = vmax.f32 %v3564_v57, 0.0  ;;  %6590 = vmatmul.msk.f32.gmra.mxu0 %vm3304_vm10, %v3262_v40  ;;  %v3279_v40 = vld [vmem:[#allocation2 + $0x180] sm:$0xff] }
 0x61e   :  { %v3859_v54 = vld [vmem:[#allocation3 + $0x70] sm:$0xff]  ;;  %6607 = vmatmul.msk.f32.vlgmr.msra.gmra.mxu1 %vm3304_vm10, %v3279_v40 }
 0x61f   :  { %3790 = vst.msk [vmem:[#allocation3 + $0x78] sm:$0xff] %vm3774_vm11, %v3725_v14 }
 0x622   :  { %v3566_v20 = vpop.f32.mrf.mxu0 }
 0x623   :  { %v3567_v41 = vadd.f32 %v10776_v31, %v3566_v20 }
 0x625   :  { %v3726_v36 = vmax.f32 %v3567_v41, 0.0  ;;  %6591 = vmatmul.msk.f32.gmra.mxu0 %vm3304_vm10, %v3263_v55  ;;  %v3271_v41 = vld [vmem:[#allocation2 + $0x140] sm:$0xff] }
 0x626   :  { %v3860_v0 = vld [vmem:[#allocation3 + $0x78] sm:$0xff] }
 0x627   :  { %3791 = vst.msk [vmem:[#allocation3 + $0x80] sm:$0xff] %vm3774_vm11, %v3726_v36  ;;  %3877 = vmatpush.msrb.mxu1 %v3860_v0  ;;  %v10941_v17 = vpack.i.bf16 %v3860_v0, %v3859_v54 }
 0x629   :  { %3878 = vmatpush.msrb.mxu1 %v3859_v54  ;;  %6741 = vrot.lane.b32.xlu0 %v10941_v17, %s7883_s0  ;;  %v3280_v54 = vld [vmem:[#allocation2 + $0x188] sm:$0xff] }
 0x62a   :  { %v3569_v9 = vpop.f32.mrf.mxu0  ;;  %6608 = vmatmul.msk.f32.gmra.mxu1 %vm3304_vm10, %v3280_v54  ;;  %v3277_v54 = vld [vmem:[#allocation2 + $0x170] sm:$0xff] }
 0x62b   :  { %v3570_v28 = vadd.f32 %v10776_v31, %v3569_v9  ;;  %3879 = vmatpush.msrb.mxu1 %v3858_v43  ;;  %v3291_v9 = vld [vmem:[#allocation2 + $0x1e0] sm:$0xff] }
 0x62d   :  { %v3727_v2 = vmax.f32 %v3570_v28, 0.0  ;;  %3880 = vmatpush.msrb.mxu1 %v3857_v5  ;;  %6592 = vmatmul.msk.f32.gmra.mxu0 %vm3304_vm10, %v3264_v50  ;;  %v3270_v5 = vld [vmem:[#allocation2 + $0x138] sm:$0xff]  ;;  %v3272_v28 = vld [vmem:[#allocation2 + $0x148] sm:$0xff] }
 0x62e   :  { %v10952_v15 = vld [vmem:[#allocation3 + $0x80] sm:$0xff] }
 0x62f   :  { %3792 = vst.msk [vmem:[#allocation3 + $0x88] sm:$0xff] %vm3774_vm11, %v3727_v2  ;;  %3881 = vmatpush.msrb.mxu1 %v3856_v52  ;;  %v3268_v52 = vld [vmem:[#allocation2 + $0x128] sm:$0xff] }
 0x631   :  { %3882 = vmatpush.msrb.mxu1 %v3855_v51  ;;  %v3287_v51 = vld [vmem:[#allocation2 + $0x1c0] sm:$0xff] }
 0x632   :  { %v3572_v60 = vpop.f32.mrf.mxu0 }
 0x633   :  { %v3573_v6 = vadd.f32 %v10776_v31, %v3572_v60  ;;  %3883 = vmatpush.msrb.mxu1 %v10897_v18  ;;  %v3281_v60 = vld [vmem:[#allocation2 + $0x190] sm:$0xff] }
 0x634   :  { %6609 = vmatmul.msk.f32.gmra.mxu1 %vm3304_vm10, %v3281_v60 }
 0x635   :  { %v3728_v49 = vmax.f32 %v3573_v6, 0.0  ;;  %3884 = vmatpush.msrb.mxu1 %v10895_v29  ;;  %6593 = vmatmul.msk.f32.gmra.mxu0 %vm3304_vm10, %v3265_v24 }
 0x636   :  { %v10954_v61 = vld [vmem:[#allocation3 + $0x88] sm:$0xff] }
 0x637   :  { %3793 = vst.msk [vmem:[#allocation3 + $0x90] sm:$0xff] %vm3774_vm11, %v3728_v49  ;;  %3885 = vmatpush.msrb.mxu1 %v10875_v26  ;;  %v10960_v1 = vpack.i.bf16 %v10954_v61, %v10952_v15  ;;  %v3285_v26 = vld [vmem:[#allocation2 + $0x1b0] sm:$0xff]  ;;  %v3292_v49 = vld [vmem:[#allocation2 + $0x1e8] sm:$0xff] }
 0x638   :  { %6613 = vmatmul.msk.f32.vlgmr.msra.gmra.mxu3 %vm3304_vm10, %v3285_v26 }
 0x639   :  { %3886 = vmatpush.msrb.mxu1 %v10873_v8  ;;  %6746 = vrot.lane.b32.xlu1 %v10960_v1, %s7883_s0 }
 0x63a   :  { %v3575_v29 = vpop.f32.mrf.mxu0 }
 0x63b   :  { %v3576_v18 = vadd.f32 %v10776_v31, %v3575_v29  ;;  %3887 = vmatpush.msrb.mxu1 %v10853_v13 }
 0x63d   :  { %v3729_v46 = vmax.f32 %v3576_v18, 0.0  ;;  %3888 = vmatpush.msrb.mxu1 %v10851_v12  ;;  %6594 = vmatmul.msk.f32.gmra.mxu0 %vm3304_vm10, %v3266_v37  ;;  %v3286_v12 = vld [vmem:[#allocation2 + $0x1b8] sm:$0xff]  ;;  %v3273_v18 = vld [vmem:[#allocation2 + $0x150] sm:$0xff] }
 0x63e   :  { %v10977_v44 = vld [vmem:[#allocation3 + $0x90] sm:$0xff] }
 0x63f   :  { %3794 = vst.msk [vmem:[#allocation3 + $0x98] sm:$0xff] %vm3774_vm11, %v3729_v46  ;;  %3889 = vmatpush.msrb.mxu1 %v10831_v47  ;;  %v3267_v47 = vld [vmem:[#allocation2 + $0x120] sm:$0xff] }
 0x640   :  { %6614 = vmatmul.msk.f32.gmra.mxu3 %vm3304_vm10, %v3286_v12  ;;  %v3274_v12 = vld [vmem:[#allocation2 + $0x158] sm:$0xff] }
 0x641   :  { %3890 = vmatpush.msrb.mxu1 %v10829_v32 }
 0x642   :  { %v3578_v8 = vpop.f32.mrf.mxu0 }
 0x643   :  { %v3579_v38 = vadd.f32 %v10776_v31, %v3578_v8  ;;  %3891 = vmatpush.msrb.mxu1 %v10810_v39  ;;  %v3282_v8 = vld [vmem:[#allocation2 + $0x198] sm:$0xff] }
 0x644   :  { %6610 = vmatmul.msk.f32.gmra.mxu1 %vm3304_vm10, %v3282_v8 }
 0x645   :  { %v3730_v13 = vmax.f32 %v3579_v38, 0.0  ;;  %3892 = vmatpush.msrb.mxu1 %v10808_v10  ;;  %6595 = vmatmul.msk.f32.gmra.mxu0 %vm3304_vm10, %v3267_v47 }
 0x646   :  { %v10979_v45 = vld [vmem:[#allocation3 + $0x98] sm:$0xff] }
 0x647   :  { %3795 = vst.msk [vmem:[#allocation3 + $0xa0] sm:$0xff] %vm3774_vm11, %v3730_v13  ;;  %v10985_v32 = vpack.i.bf16 %v10979_v45, %v10977_v44  ;;  %v3293_v13 = vld [vmem:[#allocation2 + $0x1f0] sm:$0xff] }
 0x648   :  { %6615 = vmatmul.msk.f32.gmra.mxu3 %vm3304_vm10, %v3287_v51 }
 0x649   :  { %6751 = vrot.lane.b32.xlu2 %v10985_v32, %s7883_s0 }
 0x64a   :  { %v3581_v10 = vpop.f32.mrf.mxu0 }
 0x64b   :  { %v3582_v39 = vadd.f32 %v10776_v31, %v3581_v10 }
 0x64d   :  { %v3731_v53 = vmax.f32 %v3582_v39, 0.0  ;;  %6596 = vmatmul.msk.f32.gmra.mxu0 %vm3304_vm10, %v3268_v52  ;;  %v3283_v39 = vld [vmem:[#allocation2 + $0x1a0] sm:$0xff] }
 0x64e   :  { %v10995_v4 = vld [vmem:[#allocation3 + $0xa0] sm:$0xff]  ;;  %6611 = vmatmul.msk.f32.gmra.mxu1 %vm3304_vm10, %v3283_v39 }
 0x64f   :  { %3796 = vst.msk [vmem:[#allocation3 + $0xa8] sm:$0xff] %vm3774_vm11, %v3731_v53  ;;  %v3294_v53 = vld [vmem:[#allocation2 + $0x1f8] sm:$0xff] }
 0x650   :  { %6616 = vmatmul.msk.f32.gmra.mxu3 %vm3304_vm10, %v3288_v3 }
 0x652   :  { %v3584_v58 = vpop.f32.mrf.mxu0 }
 0x653   :  { %v3585_v59 = vadd.f32 %v10776_v31, %v3584_v58 }
 0x655   :  { %v3732_v7 = vmax.f32 %v3585_v59, 0.0  ;;  %6597 = vmatmul.msk.f32.gmra.mxu0 %vm3304_vm10, %v3269_v21  ;;  %v3275_v59 = vld [vmem:[#allocation2 + $0x160] sm:$0xff]  ;;  %v11067_v21 = vpop.permute.xlu0 %6711 }
 0x656   :  { %v10997_v16 = vld [vmem:[#allocation3 + $0xa8] sm:$0xff] }
 0x657   :  { %3797 = vst.msk [vmem:[#allocation3 + $0xb0] sm:$0xff] %vm3774_vm11, %v3732_v7  ;;  %v11003_v22 = vpack.i.bf16 %v10997_v16, %v10995_v4 }
 0x658   :  { %6617 = vmatmul.msk.f32.gmra.mxu3 %vm3304_vm10, %v3289_v42 }
 0x659   :  { %6756 = vrot.lane.b32.xlu0 %v11003_v22, %s7883_s0 }
 0x65a   :  { %v3587_v35 = vpop.f32.mrf.mxu0 }
 0x65b   :  { %v3588_v30 = vadd.f32 %v10776_v31, %v3587_v35 }
 0x65d   :  { %v3733_v48 = vmax.f32 %v3588_v30, 0.0  ;;  %6598 = vmatmul.msk.f32.gmra.mxu0 %vm3304_vm10, %v3270_v5  ;;  %v3284_v30 = vld [vmem:[#allocation2 + $0x1a8] sm:$0xff] }
 0x65e   :  { %v11014_v14 = vld [vmem:[#allocation3 + $0xb0] sm:$0xff]  ;;  %6612 = vmatmul.msk.f32.gmra.mxu1 %vm3304_vm10, %v3284_v30  ;;  %v3276_v5 = vld [vmem:[#allocation2 + $0x168] sm:$0xff] }
 0x65f   :  { %3798 = vst.msk [vmem:[#allocation3 + $0xb8] sm:$0xff] %vm3774_vm11, %v3733_v48  ;;  %v11070_v48 = vpop.permute.xlu2 %6706 }
 0x660   :  { %6618 = vmatmul.msk.f32.gmra.mxu3 %vm3304_vm10, %v3290_v11 }
 0x662   :  { %v3590_v43 = vpop.f32.mrf.mxu0 }
 0x663   :  { %v3591_v56 = vadd.f32 %v10776_v31, %v3590_v43 }
 0x665   :  { %v3734_v57 = vmax.f32 %v3591_v56, 0.0  ;;  %6599 = vmatmul.msk.f32.gmra.mxu0 %vm3304_vm10, %v3271_v41 }
 0x666   :  { %v11016_v20 = vld [vmem:[#allocation3 + $0xb8] sm:$0xff] }
 0x667   :  { %3799 = vst.msk [vmem:[#allocation3 + $0xc0] sm:$0xff] %vm3774_vm11, %v3734_v57  ;;  %v11022_v34 = vpack.i.bf16 %v11016_v20, %v11014_v14  ;;  %v6722_v57 = vpop.permute.xlu2 %6721 }
 0x668   :  { %6619 = vmatmul.msk.f32.gmra.mxu3 %vm3304_vm10, %v3291_v9  ;;  %v6724_v30 = vunpack.i.h.bf16 %v6722_v57 }
 0x669   :  { %6761 = vrot.lane.b32.xlu1 %v11022_v34, %s7883_s0 }
 0x66a   :  { %v3593_v36 = vpop.f32.mrf.mxu0 }
 0x66b   :  { %v3594_v0 = vadd.f32 %v10776_v31, %v3593_v36  ;;  %v6727_v56 = vpop.permute.xlu0 %6726 }
 0x66d   :  { %v3735_v55 = vmax.f32 %v3594_v0, 0.0  ;;  %6600 = vmatmul.msk.f32.gmra.mxu0 %vm3304_vm10, %v3272_v28 }
 0x66e   :  { %v11034_v24 = vld [vmem:[#allocation3 + $0xc0] sm:$0xff] }
 0x66f   :  { %3800 = vst.msk [vmem:[#allocation3 + $0xc8] sm:$0xff] %vm3774_vm11, %v3735_v55  ;;  %v6717_v55 = vpop.permute.xlu1 %6716 }
 0x670   :  { %6620 = vmatmul.msk.f32.gmra.mxu3 %vm3304_vm10, %v3292_v49 }
 0x672   :  { %v3596_v2 = vpop.f32.mrf.mxu0 }
 0x673   :  { %v3597_v50 = vadd.f32 %v10776_v31, %v3596_v2  ;;  %v6737_v60 = vpop.permute.xlu2 %6736 }
 0x674   :  { %v6738_v8 = vunpack.i.l.bf16 %v6737_v60 }
 0x675   :  { %v3736_v6 = vmax.f32 %v3597_v50, 0.0  ;;  %6601 = vmatmul.msk.f32.gmra.mxu0 %vm3304_vm10, %v3273_v18  ;;  %v3278_v18 = vld [vmem:[#allocation2 + $0x178] sm:$0xff] }
 0x676   :  { %v11036_v29 = vld [vmem:[#allocation3 + $0xc8] sm:$0xff] }
 0x677   :  { %3801 = vst.msk [vmem:[#allocation3 + $0xd0] sm:$0xff] %vm3774_vm11, %v3736_v6  ;;  %v11042_v46 = vpack.i.bf16 %v11036_v29, %v11034_v24 }
 0x678   :  { %6621 = vmatmul.msk.f32.gmra.mxu3 %vm3304_vm10, %v3293_v13 }
 0x679   :  { %6766 = vrot.lane.b32.xlu2 %v11042_v46, %s7883_s0 }
 0x67a   :  { %v3599_v26 = vpop.f32.mrf.mxu0 }
 0x67b   :  { %v3600_v37 = vadd.f32 %v10776_v31, %v3599_v26  ;;  %v6739_v26 = vunpack.i.h.bf16 %v6737_v60 }
 0x67d   :  { %v3737_v38 = vmax.f32 %v3600_v37, 0.0  ;;  %6602 = vmatmul.msk.f32.gmra.mxu0 %vm3304_vm10, %v3274_v12  ;;  %v6732_v37 = vpop.permute.xlu1 %6731 }
 0x67e   :  { %v11054_v52 = vld [vmem:[#allocation3 + $0xd0] sm:$0xff]  ;;  %v6733_v39 = vunpack.i.l.bf16 %v6732_v37 }
 0x67f   :  { %3802 = vst.msk [vmem:[#allocation3 + $0xd8] sm:$0xff] %vm3774_vm11, %v3737_v38  ;;  %v6734_v38 = vunpack.i.h.bf16 %v6732_v37 }
 0x680   :  { %6622 = vmatmul.msk.f32.gmra.mxu3 %vm3304_vm10, %v3294_v53 }
 0x682   :  { %v3602_v47 = vpop.f32.mrf.mxu0 }
 0x683   :  { %v3603_v10 = vadd.f32 %v10776_v31, %v3602_v47 }
 0x685   :  { %v3738_v51 = vmax.f32 %v3603_v10, 0.0  ;;  %6603 = vmatmul.msk.f32.gmra.mxu0 %vm3304_vm10, %v3275_v59  ;;  %v6729_v59 = vunpack.i.h.bf16 %v6727_v56 }
 0x686   :  { %v11056_v58 = vld [vmem:[#allocation3 + $0xd8] sm:$0xff] }
 0x687   :  { %3803 = vst.msk [vmem:[#allocation3 + $0xe0] sm:$0xff] %vm3774_vm11, %v3738_v51  ;;  %v11062_v7 = vpack.i.bf16 %v11056_v58, %v11054_v52 }
 0x689   :  { %6771 = vrot.lane.b32.xlu0 %v11062_v7, %s7883_s0 }
 0x68a   :  { %v3605_v3 = vpop.f32.mrf.mxu0 }
 0x68b   :  { %v3606_v35 = vadd.f32 %v10776_v31, %v3605_v3  ;;  %v6728_v3 = vunpack.i.l.bf16 %v6727_v56  ;;  %v6718_v56 = vunpack.i.l.bf16 %v6717_v55 }
 0x68d   :  { %v3739_v42 = vmax.f32 %v3606_v35, 0.0  ;;  %6604 = vmatmul.msk.f32.gmra.mxu0 %vm3304_vm10, %v3276_v5  ;;  %v6723_v5 = vunpack.i.l.bf16 %v6722_v57 }
 0x68e   :  { %v3873_v41 = vld [vmem:[#allocation3 + $0xe0] sm:$0xff] }
 0x68f   :  { %3804 = vst.msk [vmem:[#allocation3 + $0xe8] sm:$0xff] %vm3774_vm11, %v3739_v42 }
 0x691   :  { %6786 = vrot.lane.b32.xlu0 %v10815_v27, %s7884_s16 }
 0x692   :  { %v3608_v43 = vpop.f32.mrf.mxu0 }
 0x693   :  { %v3609_v40 = vadd.f32 %v10776_v31, %v3608_v43 }
 0x695   :  { %v3740_v11 = vmax.f32 %v3609_v40, 0.0  ;;  %6605 = vmatmul.msk.f32.gmra.mxu0 %vm3304_vm10, %v3277_v54  ;;  %v6719_v40 = vunpack.i.h.bf16 %v6717_v55 }
 0x696   :  { %v3874_v36 = vld [vmem:[#allocation3 + $0xe8] sm:$0xff] }
 0x697   :  { %3805 = vst.msk [vmem:[#allocation3 + $0xf0] sm:$0xff] %vm3774_vm11, %v3740_v11  ;;  %v11079_v0 = vpack.i.bf16 %v3874_v36, %v3873_v41  ;;  %v6713_v11 = vunpack.i.l.bf16 %v11067_v21 }
 0x699   :  { %6776 = vrot.lane.b32.xlu1 %v11079_v0, %s7883_s0  ;;  %6801 = vrot.lane.b32.xlu0 %v10881_v19, %s7884_s16 }
 0x69a   :  { %v3611_v9 = vpop.f32.mrf.mxu0 }
 0x69b   :  { %v3612_v28 = vadd.f32 %v10776_v31, %v3611_v9  ;;  %v6742_v2 = vpop.permute.xlu0 %6741 }
 0x69c   :  { %v6744_v50 = vunpack.i.h.bf16 %v6742_v2  ;;  %v6743_v49 = vunpack.i.l.bf16 %v6742_v2 }
 0x69d   :  { %v3741_v6 = vmax.f32 %v3612_v28, 0.0  ;;  %6606 = vmatmul.msk.f32.gmra.mxu0 %vm3304_vm10, %v3278_v18 }
 0x69e   :  { %4058 = vmatpush.msrb.mxu3 %v6744_v50  ;;  %v3875_v13 = vld [vmem:[#allocation3 + $0xf0] sm:$0xff] }
 0x69f   :  { %3806 = vst.msk [vmem:[#allocation3 + $0xf8] sm:$0xff] %vm3774_vm11, %v3741_v6 }
 0x6a0   :  { %4059 = vmatpush.msrb.mxu3 %v6743_v49 }
 0x6a1   :  { %6791 = vrot.lane.b32.xlu1 %v10837_v33, %s7884_s16  ;;  %6816 = vrot.lane.b32.xlu0 %v10930_v63, %s7884_s16 }
 0x6a2   :  { %4060 = vmatpush.msrb.mxu3 %v6739_v26  ;;  %v3614_v12 = vpop.f32.mrf.mxu0 }
 0x6a3   :  { %v3615_v47 = vadd.f32 %v10776_v31, %v3614_v12 }
 0x6a4   :  { %4061 = vmatpush.msrb.mxu3 %v6738_v8 }
 0x6a5   :  { %v3742_v51 = vmax.f32 %v3615_v47, 0.0 }
 0x6a6   :  { %4062 = vmatpush.msrb.mxu3 %v6734_v38  ;;  %v3876_v10 = vld [vmem:[#allocation3 + $0xf8] sm:$0xff]  ;;  %v3662_v38 = vpop.f32.mrf.mxu1 }
 0x6a7   :  { %3900 = vmatpush.msra.mxu2 %v3876_v10  ;;  %v11094_v53 = vpack.i.bf16 %v3876_v10, %v3875_v13  ;;  %3807 = vst.msk [vmem:[#allocation3 + $0x100] sm:$0xff] %vm3774_vm11, %v3742_v51 }
 0x6a8   :  { %4063 = vmatpush.msrb.mxu3 %v6733_v39 }
 0x6a9   :  { %3901 = vmatpush.msra.mxu2 %v3875_v13  ;;  %6806 = vrot.lane.b32.xlu1 %v10902_v23, %s7884_s16 }
 0x6aa   :  { %6831 = vrot.lane.b32.xlu0 %v10985_v32, %s7884_s16  ;;  %6781 = vrot.lane.b32.xlu2 %v11094_v53, %s7883_s0  ;;  %v3617_v35 = vpop.f32.mrf.mxu0 }
 0x6ab   :  { %4064 = vmatpush.msrb.mxu3 %v6729_v59  ;;  %3902 = vmatpush.msra.mxu2 %v3874_v36  ;;  %v3618_v42 = vadd.f32 %v10776_v31, %v3617_v35  ;;  %v7828_v35 = vld [vmem:[#allocation3 + $0x18] sm:$0xff] }
 0x6ad   :  { %4065 = vmatpush.msrb.mxu3 %v6728_v3  ;;  %3903 = vmatpush.msra.mxu2 %v3873_v41  ;;  %v3743_v43 = vmax.f32 %v3618_v42, 0.0  ;;  %v7827_v3 = vld [vmem:[#allocation3 + $0x10] sm:$0xff] }
 0x6ae   :  { %v3665_v42 = vpop.f32.mrf.mxu1 }
 0x6af   :  { %4066 = vmatpush.msrb.mxu3 %v6724_v30  ;;  %3904 = vmatpush.msra.mxu2 %v11056_v58  ;;  %3808 = vst.msk [vmem:[#allocation3 + $0x108] sm:$0xff] %vm3774_vm11, %v3743_v43  ;;  %v11193_v30 = vpack.i.bf16 %v7828_v35, %v7827_v3 }
 0x6b1   :  { %4067 = vmatpush.msrb.mxu3 %v6723_v5  ;;  %3905 = vmatpush.msra.mxu2 %v11054_v52  ;;  %v6714_v52 = vunpack.i.h.bf16 %v11067_v21 }
 0x6b2   :  { %6821 = vrot.lane.b32.xlu1 %v10941_v17, %s7884_s16  ;;  %6846 = vrot.lane.b32.xlu0 %v11042_v46, %s7884_s16  ;;  %v3620_v58 = vpop.f32.mrf.mxu0 }
 0x6b3   :  { %6796 = vrot.lane.b32.xlu2 %v10859_v25, %s7884_s16  ;;  %4068 = vmatpush.msrb.mxu3 %v6719_v40  ;;  %v3621_v57 = vadd.f32 %v10776_v31, %v3620_v58  ;;  %v6708_v31 = vunpack.i.l.bf16 %v11070_v48 }
 0x6b4   :  { %3906 = vmatpush.msra.mxu2 %v11036_v29  ;;  %v6709_v29 = vunpack.i.h.bf16 %v11070_v48 }
 0x6b5   :  { %4069 = vmatpush.msrb.mxu3 %v6718_v56  ;;  %v3744_v41 = vmax.f32 %v3621_v57, 0.0 }
 0x6b6   :  { %3907 = vmatpush.msra.mxu2 %v11034_v24 }
 0x6b7   :  { %4070 = vmatpush.msrb.mxu3 %v6714_v52  ;;  %3809 = vst.msk [vmem:[#allocation3 + $0x110] sm:$0xff] %vm3774_vm11, %v3744_v41  ;;  %v3668_v41 = vpop.f32.mrf.mxu1 }
 0x6b8   :  { %3908 = vmatpush.msra.mxu2 %v11016_v20 }
 0x6b9   :  { %4071 = vmatpush.msrb.mxu3 %v6713_v11 }
 0x6ba   :  { %3909 = vmatpush.msra.mxu2 %v11014_v14  ;;  %6836 = vrot.lane.b32.xlu1 %v11003_v22, %s7884_s16  ;;  %v3623_v20 = vpop.f32.mrf.mxu0  ;;  %v11133_v14 = vld [vmem:[%s12699_s2] ss:$0 sm:$0xff]  ;;  %s7885_s2 = smov 125  }
 0x6bb   :  { %6861 = vrot.lane.b32.xlu0 %v11094_v53, %s7884_s16  ;;  %6811 = vrot.lane.b32.xlu2 %v10916_v62, %s7884_s16  ;;  %v3624_v24 = vadd.f32 %v11133_v14, %v3623_v20  ;;  %v3680_v36 = vpop.f32.mrf.mxu3  ;;  %v3663_v12 = vadd.f32 %v11133_v14, %v3662_v38  ;;  %v3666_v43 = vadd.f32 %v11133_v14, %v3665_v42 }
 0x6bc   :  { %4072 = vmatpush.msrb.mxu3 %v6709_v29  ;;  %3910 = vmatpush.msra.mxu2 %v10997_v16  ;;  %v3681_v16 = vadd.f32 %v11133_v14, %v3680_v36 }
 0x6bd   :  { %v3745_v21 = vmax.f32 %v3624_v24, 0.0  ;;  %v3759_v56 = vmax.f32 %v3666_v43, 0.0  ;;  %v7834_v43 = vld [vmem:[#allocation3 + $0x38] sm:$0xff] }
 0x6be   :  { %4073 = vmatpush.msrb.mxu3 %v6708_v31  ;;  %3911 = vmatpush.msra.mxu2 %v10995_v4  ;;  %v3669_v31 = vadd.f32 %v11133_v14, %v3668_v41 }
 0x6bf   :  { %3810 = vst.msk [vmem:[#allocation3 + $0x118] sm:$0xff] %vm3774_vm11, %v3745_v21  ;;  %v11218_v21 = vpop.permute.xlu2 %6751 }
 0x6c0   :  { %3912 = vmatpush.msra.mxu2 %v10979_v45  ;;  %v3764_v45 = vmax.f32 %v3681_v16, 0.0  ;;  %3824 = vst.msk [vmem:[#allocation3 + $0x188] sm:$0xff] %vm3774_vm11, %v3759_v56  ;;  %v3760_v36 = vmax.f32 %v3669_v31, 0.0 }
 0x6c2   :  { %3913 = vmatpush.msra.mxu2 %v10977_v44  ;;  %6851 = vrot.lane.b32.xlu1 %v11062_v7, %s7884_s16  ;;  %v3626_v4 = vpop.f32.mrf.mxu0  ;;  %3829 = vst.msk [vmem:[#allocation3 + $0x1b0] sm:$0xff] %vm3774_vm11, %v3764_v45 }
 0x6c3   :  { %6876 = vrot.lane.b32.xlu0 %v10859_v25, %s7885_s2  ;;  %6826 = vrot.lane.b32.xlu2 %v10960_v1, %s7884_s16  ;;  %v3627_v48 = vadd.f32 %v11133_v14, %v3626_v4  ;;  %v3683_v54 = vpop.f32.mrf.mxu3  ;;  %3825 = vst.msk [vmem:[#allocation3 + $0x190] sm:$0xff] %vm3774_vm11, %v3760_v36 }
 0x6c4   :  { %3914 = vmatpush.msra.mxu2 %v10954_v61  ;;  %v3684_v25 = vadd.f32 %v11133_v14, %v3683_v54 }
 0x6c5   :  { %v3746_v44 = vmax.f32 %v3627_v48, 0.0  ;;  %v7829_v48 = vld [vmem:[#allocation3 + $0x20] sm:$0xff] }
 0x6c6   :  { %3915 = vmatpush.msra.mxu2 %v10952_v15  ;;  %v3765_v61 = vmax.f32 %v3684_v25, 0.0 }
 0x6c7   :  { %3811 = vst.msk [vmem:[#allocation3 + $0x120] sm:$0xff] %vm3774_vm11, %v3746_v44  ;;  %v7830_v44 = vld [vmem:[#allocation3 + $0x28] sm:$0xff] }
 0x6c8   :  { %3830 = vst.msk [vmem:[#allocation3 + $0x1b8] sm:$0xff] %vm3774_vm11, %v3765_v61  ;;  %v11223_v54 = vpack.i.bf16 %v7830_v44, %v7829_v48  ;;  %v3671_v61 = vpop.f32.mrf.mxu1 }
 0x6ca   :  { %6866 = vrot.lane.b32.xlu1 %v10815_v27, %s7885_s2  ;;  %v3629_v55 = vpop.f32.mrf.mxu0 }
 0x6cb   :  { %6891 = vrot.lane.b32.xlu0 %v10916_v62, %s7885_s2  ;;  %6841 = vrot.lane.b32.xlu2 %v11022_v34, %s7884_s16  ;;  %v3630_v15 = vadd.f32 %v11133_v14, %v3629_v55  ;;  %v3686_v28 = vpop.f32.mrf.mxu3  ;;  %v11212_v24 = vpop.permute.xlu0 %6756 }
 0x6cc   :  { %v3687_v27 = vadd.f32 %v11133_v14, %v3686_v28  ;;  %v11230_v28 = vpop.permute.xlu1 %6746 }
 0x6cd   :  { %v3747_v9 = vmax.f32 %v3630_v15, 0.0  ;;  %v3672_v15 = vadd.f32 %v11133_v14, %v3671_v61 }
 0x6ce   :  { %v3766_v2 = vmax.f32 %v3687_v27, 0.0 }
 0x6cf   :  { %3812 = vst.msk [vmem:[#allocation3 + $0x128] sm:$0xff] %vm3774_vm11, %v3747_v9 }
 0x6d0   :  { %3831 = vst.msk [vmem:[#allocation3 + $0x1c0] sm:$0xff] %vm3774_vm11, %v3766_v2 }
 0x6d2   :  { %6881 = vrot.lane.b32.xlu1 %v10881_v19, %s7885_s2  ;;  %v3632_v50 = vpop.f32.mrf.mxu0 }
 0x6d3   :  { %6906 = vrot.lane.b32.xlu0 %v10960_v1, %s7885_s2  ;;  %6856 = vrot.lane.b32.xlu2 %v11079_v0, %s7884_s16  ;;  %v3633_v60 = vadd.f32 %v11133_v14, %v3632_v50  ;;  %v3689_v49 = vpop.f32.mrf.mxu3  ;;  %v11238_v2 = vpop.permute.xlu2 %6766  ;;  %v3761_v50 = vmax.f32 %v3672_v15, 0.0 }
 0x6d4   :  { %v3690_v19 = vadd.f32 %v11133_v14, %v3689_v49  ;;  %v6769_v15 = vunpack.i.h.bf16 %v11238_v2 }
 0x6d5   :  { %v3748_v6 = vmax.f32 %v3633_v60, 0.0  ;;  %3826 = vst.msk [vmem:[#allocation3 + $0x198] sm:$0xff] %vm3774_vm11, %v3761_v50 }
 0x6d6   :  { %v3767_v18 = vmax.f32 %v3690_v19, 0.0  ;;  %v7831_v19 = vld [vmem:[#allocation3] sm:$0xff] }
 0x6d7   :  { %3813 = vst.msk [vmem:[#allocation3 + $0x130] sm:$0xff] %vm3774_vm11, %v3748_v6 }
 0x6d8   :  { %3832 = vst.msk [vmem:[#allocation3 + $0x1c8] sm:$0xff] %vm3774_vm11, %v3767_v18  ;;  %v7832_v18 = vld [vmem:[#allocation3 + $0x8] sm:$0xff] }
 0x6da   :  { %6896 = vrot.lane.b32.xlu1 %v10930_v63, %s7885_s2  ;;  %v3635_v26 = vpop.f32.mrf.mxu0 }
 0x6db   :  { %6921 = vrot.lane.b32.xlu0 %v11022_v34, %s7885_s2  ;;  %6871 = vrot.lane.b32.xlu2 %v10837_v33, %s7885_s2  ;;  %v3636_v37 = vadd.f32 %v11133_v14, %v3635_v26  ;;  %v3692_v13 = vpop.f32.mrf.mxu3  ;;  %v3758_v33 = vmax.f32 %v3663_v12, 0.0  ;;  %v11243_v26 = vpack.i.bf16 %v7832_v18, %v7831_v19  ;;  %v6759_v19 = vunpack.i.h.bf16 %v11212_v24 }
 0x6dc   :  { %v3693_v47 = vadd.f32 %v11133_v14, %v3692_v13 }
 0x6dd   :  { %v3749_v8 = vmax.f32 %v3636_v37, 0.0  ;;  %3823 = vst.msk [vmem:[#allocation3 + $0x180] sm:$0xff] %vm3774_vm11, %v3758_v33 }
 0x6de   :  { %v3768_v10 = vmax.f32 %v3693_v47, 0.0  ;;  %v11249_v47 = vpop.permute.xlu1 %6761 }
 0x6df   :  { %3814 = vst.msk [vmem:[#allocation3 + $0x138] sm:$0xff] %vm3774_vm11, %v3749_v8  ;;  %v3674_v8 = vpop.f32.mrf.mxu1 }
 0x6e0   :  { %3833 = vst.msk [vmem:[#allocation3 + $0x1d0] sm:$0xff] %vm3774_vm11, %v3768_v10  ;;  %v3675_v13 = vadd.f32 %v11133_v14, %v3674_v8  ;;  %v6758_v8 = vunpack.i.l.bf16 %v11212_v24 }
 0x6e2   :  { %6911 = vrot.lane.b32.xlu1 %v10985_v32, %s7885_s2  ;;  %v3638_v39 = vpop.f32.mrf.mxu0 }
 0x6e3   :  { %6936 = vrot.lane.b32.xlu0 %v11079_v0, %s7885_s2  ;;  %6886 = vrot.lane.b32.xlu2 %v10902_v23, %s7885_s2  ;;  %v3639_v51 = vadd.f32 %v11133_v14, %v3638_v39  ;;  %v3695_v5 = vpop.f32.mrf.mxu3  ;;  %v3762_v39 = vmax.f32 %v3675_v13, 0.0 }
 0x6e4   :  { %v3696_v40 = vadd.f32 %v11133_v14, %v3695_v5  ;;  %v7833_v5 = vld [vmem:[#allocation3 + $0x30] sm:$0xff] }
 0x6e5   :  { %v3750_v59 = vmax.f32 %v3639_v51, 0.0  ;;  %3827 = vst.msk [vmem:[#allocation3 + $0x1a0] sm:$0xff] %vm3774_vm11, %v3762_v39 }
 0x6e6   :  { %v3769_v58 = vmax.f32 %v3696_v40, 0.0  ;;  %v11261_v40 = vpack.i.bf16 %v7834_v43, %v7833_v5 }
 0x6e7   :  { %3815 = vst.msk [vmem:[#allocation3 + $0x140] sm:$0xff] %vm3774_vm11, %v3750_v59 }
 0x6e8   :  { %3834 = vst.msk [vmem:[#allocation3 + $0x1d8] sm:$0xff] %vm3774_vm11, %v3769_v58 }
 0x6ea   :  { %6926 = vrot.lane.b32.xlu1 %v11042_v46, %s7885_s2  ;;  %v3641_v52 = vpop.f32.mrf.mxu0 }
 0x6eb   :  { %6951 = vrot.lane.b32.xlu0 %v11193_v30, %s7886_s1  ;;  %6901 = vrot.lane.b32.xlu2 %v10941_v17, %s7885_s2  ;;  %v3642_v57 = vadd.f32 %v11133_v14, %v3641_v52  ;;  %v3698_v29 = vpop.f32.mrf.mxu3  ;;  %v3677_v52 = vpop.f32.mrf.mxu1 }
 0x6ec   :  { %v3699_v20 = vadd.f32 %v11133_v14, %v3698_v29  ;;  %v3678_v29 = vadd.f32 %v11133_v14, %v3677_v52 }
 0x6ed   :  { %v3751_v11 = vmax.f32 %v3642_v57, 0.0 }
 0x6ee   :  { %v3770_v16 = vmax.f32 %v3699_v20, 0.0 }
 0x6ef   :  { %3816 = vst.msk [vmem:[#allocation3 + $0x148] sm:$0xff] %vm3774_vm11, %v3751_v11 }
 0x6f0   :  { %3835 = vst.msk [vmem:[#allocation3 + $0x1e0] sm:$0xff] %vm3774_vm11, %v3770_v16 }
 0x6f2   :  { %6941 = vrot.lane.b32.xlu1 %v11094_v53, %s7885_s2  ;;  %v3644_v45 = vpop.f32.mrf.mxu0 }
 0x6f3   :  { %6966 = vrot.lane.b32.xlu0 %v10902_v23, %s7886_s1  ;;  %6916 = vrot.lane.b32.xlu2 %v11003_v22, %s7885_s2  ;;  %v3645_v4 = vadd.f32 %v11133_v14, %v3644_v45  ;;  %v3701_v55 = vpop.f32.mrf.mxu3 }
 0x6f4   :  { %v3702_v9 = vadd.f32 %v11133_v14, %v3701_v55 }
 0x6f5   :  { %v3752_v25 = vmax.f32 %v3645_v4, 0.0 }
 0x6f6   :  { %v3771_v60 = vmax.f32 %v3702_v9, 0.0 }
 0x6f7   :  { %3817 = vst.msk [vmem:[#allocation3 + $0x150] sm:$0xff] %vm3774_vm11, %v3752_v25 }
 0x6f8   :  { %3836 = vst.msk [vmem:[#allocation3 + $0x1e8] sm:$0xff] %vm3774_vm11, %v3771_v60  ;;  %v6764_v60 = vunpack.i.h.bf16 %v11249_v47 }
 0x6fa   :  { %6956 = vrot.lane.b32.xlu1 %v11223_v54, %s7886_s1  ;;  %v3647_v6 = vpop.f32.mrf.mxu0 }
 0x6fb   :  { %6981 = vrot.lane.b32.xlu0 %v10941_v17, %s7886_s1  ;;  %6931 = vrot.lane.b32.xlu2 %v11062_v7, %s7885_s2  ;;  %v11236_v27 = vpop.permute.xlu0 %6771  ;;  %v3648_v49 = vadd.f32 %v11133_v14, %v3647_v6  ;;  %v3704_v38 = vpop.f32.mrf.mxu3 }
 0x6fc   :  { %v3705_v12 = vadd.f32 %v11133_v14, %v3704_v38  ;;  %v6774_v48 = vunpack.i.h.bf16 %v11236_v27  ;;  %v6773_v25 = vunpack.i.l.bf16 %v11236_v27 }
 0x6fd   :  { %v3753_v37 = vmax.f32 %v3648_v49, 0.0  ;;  %v6763_v49 = vunpack.i.l.bf16 %v11249_v47 }
 0x6fe   :  { %v3772_v51 = vmax.f32 %v3705_v12, 0.0  ;;  %v6754_v12 = vunpack.i.h.bf16 %v11218_v21 }
 0x6ff   :  { %3818 = vst.msk [vmem:[#allocation3 + $0x158] sm:$0xff] %vm3774_vm11, %v3753_v37 }
 0x700   :  { %3837 = vst.msk [vmem:[#allocation3 + $0x1f0] sm:$0xff] %vm3774_vm11, %v3772_v51 }
 0x702   :  { %6971 = vrot.lane.b32.xlu1 %v10916_v62, %s7886_s1  ;;  %v3650_v35 = vpop.f32.mrf.mxu0 }
 0x703   :  { %6996 = vrot.lane.b32.xlu0 %v11003_v22, %s7886_s1  ;;  %6946 = vrot.lane.b32.xlu2 %v11243_v26, %s7886_s1  ;;  %v11255_v33 = vpop.permute.xlu0 %6786  ;;  %v3651_v42 = vadd.f32 %v11133_v14, %v3650_v35  ;;  %v3707_v58 = vpop.f32.mrf.mxu3  ;;  %v3841_v35 = vld [vmem:[%s12700_s3] sm:$0xff] }
 0x704   :  { %v6782_v10 = vpop.permute.xlu2 %6781  ;;  %v3708_v57 = vadd.f32 %v11133_v14, %v3707_v58  ;;  %3893 = vmatmul.f32.vlgmr.msrb.gmra.mxu1 %v3841_v35 }
 0x705   :  { %v6784_v59 = vunpack.i.h.bf16 %v6782_v10  ;;  %v6783_v3 = vunpack.i.l.bf16 %v6782_v10  ;;  %v3754_v56 = vmax.f32 %v3651_v42, 0.0  ;;  %v6753_v10 = vunpack.i.l.bf16 %v11218_v21 }
 0x706   :  { %v3773_v20 = vmax.f32 %v3708_v57, 0.0 }
 0x707   :  { %4081 = vmatpush.msra.mxu1 %v6784_v59  ;;  %3819 = vst.msk [vmem:[#allocation3 + $0x160] sm:$0xff] %vm3774_vm11, %v3754_v56  ;;  %v6748_v59 = vunpack.i.l.bf16 %v11230_v28 }
 0x708   :  { %3838 = vst.msk [vmem:[#allocation3 + $0x1f8] sm:$0xff] %vm3774_vm11, %v3773_v20 }
 0x709   :  { %4082 = vmatpush.msra.mxu1 %v6783_v3 }
 0x70a   :  { %6986 = vrot.lane.b32.xlu1 %v10960_v1, %s7886_s1  ;;  %v3763_v1 = vmax.f32 %v3678_v29, 0.0  ;;  %v3653_v45 = vpop.f32.mrf.mxu0 }
 0x70b   :  { %7011 = vrot.lane.b32.xlu0 %v11062_v7, %s7886_s1  ;;  %6961 = vrot.lane.b32.xlu2 %v11261_v40, %s7886_s1  ;;  %v6777_v11 = vpop.permute.xlu1 %6776  ;;  %v11270_v41 = vpop.permute.xlu0 %6801  ;;  %v3654_v4 = vadd.f32 %v11133_v14, %v3653_v45 }
 0x70c   :  { %v6779_v31 = vunpack.i.h.bf16 %v6777_v11  ;;  %v6778_v16 = vunpack.i.l.bf16 %v6777_v11  ;;  %3828 = vst.msk [vmem:[#allocation3 + $0x1a8] sm:$0xff] %vm3774_vm11, %v3763_v1 }
 0x70d   :  { %v11274_v36 = vpop.permute.xlu2 %6796  ;;  %v3755_v44 = vmax.f32 %v3654_v4, 0.0 }
 0x70e   :  { %4083 = vmatpush.msra.mxu1 %v6779_v31 }
 0x70f   :  { %3820 = vst.msk [vmem:[#allocation3 + $0x168] sm:$0xff] %vm3774_vm11, %v3755_v44  ;;  %v6803_v44 = vunpack.i.l.bf16 %v11270_v41 }
 0x710   :  { %4084 = vmatpush.msra.mxu1 %v6778_v16 }
 0x712   :  { %7001 = vrot.lane.b32.xlu1 %v11022_v34, %s7886_s1  ;;  %4085 = vmatpush.msra.mxu1 %v6774_v48  ;;  %v6768_v34 = vunpack.i.l.bf16 %v11238_v2  ;;  %v3656_v27 = vpop.f32.mrf.mxu0  ;;  %v6804_v48 = vunpack.i.h.bf16 %v11270_v41 }
 0x713   :  { %7026 = vrot.lane.b32.xlu0 %v11243_v26, %s7887_s29  ;;  %6976 = vrot.lane.b32.xlu2 %v10930_v63, %s7886_s1  ;;  %v11287_v61 = vpop.permute.xlu1 %6791  ;;  %v6817_v55 = vpop.permute.xlu0 %6816  ;;  %v3657_v50 = vadd.f32 %v11133_v14, %v3656_v27 }
 0x714   :  { %4086 = vmatpush.msra.mxu1 %v6773_v25  ;;  %v6819_v42 = vunpack.i.h.bf16 %v6817_v55  ;;  %v6818_v5 = vunpack.i.l.bf16 %v6817_v55 }
 0x715   :  { %v11291_v9 = vpop.permute.xlu2 %6811  ;;  %v3756_v6 = vmax.f32 %v3657_v50, 0.0 }
 0x716   :  { %4087 = vmatpush.msra.mxu1 %v6769_v15  ;;  %v6814_v52 = vunpack.i.h.bf16 %v11291_v9  ;;  %v6813_v11 = vunpack.i.l.bf16 %v11291_v9  ;;  %v6799_v15 = vunpack.i.h.bf16 %v11274_v36 }
 0x717   :  { %3821 = vst.msk [vmem:[#allocation3 + $0x170] sm:$0xff] %vm3774_vm11, %v3756_v6 }
 0x718   :  { %4088 = vmatpush.msra.mxu1 %v6768_v34 }
 0x71a   :  { %7016 = vrot.lane.b32.xlu1 %v11079_v0, %s7886_s1  ;;  %4089 = vmatpush.msra.mxu1 %v6764_v60  ;;  %v3659_v38 = vpop.f32.mrf.mxu0  ;;  %v6794_v60 = vunpack.i.h.bf16 %v11287_v61 }
 0x71b   :  { %7041 = vrot.lane.b32.xlu0 %v11261_v40, %s7887_s29  ;;  %6991 = vrot.lane.b32.xlu2 %v10985_v32, %s7886_s1  ;;  %v11303_v2 = vpop.permute.xlu1 %6806  ;;  %v3660_v13 = vadd.f32 %v11133_v14, %v3659_v38  ;;  %v6749_v14 = vunpack.i.h.bf16 %v11230_v28 }
 0x71c   :  { %v11307_v18 = vpop.permute.xlu0 %6831  ;;  %4090 = vmatpush.msra.mxu1 %v6763_v49  ;;  %v6808_v20 = vunpack.i.l.bf16 %v11303_v2  ;;  %v6793_v49 = vunpack.i.l.bf16 %v11287_v61 }
 0x71d   :  { %v11309_v37 = vpop.permute.xlu2 %6826  ;;  %v3757_v47 = vmax.f32 %v3660_v13, 0.0 }
 0x71e   :  { %4091 = vmatpush.msra.mxu1 %v6759_v19  ;;  %v7836_v19 = vld [vmem:[#allocation3 + $0x88] sm:$0xff]  ;;  %v6829_v35 = vunpack.i.h.bf16 %v11309_v37 }
 0x71f   :  { %3822 = vst.msk [vmem:[#allocation3 + $0x178] sm:$0xff] %vm3774_vm11, %v3757_v47  ;;  %v6788_v47 = vunpack.i.l.bf16 %v11255_v33 }
 0x720   :  { %4092 = vmatpush.msra.mxu1 %v6758_v8 }
 0x722   :  { %7031 = vrot.lane.b32.xlu1 %v11193_v30, %s7887_s29  ;;  %4093 = vmatpush.msra.mxu1 %v6754_v12 }
 0x723   :  { %7056 = vrot.lane.b32.xlu0 %v10930_v63, %s7887_s29  ;;  %7006 = vrot.lane.b32.xlu2 %v11042_v46, %s7886_s1 }
 0x724   :  { %v6822_v24 = vpop.permute.xlu1 %6821  ;;  %v11323_v39 = vpop.permute.xlu0 %6846  ;;  %4094 = vmatpush.msra.mxu1 %v6753_v10 }
 0x725   :  { %v11325_v51 = vpop.permute.xlu2 %6841  ;;  %v6824_v21 = vunpack.i.h.bf16 %v6822_v24  ;;  %v6823_v3 = vunpack.i.l.bf16 %v6822_v24  ;;  %v6849_v55 = vunpack.i.h.bf16 %v11323_v39  ;;  %v6848_v41 = vunpack.i.l.bf16 %v11323_v39  ;;  %v3842_v24 = vld [vmem:[%s12700_s3 + $0x8] sm:$0xff] }
 0x726   :  { %4095 = vmatpush.msra.mxu1 %v6749_v14  ;;  %v6844_v50 = vunpack.i.h.bf16 %v11325_v51  ;;  %v6843_v6 = vunpack.i.l.bf16 %v11325_v51  ;;  %v6834_v39 = vunpack.i.h.bf16 %v11307_v18  ;;  %3916 = vmatmul.f32.vlgmr.msra.gmra.mxu2 %v3842_v24 }
 0x727   :  { %4207 = vmatpush.msrb.mxu2 %v6824_v21  ;;  %v6833_v21 = vunpack.i.l.bf16 %v11307_v18 }
 0x728   :  { %4096 = vmatpush.msra.mxu1 %v6748_v59  ;;  %v7838_v59 = vld [vmem:[#allocation3 + $0xb8] sm:$0xff] }
 0x729   :  { %4208 = vmatpush.msrb.mxu2 %v6823_v3 }
 0x72a   :  { %7046 = vrot.lane.b32.xlu1 %v10902_v23, %s7887_s29 }
 0x72b   :  { %7071 = vrot.lane.b32.xlu0 %v10985_v32, %s7887_s29  ;;  %7021 = vrot.lane.b32.xlu2 %v11094_v53, %s7886_s1  ;;  %v6809_v32 = vunpack.i.h.bf16 %v11303_v2  ;;  %v7835_v2 = vld [vmem:[#allocation3 + $0x80] sm:$0xff] }
 0x72c   :  { %4209 = vmatpush.msrb.mxu2 %v6819_v42  ;;  %v11337_v28 = vpop.permute.xlu1 %6836  ;;  %v11375_v8 = vpack.i.bf16 %v7836_v19, %v7835_v2 }
 0x72d   :  { %v6862_v43 = vpop.permute.xlu0 %6861  ;;  %v6857_v56 = vpop.permute.xlu2 %6856  ;;  %v6839_v38 = vunpack.i.h.bf16 %v11337_v28  ;;  %v6838_v10 = vunpack.i.l.bf16 %v11337_v28 }
 0x72e   :  { %v6864_v58 = vunpack.i.h.bf16 %v6862_v43  ;;  %4210 = vmatpush.msrb.mxu2 %v6818_v5  ;;  %v6863_v57 = vunpack.i.l.bf16 %v6862_v43  ;;  %v6859_v29 = vunpack.i.h.bf16 %v6857_v56  ;;  %v6858_v1 = vunpack.i.l.bf16 %v6857_v56  ;;  %v6623_v56 = vld [vmem:[%s12700_s3 + $0x20] sm:$0xff] }
 0x72f   :  { %v6828_v43 = vunpack.i.l.bf16 %v11309_v37  ;;  %4074 = vmatmul.f32.vlgmr.msrb.gmra.mxu3 %v6623_v56 }
 0x730   :  { %4211 = vmatpush.msrb.mxu2 %v6814_v52  ;;  %4230 = vmatpush.msra.mxu3 %v6864_v58 }
 0x732   :  { %4212 = vmatpush.msrb.mxu2 %v6813_v11  ;;  %4231 = vmatpush.msra.mxu3 %v6863_v57 }
 0x733   :  { %7061 = vrot.lane.b32.xlu1 %v10941_v17, %s7887_s29  ;;  %7086 = vrot.lane.b32.xlu0 %v11042_v46, %s7887_s29 }
 0x734   :  { %7036 = vrot.lane.b32.xlu2 %v11223_v54, %s7887_s29  ;;  %4213 = vmatpush.msrb.mxu2 %v6809_v32  ;;  %v6852_v31 = vpop.permute.xlu1 %6851 }
 0x735   :  { %4232 = vmatpush.msra.mxu3 %v6859_v29  ;;  %v6854_v16 = vunpack.i.h.bf16 %v6852_v31  ;;  %v11349_v45 = vpop.permute.xlu0 %6876  ;;  %v11351_v4 = vpop.permute.xlu2 %6871  ;;  %v6853_v25 = vunpack.i.l.bf16 %v6852_v31 }
 0x736   :  { %4214 = vmatpush.msrb.mxu2 %v6808_v20 }
 0x737   :  { %4233 = vmatpush.msra.mxu3 %v6858_v1 }
 0x738   :  { %4215 = vmatpush.msrb.mxu2 %v6804_v48 }
 0x739   :  { %4234 = vmatpush.msra.mxu3 %v6854_v16 }
 0x73a   :  { %4216 = vmatpush.msrb.mxu2 %v6803_v44 }
 0x73b   :  { %4235 = vmatpush.msra.mxu3 %v6853_v25  ;;  %7076 = vrot.lane.b32.xlu1 %v11003_v22, %s7887_s29  ;;  %v6798_v22 = vunpack.i.l.bf16 %v11274_v36  ;;  %v6789_v36 = vunpack.i.h.bf16 %v11255_v33  ;;  %v7837_v33 = vld [vmem:[#allocation3 + $0xb0] sm:$0xff]  ;;  %v6879_v25 = vunpack.i.h.bf16 %v11349_v45 }
 0x73c   :  { %7101 = vrot.lane.b32.xlu0 %v11094_v53, %s7887_s29  ;;  %7051 = vrot.lane.b32.xlu2 %v10916_v62, %s7887_s29  ;;  %v11363_v9 = vpop.permute.xlu1 %6866  ;;  %v11396_v3 = vpack.i.bf16 %v7838_v59, %v7837_v33 }
 0x73d   :  { %4217 = vmatpush.msrb.mxu2 %v6799_v15  ;;  %4236 = vmatpush.msra.mxu3 %v6849_v55  ;;  %v11366_v34 = vpop.permute.xlu0 %6891  ;;  %v11368_v27 = vpop.permute.xlu2 %6886  ;;  %v6878_v55 = vunpack.i.l.bf16 %v11349_v45  ;;  %v3843_v15 = vld [vmem:[%s12700_s3 + $0x10] sm:$0x3]  ;;  %v6869_v2 = vunpack.i.h.bf16 %v11363_v9  ;;  %v6868_v19 = vunpack.i.l.bf16 %v11363_v9 }
 0x73e   :  { %v6894_v52 = vunpack.i.h.bf16 %v11366_v34  ;;  %v6893_v57 = vunpack.i.l.bf16 %v11366_v34  ;;  %v6889_v29 = vunpack.i.h.bf16 %v11368_v27  ;;  %v6888_v31 = vunpack.i.l.bf16 %v11368_v27  ;;  %3896 = vmatmul.f32.gmra.mxu1 %v3843_v15  ;;  %v7839_v34 = vld [vmem:[#allocation3 + $0x90] sm:$0xff]  ;;  %v7840_v27 = vld [vmem:[#allocation3 + $0x98] sm:$0xff] }
 0x73f   :  { %4218 = vmatpush.msrb.mxu2 %v6798_v22  ;;  %4237 = vmatpush.msra.mxu3 %v6848_v41  ;;  %v6874_v41 = vunpack.i.h.bf16 %v11351_v4  ;;  %v11447_v22 = vpack.i.bf16 %v7840_v27, %v7839_v34 }
 0x741   :  { %4219 = vmatpush.msrb.mxu2 %v6794_v60  ;;  %4238 = vmatpush.msra.mxu3 %v6844_v50  ;;  %v6873_v50 = vunpack.i.l.bf16 %v11351_v4 }
 0x743   :  { %4220 = vmatpush.msrb.mxu2 %v6793_v49  ;;  %4239 = vmatpush.msra.mxu3 %v6843_v6 }
 0x744   :  { %7091 = vrot.lane.b32.xlu1 %v11062_v7, %s7887_s29  ;;  %7116 = vrot.lane.b32.xlu0 %v11223_v54, %s7888_s7  ;;  %v11383_v13 = vpop.permute.xlu1 %6881 }
 0x745   :  { %7066 = vrot.lane.b32.xlu2 %v11375_v8, %s7887_s29  ;;  %4221 = vmatpush.msrb.mxu2 %v6789_v36  ;;  %v11387_v61 = vpop.permute.xlu0 %6906  ;;  %v6902_v12 = vpop.permute.xlu2 %6901  ;;  %v6884_v20 = vunpack.i.h.bf16 %v11383_v13  ;;  %v6883_v1 = vunpack.i.l.bf16 %v11383_v13 }
 0x746   :  { %4240 = vmatpush.msra.mxu3 %v6839_v38  ;;  %v6904_v14 = vunpack.i.h.bf16 %v6902_v12  ;;  %v6903_v51 = vunpack.i.l.bf16 %v6902_v12  ;;  %v6624_v38 = vld [vmem:[%s12700_s3 + $0x28] sm:$0xff]  ;;  %v6908_v27 = vunpack.i.l.bf16 %v11387_v61 }
 0x747   :  { %4222 = vmatpush.msrb.mxu2 %v6788_v47  ;;  %4097 = vmatmul.f32.vlgmr.msra.gmra.mxu1 %v6624_v38 }
 0x748   :  { %4241 = vmatpush.msra.mxu3 %v6838_v10  ;;  %4356 = vmatpush.msrb.mxu1 %v6904_v14 }
 0x74a   :  { %4242 = vmatpush.msra.mxu3 %v6834_v39  ;;  %4357 = vmatpush.msrb.mxu1 %v6903_v51 }
 0x74c   :  { %4243 = vmatpush.msra.mxu3 %v6833_v21  ;;  %7106 = vrot.lane.b32.xlu1 %v11243_v26, %s7888_s7  ;;  %v6897_v42 = vpop.permute.xlu1 %6896  ;;  %v7841_v21 = vld [vmem:[#allocation3 + $0xa0] sm:$0xff] }
 0x74d   :  { %7131 = vrot.lane.b32.xlu0 %v10916_v62, %s7888_s7  ;;  %7081 = vrot.lane.b32.xlu2 %v11396_v3, %s7887_s29  ;;  %v6899_v18 = vunpack.i.h.bf16 %v6897_v42  ;;  %v11405_v28 = vpop.permute.xlu0 %6921  ;;  %v11407_v5 = vpop.permute.xlu2 %6916  ;;  %v6898_v58 = vunpack.i.l.bf16 %v6897_v42 }
 0x74e   :  { %4244 = vmatpush.msra.mxu3 %v6829_v35  ;;  %v6924_v56 = vunpack.i.h.bf16 %v11405_v28 }
 0x74f   :  { %4358 = vmatpush.msrb.mxu1 %v6899_v18 }
 0x750   :  { %4245 = vmatpush.msra.mxu3 %v6828_v43 }
 0x751   :  { %4359 = vmatpush.msrb.mxu1 %v6898_v58 }
 0x753   :  { %4360 = vmatpush.msrb.mxu1 %v6894_v52 }
 0x754   :  { %7121 = vrot.lane.b32.xlu1 %v11261_v40, %s7888_s7  ;;  %v11417_v11 = vpop.permute.xlu1 %6911 }
 0x755   :  { %7146 = vrot.lane.b32.xlu0 %v11375_v8, %s7888_s7  ;;  %7096 = vrot.lane.b32.xlu2 %v11079_v0, %s7887_s29  ;;  %v6937_v37 = vpop.permute.xlu0 %6936  ;;  %v11423_v32 = vpop.permute.xlu2 %6931 }
 0x756   :  { %4361 = vmatpush.msrb.mxu1 %v6893_v57  ;;  %v6939_v36 = vunpack.i.h.bf16 %v6937_v37  ;;  %v6938_v13 = vunpack.i.l.bf16 %v6937_v37  ;;  %v6934_v10 = vunpack.i.h.bf16 %v11423_v32  ;;  %v6933_v24 = vunpack.i.l.bf16 %v11423_v32 }
 0x757   :  { %v6923_v57 = vunpack.i.l.bf16 %v11405_v28 }
 0x758   :  { %4362 = vmatpush.msrb.mxu1 %v6889_v29 }
 0x75a   :  { %4363 = vmatpush.msrb.mxu1 %v6888_v31 }
 0x75c   :  { %7136 = vrot.lane.b32.xlu1 %v10930_v63, %s7888_s7  ;;  %4364 = vmatpush.msrb.mxu1 %v6884_v20  ;;  %v11431_v16 = vpop.permute.xlu1 %6926  ;;  %v6918_v20 = vunpack.i.l.bf16 %v11407_v5 }
 0x75d   :  { %7161 = vrot.lane.b32.xlu0 %v11396_v3, %s7888_s7  ;;  %7111 = vrot.lane.b32.xlu2 %v11193_v30, %s7888_s7  ;;  %v11437_v48 = vpop.permute.xlu0 %6951  ;;  %v11439_v44 = vpop.permute.xlu2 %6946  ;;  %v6929_v51 = vunpack.i.h.bf16 %v11431_v16  ;;  %v6928_v59 = vunpack.i.l.bf16 %v11431_v16 }
 0x75e   :  { %4365 = vmatpush.msrb.mxu1 %v6883_v1 }
 0x760   :  { %4366 = vmatpush.msrb.mxu1 %v6879_v25  ;;  %v6913_v25 = vunpack.i.l.bf16 %v11417_v11 }
 0x762   :  { %4367 = vmatpush.msrb.mxu1 %v6878_v55 }
 0x764   :  { %7151 = vrot.lane.b32.xlu1 %v11447_v22, %s7888_s7  ;;  %4368 = vmatpush.msrb.mxu1 %v6874_v41  ;;  %v6942_v45 = vpop.permute.xlu1 %6941 }
 0x765   :  { %7176 = vrot.lane.b32.xlu0 %v11079_v0, %s7888_s7  ;;  %7126 = vrot.lane.b32.xlu2 %v10902_v23, %s7888_s7  ;;  %v6944_v60 = vunpack.i.h.bf16 %v6942_v45  ;;  %v11456_v6 = vpop.permute.xlu0 %6966  ;;  %v11458_v49 = vpop.permute.xlu2 %6961  ;;  %v6943_v4 = vunpack.i.l.bf16 %v6942_v45 }
 0x766   :  { %4369 = vmatpush.msrb.mxu1 %v6873_v50  ;;  %v6969_v32 = vunpack.i.h.bf16 %v11456_v6  ;;  %v6968_v1 = vunpack.i.l.bf16 %v11456_v6  ;;  %v6964_v16 = vunpack.i.h.bf16 %v11458_v49  ;;  %v6963_v55 = vunpack.i.l.bf16 %v11458_v49  ;;  %v6627_v6 = vld [vmem:[%s12700_s3 + $0x40] sm:$0xff] }
 0x767   :  { %4379 = vmatpush.msra.mxu2 %v6944_v60 }
 0x768   :  { %4370 = vmatpush.msrb.mxu1 %v6869_v2  ;;  %v6949_v2 = vunpack.i.h.bf16 %v11439_v44 }
 0x769   :  { %4380 = vmatpush.msra.mxu2 %v6943_v4 }
 0x76a   :  { %4371 = vmatpush.msrb.mxu1 %v6868_v19 }
 0x76b   :  { %4381 = vmatpush.msra.mxu2 %v6939_v36 }
 0x76c   :  { %7166 = vrot.lane.b32.xlu1 %v11042_v46, %s7888_s7  ;;  %v11467_v12 = vpop.permute.xlu1 %6956 }
 0x76d   :  { %7191 = vrot.lane.b32.xlu0 %v11193_v30, %s7889_s20  ;;  %7141 = vrot.lane.b32.xlu2 %v10941_v17, %s7888_s7  ;;  %v6982_v9 = vpop.permute.xlu0 %6981  ;;  %v6977_v47 = vpop.permute.xlu2 %6976  ;;  %v7842_v30 = vld [vmem:[#allocation3 + $0xa8] sm:$0xff]  ;;  %v6959_v41 = vunpack.i.h.bf16 %v11467_v12  ;;  %v6958_v45 = vunpack.i.l.bf16 %v11467_v12  ;;  %v11548_v12 = vld [vmem:[#allocation3 + $0x100] sm:$0xff] }
 0x76e   :  { %v6984_v14 = vunpack.i.h.bf16 %v6982_v9  ;;  %4382 = vmatpush.msra.mxu2 %v6938_v13  ;;  %v6983_v39 = vunpack.i.l.bf16 %v6982_v9  ;;  %v7155_v33 = vpack.i.bf16 %v7842_v30, %v7841_v21  ;;  %v6979_v35 = vunpack.i.h.bf16 %v6977_v47  ;;  %12721 = vst [vmem:[#allocation4_spill] sm:$0xff] %v11548_v12 }
 0x76f   :  { %v6978_v58 = vunpack.i.l.bf16 %v6977_v47 }
 0x770   :  { %4383 = vmatpush.msra.mxu2 %v6934_v10  ;;  %4505 = vmatpush.msrb.mxu3 %v6984_v14 }
 0x772   :  { %4384 = vmatpush.msra.mxu2 %v6933_v24  ;;  %4506 = vmatpush.msrb.mxu3 %v6983_v39 }
 0x774   :  { %7181 = vrot.lane.b32.xlu1 %v11094_v53, %s7888_s7  ;;  %4385 = vmatpush.msra.mxu2 %v6929_v51  ;;  %v6972_v42 = vpop.permute.xlu1 %6971  ;;  %v11572_v51 = vld [vmem:[#allocation3 + $0x130] sm:$0xff] }
 0x775   :  { %7206 = vrot.lane.b32.xlu0 %v10902_v23, %s7889_s20  ;;  %7156 = vrot.lane.b32.xlu2 %v7155_v33, %s7888_s7  ;;  %v11482_v18 = vpop.permute.xlu0 %6996  ;;  %v11484_v43 = vpop.permute.xlu2 %6991  ;;  %v6974_v52 = vunpack.i.h.bf16 %v6972_v42  ;;  %v6973_v37 = vunpack.i.l.bf16 %v6972_v42  ;;  %v6919_v23 = vunpack.i.h.bf16 %v11407_v5  ;;  %v6909_v5 = vunpack.i.h.bf16 %v11387_v61 }
 0x776   :  { %4507 = vmatpush.msrb.mxu3 %v6979_v35  ;;  %4386 = vmatpush.msra.mxu2 %v6928_v59  ;;  %v6954_v61 = vunpack.i.h.bf16 %v11437_v48  ;;  %v6998_v35 = vunpack.i.l.bf16 %v11482_v18 }
 0x778   :  { %4508 = vmatpush.msrb.mxu3 %v6978_v58  ;;  %4387 = vmatpush.msra.mxu2 %v6924_v56  ;;  %v11595_v56 = vld [vmem:[#allocation3 + $0x110] sm:$0xff]  ;;  %v11597_v58 = vld [vmem:[#allocation3 + $0x118] sm:$0xff] }
 0x77a   :  { %4509 = vmatpush.msrb.mxu3 %v6974_v52  ;;  %4388 = vmatpush.msra.mxu2 %v6923_v57  ;;  %v11600_v52 = vld [vmem:[#allocation3 + $0x160] sm:$0xff]  ;;  %v11602_v57 = vld [vmem:[#allocation3 + $0x168] sm:$0xff] }
 0x77c   :  { %4510 = vmatpush.msrb.mxu3 %v6973_v37  ;;  %7196 = vrot.lane.b32.xlu1 %v11223_v54, %s7889_s20  ;;  %v11492_v29 = vpop.permute.xlu1 %6986  ;;  %v6914_v54 = vunpack.i.h.bf16 %v11417_v11  ;;  %v11610_v37 = vpack.i.bf16 %v11597_v58, %v11595_v56 }
 0x77d   :  { %7221 = vrot.lane.b32.xlu0 %v10941_v17, %s7889_s20  ;;  %7171 = vrot.lane.b32.xlu2 %v11062_v7, %s7888_s7  ;;  %v11498_v28 = vpop.permute.xlu0 %7011  ;;  %v11500_v31 = vpop.permute.xlu2 %7006  ;;  %v3844_v17 = vld [vmem:[%s12700_s3 + $0x18] sm:$0x3] }
 0x77e   :  { %4389 = vmatpush.msra.mxu2 %v6919_v23  ;;  %4511 = vmatpush.msrb.mxu3 %v6969_v32  ;;  %v7014_v13 = vunpack.i.h.bf16 %v11498_v28  ;;  %v7009_v47 = vunpack.i.h.bf16 %v11500_v31  ;;  %v7008_v24 = vunpack.i.l.bf16 %v11500_v31  ;;  %v11614_v23 = vpack.i.bf16 %v11602_v57, %v11600_v52 }
 0x77f   :  { %3919 = vmatmul.f32.gmra.mxu2 %v3844_v17  ;;  %v6989_v32 = vunpack.i.h.bf16 %v11492_v29  ;;  %v11630_v17 = vld [vmem:[#allocation3 + $0x148] sm:$0xff] }
 0x780   :  { %4390 = vmatpush.msra.mxu2 %v6918_v20  ;;  %4512 = vmatpush.msrb.mxu3 %v6968_v1  ;;  %v6988_v20 = vunpack.i.l.bf16 %v11492_v29 }
 0x782   :  { %4391 = vmatpush.msra.mxu2 %v6914_v54  ;;  %4513 = vmatpush.msrb.mxu3 %v6964_v16  ;;  %v11628_v16 = vld [vmem:[#allocation3 + $0x140] sm:$0xff] }
 0x783   :  { %v11638_v29 = vpack.i.bf16 %v11630_v17, %v11628_v16 }
 0x784   :  { %4392 = vmatpush.msra.mxu2 %v6913_v25  ;;  %4514 = vmatpush.msrb.mxu3 %v6963_v55  ;;  %v11512_v15 = vpop.permute.xlu1 %7001  ;;  %v11640_v55 = vld [vmem:[#allocation3 + $0x190] sm:$0xff] }
 0x785   :  { %7211 = vrot.lane.b32.xlu1 %v10916_v62, %s7889_s20  ;;  %7236 = vrot.lane.b32.xlu0 %v7155_v33, %s7889_s20  ;;  %v11518_v34 = vpop.permute.xlu0 %7026  ;;  %v7022_v11 = vpop.permute.xlu2 %7021  ;;  %v6625_v62 = vld [vmem:[%s12700_s3 + $0x30] sm:$0x3]  ;;  %v7004_v39 = vunpack.i.h.bf16 %v11512_v15  ;;  %v7003_v21 = vunpack.i.l.bf16 %v11512_v15  ;;  %v6999_v33 = vunpack.i.h.bf16 %v11482_v18  ;;  %v6993_v18 = vunpack.i.l.bf16 %v11484_v43  ;;  %12722 = vst [vmem:[#allocation6_spill] sm:$0xff] %v11640_v55 }
 0x786   :  { %7186 = vrot.lane.b32.xlu2 %v11243_v26, %s7889_s20  ;;  %4393 = vmatpush.msra.mxu2 %v6909_v5  ;;  %v7024_v50 = vunpack.i.h.bf16 %v7022_v11  ;;  %v7023_v60 = vunpack.i.l.bf16 %v7022_v11  ;;  %v6953_v26 = vunpack.i.l.bf16 %v11437_v48  ;;  %v6948_v48 = vunpack.i.l.bf16 %v11439_v44  ;;  %v11642_v5 = vld [vmem:[#allocation3 + $0x198] sm:$0xff] }
 0x787   :  { %4515 = vmatpush.msrb.mxu3 %v6959_v41  ;;  %4223 = vmatmul.f32.vlgmr.msrb.gmra.mxu2 %v6627_v6  ;;  %12723 = vst [vmem:[#allocation5_spill] sm:$0xff] %v11642_v5  ;;  %v11646_v15 = vpack.i.bf16 %v11642_v5, %v11640_v55  ;;  %v11660_v6 = vld [vmem:[#allocation3 + $0x178] sm:$0xff]  ;;  %v6637_v5 = vld [vmem:[%s12700_s3 + $0x90] sm:$0x3] }
 0x788   :  { %4394 = vmatpush.msra.mxu2 %v6908_v27  ;;  %4528 = vmatpush.msra.mxu1 %v7024_v50 }
 0x789   :  { %4516 = vmatpush.msrb.mxu3 %v6958_v45 }
 0x78a   :  { %4529 = vmatpush.msra.mxu1 %v7023_v60  ;;  %4077 = vmatmul.f32.gmra.mxu3 %v6625_v62  ;;  %v11658_v62 = vld [vmem:[#allocation3 + $0x170] sm:$0xff] }
 0x78b   :  { %4517 = vmatpush.msrb.mxu3 %v6954_v61 }
 0x78c   :  { %v7017_v49 = vpop.permute.xlu1 %7016 }
 0x78d   :  { %4518 = vmatpush.msrb.mxu3 %v6953_v26  ;;  %7226 = vrot.lane.b32.xlu1 %v11375_v8, %s7889_s20  ;;  %v7019_v4 = vunpack.i.h.bf16 %v7017_v49  ;;  %v11535_v19 = vpop.permute.xlu0 %7041  ;;  %v7018_v38 = vunpack.i.l.bf16 %v7017_v49  ;;  %v6628_v8 = vld [vmem:[%s12700_s3 + $0x48] sm:$0xff]  ;;  %v11663_v49 = vld [vmem:[#allocation3 + $0x120] sm:$0xff] }
 0x78e   :  { %7251 = vrot.lane.b32.xlu0 %v11062_v7, %s7889_s20  ;;  %7201 = vrot.lane.b32.xlu2 %v11261_v40, %s7889_s20  ;;  %v11541_v36 = vpop.permute.xlu2 %7036  ;;  %v11550_v7 = vld [vmem:[#allocation3 + $0x108] sm:$0xff]  ;;  %v7013_v40 = vunpack.i.l.bf16 %v11498_v28 }
 0x78f   :  { %4519 = vmatpush.msrb.mxu3 %v6949_v2  ;;  %4530 = vmatpush.msra.mxu1 %v7019_v4  ;;  %v11555_v44 = vpack.i.bf16 %v11550_v7, %v11548_v12  ;;  %v11665_v2 = vld [vmem:[#allocation3 + $0x128] sm:$0xff]  ;;  %v11670_v4 = vpack.i.bf16 %v11660_v6, %v11658_v62 }
 0x790   :  { %v6636_v12 = vld [vmem:[%s12700_s3 + $0x88] sm:$0xff] }
 0x791   :  { %4520 = vmatpush.msrb.mxu3 %v6948_v48  ;;  %4531 = vmatpush.msra.mxu1 %v7018_v38  ;;  %v11672_v48 = vld [vmem:[#allocation3 + $0x1c0] sm:$0xff]  ;;  %v11674_v38 = vld [vmem:[#allocation3 + $0x1c8] sm:$0xff] }
 0x792   :  { %4246 = vmatmul.f32.vlgmr.msra.gmra.mxu3 %v6628_v8  ;;  %v11678_v8 = vpack.i.bf16 %v11674_v38, %v11672_v48 }
 0x793   :  { %4532 = vmatpush.msra.mxu1 %v7014_v13  ;;  %v11682_v13 = vpack.i.bf16 %v11665_v2, %v11663_v49 }
 0x794   :  { %v11557_v9 = vpop.permute.xlu1 %7031 }
 0x795   :  { %7241 = vrot.lane.b32.xlu1 %v11396_v3, %s7889_s20  ;;  %v11562_v10 = vpop.permute.xlu0 %7056  ;;  %4533 = vmatpush.msra.mxu1 %v7013_v40  ;;  %v11574_v3 = vld [vmem:[#allocation3 + $0x138] sm:$0xff] }
 0x796   :  { %7266 = vrot.lane.b32.xlu0 %v11555_v44, %s7883_s0  ;;  %7216 = vrot.lane.b32.xlu2 %v10930_v63, %s7889_s20  ;;  %v11568_v14 = vpop.permute.xlu2 %7051  ;;  %v11579_v30 = vpack.i.bf16 %v11574_v3, %v11572_v51  ;;  %v7059_v25 = vunpack.i.h.bf16 %v11562_v10  ;;  %v7058_v41 = vunpack.i.l.bf16 %v11562_v10 }
 0x797   :  { %4534 = vmatpush.msra.mxu1 %v7009_v47  ;;  %v7054_v50 = vunpack.i.h.bf16 %v11568_v14  ;;  %v7053_v61 = vunpack.i.l.bf16 %v11568_v14 }
 0x799   :  { %4535 = vmatpush.msra.mxu1 %v7008_v24  ;;  %v7044_v24 = vunpack.i.h.bf16 %v11535_v19 }
 0x79b   :  { %4536 = vmatpush.msra.mxu1 %v7004_v39 }
 0x79c   :  { %v11581_v63 = vpop.permute.xlu1 %7046 }
 0x79d   :  { %7256 = vrot.lane.b32.xlu1 %v11079_v0, %s7889_s20  ;;  %v11586_v59 = vpop.permute.xlu0 %7071  ;;  %4537 = vmatpush.msra.mxu1 %v7003_v21  ;;  %v6994_v0 = vunpack.i.h.bf16 %v11484_v43  ;;  %v7048_v40 = vunpack.i.l.bf16 %v11581_v63 }
 0x79e   :  { %7281 = vrot.lane.b32.xlu0 %v11579_v30, %s7883_s0  ;;  %7231 = vrot.lane.b32.xlu2 %v11447_v22, %s7889_s20  ;;  %v6626_v22 = vld [vmem:[%s12700_s3 + $0x38] sm:$0x3] }
 0x79f   :  { %v11593_v42 = vpop.permute.xlu2 %7066  ;;  %4538 = vmatpush.msra.mxu1 %v6999_v33  ;;  %v7043_v33 = vunpack.i.l.bf16 %v11535_v19  ;;  %v11711_v19 = vld [vmem:[#allocation3 + $0x1f8] sm:$0xff] }
 0x7a0   :  { %4100 = vmatmul.f32.gmra.mxu1 %v6626_v22  ;;  %v11701_v22 = vld [vmem:[#allocation3 + $0x1a0] sm:$0xff] }
 0x7a1   :  { %4539 = vmatpush.msra.mxu1 %v6998_v35  ;;  %v11697_v35 = vld [vmem:[#allocation3 + $0x150] sm:$0xff]  ;;  %12724 = vst [vmem:[#allocation7_spill] sm:$0xff] %v11701_v22 }
 0x7a3   :  { %4540 = vmatpush.msra.mxu1 %v6994_v0  ;;  %v11699_v0 = vld [vmem:[#allocation3 + $0x158] sm:$0xff] }
 0x7a5   :  { %7271 = vrot.lane.b32.xlu1 %v11610_v37, %s7883_s0  ;;  %v7062_v28 = vpop.permute.xlu1 %7061  ;;  %v11619_v31 = vpop.permute.xlu0 %7086  ;;  %4541 = vmatpush.msra.mxu1 %v6993_v18  ;;  %v11703_v18 = vld [vmem:[#allocation3 + $0x1a8] sm:$0xff] }
 0x7a6   :  { %7296 = vrot.lane.b32.xlu0 %v11614_v23, %s7883_s0  ;;  %7246 = vrot.lane.b32.xlu2 %v11042_v46, %s7889_s20  ;;  %v7064_v43 = vunpack.i.h.bf16 %v7062_v28  ;;  %v7063_v54 = vunpack.i.l.bf16 %v7062_v28  ;;  %v6631_v46 = vld [vmem:[%s12700_s3 + $0x60] sm:$0xff]  ;;  %v11707_v28 = vpack.i.bf16 %v11703_v18, %v11701_v22 }
 0x7a7   :  { %v11626_v1 = vpop.permute.xlu2 %7081  ;;  %4542 = vmatpush.msra.mxu1 %v6989_v32  ;;  %v6639_v22 = vld [vmem:[%s12700_s3 + $0xa0] sm:$0xff] }
 0x7a8   :  { %4654 = vmatpush.msrb.mxu2 %v7064_v43  ;;  %4372 = vmatmul.f32.vlgmr.msrb.gmra.mxu1 %v6631_v46  ;;  %v11709_v43 = vld [vmem:[#allocation3 + $0x1f0] sm:$0xff]  ;;  %v7089_v46 = vunpack.i.h.bf16 %v11619_v31 }
 0x7a9   :  { %4543 = vmatpush.msra.mxu1 %v6988_v20  ;;  %v11715_v20 = vpack.i.bf16 %v11711_v19, %v11709_v43 }
 0x7aa   :  { %4655 = vmatpush.msrb.mxu2 %v7063_v54  ;;  %v11719_v54 = vpack.i.bf16 %v11699_v0, %v11697_v35 }
 0x7ac   :  { %4656 = vmatpush.msrb.mxu2 %v7059_v25  ;;  %v7039_v25 = vunpack.i.h.bf16 %v11541_v36 }
 0x7ad   :  { %7286 = vrot.lane.b32.xlu1 %v11638_v29, %s7883_s0  ;;  %v11651_v11 = vpop.permute.xlu1 %7076 }
 0x7ae   :  { %7311 = vrot.lane.b32.xlu0 %v11646_v15, %s7883_s0  ;;  %7261 = vrot.lane.b32.xlu2 %v11094_v53, %s7889_s20  ;;  %v7102_v27 = vpop.permute.xlu0 %7101  ;;  %v7049_v53 = vunpack.i.h.bf16 %v11581_v63 }
 0x7af   :  { %v7104_v45 = vunpack.i.h.bf16 %v7102_v27  ;;  %v7097_v60 = vpop.permute.xlu2 %7096  ;;  %4657 = vmatpush.msrb.mxu2 %v7058_v41  ;;  %v7103_v26 = vunpack.i.l.bf16 %v7102_v27  ;;  %v7038_v27 = vunpack.i.l.bf16 %v11541_v36  ;;  %v7033_v36 = vunpack.i.l.bf16 %v11557_v9 }
 0x7b0   :  { %v7099_v47 = vunpack.i.h.bf16 %v7097_v60  ;;  %v7098_v39 = vunpack.i.l.bf16 %v7097_v60 }
 0x7b1   :  { %4658 = vmatpush.msrb.mxu2 %v7054_v50  ;;  %4677 = vmatpush.msra.mxu3 %v7104_v45  ;;  %v7088_v50 = vunpack.i.l.bf16 %v11619_v31  ;;  %v7083_v31 = vunpack.i.l.bf16 %v11626_v1 }
 0x7b3   :  { %4659 = vmatpush.msrb.mxu2 %v7053_v61  ;;  %4678 = vmatpush.msra.mxu3 %v7103_v26  ;;  %v7034_v61 = vunpack.i.h.bf16 %v11557_v9  ;;  %v7084_v26 = vunpack.i.h.bf16 %v11626_v1  ;;  %v7079_v1 = vunpack.i.h.bf16 %v11651_v11 }
 0x7b5   :  { %7301 = vrot.lane.b32.xlu1 %v11670_v4, %s7883_s0  ;;  %4660 = vmatpush.msrb.mxu2 %v7049_v53  ;;  %v6629_v53 = vld [vmem:[%s12700_s3 + $0x50] sm:$0x3] }
 0x7b6   :  { %7326 = vrot.lane.b32.xlu0 %v11678_v8, %s7883_s0  ;;  %7276 = vrot.lane.b32.xlu2 %v11682_v13, %s7883_s0  ;;  %v7092_v10 = vpop.permute.xlu1 %7091  ;;  %v11691_v14 = vpop.permute.xlu0 %7116 }
 0x7b7   :  { %4679 = vmatpush.msra.mxu3 %v7099_v47  ;;  %v7094_v21 = vunpack.i.h.bf16 %v7092_v10  ;;  %v11694_v63 = vpop.permute.xlu2 %7111  ;;  %4661 = vmatpush.msrb.mxu2 %v7048_v40  ;;  %v7093_v32 = vunpack.i.l.bf16 %v7092_v10  ;;  %v11744_v40 = vld [vmem:[#allocation3 + $0x1d0] sm:$0xff]  ;;  %v11746_v47 = vld [vmem:[#allocation3 + $0x1d8] sm:$0xff] }
 0x7b8   :  { %4226 = vmatmul.f32.gmra.mxu2 %v6629_v53  ;;  %v11750_v10 = vpack.i.bf16 %v11746_v47, %v11744_v40  ;;  %v7113_v55 = vunpack.i.l.bf16 %v11694_v63 }
 0x7b9   :  { %4680 = vmatpush.msra.mxu3 %v7098_v39  ;;  %4662 = vmatpush.msrb.mxu2 %v7044_v24  ;;  %v11752_v24 = vld [vmem:[#allocation3 + $0x180] sm:$0xff]  ;;  %v11754_v39 = vld [vmem:[#allocation3 + $0x188] sm:$0xff] }
 0x7ba   :  { %12725 = vst [vmem:[#allocation8_spill] sm:$0xff] %v11752_v24  ;;  %v11759_v9 = vpack.i.bf16 %v11754_v39, %v11752_v24 }
 0x7bb   :  { %4681 = vmatpush.msra.mxu3 %v7094_v21  ;;  %4663 = vmatpush.msrb.mxu2 %v7043_v33  ;;  %12726 = vst [vmem:[#allocation9_spill] sm:$0xff] %v11754_v39  ;;  %v7029_v21 = vunpack.i.h.bf16 %v11518_v34  ;;  %v7114_v39 = vunpack.i.h.bf16 %v11694_v63 }
 0x7bd   :  { %4682 = vmatpush.msra.mxu3 %v7093_v32  ;;  %7316 = vrot.lane.b32.xlu1 %v11707_v28, %s7883_s0  ;;  %v7028_v32 = vunpack.i.l.bf16 %v11518_v34  ;;  %v6632_v34 = vld [vmem:[%s12700_s3 + $0x68] sm:$0xff] }
 0x7be   :  { %7341 = vrot.lane.b32.xlu0 %v11715_v20, %s7883_s0  ;;  %7291 = vrot.lane.b32.xlu2 %v11719_v54, %s7883_s0  ;;  %v11729_v41 = vpop.permute.xlu1 %7106 }
 0x7bf   :  { %4664 = vmatpush.msrb.mxu2 %v7039_v25  ;;  %4683 = vmatpush.msra.mxu3 %v7089_v46  ;;  %v11733_v45 = vpop.permute.xlu0 %7131  ;;  %v11735_v60 = vpop.permute.xlu2 %7126 }
 0x7c0   :  { %4395 = vmatmul.f32.vlgmr.msra.gmra.mxu2 %v6632_v34  ;;  %v6635_v34 = vld [vmem:[%s12700_s3 + $0x80] sm:$0xff] }
 0x7c1   :  { %4665 = vmatpush.msrb.mxu2 %v7038_v27  ;;  %4684 = vmatpush.msra.mxu3 %v7088_v50  ;;  %v7078_v27 = vunpack.i.l.bf16 %v11651_v11  ;;  %v7073_v11 = vunpack.i.l.bf16 %v11586_v59 }
 0x7c3   :  { %4666 = vmatpush.msrb.mxu2 %v7034_v61  ;;  %4685 = vmatpush.msra.mxu3 %v7084_v26  ;;  %v6630_v61 = vld [vmem:[%s12700_s3 + $0x58] sm:$0x3]  ;;  %v7074_v26 = vunpack.i.h.bf16 %v11586_v59 }
 0x7c4   :  { %4249 = vmatmul.f32.gmra.mxu3 %v6630_v61 }
 0x7c5   :  { %4667 = vmatpush.msrb.mxu2 %v7033_v36  ;;  %4686 = vmatpush.msra.mxu3 %v7083_v31  ;;  %v11782_v36 = vld [vmem:[#allocation3 + $0x1b0] sm:$0xff]  ;;  %v11784_v31 = vld [vmem:[#allocation3 + $0x1b8] sm:$0xff] }
 0x7c6   :  { %7331 = vrot.lane.b32.xlu1 %v11750_v10, %s7883_s0  ;;  %7356 = vrot.lane.b32.xlu0 %v11682_v13, %s7884_s16  ;;  %v11766_v33 = vpop.permute.xlu1 %7121 }
 0x7c7   :  { %7306 = vrot.lane.b32.xlu2 %v11759_v9, %s7883_s0  ;;  %4668 = vmatpush.msrb.mxu2 %v7029_v21  ;;  %v11771_v25 = vpop.permute.xlu0 %7146  ;;  %v7142_v46 = vpop.permute.xlu2 %7141  ;;  %v11788_v21 = vpack.i.bf16 %v11784_v31, %v11782_v36 }
 0x7c8   :  { %4687 = vmatpush.msra.mxu3 %v7079_v1  ;;  %v7144_v50 = vunpack.i.h.bf16 %v7142_v46  ;;  %v7143_v53 = vunpack.i.l.bf16 %v7142_v46  ;;  %v7069_v1 = vunpack.i.h.bf16 %v11593_v42 }
 0x7c9   :  { %4669 = vmatpush.msrb.mxu2 %v7028_v32 }
 0x7ca   :  { %4688 = vmatpush.msra.mxu3 %v7078_v27  ;;  %4803 = vmatpush.msrb.mxu1 %v7144_v50  ;;  %v7068_v50 = vunpack.i.l.bf16 %v11593_v42  ;;  %v7133_v42 = vunpack.i.l.bf16 %v11733_v45 }
 0x7cc   :  { %4689 = vmatpush.msra.mxu3 %v7074_v26  ;;  %4804 = vmatpush.msrb.mxu1 %v7143_v53  ;;  %v7134_v26 = vunpack.i.h.bf16 %v11733_v45  ;;  %v11806_v53 = vld [vmem:[#allocation3 + $0x1e0] sm:$0xff]  ;;  %v7124_v45 = vunpack.i.h.bf16 %v11766_v33 }
 0x7cd   :  { %4521 = vmatmul.f32.vlgmr.msrb.gmra.mxu3 %v6635_v34  ;;  %v7123_v34 = vunpack.i.l.bf16 %v11766_v33  ;;  %v7118_v33 = vunpack.i.l.bf16 %v11691_v14 }
 0x7ce   :  { %4690 = vmatpush.msra.mxu3 %v7073_v11  ;;  %7346 = vrot.lane.b32.xlu1 %v11555_v44, %s7884_s16  ;;  %v7137_v32 = vpop.permute.xlu1 %7136  ;;  %v11808_v11 = vld [vmem:[#allocation3 + $0x1e8] sm:$0xff] }
 0x7cf   :  { %7371 = vrot.lane.b32.xlu0 %v11719_v54, %s7884_s16  ;;  %7321 = vrot.lane.b32.xlu2 %v11788_v21, %s7883_s0  ;;  %v7139_v59 = vunpack.i.h.bf16 %v7137_v32  ;;  %v11797_v46 = vpop.permute.xlu0 %7161  ;;  %v11799_v27 = vpop.permute.xlu2 %7156  ;;  %v7138_v61 = vunpack.i.l.bf16 %v7137_v32  ;;  %v11812_v24 = vpack.i.bf16 %v11808_v11, %v11806_v53 }
 0x7d0   :  { %4691 = vmatpush.msra.mxu3 %v7069_v1 }
 0x7d1   :  { %4805 = vmatpush.msrb.mxu1 %v7139_v59 }
 0x7d2   :  { %4692 = vmatpush.msra.mxu3 %v7068_v50  ;;  %v7129_v50 = vunpack.i.h.bf16 %v11735_v60 }
 0x7d3   :  { %4806 = vmatpush.msrb.mxu1 %v7138_v61  ;;  %v7128_v61 = vunpack.i.l.bf16 %v11735_v60  ;;  %v7119_v60 = vunpack.i.h.bf16 %v11691_v14 }
 0x7d5   :  { %4807 = vmatpush.msrb.mxu1 %v7134_v26  ;;  %4524 = vmatmul.f32.gmra.mxu3 %v6637_v5 }
 0x7d6   :  { %7361 = vrot.lane.b32.xlu1 %v11579_v30, %s7884_s16  ;;  %v11817_v1 = vpop.permute.xlu1 %7151 }
 0x7d7   :  { %7386 = vrot.lane.b32.xlu0 %v11759_v9, %s7884_s16  ;;  %7336 = vrot.lane.b32.xlu2 %v11812_v24, %s7883_s0  ;;  %v7177_v32 = vpop.permute.xlu0 %7176  ;;  %v11823_v59 = vpop.permute.xlu2 %7171 }
 0x7d8   :  { %4808 = vmatpush.msrb.mxu1 %v7133_v42 }
 0x7da   :  { %4809 = vmatpush.msrb.mxu1 %v7129_v50 }
 0x7dc   :  { %4810 = vmatpush.msrb.mxu1 %v7128_v61  ;;  %v6634_v61 = vld [vmem:[%s12700_s3 + $0x78] sm:$0x3] }
 0x7dd   :  { %4398 = vmatmul.f32.gmra.mxu2 %v6634_v61  ;;  %v7109_v61 = vunpack.i.h.bf16 %v11729_v41 }
 0x7de   :  { %7376 = vrot.lane.b32.xlu1 %v11614_v23, %s7884_s16  ;;  %4811 = vmatpush.msrb.mxu1 %v7124_v45  ;;  %v11831_v26 = vpop.permute.xlu1 %7166  ;;  %v6633_v45 = vld [vmem:[%s12700_s3 + $0x70] sm:$0x3] }
 0x7df   :  { %7401 = vrot.lane.b32.xlu0 %v11788_v21, %s7884_s16  ;;  %7351 = vrot.lane.b32.xlu2 %v11610_v37, %s7884_s16  ;;  %v11837_v42 = vpop.permute.xlu0 %7191 }
 0x7e0   :  { %v11840_v50 = vpop.permute.xlu2 %7186  ;;  %4812 = vmatpush.msrb.mxu1 %v7123_v34 }
 0x7e1   :  { %4375 = vmatmul.f32.gmra.mxu1 %v6633_v45 }
 0x7e2   :  { %4813 = vmatpush.msrb.mxu1 %v7119_v60 }
 0x7e4   :  { %4814 = vmatpush.msrb.mxu1 %v7118_v33  ;;  %v7108_v33 = vunpack.i.l.bf16 %v11729_v41 }
 0x7e5   :  { %4670 = vmatmul.f32.vlgmr.msrb.gmra.mxu2 %v6639_v22  ;;  %v6640_v22 = vld [vmem:[%s12700_s3 + $0xa8] sm:$0xff] }
 0x7e6   :  { %7391 = vrot.lane.b32.xlu1 %v11646_v15, %s7884_s16  ;;  %4815 = vmatpush.msrb.mxu1 %v7114_v39  ;;  %v7182_v14 = vpop.permute.xlu1 %7181  ;;  %v7179_v39 = vunpack.i.h.bf16 %v7177_v32 }
 0x7e7   :  { %7416 = vrot.lane.b32.xlu0 %v11812_v24, %s7884_s16  ;;  %7366 = vrot.lane.b32.xlu2 %v11638_v29, %s7884_s16  ;;  %v7184_v34 = vunpack.i.h.bf16 %v7182_v14  ;;  %v11857_v60 = vpop.permute.xlu0 %7206  ;;  %v7183_v63 = vunpack.i.l.bf16 %v7182_v14 }
 0x7e8   :  { %v11860_v45 = vpop.permute.xlu2 %7201  ;;  %4816 = vmatpush.msrb.mxu1 %v7113_v55  ;;  %v7178_v55 = vunpack.i.l.bf16 %v7177_v32  ;;  %4693 = vmatmul.f32.vlgmr.msra.gmra.mxu3 %v6640_v22  ;;  %v7159_v22 = vunpack.i.h.bf16 %v11799_v27 }
 0x7e9   :  { %4826 = vmatpush.msra.mxu2 %v7184_v34  ;;  %4544 = vmatmul.f32.vlgmr.msra.gmra.mxu1 %v6636_v12  ;;  %v7174_v34 = vunpack.i.h.bf16 %v11823_v59  ;;  %v7173_v12 = vunpack.i.l.bf16 %v11823_v59 }
 0x7ea   :  { %4817 = vmatpush.msrb.mxu1 %v7109_v61 }
 0x7eb   :  { %4827 = vmatpush.msra.mxu2 %v7183_v63  ;;  %v7169_v63 = vunpack.i.h.bf16 %v11831_v26 }
 0x7ec   :  { %4818 = vmatpush.msrb.mxu1 %v7108_v33  ;;  %v7168_v33 = vunpack.i.l.bf16 %v11831_v26 }
 0x7ed   :  { %4828 = vmatpush.msra.mxu2 %v7179_v39 }
 0x7ee   :  { %7406 = vrot.lane.b32.xlu1 %v11678_v8, %s7884_s16  ;;  %v11874_v41 = vpop.permute.xlu1 %7196 }
 0x7ef   :  { %7431 = vrot.lane.b32.xlu0 %v11610_v37, %s7885_s2  ;;  %7381 = vrot.lane.b32.xlu2 %v11670_v4, %s7884_s16  ;;  %v7222_v14 = vpop.permute.xlu0 %7221 }
 0x7f0   :  { %v7224_v61 = vunpack.i.h.bf16 %v7222_v14  ;;  %v7217_v5 = vpop.permute.xlu2 %7216  ;;  %4829 = vmatpush.msra.mxu2 %v7178_v55  ;;  %v7223_v32 = vunpack.i.l.bf16 %v7222_v14  ;;  %v7164_v14 = vunpack.i.h.bf16 %v11797_v46 }
 0x7f1   :  { %v7219_v39 = vunpack.i.h.bf16 %v7217_v5 }
 0x7f2   :  { %4830 = vmatpush.msra.mxu2 %v7174_v34  ;;  %4952 = vmatpush.msrb.mxu3 %v7224_v61  ;;  %v7218_v34 = vunpack.i.l.bf16 %v7217_v5  ;;  %v7158_v5 = vunpack.i.l.bf16 %v11799_v27  ;;  %v7149_v27 = vunpack.i.h.bf16 %v11771_v25 }
 0x7f4   :  { %4831 = vmatpush.msra.mxu2 %v7173_v12  ;;  %4953 = vmatpush.msrb.mxu3 %v7223_v32  ;;  %v7163_v12 = vunpack.i.l.bf16 %v11797_v46 }
 0x7f6   :  { %7421 = vrot.lane.b32.xlu1 %v11715_v20, %s7884_s16  ;;  %4832 = vmatpush.msra.mxu2 %v7169_v63  ;;  %v7209_v63 = vunpack.i.h.bf16 %v11857_v60 }
 0x7f7   :  { %7446 = vrot.lane.b32.xlu0 %v11638_v29, %s7885_s2  ;;  %7396 = vrot.lane.b32.xlu2 %v11707_v28, %s7884_s16  ;;  %v7212_v59 = vpop.permute.xlu1 %7211  ;;  %v11893_v55 = vpop.permute.xlu0 %7236 }
 0x7f8   :  { %4954 = vmatpush.msrb.mxu3 %v7219_v39  ;;  %v7214_v61 = vunpack.i.h.bf16 %v7212_v59  ;;  %v11896_v26 = vpop.permute.xlu2 %7231  ;;  %4833 = vmatpush.msra.mxu2 %v7168_v33  ;;  %v7213_v32 = vunpack.i.l.bf16 %v7212_v59  ;;  %v7208_v33 = vunpack.i.l.bf16 %v11857_v60  ;;  %v6638_v60 = vld [vmem:[%s12700_s3 + $0x98] sm:$0x3] }
 0x7f9   :  { %4547 = vmatmul.f32.gmra.mxu1 %v6638_v60 }
 0x7fa   :  { %4955 = vmatpush.msrb.mxu3 %v7218_v34  ;;  %4834 = vmatpush.msra.mxu2 %v7164_v14  ;;  %v7154_v14 = vunpack.i.h.bf16 %v11817_v1  ;;  %v7204_v34 = vunpack.i.h.bf16 %v11860_v45 }
 0x7fc   :  { %4956 = vmatpush.msrb.mxu3 %v7214_v61  ;;  %4835 = vmatpush.msra.mxu2 %v7163_v12  ;;  %v7153_v61 = vunpack.i.l.bf16 %v11817_v1  ;;  %v7203_v12 = vunpack.i.l.bf16 %v11860_v45  ;;  %v7148_v45 = vunpack.i.l.bf16 %v11771_v25  ;;  %v7193_v25 = vunpack.i.l.bf16 %v11837_v42 }
 0x7fe   :  { %4957 = vmatpush.msrb.mxu3 %v7213_v32  ;;  %7436 = vrot.lane.b32.xlu1 %v11682_v13, %s7885_s2  ;;  %v7199_v32 = vunpack.i.h.bf16 %v11874_v41 }
 0x7ff   :  { %7461 = vrot.lane.b32.xlu0 %v11670_v4, %s7885_s2  ;;  %7411 = vrot.lane.b32.xlu2 %v11750_v10, %s7884_s16  ;;  %v11907_v46 = vpop.permute.xlu1 %7226 }
 0x800   :  { %4836 = vmatpush.msra.mxu2 %v7159_v22  ;;  %4958 = vmatpush.msrb.mxu3 %v7209_v63  ;;  %v11911_v39 = vpop.permute.xlu0 %7251  ;;  %v11913_v59 = vpop.permute.xlu2 %7246 }
 0x802   :  { %4837 = vmatpush.msra.mxu2 %v7158_v5  ;;  %4959 = vmatpush.msrb.mxu3 %v7208_v33  ;;  %v7198_v5 = vunpack.i.l.bf16 %v11874_v41 }
 0x804   :  { %4838 = vmatpush.msra.mxu2 %v7154_v14  ;;  %4960 = vmatpush.msrb.mxu3 %v7204_v34  ;;  %v7194_v14 = vunpack.i.h.bf16 %v11837_v42 }
 0x806   :  { %4839 = vmatpush.msra.mxu2 %v7153_v61  ;;  %4961 = vmatpush.msrb.mxu3 %v7203_v12  ;;  %v7189_v61 = vunpack.i.h.bf16 %v11840_v50  ;;  %v6641_v12 = vld [vmem:[%s12700_s3 + $0xb0] sm:$0x3] }
 0x807   :  { %7451 = vrot.lane.b32.xlu1 %v11719_v54, %s7885_s2  ;;  %7476 = vrot.lane.b32.xlu0 %v11707_v28, %s7885_s2  ;;  %v11928_v1 = vpop.permute.xlu1 %7241 }
 0x808   :  { %7426 = vrot.lane.b32.xlu2 %v11555_v44, %s7885_s2  ;;  %4840 = vmatpush.msra.mxu2 %v7149_v27  ;;  %v11933_v22 = vpop.permute.xlu0 %7266  ;;  %v7262_v63 = vpop.permute.xlu2 %7261  ;;  %v7188_v27 = vunpack.i.l.bf16 %v11840_v50  ;;  %v7253_v50 = vunpack.i.l.bf16 %v11911_v39 }
 0x809   :  { %4962 = vmatpush.msrb.mxu3 %v7199_v32  ;;  %v7264_v33 = vunpack.i.h.bf16 %v7262_v63  ;;  %v7263_v34 = vunpack.i.l.bf16 %v7262_v63  ;;  %4673 = vmatmul.f32.gmra.mxu2 %v6641_v12  ;;  %v6643_v32 = vld [vmem:[%s12700_s3 + $0xc0] sm:$0xff]  ;;  %v6644_v63 = vld [vmem:[%s12700_s3 + $0xc8] sm:$0xff] }
 0x80a   :  { %4841 = vmatpush.msra.mxu2 %v7148_v45  ;;  %v7254_v45 = vunpack.i.h.bf16 %v11911_v39  ;;  %4819 = vmatmul.f32.vlgmr.msrb.gmra.mxu1 %v6643_v32  ;;  %v7249_v39 = vunpack.i.h.bf16 %v11913_v59  ;;  %v12732_v12 = vld [vmem:[#allocation8_spill] sm:$0xff] }
 0x80b   :  { %4963 = vmatpush.msrb.mxu3 %v7198_v5  ;;  %4975 = vmatpush.msra.mxu1 %v7264_v33  ;;  %v7244_v5 = vunpack.i.h.bf16 %v11928_v1  ;;  %v7239_v33 = vunpack.i.h.bf16 %v11893_v55 }
 0x80c   :  { %5042 = vmatpush.msrb.mxu2 %v11660_v6 }
 0x80d   :  { %4964 = vmatpush.msrb.mxu3 %v7194_v14  ;;  %4976 = vmatpush.msra.mxu1 %v7263_v34  ;;  %v12730_v14 = vld [vmem:[#allocation6_spill] sm:$0xff] }
 0x80e   :  { %5043 = vmatpush.msrb.mxu2 %v11658_v62 }
 0x80f   :  { %4965 = vmatpush.msrb.mxu3 %v7193_v25  ;;  %7466 = vrot.lane.b32.xlu1 %v11759_v9, %s7885_s2  ;;  %v7257_v41 = vpop.permute.xlu1 %7256  ;;  %v12731_v25 = vld [vmem:[#allocation9_spill] sm:$0xff] }
 0x810   :  { %7491 = vrot.lane.b32.xlu0 %v11750_v10, %s7885_s2  ;;  %7441 = vrot.lane.b32.xlu2 %v11579_v30, %s7885_s2  ;;  %v7259_v6 = vunpack.i.h.bf16 %v7257_v41  ;;  %v11950_v62 = vpop.permute.xlu0 %7281  ;;  %v11952_v42 = vpop.permute.xlu2 %7276  ;;  %v7258_v60 = vunpack.i.l.bf16 %v7257_v41 }
 0x811   :  { %5044 = vmatpush.msrb.mxu2 %v11602_v57  ;;  %4966 = vmatpush.msrb.mxu3 %v7189_v61 }
 0x812   :  { %4977 = vmatpush.msra.mxu1 %v7259_v6  ;;  %4842 = vmatmul.f32.vlgmr.msra.gmra.mxu2 %v6644_v63 }
 0x813   :  { %5045 = vmatpush.msrb.mxu2 %v11600_v52  ;;  %4967 = vmatpush.msrb.mxu3 %v7188_v27  ;;  %v6642_v52 = vld [vmem:[%s12700_s3 + $0xb8] sm:$0x3] }
 0x814   :  { %4978 = vmatpush.msra.mxu1 %v7258_v60  ;;  %4696 = vmatmul.f32.gmra.mxu3 %v6642_v52 }
 0x815   :  { %5065 = vmatpush.msra.mxu3 %v11711_v19  ;;  %5046 = vmatpush.msrb.mxu2 %v11699_v0 }
 0x816   :  { %4979 = vmatpush.msra.mxu1 %v7254_v45 }
 0x817   :  { %5066 = vmatpush.msra.mxu3 %v11709_v43  ;;  %5047 = vmatpush.msrb.mxu2 %v11697_v35  ;;  %v11967_v57 = vpop.permute.xlu1 %7271 }
 0x818   :  { %7481 = vrot.lane.b32.xlu1 %v11788_v21, %s7885_s2  ;;  %7506 = vrot.lane.b32.xlu0 %v11555_v44, %s7886_s1  ;;  %v11977_v43 = vpop.permute.xlu0 %7296  ;;  %v11979_v35 = vpop.permute.xlu2 %7291  ;;  %v7248_v44 = vunpack.i.l.bf16 %v11913_v59  ;;  %v7243_v59 = vunpack.i.l.bf16 %v11928_v1  ;;  %v7234_v1 = vunpack.i.h.bf16 %v11896_v26 }
 0x819   :  { %7456 = vrot.lane.b32.xlu2 %v11614_v23, %s7885_s2  ;;  %5048 = vmatpush.msrb.mxu2 %v11630_v17  ;;  %v7299_v6 = vunpack.i.h.bf16 %v11977_v43  ;;  %v7298_v60 = vunpack.i.l.bf16 %v11977_v43  ;;  %v7293_v43 = vunpack.i.l.bf16 %v11979_v35 }
 0x81a   :  { %5067 = vmatpush.msra.mxu3 %v11808_v11  ;;  %4980 = vmatpush.msra.mxu1 %v7253_v50  ;;  %v7294_v50 = vunpack.i.h.bf16 %v11979_v35  ;;  %v7284_v35 = vunpack.i.h.bf16 %v11950_v62 }
 0x81b   :  { %5049 = vmatpush.msrb.mxu2 %v11628_v16 }
 0x81c   :  { %5068 = vmatpush.msra.mxu3 %v11806_v53  ;;  %4981 = vmatpush.msra.mxu1 %v7249_v39 }
 0x81d   :  { %5050 = vmatpush.msrb.mxu2 %v11574_v3  ;;  %v6645_v3 = vld [vmem:[%s12700_s3 + $0xd0] sm:$0x3] }
 0x81e   :  { %5069 = vmatpush.msra.mxu3 %v11746_v47  ;;  %4982 = vmatpush.msra.mxu1 %v7248_v44  ;;  %v6650_v44 = vld [vmem:[%s12700_s3 + $0xf8] sm:$0x3] }
 0x81f   :  { %5051 = vmatpush.msrb.mxu2 %v11572_v51  ;;  %v11994_v17 = vpop.permute.xlu1 %7286  ;;  %4822 = vmatmul.f32.gmra.mxu1 %v6645_v3 }
 0x820   :  { %5070 = vmatpush.msra.mxu3 %v11744_v40  ;;  %7496 = vrot.lane.b32.xlu1 %v11812_v24, %s7885_s2  ;;  %v12001_v16 = vpop.permute.xlu0 %7311 }
 0x821   :  { %7521 = vrot.lane.b32.xlu0 %v11579_v30, %s7886_s1  ;;  %7471 = vrot.lane.b32.xlu2 %v11646_v15, %s7885_s2  ;;  %v12009_v51 = vpop.permute.xlu2 %7306  ;;  %v6647_v30 = vld [vmem:[%s12700_s3 + $0xe0] sm:$0xff] }
 0x822   :  { %5052 = vmatpush.msrb.mxu2 %v11665_v2  ;;  %5071 = vmatpush.msra.mxu3 %v11674_v38  ;;  %v7238_v2 = vunpack.i.l.bf16 %v11893_v55 }
 0x823   :  { %4983 = vmatpush.msra.mxu1 %v7244_v5  ;;  %4968 = vmatmul.f32.vlgmr.msrb.gmra.mxu3 %v6647_v30  ;;  %v7289_v5 = vunpack.i.h.bf16 %v11994_v17 }
 0x824   :  { %5053 = vmatpush.msrb.mxu2 %v11663_v49  ;;  %5072 = vmatpush.msra.mxu3 %v11672_v48  ;;  %v12727_v48 = vld [vmem:[#allocation4_spill] sm:$0xff] }
 0x825   :  { %4984 = vmatpush.msra.mxu1 %v7243_v59 }
 0x826   :  { %5054 = vmatpush.msrb.mxu2 %v11597_v58  ;;  %5073 = vmatpush.msra.mxu3 %v11784_v31  ;;  %v12729_v31 = vld [vmem:[#allocation5_spill] sm:$0xff] }
 0x827   :  { %4985 = vmatpush.msra.mxu1 %v7239_v33  ;;  %v7302_v38 = vpop.permute.xlu1 %7301 }
 0x828   :  { %5055 = vmatpush.msrb.mxu2 %v11595_v56  ;;  %5074 = vmatpush.msra.mxu3 %v11782_v36  ;;  %v12024_v49 = vpop.permute.xlu0 %7326  ;;  %v7233_v56 = vunpack.i.l.bf16 %v11896_v26  ;;  %v7229_v36 = vunpack.i.h.bf16 %v11907_v46  ;;  %v7304_v34 = vunpack.i.h.bf16 %v7302_v38  ;;  %v7303_v61 = vunpack.i.l.bf16 %v7302_v38 }
 0x829   :  { %4986 = vmatpush.msra.mxu1 %v7238_v2  ;;  %7511 = vrot.lane.b32.xlu1 %v11610_v37, %s7886_s1  ;;  %v12031_v58 = vpop.permute.xlu2 %7321  ;;  %v12728_v37 = vld [vmem:[#allocation7_spill] sm:$0xff]  ;;  %v7329_v33 = vunpack.i.h.bf16 %v12024_v49  ;;  %v7328_v2 = vunpack.i.l.bf16 %v12024_v49  ;;  %v7279_v38 = vunpack.i.h.bf16 %v11952_v42  ;;  %v7274_v49 = vunpack.i.h.bf16 %v11967_v57 }
 0x82a   :  { %7536 = vrot.lane.b32.xlu0 %v11614_v23, %s7886_s1  ;;  %7486 = vrot.lane.b32.xlu2 %v11678_v8, %s7885_s2  ;;  %v7228_v23 = vunpack.i.l.bf16 %v11907_v46  ;;  %v6648_v46 = vld [vmem:[%s12700_s3 + $0xe8] sm:$0xff] }
 0x82b   :  { %5056 = vmatpush.msrb.mxu2 %v11550_v7  ;;  %5075 = vmatpush.msra.mxu3 %v11703_v18 }
 0x82c   :  { %4987 = vmatpush.msra.mxu1 %v7234_v1  ;;  %v7324_v1 = vunpack.i.h.bf16 %v12031_v58 }
 0x82d   :  { %5057 = vmatpush.msrb.mxu2 %v12727_v48  ;;  %5076 = vmatpush.msra.mxu3 %v12728_v37 }
 0x82e   :  { %4988 = vmatpush.msra.mxu1 %v7233_v56  ;;  %v7323_v56 = vunpack.i.l.bf16 %v12031_v58 }
 0x82f   :  { %5077 = vmatpush.msra.mxu3 %v12729_v31  ;;  %v12043_v55 = vpop.permute.xlu1 %7316  ;;  %v12117_v31 = vpop.f32.mrf.mxu1 }
 0x830   :  { %4989 = vmatpush.msra.mxu1 %v7229_v36  ;;  %v7342_v7 = vpop.permute.xlu0 %7341  ;;  %v7319_v36 = vunpack.i.h.bf16 %v12043_v55  ;;  %v7318_v58 = vunpack.i.l.bf16 %v12043_v55  ;;  %v12122_v55 = vld [vmem:[#allocation3 + $0x100] sm:$0xff] }
 0x831   :  { %5078 = vmatpush.msra.mxu3 %v12730_v14  ;;  %v7344_v18 = vunpack.i.h.bf16 %v7342_v7  ;;  %v7337_v26 = vpop.permute.xlu2 %7336  ;;  %7526 = vrot.lane.b32.xlu1 %v11638_v29, %s7886_s1  ;;  %v7343_v41 = vunpack.i.l.bf16 %v7342_v7  ;;  %v6646_v29 = vld [vmem:[%s12700_s3 + $0xd8] sm:$0x3]  ;;  %v12124_v7 = vld [vmem:[#allocation3 + $0x108] sm:$0xff] }
 0x832   :  { %4990 = vmatpush.msra.mxu1 %v7228_v23  ;;  %7551 = vrot.lane.b32.xlu0 %v11646_v15, %s7886_s1  ;;  %v6649_v15 = vld [vmem:[%s12700_s3 + $0xf0] sm:$0x3]  ;;  %v7339_v27 = vunpack.i.h.bf16 %v7337_v26  ;;  %v7338_v63 = vunpack.i.l.bf16 %v7337_v26  ;;  %v7269_v23 = vunpack.i.h.bf16 %v11933_v22  ;;  %v7585_v14 = vpack.i.bf16 %v12124_v7, %v12122_v55 }
 0x833   :  { %7501 = vrot.lane.b32.xlu2 %v11715_v20, %s7885_s2  ;;  %5079 = vmatpush.msra.mxu3 %v12731_v25  ;;  %v7309_v25 = vunpack.i.h.bf16 %v12009_v51 }
 0x834   :  { %5222 = vmatpush.msrb.mxu1 %v7304_v34  ;;  %5245 = vmatpush.msra.mxu2 %v7344_v18 }
 0x835   :  { %5080 = vmatpush.msra.mxu3 %v12732_v12  ;;  %4991 = vmatmul.f32.vlgmr.msra.gmra.mxu1 %v6648_v46  ;;  %v12132_v46 = vld [vmem:[#allocation3 + $0x170] sm:$0xff] }
 0x836   :  { %5223 = vmatpush.msrb.mxu1 %v7303_v61  ;;  %5246 = vmatpush.msra.mxu2 %v7343_v41  ;;  %v5006_v61 = vld [vmem:[%s12700_s3] sm:$0xff]  ;;  %v7308_v41 = vunpack.i.l.bf16 %v12009_v51 }
 0x837   :  { %4845 = vmatmul.f32.gmra.mxu2 %v6646_v29  ;;  %4971 = vmatmul.f32.gmra.mxu3 %v6649_v15 }
 0x838   :  { %5224 = vmatpush.msrb.mxu1 %v7299_v6  ;;  %5247 = vmatpush.msra.mxu2 %v7339_v27  ;;  %v7332_v32 = vpop.permute.xlu1 %7331  ;;  %v12065_v45 = vpop.permute.xlu0 %7356  ;;  %v12156_v27 = vld [vmem:[#allocation3 + $0x130] sm:$0xff] }
 0x839   :  { %v12067_v52 = vpop.permute.xlu2 %7351  ;;  %7541 = vrot.lane.b32.xlu1 %v11670_v4, %s7886_s1  ;;  %v7334_v39 = vunpack.i.h.bf16 %v7332_v32  ;;  %v7333_v3 = vunpack.i.l.bf16 %v7332_v32  ;;  %v7288_v4 = vunpack.i.l.bf16 %v11994_v17  ;;  %v7283_v17 = vunpack.i.l.bf16 %v11950_v62  ;;  %v12153_v6 = vpop.f32.mrf.mxu1 }
 0x83a   :  { %5225 = vmatpush.msrb.mxu1 %v7298_v60  ;;  %7566 = vrot.lane.b32.xlu0 %v11678_v8, %s7886_s1  ;;  %v12158_v60 = vld [vmem:[#allocation3 + $0x138] sm:$0xff] }
 0x83b   :  { %7516 = vrot.lane.b32.xlu2 %v11682_v13, %s7886_s1  ;;  %5248 = vmatpush.msra.mxu2 %v7338_v63  ;;  %v7600_v51 = vpack.i.bf16 %v12158_v60, %v12156_v27  ;;  %v7625_v63 = vpack.i.bf16 %v11711_v19, %v11699_v0 }
 0x83c   :  { %5226 = vmatpush.msrb.mxu1 %v7294_v50 }
 0x83d   :  { %4994 = vmatmul.f32.gmra.mxu1 %v6650_v44  ;;  %5249 = vmatpush.msra.mxu2 %v7334_v39  ;;  %v12173_v44 = vpop.f32.mrf.mxu2 }
 0x83e   :  { %5227 = vmatpush.msrb.mxu1 %v7293_v43 }
 0x83f   :  { %5250 = vmatpush.msra.mxu2 %v7333_v3  ;;  %v12177_v3 = vpop.f32.mrf.mxu3 }
 0x840   :  { %5228 = vmatpush.msrb.mxu1 %v7289_v5  ;;  %v12082_v59 = vpop.permute.xlu1 %7346  ;;  %5058 = vmatmul.f32.vlgmr.msrb.gmra.mxu2 %v5006_v61  ;;  %v12244_v61 = vld [vmem:[#allocation3 + $0x140] sm:$0xff] }
 0x841   :  { %v12084_v8 = vpop.permute.xlu0 %7371  ;;  %v12086_v30 = vpop.permute.xlu2 %7366  ;;  %7556 = vrot.lane.b32.xlu1 %v11707_v28, %s7886_s1  ;;  %5251 = vmatpush.msra.mxu2 %v7329_v33  ;;  %v7278_v28 = vunpack.i.l.bf16 %v11952_v42  ;;  %v7273_v42 = vunpack.i.l.bf16 %v11967_v57 }
 0x842   :  { %5229 = vmatpush.msrb.mxu1 %v7288_v4  ;;  %7581 = vrot.lane.b32.xlu0 %v11715_v20, %s7886_s1  ;;  %v7374_v15 = vunpack.i.h.bf16 %v12084_v8  ;;  %v7369_v39 = vunpack.i.h.bf16 %v12086_v30  ;;  %v7368_v43 = vunpack.i.l.bf16 %v12086_v30  ;;  %v12182_v4 = vld [vmem:[#allocation3 + $0x160] sm:$0xff]  ;;  %v12190_v30 = vld [vmem:[#allocation3 + $0x148] sm:$0xff] }
 0x843   :  { %7531 = vrot.lane.b32.xlu2 %v11719_v54, %s7886_s1  ;;  %5252 = vmatpush.msra.mxu2 %v7328_v2  ;;  %v7640_v33 = vpack.i.bf16 %v11808_v11, %v12190_v30  ;;  %v12196_v2 = vld [vmem:[#allocation3 + $0x118] sm:$0xff] }
 0x844   :  { %5230 = vmatpush.msrb.mxu1 %v7284_v35 }
 0x845   :  { %5253 = vmatpush.msra.mxu2 %v7324_v1  ;;  %v12208_v11 = vpop.f32.mrf.mxu2 }
 0x846   :  { %5231 = vmatpush.msrb.mxu1 %v7283_v17  ;;  %v12194_v17 = vld [vmem:[#allocation3 + $0x110] sm:$0xff] }
 0x847   :  { %5254 = vmatpush.msra.mxu2 %v7323_v56  ;;  %v7359_v56 = vunpack.i.h.bf16 %v12065_v45 }
 0x848   :  { %5232 = vmatpush.msrb.mxu1 %v7279_v38  ;;  %v12102_v20 = vpop.permute.xlu1 %7361  ;;  %v7590_v38 = vpack.i.bf16 %v12196_v2, %v12194_v17 }
 0x849   :  { %v12104_v54 = vpop.permute.xlu0 %7386  ;;  %v7382_v62 = vpop.permute.xlu2 %7381  ;;  %7571 = vrot.lane.b32.xlu1 %v11750_v10, %s7886_s1  ;;  %5255 = vmatpush.msra.mxu2 %v7319_v36  ;;  %v7314_v10 = vunpack.i.h.bf16 %v12001_v16  ;;  %v7364_v5 = vunpack.i.h.bf16 %v12102_v20  ;;  %v7363_v19 = vunpack.i.l.bf16 %v12102_v20  ;;  %v7358_v20 = vunpack.i.l.bf16 %v12065_v45  ;;  %v12213_v36 = vld [vmem:[#allocation3 + $0x150] sm:$0xff] }
 0x84a   :  { %5233 = vmatpush.msrb.mxu1 %v7278_v28  ;;  %v7384_v48 = vunpack.i.h.bf16 %v7382_v62  ;;  %7596 = vrot.lane.b32.xlu0 %v11682_v13, %s7887_s29  ;;  %v7383_v37 = vunpack.i.l.bf16 %v7382_v62  ;;  %v7268_v13 = vunpack.i.l.bf16 %v11933_v22  ;;  %v12134_v22 = vld [vmem:[#allocation3 + $0x178] sm:$0xff]  ;;  %v12202_v28 = vpop.f32.mrf.mxu1  ;;  %v7354_v62 = vunpack.i.h.bf16 %v12067_v52 }
 0x84b   :  { %7546 = vrot.lane.b32.xlu2 %v11759_v9, %s7886_s1  ;;  %5256 = vmatpush.msra.mxu2 %v7318_v58  ;;  %v7313_v9 = vunpack.i.l.bf16 %v12001_v16  ;;  %v12138_v16 = vpack.i.bf16 %v12132_v46, %v12134_v22  ;;  %v7655_v45 = vpack.i.bf16 %v11744_v40, %v11746_v47 }
 0x84c   :  { %5234 = vmatpush.msrb.mxu1 %v7274_v49  ;;  %5370 = vmatpush.msrb.mxu3 %v7384_v48  ;;  %v7353_v48 = vunpack.i.l.bf16 %v12067_v52  ;;  %v7349_v52 = vunpack.i.h.bf16 %v12082_v59 }
 0x84d   :  { %5257 = vmatpush.msra.mxu2 %v7314_v10  ;;  %v12221_v10 = vpop.f32.mrf.mxu3  ;;  %v12235_v40 = vpop.f32.mrf.mxu2 }
 0x84e   :  { %5235 = vmatpush.msrb.mxu1 %v7273_v42  ;;  %5371 = vmatpush.msrb.mxu3 %v7383_v37  ;;  %v12215_v42 = vld [vmem:[#allocation3 + $0x1f0] sm:$0xff] }
 0x84f   :  { %5258 = vmatpush.msra.mxu2 %v7313_v9  ;;  %v7630_v58 = vpack.i.bf16 %v12215_v42, %v12213_v36  ;;  %v7348_v9 = vunpack.i.l.bf16 %v12082_v59  ;;  %v7645_v59 = vpack.i.bf16 %v11806_v53, %v12244_v61 }
 0x850   :  { %5236 = vmatpush.msrb.mxu1 %v7269_v23  ;;  %v7377_v57 = vpop.permute.xlu1 %7376 }
 0x851   :  { %v7379_v18 = vunpack.i.h.bf16 %v7377_v57  ;;  %v12128_v26 = vpop.permute.xlu0 %7401  ;;  %v12130_v34 = vpop.permute.xlu2 %7396  ;;  %7586 = vrot.lane.b32.xlu1 %v7585_v14, %s7887_s29  ;;  %5259 = vmatpush.msra.mxu2 %v7309_v25  ;;  %v7378_v29 = vunpack.i.l.bf16 %v7377_v57 }
 0x852   :  { %5237 = vmatpush.msrb.mxu1 %v7268_v13  ;;  %7611 = vrot.lane.b32.xlu0 %v12138_v16, %s7888_s7  ;;  %v12232_v57 = vpop.f32.mrf.mxu1 }
 0x853   :  { %7561 = vrot.lane.b32.xlu2 %v11788_v21, %s7886_s1  ;;  %5372 = vmatpush.msrb.mxu3 %v7379_v18  ;;  %v7373_v21 = vunpack.i.l.bf16 %v12084_v8  ;;  %v12184_v8 = vld [vmem:[#allocation3 + $0x168] sm:$0xff] }
 0x854   :  { %5260 = vmatpush.msra.mxu2 %v7308_v41  ;;  %v5007_v18 = vld [vmem:[%s12700_s3 + $0x8] sm:$0xff] }
 0x855   :  { %5373 = vmatpush.msrb.mxu3 %v7378_v29  ;;  %v7857_v29 = vld [vmem:[#allocation3 + $0x1f8] sm:$0xff] }
 0x856   :  { %5081 = vmatmul.f32.vlgmr.msra.gmra.mxu3 %v5007_v18 }
 0x857   :  { %5374 = vmatpush.msrb.mxu3 %v7374_v15  ;;  %v7670_v15 = vpack.i.bf16 %v12215_v42, %v7857_v29 }
 0x858   :  { %v12151_v12 = vpop.permute.xlu1 %7391 }
 0x859   :  { %v12162_v32 = vpop.permute.xlu0 %7416  ;;  %v12164_v50 = vpop.permute.xlu2 %7411  ;;  %7601 = vrot.lane.b32.xlu1 %v7600_v51, %s7887_s29  ;;  %5375 = vmatpush.msrb.mxu3 %v7373_v21 }
 0x85a   :  { %7626 = vrot.lane.b32.xlu0 %v7625_v63, %s7887_s29  ;;  %v7419_v47 = vunpack.i.h.bf16 %v12162_v32  ;;  %v7414_v63 = vunpack.i.h.bf16 %v12164_v50 }
 0x85b   :  { %7576 = vrot.lane.b32.xlu2 %v11812_v24, %s7886_s1  ;;  %5376 = vmatpush.msrb.mxu3 %v7369_v39  ;;  %v7615_v24 = vpack.i.bf16 %v12182_v4, %v12184_v8  ;;  %v12251_v39 = vpop.f32.mrf.mxu3 }
 0x85d   :  { %5377 = vmatpush.msrb.mxu3 %v7368_v43 }
 0x85f   :  { %5378 = vmatpush.msrb.mxu3 %v7364_v5  ;;  %v12256_v5 = vpop.f32.mrf.mxu1 }
 0x860   :  { %v12179_v0 = vpop.permute.xlu1 %7406 }
 0x861   :  { %v12188_v35 = vpop.permute.xlu0 %7431  ;;  %7616 = vrot.lane.b32.xlu1 %v7615_v24, %s7887_s29  ;;  %5379 = vmatpush.msrb.mxu3 %v7363_v19  ;;  %v7409_v19 = vunpack.i.h.bf16 %v12179_v0 }
 0x862   :  { %v12200_v1 = vpop.permute.xlu2 %7426  ;;  %7641 = vrot.lane.b32.xlu0 %v7640_v33, %s7887_s29 }
 0x863   :  { %7591 = vrot.lane.b32.xlu2 %v7590_v38, %s7887_s29  ;;  %5380 = vmatpush.msrb.mxu3 %v7359_v56  ;;  %v12259_v38 = vpop.f32.mrf.mxu2  ;;  %v7408_v56 = vunpack.i.l.bf16 %v12179_v0 }
 0x865   :  { %5381 = vmatpush.msrb.mxu3 %v7358_v20  ;;  %v7660_v20 = vpack.i.bf16 %v12158_v60, %v7857_v29 }
 0x867   :  { %5382 = vmatpush.msrb.mxu3 %v7354_v62  ;;  %v12265_v62 = vld [vmem:[#allocation3 + $0x120] sm:$0xff]  ;;  %v12283_v18 = vpop.f32.mrf.mxu1 }
 0x868   :  { %v7422_v49 = vpop.permute.xlu1 %7421 }
 0x869   :  { %v7424_v37 = vunpack.i.h.bf16 %v7422_v49  ;;  %v12219_v23 = vpop.permute.xlu0 %7446  ;;  %7631 = vrot.lane.b32.xlu1 %v7630_v58, %s7887_s29  ;;  %5383 = vmatpush.msrb.mxu3 %v7353_v48  ;;  %v7423_v14 = vunpack.i.l.bf16 %v7422_v49  ;;  %v7685_v49 = vpack.i.bf16 %v12265_v62, %v11806_v53  ;;  %v12269_v48 = vld [vmem:[#allocation3 + $0x158] sm:$0xff]  ;;  %v7403_v53 = vunpack.i.l.bf16 %v12128_v26 }
 0x86a   :  { %v12225_v13 = vpop.permute.xlu2 %7441  ;;  %7656 = vrot.lane.b32.xlu0 %v7655_v45, %s7887_s29  ;;  %v7635_v58 = vpack.i.bf16 %v12213_v36, %v12269_v48 }
 0x86b   :  { %7606 = vrot.lane.b32.xlu2 %v12138_v16, %s7887_s29  ;;  %5384 = vmatpush.msrb.mxu3 %v7349_v52  ;;  %v7418_v16 = vunpack.i.l.bf16 %v12162_v32  ;;  %v7413_v32 = vunpack.i.l.bf16 %v12164_v50 }
 0x86c   :  { %5393 = vmatpush.msra.mxu1 %v7424_v37  ;;  %v7404_v37 = vunpack.i.h.bf16 %v12128_v26 }
 0x86d   :  { %5385 = vmatpush.msrb.mxu3 %v7348_v9  ;;  %v12280_v9 = vpop.f32.mrf.mxu3 }
 0x86e   :  { %5394 = vmatpush.msra.mxu1 %v7423_v14  ;;  %v7399_v14 = vunpack.i.h.bf16 %v12130_v34 }
 0x870   :  { %v12241_v25 = vpop.permute.xlu1 %7436  ;;  %5395 = vmatpush.msra.mxu1 %v7419_v47 }
 0x871   :  { %v7462_v41 = vpop.permute.xlu0 %7461  ;;  %7646 = vrot.lane.b32.xlu1 %v7645_v59, %s7887_s29  ;;  %v12286_v59 = vld [vmem:[#allocation3 + $0x1c0] sm:$0xff] }
 0x872   :  { %v7464_v21 = vunpack.i.h.bf16 %v7462_v41  ;;  %5396 = vmatpush.msra.mxu1 %v7418_v16  ;;  %7671 = vrot.lane.b32.xlu0 %v7670_v15, %s7889_s20  ;;  %v7463_v43 = vunpack.i.l.bf16 %v7462_v41  ;;  %v7449_v16 = vunpack.i.h.bf16 %v12219_v23  ;;  %v12288_v41 = vld [vmem:[#allocation3 + $0x1c8] sm:$0xff]  ;;  %v7862_v15 = vld [vmem:[#allocation3 + $0x1d8] sm:$0xff] }
 0x873   :  { %v7457_v51 = vpop.permute.xlu2 %7456  ;;  %7621 = vrot.lane.b32.xlu2 %v7615_v24, %s7888_s7  ;;  %v7675_v26 = vpack.i.bf16 %v12286_v59, %v12288_v41 }
 0x874   :  { %5397 = vmatpush.msra.mxu1 %v7414_v63  ;;  %5518 = vmatpush.msrb.mxu2 %v7464_v21  ;;  %v7459_v33 = vunpack.i.h.bf16 %v7457_v51  ;;  %v7458_v0 = vunpack.i.l.bf16 %v7457_v51  ;;  %v7700_v21 = vpack.i.bf16 %v12196_v2, %v7862_v15  ;;  %v7650_v51 = vpack.i.bf16 %v12244_v61, %v12190_v30 }
 0x876   :  { %5398 = vmatpush.msra.mxu1 %v7413_v32  ;;  %5519 = vmatpush.msrb.mxu2 %v7463_v43  ;;  %v12299_v32 = vpop.f32.mrf.mxu2  ;;  %v7398_v43 = vunpack.i.l.bf16 %v12130_v34  ;;  %v7443_v34 = vunpack.i.l.bf16 %v12225_v13 }
 0x878   :  { %5399 = vmatpush.msra.mxu1 %v7409_v19  ;;  %5520 = vmatpush.msrb.mxu2 %v7459_v33  ;;  %v7448_v19 = vunpack.i.l.bf16 %v12219_v23  ;;  %v12312_v23 = vpop.f32.mrf.mxu3 }
 0x879   :  { %v7452_v24 = vpop.permute.xlu1 %7451  ;;  %v12263_v50 = vpop.permute.xlu0 %7476  ;;  %7661 = vrot.lane.b32.xlu1 %v7660_v20, %s7888_s7  ;;  %v7444_v20 = vunpack.i.h.bf16 %v12225_v13 }
 0x87a   :  { %v7454_v45 = vunpack.i.h.bf16 %v7452_v24  ;;  %5400 = vmatpush.msra.mxu1 %v7408_v56  ;;  %7686 = vrot.lane.b32.xlu0 %v7685_v49, %s7888_s7  ;;  %v7453_v47 = vunpack.i.l.bf16 %v7452_v24  ;;  %v7394_v56 = vunpack.i.h.bf16 %v12151_v12  ;;  %v7393_v24 = vunpack.i.l.bf16 %v12151_v12  ;;  %v12323_v13 = vpop.f32.mrf.mxu1 }
 0x87b   :  { %v12275_v52 = vpop.permute.xlu2 %7471  ;;  %7636 = vrot.lane.b32.xlu2 %v7635_v58, %s7888_s7  ;;  %5521 = vmatpush.msrb.mxu2 %v7458_v0  ;;  %v7389_v49 = vunpack.i.h.bf16 %v12104_v54  ;;  %v7863_v58 = vld [vmem:[#allocation3 + $0x1e8] sm:$0xff]  ;;  %v7665_v12 = vpack.i.bf16 %v12156_v27, %v12215_v42 }
 0x87c   :  { %5401 = vmatpush.msra.mxu1 %v7404_v37  ;;  %v7690_v37 = vpack.i.bf16 %v12134_v22, %v7863_v58 }
 0x87d   :  { %5522 = vmatpush.msrb.mxu2 %v7454_v45  ;;  %v7715_v45 = vpack.i.bf16 %v12184_v8, %v7862_v15  ;;  %v7438_v8 = vunpack.i.l.bf16 %v12241_v25  ;;  %v6651_v15 = vld [vmem:[%s12700_s3 + $0x20] sm:$0xff] }
 0x87e   :  { %5402 = vmatpush.msra.mxu1 %v7403_v53  ;;  %v12330_v22 = vpop.f32.mrf.mxu2 }
 0x87f   :  { %5523 = vmatpush.msrb.mxu2 %v7453_v47  ;;  %v7439_v47 = vunpack.i.h.bf16 %v12241_v25  ;;  %v7433_v25 = vunpack.i.l.bf16 %v12188_v35  ;;  %5238 = vmatmul.f32.vlgmr.msrb.gmra.mxu1 %v6651_v15  ;;  %v12381_v15 = vld [vmem:[#allocation3 + $0x1a8] sm:$0xff] }
 0x880   :  { %5403 = vmatpush.msra.mxu1 %v7399_v14  ;;  %v7388_v14 = vunpack.i.l.bf16 %v12104_v54  ;;  %v5008_v54 = vld [vmem:[%s12700_s3 + $0x10] sm:$0x3] }
 0x881   :  { %v12292_v29 = vpop.permute.xlu1 %7466  ;;  %7676 = vrot.lane.b32.xlu1 %v7675_v26, %s7887_s29  ;;  %5524 = vmatpush.msrb.mxu2 %v7449_v16  ;;  %v7434_v26 = vunpack.i.h.bf16 %v12188_v35  ;;  %v7429_v35 = vunpack.i.h.bf16 %v12200_v1 }
 0x882   :  { %v12297_v63 = vpop.permute.xlu0 %7491  ;;  %7701 = vrot.lane.b32.xlu0 %v7700_v21, %s7888_s7  ;;  %5404 = vmatpush.msra.mxu1 %v7398_v43 }
 0x883   :  { %7651 = vrot.lane.b32.xlu2 %v7650_v51, %s7888_s7  ;;  %5525 = vmatpush.msrb.mxu2 %v7448_v19  ;;  %v7864_v51 = vld [vmem:[#allocation3 + $0x1e0] sm:$0xff]  ;;  %v12342_v19 = vpop.f32.mrf.mxu3 }
 0x884   :  { %v12306_v33 = vpop.permute.xlu2 %7486  ;;  %5405 = vmatpush.msra.mxu1 %v7394_v56  ;;  %5061 = vmatmul.f32.gmra.mxu2 %v5008_v54  ;;  %v7705_v43 = vpack.i.bf16 %v12132_v46, %v7864_v51  ;;  %v12344_v56 = vld [vmem:[#allocation3 + $0x1d0] sm:$0xff]  ;;  %v12379_v54 = vld [vmem:[#allocation3 + $0x1a0] sm:$0xff]  ;;  %v12389_v51 = vld [vmem:[#allocation3 + $0x198] sm:$0xff] }
 0x885   :  { %5526 = vmatpush.msrb.mxu2 %v7444_v20  ;;  %v7730_v20 = vpack.i.bf16 %v12182_v4, %v12344_v56  ;;  %v7428_v4 = vunpack.i.l.bf16 %v12200_v1  ;;  %v7494_v1 = vunpack.i.h.bf16 %v12297_v63 }
 0x886   :  { %5406 = vmatpush.msra.mxu1 %v7393_v24  ;;  %v12348_v24 = vld [vmem:[#allocation3 + $0x128] sm:$0xff] }
 0x887   :  { %5527 = vmatpush.msrb.mxu2 %v7443_v34  ;;  %v7680_v34 = vpack.i.bf16 %v12348_v24, %v7863_v58  ;;  %v3918_v58 = vadd.f32 %v12173_v44, %v12117_v31  ;;  %v6652_v31 = vld [vmem:[%s12700_s3 + $0x28] sm:$0xff] }
 0x888   :  { %5407 = vmatpush.msra.mxu1 %v7389_v49 }
 0x889   :  { %7691 = vrot.lane.b32.xlu1 %v7690_v37, %s7889_s20  ;;  %5528 = vmatpush.msrb.mxu2 %v7439_v47  ;;  %v3839_v47 = vld [vmem:[%s12701_s4] sm:$0xff] }
 0x88a   :  { %v12316_v0 = vpop.permute.xlu1 %7481  ;;  %v12321_v53 = vpop.permute.xlu0 %7506  ;;  %7716 = vrot.lane.b32.xlu0 %v7715_v45, %s7889_s20  ;;  %5408 = vmatpush.msra.mxu1 %v7388_v14  ;;  %v3923_v44 = vadd.f32 %v3918_v58, %v3839_v47  ;;  %v4248_v58 = vadd.f32 %v12251_v39, %v12235_v40  ;;  %v3840_v39 = vld [vmem:[%s12701_s4 + $0x8] sm:$0x3] }
 0x88b   :  { %7666 = vrot.lane.b32.xlu2 %v7665_v12, %s7888_s7  ;;  %5529 = vmatpush.msrb.mxu2 %v7438_v8  ;;  %v12357_v45 = vpop.f32.mrf.mxu1  ;;  %v12367_v8 = vpop.f32.mrf.mxu2 }
 0x88c   :  { %5261 = vmatmul.f32.vlgmr.msra.gmra.mxu2 %v6652_v31  ;;  %v6654_v31 = vld [vmem:[%s12700_s3 + $0x38] sm:$0x3] }
 0x88d   :  { %v7502_v42 = vpop.permute.xlu2 %7501  ;;  %5530 = vmatpush.msrb.mxu2 %v7434_v26  ;;  %v7493_v26 = vunpack.i.l.bf16 %v12297_v63 }
 0x88e   :  { %v7504_v16 = vunpack.i.h.bf16 %v7502_v42  ;;  %v7503_v21 = vunpack.i.l.bf16 %v7502_v42  ;;  %v5009_v42 = vld [vmem:[%s12700_s3 + $0x18] sm:$0x3] }
 0x88f   :  { %5531 = vmatpush.msrb.mxu2 %v7433_v25  ;;  %5084 = vmatmul.f32.gmra.mxu3 %v5009_v42  ;;  %v12387_v25 = vld [vmem:[#allocation3 + $0x190] sm:$0xff]  ;;  %v6655_v42 = vld [vmem:[%s12700_s3 + $0x40] sm:$0xff] }
 0x890   :  { %5541 = vmatpush.msra.mxu3 %v7504_v16  ;;  %v4099_v16 = vadd.f32 %v12202_v28, %v12177_v3  ;;  %v12395_v3 = vld [vmem:[#allocation3 + $0x1b0] sm:$0xff]  ;;  %v7872_v28 = vld [vmem:[#allocation3 + $0x1b8] sm:$0xff] }
 0x891   :  { %7706 = vrot.lane.b32.xlu1 %v7705_v43, %s7889_s20  ;;  %5532 = vmatpush.msrb.mxu2 %v7429_v35  ;;  %v12393_v43 = vpack.i.bf16 %v12387_v25, %v12389_v51  ;;  %v12398_v63 = vpack.i.bf16 %v12395_v3, %v7872_v28  ;;  %v4694_v35 = vpop.f32.mrf.mxu3 }
 0x892   :  { %5542 = vmatpush.msra.mxu3 %v7503_v21  ;;  %v7497_v49 = vpop.permute.xlu1 %7496  ;;  %7731 = vrot.lane.b32.xlu0 %v7730_v20, %s7889_s20  ;;  %v12385_v21 = vpack.i.bf16 %v12379_v54, %v12381_v15  ;;  %v7489_v20 = vunpack.i.h.bf16 %v12306_v33 }
 0x893   :  { %v12351_v37 = vpop.permute.xlu0 %7521  ;;  %v7499_v46 = vunpack.i.h.bf16 %v7497_v49  ;;  %7681 = vrot.lane.b32.xlu2 %v7680_v34, %s7888_s7  ;;  %v7498_v12 = vunpack.i.l.bf16 %v7497_v49  ;;  %5533 = vmatpush.msrb.mxu2 %v7428_v4  ;;  %v7488_v4 = vunpack.i.l.bf16 %v12306_v33  ;;  %v12416_v47 = vpop.f32.mrf.mxu1  ;;  %v3921_v33 = vadd.f32 %v12208_v11, %v12153_v6 }
 0x894   :  { %v12427_v40 = vpop.f32.mrf.mxu2  ;;  %5264 = vmatmul.f32.gmra.mxu2 %v6654_v31  ;;  %v7760_v6 = vpack.i.bf16 %v12190_v30, %v7872_v28  ;;  %v7710_v11 = vpack.i.bf16 %v12194_v17, %v12344_v56  ;;  %v7478_v30 = vunpack.i.l.bf16 %v12263_v50  ;;  %v4546_v28 = vadd.f32 %v12323_v13, %v12312_v23  ;;  %v6659_v23 = vld [vmem:[%s12700_s3 + $0x60] sm:$0xff] }
 0x895   :  { %v12362_v14 = vpop.permute.xlu2 %7516  ;;  %5543 = vmatpush.msra.mxu3 %v7499_v46  ;;  %v4104_v46 = vadd.f32 %v4099_v16, %v3923_v44  ;;  %v7483_v44 = vunpack.i.l.bf16 %v12316_v0 }
 0x897   :  { %5544 = vmatpush.msra.mxu3 %v7498_v12  ;;  %v4253_v16 = vadd.f32 %v4248_v58, %v4104_v46  ;;  %v6653_v46 = vld [vmem:[%s12700_s3 + $0x30] sm:$0x3] }
 0x898   :  { %5386 = vmatmul.f32.vlgmr.msrb.gmra.mxu3 %v6655_v42  ;;  %v3924_v42 = vadd.f32 %v3921_v33, %v3840_v39  ;;  %5241 = vmatmul.f32.gmra.mxu1 %v6653_v46  ;;  %v6657_v58 = vld [vmem:[%s12700_s3 + $0x50] sm:$0x3]  ;;  %v7473_v33 = vunpack.i.l.bf16 %v12275_v52  ;;  %v4549_v46 = vadd.f32 %v12357_v45, %v12342_v19 }
 0x899   :  { %5545 = vmatpush.msra.mxu3 %v7494_v1  ;;  %7721 = vrot.lane.b32.xlu1 %v12385_v21, %s7887_s29  ;;  %v7484_v1 = vunpack.i.h.bf16 %v12316_v0  ;;  %v4102_v0 = vadd.f32 %v12232_v57, %v12221_v10  ;;  %v12458_v57 = vpop.f32.mrf.mxu3 }
 0x89a   :  { %7746 = vrot.lane.b32.xlu0 %v12393_v43, %s7887_s29 }
 0x89b   :  { %v12403_v34 = vpop.permute.xlu1 %7511  ;;  %5546 = vmatpush.msra.mxu3 %v7493_v26  ;;  %7696 = vrot.lane.b32.xlu2 %v12398_v63, %s7887_s29  ;;  %v4397_v26 = vadd.f32 %v12299_v32, %v12256_v5  ;;  %v4105_v13 = vadd.f32 %v4102_v0, %v3924_v42  ;;  %v12498_v42 = vld [vmem:[#allocation3 + $0x188] sm:$0xff] }
 0x89c   :  { %v12405_v49 = vpop.permute.xlu0 %7536  ;;  %v12469_v31 = vpop.f32.mrf.mxu1  ;;  %5534 = vmatmul.f32.vlgmr.msrb.gmra.mxu2 %v6659_v23  ;;  %v7740_v23 = vpack.i.bf16 %v12269_v48, %v12288_v41  ;;  %v4698_v48 = vadd.f32 %v12458_v57, %v12427_v40 }
 0x89d   :  { %v12414_v12 = vpop.permute.xlu2 %7531  ;;  %5547 = vmatpush.msra.mxu3 %v7489_v20  ;;  %v7735_v20 = vpack.i.bf16 %v12122_v55, %v12286_v59  ;;  %v4402_v56 = vadd.f32 %v4397_v26, %v4253_v16  ;;  %v7775_v16 = vpack.i.bf16 %v12244_v61, %v12395_v3  ;;  %v7725_v26 = vpack.i.bf16 %v12124_v7, %v12288_v41 }
 0x89e   :  { %v4400_v61 = vadd.f32 %v12330_v22, %v12283_v18  ;;  %v6660_v18 = vld [vmem:[%s12700_s3 + $0x68] sm:$0xff]  ;;  %v12496_v22 = vld [vmem:[#allocation3 + $0x180] sm:$0xff] }
 0x89f   :  { %5548 = vmatpush.msra.mxu3 %v7488_v4  ;;  %v7479_v4 = vunpack.i.h.bf16 %v12263_v50  ;;  %v7474_v50 = vunpack.i.h.bf16 %v12275_v52  ;;  %v4551_v39 = vadd.f32 %v4546_v28, %v4402_v56  ;;  %v7539_v56 = vunpack.i.h.bf16 %v12405_v49 }
 0x8a0   :  { %5389 = vmatmul.f32.gmra.mxu3 %v6657_v58 }
 0x8a1   :  { %5549 = vmatpush.msra.mxu3 %v7484_v1  ;;  %7736 = vrot.lane.b32.xlu1 %v7735_v20, %s7888_s7  ;;  %v4251_v1 = vadd.f32 %v12280_v9, %v12259_v38  ;;  %v4843_v20 = vpop.f32.mrf.mxu2  ;;  %v7468_v38 = vunpack.i.l.bf16 %v12292_v29 }
 0x8a2   :  { %7761 = vrot.lane.b32.xlu0 %v7760_v6, %s7889_s20  ;;  %v7469_v6 = vunpack.i.h.bf16 %v12292_v29  ;;  %v6656_v29 = vld [vmem:[%s12700_s3 + $0x48] sm:$0xff] }
 0x8a3   :  { %5550 = vmatpush.msra.mxu3 %v7483_v44  ;;  %7711 = vrot.lane.b32.xlu2 %v7710_v11, %s7888_s7  ;;  %v12446_v5 = vpop.permute.xlu1 %7526  ;;  %v4695_v44 = vadd.f32 %v4694_v35, %v12367_v8  ;;  %v4254_v52 = vadd.f32 %v4251_v1, %v4105_v13  ;;  %v4844_v11 = vadd.f32 %v4843_v20, %v12416_v47  ;;  %v7538_v1 = vunpack.i.l.bf16 %v12405_v49 }
 0x8a4   :  { %v12448_v32 = vpop.permute.xlu0 %7551  ;;  %v12502_v47 = vpack.i.bf16 %v12496_v22, %v12498_v42  ;;  %5409 = vmatmul.f32.vlgmr.msra.gmra.mxu1 %v6656_v29  ;;  %v7529_v40 = vunpack.i.h.bf16 %v12446_v5  ;;  %v7780_v20 = vpack.i.bf16 %v12158_v60, %v12381_v15 }
 0x8a5   :  { %5551 = vmatpush.msra.mxu3 %v7479_v4  ;;  %v12456_v10 = vpop.permute.xlu2 %7546  ;;  %v4700_v35 = vadd.f32 %v4695_v44, %v4551_v39  ;;  %v4403_v28 = vadd.f32 %v4400_v61, %v4254_v52  ;;  %v6658_v44 = vld [vmem:[%s12700_s3 + $0x58] sm:$0x3] }
 0x8a6   :  { %v4969_v0 = vpop.f32.mrf.mxu3 }
 0x8a7   :  { %5552 = vmatpush.msra.mxu3 %v7478_v30  ;;  %v6661_v30 = vld [vmem:[%s12700_s3 + $0x70] sm:$0x3]  ;;  %v4849_v58 = vadd.f32 %v4844_v11, %v4700_v35  ;;  %v4552_v45 = vadd.f32 %v4549_v46, %v4403_v28  ;;  %v7514_v28 = vunpack.i.h.bf16 %v12403_v34 }
 0x8a8   :  { %5537 = vmatmul.f32.gmra.mxu2 %v6661_v30  ;;  %v7519_v30 = vunpack.i.h.bf16 %v12362_v14 }
 0x8a9   :  { %5553 = vmatpush.msra.mxu3 %v7474_v50  ;;  %7751 = vrot.lane.b32.xlu1 %v12398_v63, %s7888_s7  ;;  %v7790_v50 = vpack.i.bf16 %v12156_v27, %v12379_v54  ;;  %v7534_v27 = vunpack.i.h.bf16 %v12414_v12  ;;  %v4701_v57 = vadd.f32 %v4698_v48, %v4552_v45  ;;  %v7548_v48 = vunpack.i.l.bf16 %v12456_v10 }
 0x8aa   :  { %7776 = vrot.lane.b32.xlu0 %v7775_v16, %s7889_s20  ;;  %v7533_v16 = vunpack.i.l.bf16 %v12414_v12  ;;  %v7755_v12 = vpack.i.bf16 %v12213_v36, %v12286_v59 }
 0x8ab   :  { %5554 = vmatpush.msra.mxu3 %v7473_v33  ;;  %7726 = vrot.lane.b32.xlu2 %v7725_v26, %s7888_s7  ;;  %v7542_v9 = vpop.permute.xlu1 %7541 }
 0x8ac   :  { %v7544_v8 = vunpack.i.h.bf16 %v7542_v9  ;;  %v12485_v3 = vpop.permute.xlu0 %7566  ;;  %v7543_v4 = vunpack.i.l.bf16 %v7542_v9  ;;  %5412 = vmatmul.f32.gmra.mxu1 %v6658_v44  ;;  %v7528_v9 = vunpack.i.l.bf16 %v12446_v5  ;;  %v6664_v44 = vld [vmem:[%s12700_s3 + $0x88] sm:$0xff] }
 0x8ad   :  { %5555 = vmatpush.msra.mxu3 %v7469_v6  ;;  %v12488_v63 = vpop.permute.xlu2 %7561  ;;  %v7805_v6 = vpack.i.bf16 %v12265_v62, %v12387_v25  ;;  %v7524_v62 = vunpack.i.h.bf16 %v12351_v37 }
 0x8ae   :  { %5666 = vmatpush.msrb.mxu1 %v7544_v8  ;;  %v7564_v46 = vunpack.i.h.bf16 %v12488_v63 }
 0x8af   :  { %5556 = vmatpush.msra.mxu3 %v7468_v38 }
 0x8b0   :  { %5557 = vmatmul.f32.vlgmr.msra.gmra.mxu3 %v6660_v18  ;;  %5667 = vmatpush.msrb.mxu1 %v7543_v4  ;;  %v7795_v18 = vpack.i.bf16 %v12348_v24, %v12389_v51  ;;  %v7518_v24 = vunpack.i.l.bf16 %v12362_v14  ;;  %v7568_v51 = vunpack.i.l.bf16 %v12485_v3  ;;  %v7513_v14 = vunpack.i.l.bf16 %v12403_v34 }
 0x8b1   :  { %7766 = vrot.lane.b32.xlu1 %v12502_v47, %s7887_s29  ;;  %v7508_v34 = vunpack.i.l.bf16 %v12321_v53 }
 0x8b2   :  { %v4992_v13 = vpop.f32.mrf.mxu1  ;;  %5668 = vmatpush.msrb.mxu1 %v7539_v56  ;;  %7791 = vrot.lane.b32.xlu0 %v7790_v50, %s7889_s20 }
 0x8b3   :  { %v4993_v33 = vadd.f32 %v4992_v13, %v4969_v0  ;;  %7741 = vrot.lane.b32.xlu2 %v7740_v23, %s7889_s20  ;;  %v12519_v19 = vpop.permute.xlu1 %7556  ;;  %v7820_v0 = vpack.i.bf16 %v12122_v55, %v12124_v7  ;;  %v7810_v23 = vpack.i.bf16 %v12196_v2, %v12498_v42  ;;  %v7509_v13 = vunpack.i.h.bf16 %v12321_v53  ;;  %v6663_v2 = vld [vmem:[%s12700_s3 + $0x80] sm:$0xff] }
 0x8b4   :  { %v7582_v54 = vpop.permute.xlu0 %7581  ;;  %5669 = vmatpush.msrb.mxu1 %v7538_v1  ;;  %v7559_v1 = vunpack.i.h.bf16 %v12519_v19  ;;  %v7558_v42 = vunpack.i.l.bf16 %v12519_v19  ;;  %v7553_v53 = vunpack.i.l.bf16 %v12448_v32 }
 0x8b5   :  { %v4998_v41 = vadd.f32 %v4993_v33, %v4849_v58  ;;  %v7584_v49 = vunpack.i.h.bf16 %v7582_v54  ;;  %v7577_v39 = vpop.permute.xlu2 %7576  ;;  %v7583_v26 = vunpack.i.l.bf16 %v7582_v54  ;;  %v7554_v54 = vunpack.i.h.bf16 %v12448_v32  ;;  %v6665_v32 = vld [vmem:[%s12700_s3 + $0x90] sm:$0x3] }
 0x8b6   :  { %5670 = vmatpush.msrb.mxu1 %v7534_v27  ;;  %v7579_v61 = vunpack.i.h.bf16 %v7577_v39  ;;  %v7578_v15 = vunpack.i.l.bf16 %v7577_v39 }
 0x8b7   :  { %5001 = vst.msk [vmem:[%s12702_s5] sm:$0xff] %vm5000_vm12, %v4998_v41  ;;  %5689 = vmatpush.msra.mxu2 %v7584_v49 }
 0x8b8   :  { %5671 = vmatpush.msrb.mxu1 %v7533_v16 }
 0x8b9   :  { %5690 = vmatpush.msra.mxu2 %v7583_v26  ;;  %7781 = vrot.lane.b32.xlu1 %v7780_v20, %s7889_s20 }
 0x8ba   :  { %v4846_v38 = vpop.f32.mrf.mxu2  ;;  %v4972_v52 = vpop.f32.mrf.mxu3  ;;  %5672 = vmatpush.msrb.mxu1 %v7529_v40  ;;  %7806 = vrot.lane.b32.xlu0 %v7805_v6, %s7889_s20  ;;  %v7815_v40 = vpack.i.bf16 %v12194_v17, %v12496_v22 }
 0x8bb   :  { %v4847_v8 = vadd.f32 %v4846_v38, %v12469_v31  ;;  %v4995_v35 = vpop.f32.mrf.mxu1  ;;  %7756 = vrot.lane.b32.xlu2 %v7755_v12, %s7889_s20  ;;  %5691 = vmatpush.msra.mxu2 %v7579_v61  ;;  %v7572_v36 = vpop.permute.xlu1 %7571  ;;  %v7523_v31 = vunpack.i.l.bf16 %v12351_v37  ;;  %v7569_v37 = vunpack.i.h.bf16 %v12485_v3  ;;  %v7563_v3 = vunpack.i.l.bf16 %v12488_v63  ;;  %v6666_v61 = vld [vmem:[%s12700_s3 + $0x98] sm:$0x3] }
 0x8bc   :  { %v4996_v60 = vadd.f32 %v4995_v35, %v4972_v52  ;;  %v12544_v59 = vpop.permute.xlu0 %7596  ;;  %5673 = vmatpush.msrb.mxu1 %v7528_v9  ;;  %v7574_v5 = vunpack.i.h.bf16 %v7572_v36  ;;  %v7573_v4 = vunpack.i.l.bf16 %v7572_v36 }
 0x8bd   :  { %v4850_v25 = vadd.f32 %v4847_v8, %v4701_v57  ;;  %v12546_v11 = vpop.permute.xlu2 %7591  ;;  %5692 = vmatpush.msra.mxu2 %v7578_v15 }
 0x8be   :  { %5674 = vmatpush.msrb.mxu1 %v7524_v62 }
 0x8bf   :  { %v4999_v29 = vadd.f32 %v4996_v60, %v4850_v25  ;;  %5693 = vmatpush.msra.mxu2 %v7574_v5 }
 0x8c0   :  { %5675 = vmatpush.msrb.mxu1 %v7523_v31 }
 0x8c1   :  { %5003 = vst.msk [vmem:[%s12702_s5 + $0x8] sm:$0x3] %vm5002_vm13, %v4999_v29  ;;  %5694 = vmatpush.msra.mxu2 %v7573_v4  ;;  %7796 = vrot.lane.b32.xlu1 %v7795_v18, %s7889_s20 }
 0x8c2   :  { %7821 = vrot.lane.b32.xlu0 %v7820_v0, %s7889_s20  ;;  %5676 = vmatpush.msrb.mxu1 %v7519_v30  ;;  %v7599_v30 = vunpack.i.h.bf16 %v12544_v59 }
 0x8c3   :  { %7771 = vrot.lane.b32.xlu2 %v12385_v21, %s7888_s7  ;;  %5695 = vmatpush.msra.mxu2 %v7569_v37  ;;  %v12564_v56 = vpop.permute.xlu1 %7586  ;;  %v6662_v21 = vld [vmem:[%s12700_s3 + $0x78] sm:$0x3] }
 0x8c4   :  { %v7612_v55 = vpop.permute.xlu0 %7611  ;;  %5677 = vmatpush.msrb.mxu1 %v7518_v24  ;;  %5560 = vmatmul.f32.gmra.mxu3 %v6662_v21  ;;  %v7598_v24 = vunpack.i.l.bf16 %v12544_v59 }
 0x8c5   :  { %v7607_v7 = vpop.permute.xlu2 %7606  ;;  %5696 = vmatpush.msra.mxu2 %v7568_v51  ;;  %v7613_v16 = vunpack.i.l.bf16 %v7612_v55 }
 0x8c6   :  { %v7608_v58 = vunpack.i.l.bf16 %v7607_v7  ;;  %5678 = vmatpush.msrb.mxu1 %v7514_v28  ;;  %v7609_v50 = vunpack.i.h.bf16 %v7607_v7  ;;  %v7594_v28 = vunpack.i.h.bf16 %v12546_v11 }
 0x8c7   :  { %5697 = vmatpush.msra.mxu2 %v7564_v46 }
 0x8c8   :  { %5814 = vmatpush.msrb.mxu3 %v7608_v58  ;;  %5679 = vmatpush.msrb.mxu1 %v7513_v14  ;;  %v7593_v58 = vunpack.i.l.bf16 %v12546_v11  ;;  %v7589_v14 = vunpack.i.h.bf16 %v12564_v56 }
 0x8c9   :  { %5698 = vmatpush.msra.mxu2 %v7563_v3  ;;  %7811 = vrot.lane.b32.xlu1 %v7810_v23, %s7889_s20 }
 0x8ca   :  { %5815 = vmatpush.msrb.mxu3 %v7609_v50  ;;  %5680 = vmatpush.msrb.mxu1 %v7509_v13  ;;  %v7588_v50 = vunpack.i.l.bf16 %v12564_v56 }
 0x8cb   :  { %7786 = vrot.lane.b32.xlu2 %v12393_v43, %s7888_s7  ;;  %v12581_v63 = vpop.permute.xlu1 %7601  ;;  %5699 = vmatpush.msra.mxu2 %v7559_v1  ;;  %v7549_v43 = vunpack.i.h.bf16 %v12456_v10 }
 0x8cc   :  { %v7627_v33 = vpop.permute.xlu0 %7626  ;;  %5681 = vmatpush.msrb.mxu1 %v7508_v34  ;;  %v7604_v29 = vunpack.i.h.bf16 %v12581_v63  ;;  %v7603_v18 = vunpack.i.l.bf16 %v12581_v63 }
 0x8cd   :  { %v7622_v27 = vpop.permute.xlu2 %7621  ;;  %v7629_v45 = vunpack.i.h.bf16 %v7627_v33  ;;  %5700 = vmatpush.msra.mxu2 %v7558_v42  ;;  %5682 = vmatmul.f32.vlgmr.msrb.gmra.mxu1 %v6663_v2  ;;  %v7628_v10 = vunpack.i.l.bf16 %v7627_v33 }
 0x8ce   :  { %v7623_v57 = vunpack.i.l.bf16 %v7622_v27  ;;  %v7624_v6 = vunpack.i.h.bf16 %v7622_v27 }
 0x8cf   :  { %5837 = vmatpush.msra.mxu1 %v7629_v45  ;;  %5701 = vmatpush.msra.mxu2 %v7554_v54 }
 0x8d1   :  { %5702 = vmatpush.msra.mxu2 %v7553_v53 }
 0x8d3   :  { %7801 = vrot.lane.b32.xlu2 %v12502_v47, %s7888_s7  ;;  %v7617_v19 = vpop.permute.xlu1 %7616  ;;  %5703 = vmatpush.msra.mxu2 %v7549_v43  ;;  %v7614_v47 = vunpack.i.h.bf16 %v7612_v55 }
 0x8d4   :  { %v7618_v41 = vunpack.i.l.bf16 %v7617_v19  ;;  %v7642_v49 = vpop.permute.xlu0 %7641  ;;  %v7619_v26 = vunpack.i.h.bf16 %v7617_v19 }
 0x8d5   :  { %v7637_v39 = vpop.permute.xlu2 %7636  ;;  %5704 = vmatpush.msra.mxu2 %v7548_v48  ;;  %5685 = vmatmul.f32.gmra.mxu1 %v6665_v32  ;;  %v7643_v8 = vunpack.i.l.bf16 %v7642_v49  ;;  %v7644_v17 = vunpack.i.h.bf16 %v7642_v49 }
 0x8d6   :  { %5816 = vmatpush.msrb.mxu3 %v7618_v41  ;;  %5705 = vmatmul.f32.vlgmr.msra.gmra.mxu2 %v6664_v44  ;;  %v7638_v35 = vunpack.i.l.bf16 %v7637_v39  ;;  %v7639_v22 = vunpack.i.h.bf16 %v7637_v39  ;;  %v6667_v41 = vld [vmem:[%s12700_s3 + $0xa0] sm:$0xff] }
 0x8d7   :  { %5962 = vmatpush.msrb.mxu2 %v7613_v16 }
 0x8d8   :  { %5817 = vmatpush.msrb.mxu3 %v7619_v26  ;;  %v6669_v26 = vld [vmem:[%s12700_s3 + $0xb0] sm:$0x3] }
 0x8d9   :  { %5963 = vmatpush.msrb.mxu2 %v7614_v47 }
 0x8da   :  { %5818 = vmatpush.msrb.mxu3 %v7628_v10 }
 0x8db   :  { %7816 = vrot.lane.b32.xlu2 %v7815_v40, %s7889_s20  ;;  %v7632_v20 = vpop.permute.xlu1 %7631  ;;  %5964 = vmatpush.msrb.mxu2 %v7623_v57 }
 0x8dc   :  { %v7634_v12 = vunpack.i.h.bf16 %v7632_v20  ;;  %v7633_v38 = vunpack.i.l.bf16 %v7632_v20  ;;  %v7657_v52 = vpop.permute.xlu0 %7656 }
 0x8dd   :  { %v7652_v9 = vpop.permute.xlu2 %7651  ;;  %5965 = vmatpush.msrb.mxu2 %v7624_v6  ;;  %v7658_v4 = vunpack.i.l.bf16 %v7657_v52  ;;  %v7659_v0 = vunpack.i.h.bf16 %v7657_v52 }
 0x8de   :  { %5819 = vmatpush.msrb.mxu3 %v7633_v38  ;;  %5838 = vmatpush.msra.mxu1 %v7634_v12  ;;  %v7653_v60 = vunpack.i.l.bf16 %v7652_v9  ;;  %v7654_v15 = vunpack.i.h.bf16 %v7652_v9 }
 0x8df   :  { %5708 = vmatmul.f32.gmra.mxu2 %v6666_v61 }
 0x8e0   :  { %5966 = vmatpush.msrb.mxu2 %v7638_v35  ;;  %5820 = vmatpush.msrb.mxu3 %v7643_v8 }
 0x8e1   :  { %5839 = vmatpush.msra.mxu1 %v7644_v17  ;;  %v6671_v17 = vld [vmem:[%s12700_s3 + $0xc0] sm:$0xff] }
 0x8e2   :  { %5967 = vmatpush.msrb.mxu2 %v7639_v22 }
 0x8e3   :  { %v7647_v62 = vpop.permute.xlu1 %7646 }
 0x8e4   :  { %5968 = vmatpush.msrb.mxu2 %v7653_v60  ;;  %v7649_v36 = vunpack.i.h.bf16 %v7647_v62  ;;  %v7648_v25 = vunpack.i.l.bf16 %v7647_v62  ;;  %v12605_v5 = vpop.permute.xlu0 %7671 }
 0x8e5   :  { %v7667_v31 = vpop.permute.xlu2 %7666  ;;  %v7673_v8 = vunpack.i.l.bf16 %v12605_v5  ;;  %v7674_v22 = vunpack.i.h.bf16 %v12605_v5 }
 0x8e6   :  { %5969 = vmatpush.msrb.mxu2 %v7654_v15  ;;  %5821 = vmatpush.msrb.mxu3 %v7648_v25  ;;  %v7669_v46 = vunpack.i.h.bf16 %v7667_v31  ;;  %v7668_v11 = vunpack.i.l.bf16 %v7667_v31 }
 0x8e7   :  { %5840 = vmatpush.msra.mxu1 %v7649_v36 }
 0x8e8   :  { %5822 = vmatpush.msrb.mxu3 %v7604_v29  ;;  %v6673_v29 = vld [vmem:[%s12700_s3 + $0xd0] sm:$0x3] }
 0x8e9   :  { %5841 = vmatpush.msra.mxu1 %v7658_v4 }
 0x8ea   :  { %5823 = vmatpush.msrb.mxu3 %v7603_v18 }
 0x8eb   :  { %5842 = vmatpush.msra.mxu1 %v7659_v0  ;;  %v7662_v37 = vpop.permute.xlu1 %7661 }
 0x8ec   :  { %v7664_v51 = vunpack.i.h.bf16 %v7662_v37  ;;  %v7687_v55 = vpop.permute.xlu0 %7686  ;;  %5824 = vmatpush.msrb.mxu3 %v7599_v30  ;;  %v7663_v34 = vunpack.i.l.bf16 %v7662_v37 }
 0x8ed   :  { %v7682_v7 = vpop.permute.xlu2 %7681  ;;  %v7689_v3 = vunpack.i.h.bf16 %v7687_v55  ;;  %v7688_v56 = vunpack.i.l.bf16 %v7687_v55 }
 0x8ee   :  { %5825 = vmatpush.msrb.mxu3 %v7598_v24  ;;  %5970 = vmatpush.msrb.mxu2 %v7664_v51  ;;  %v7684_v21 = vunpack.i.h.bf16 %v7682_v7  ;;  %v7683_v33 = vunpack.i.l.bf16 %v7682_v7 }
 0x8f0   :  { %5826 = vmatpush.msrb.mxu3 %v7594_v28  ;;  %5971 = vmatpush.msrb.mxu2 %v7669_v46 }
 0x8f2   :  { %5827 = vmatpush.msrb.mxu3 %v7593_v58  ;;  %5972 = vmatpush.msrb.mxu2 %v7684_v21  ;;  %v6668_v21 = vld [vmem:[%s12700_s3 + $0xa8] sm:$0xff] }
 0x8f3   :  { %v7677_v59 = vpop.permute.xlu1 %7676 }
 0x8f4   :  { %v7678_v23 = vunpack.i.l.bf16 %v7677_v59  ;;  %v7702_v13 = vpop.permute.xlu0 %7701  ;;  %5828 = vmatpush.msrb.mxu3 %v7589_v14  ;;  %5973 = vmatpush.msrb.mxu2 %v7689_v3  ;;  %v7679_v2 = vunpack.i.h.bf16 %v7677_v59 }
 0x8f5   :  { %v7697_v1 = vpop.permute.xlu2 %7696  ;;  %v7704_v63 = vunpack.i.h.bf16 %v7702_v13  ;;  %v7703_v43 = vunpack.i.l.bf16 %v7702_v13 }
 0x8f6   :  { %5829 = vmatpush.msrb.mxu3 %v7588_v50  ;;  %5843 = vmatpush.msra.mxu1 %v7678_v23  ;;  %v7698_v42 = vunpack.i.l.bf16 %v7697_v1  ;;  %v7699_v27 = vunpack.i.h.bf16 %v7697_v1 }
 0x8f7   :  { %5974 = vmatpush.msrb.mxu2 %v7704_v63  ;;  %5830 = vmatmul.f32.vlgmr.msrb.gmra.mxu3 %v6667_v41 }
 0x8f8   :  { %5985 = vmatpush.msra.mxu3 %v7663_v34  ;;  %5844 = vmatpush.msra.mxu1 %v7679_v2 }
 0x8fa   :  { %5986 = vmatpush.msra.mxu3 %v7668_v11  ;;  %5845 = vmatpush.msra.mxu1 %v7698_v42  ;;  %v6670_v42 = vld [vmem:[%s12700_s3 + $0xb8] sm:$0x3] }
 0x8fb   :  { %v12615_v45 = vpop.permute.xlu1 %7691 }
 0x8fc   :  { %5987 = vmatpush.msra.mxu3 %v7683_v33  ;;  %v12617_v54 = vpop.permute.xlu0 %7716  ;;  %5846 = vmatpush.msra.mxu1 %v7699_v27  ;;  %v7693_v60 = vunpack.i.l.bf16 %v12615_v45  ;;  %v7694_v3 = vunpack.i.h.bf16 %v12615_v45  ;;  %v6672_v45 = vld [vmem:[%s12700_s3 + $0xc8] sm:$0xff] }
 0x8fd   :  { %v7712_v53 = vpop.permute.xlu2 %7711  ;;  %v7718_v31 = vunpack.i.l.bf16 %v12617_v54  ;;  %v7719_v1 = vunpack.i.h.bf16 %v12617_v54 }
 0x8fe   :  { %v7714_v19 = vunpack.i.h.bf16 %v7712_v53  ;;  %5988 = vmatpush.msra.mxu3 %v7688_v56  ;;  %v7713_v48 = vunpack.i.l.bf16 %v7712_v53 }
 0x8ff   :  { %5833 = vmatmul.f32.gmra.mxu3 %v6669_v26 }
 0x900   :  { %5975 = vmatpush.msrb.mxu2 %v7714_v19  ;;  %5989 = vmatpush.msra.mxu3 %v7703_v43 }
 0x902   :  { %5990 = vmatpush.msra.mxu3 %v7713_v48 }
 0x903   :  { %v12622_v49 = vpop.permute.xlu1 %7706 }
 0x904   :  { %v12624_v39 = vpop.permute.xlu0 %7731  ;;  %v7708_v62 = vunpack.i.l.bf16 %v12622_v49  ;;  %v7709_v23 = vunpack.i.h.bf16 %v12622_v49 }
 0x905   :  { %v7727_v44 = vpop.permute.xlu2 %7726  ;;  %v7733_v5 = vunpack.i.l.bf16 %v12624_v39  ;;  %v7734_v2 = vunpack.i.h.bf16 %v12624_v39 }
 0x906   :  { %v7729_v32 = vunpack.i.h.bf16 %v7727_v44  ;;  %v7728_v16 = vunpack.i.l.bf16 %v7727_v44  ;;  %v6674_v44 = vld [vmem:[%s12700_s3 + $0xd8] sm:$0x3] }
 0x908   :  { %5976 = vmatpush.msrb.mxu2 %v7729_v32  ;;  %5991 = vmatpush.msra.mxu3 %v7728_v16 }
 0x90b   :  { %v7722_v47 = vpop.permute.xlu1 %7721 }
 0x90c   :  { %v7723_v10 = vunpack.i.l.bf16 %v7722_v47  ;;  %v7747_v40 = vpop.permute.xlu0 %7746  ;;  %v7724_v20 = vunpack.i.h.bf16 %v7722_v47 }
 0x90d   :  { %v12629_v57 = vpop.permute.xlu2 %7741  ;;  %v7748_v6 = vunpack.i.l.bf16 %v7747_v40  ;;  %v7749_v12 = vunpack.i.h.bf16 %v7747_v40 }
 0x90e   :  { %5847 = vmatpush.msra.mxu1 %v7723_v10  ;;  %v7743_v30 = vunpack.i.l.bf16 %v12629_v57  ;;  %v7744_v27 = vunpack.i.h.bf16 %v12629_v57 }
 0x910   :  { %5848 = vmatpush.msra.mxu1 %v7724_v20  ;;  %v6676_v20 = vld [vmem:[%s12700_s3 + $0xe8] sm:$0xff] }
 0x912   :  { %5849 = vmatpush.msra.mxu1 %v7748_v6 }
 0x913   :  { %v7737_v38 = vpop.permute.xlu1 %7736 }
 0x914   :  { %v7739_v52 = vunpack.i.h.bf16 %v7737_v38  ;;  %v7738_v9 = vunpack.i.l.bf16 %v7737_v38  ;;  %5850 = vmatpush.msra.mxu1 %v7749_v12  ;;  %v12634_v35 = vpop.permute.xlu0 %7761 }
 0x915   :  { %v12631_v61 = vpop.permute.xlu2 %7756  ;;  %v7763_v7 = vunpack.i.l.bf16 %v12634_v35  ;;  %v7764_v19 = vunpack.i.h.bf16 %v12634_v35  ;;  %v6677_v35 = vld [vmem:[%s12700_s3 + $0xf0] sm:$0x3] }
 0x916   :  { %5977 = vmatpush.msrb.mxu2 %v7739_v52  ;;  %5992 = vmatpush.msra.mxu3 %v7738_v9  ;;  %v7758_v24 = vunpack.i.l.bf16 %v12631_v61  ;;  %v7759_v54 = vunpack.i.h.bf16 %v12631_v61  ;;  %v6675_v61 = vld [vmem:[%s12700_s3 + $0xe0] sm:$0xff] }
 0x917   :  { %5978 = vmatmul.f32.vlgmr.msrb.gmra.mxu2 %v6671_v17  ;;  %v5059_v17 = vpop.f32.mrf.mxu2 }
 0x918   :  { %6133 = vmatpush.msra.mxu2 %v7673_v8  ;;  %v6678_v8 = vld [vmem:[%s12700_s3 + $0xf8] sm:$0x3] }
 0x91a   :  { %6134 = vmatpush.msra.mxu2 %v7674_v22 }
 0x91b   :  { %v7752_v15 = vpop.permute.xlu1 %7751 }
 0x91c   :  { %6135 = vmatpush.msra.mxu2 %v7693_v60  ;;  %v7753_v36 = vunpack.i.l.bf16 %v7752_v15  ;;  %v7754_v4 = vunpack.i.h.bf16 %v7752_v15  ;;  %v12647_v18 = vpop.permute.xlu0 %7776  ;;  %v5082_v60 = vpop.f32.mrf.mxu3 }
 0x91d   :  { %v7772_v25 = vpop.permute.xlu2 %7771  ;;  %v7778_v14 = vunpack.i.l.bf16 %v12647_v18  ;;  %v7779_v41 = vunpack.i.h.bf16 %v12647_v18 }
 0x91e   :  { %6136 = vmatpush.msra.mxu2 %v7708_v62  ;;  %5993 = vmatpush.msra.mxu3 %v7753_v36  ;;  %v7773_v0 = vunpack.i.l.bf16 %v7772_v25  ;;  %v7774_v37 = vunpack.i.h.bf16 %v7772_v25  ;;  %v5239_v36 = vpop.f32.mrf.mxu1 }
 0x91f   :  { %5981 = vmatmul.f32.gmra.mxu2 %v6673_v29  ;;  %v5062_v22 = vpop.f32.mrf.mxu2 }
 0x920   :  { %6137 = vmatpush.msra.mxu2 %v7718_v31  ;;  %5994 = vmatpush.msra.mxu3 %v7754_v4 }
 0x922   :  { %6138 = vmatpush.msra.mxu2 %v7733_v5  ;;  %5995 = vmatpush.msra.mxu3 %v7773_v0 }
 0x923   :  { %v7767_v51 = vpop.permute.xlu1 %7766 }
 0x924   :  { %6139 = vmatpush.msra.mxu2 %v7743_v30  ;;  %v7768_v55 = vunpack.i.l.bf16 %v7767_v51  ;;  %5996 = vmatpush.msra.mxu3 %v7774_v37  ;;  %v7769_v46 = vunpack.i.h.bf16 %v7767_v51  ;;  %v7792_v50 = vpop.permute.xlu0 %7791  ;;  %v5085_v15 = vpop.f32.mrf.mxu3 }
 0x925   :  { %v7787_v28 = vpop.permute.xlu2 %7786  ;;  %v7793_v33 = vunpack.i.l.bf16 %v7792_v50  ;;  %v7794_v32 = vunpack.i.h.bf16 %v7792_v50 }
 0x926   :  { %6140 = vmatpush.msra.mxu2 %v7758_v24  ;;  %v7788_v58 = vunpack.i.l.bf16 %v7787_v28  ;;  %5851 = vmatpush.msra.mxu1 %v7768_v55  ;;  %v7789_v59 = vunpack.i.h.bf16 %v7787_v28  ;;  %v5242_v29 = vpop.f32.mrf.mxu1 }
 0x927   :  { %v5262_v62 = vpop.f32.mrf.mxu2 }
 0x928   :  { %6141 = vmatpush.msra.mxu2 %v7763_v7  ;;  %5997 = vmatpush.msra.mxu3 %v7788_v58  ;;  %v5083_v58 = vadd.f32 %v5082_v60, %v5059_v17 }
 0x929   :  { %5852 = vmatpush.msra.mxu1 %v7769_v46 }
 0x92a   :  { %5853 = vmatmul.f32.vlgmr.msra.gmra.mxu1 %v6668_v21  ;;  %6142 = vmatpush.msra.mxu2 %v7778_v14  ;;  %v5004_v14 = vld [vmem:[%s12701_s4] sm:$0xff] }
 0x92b   :  { %5998 = vmatpush.msra.mxu3 %v7789_v59  ;;  %6110 = vmatpush.msrb.mxu1 %v7694_v3  ;;  %v7782_v13 = vpop.permute.xlu1 %7781  ;;  %v5088_v50 = vadd.f32 %v5083_v58, %v5004_v14 }
 0x92c   :  { %v7783_v34 = vunpack.i.l.bf16 %v7782_v13  ;;  %v7807_v53 = vpop.permute.xlu0 %7806  ;;  %v7784_v39 = vunpack.i.h.bf16 %v7782_v13  ;;  %v5387_v31 = vpop.f32.mrf.mxu3  ;;  %v5086_v13 = vadd.f32 %v5085_v15, %v5062_v22 }
 0x92d   :  { %6111 = vmatpush.msrb.mxu1 %v7709_v23  ;;  %v7802_v63 = vpop.permute.xlu2 %7801  ;;  %v7808_v49 = vunpack.i.l.bf16 %v7807_v53  ;;  %v7809_v40 = vunpack.i.h.bf16 %v7807_v53  ;;  %v5263_v23 = vadd.f32 %v5262_v62, %v5239_v36 }
 0x92e   :  { %v7803_v11 = vunpack.i.l.bf16 %v7802_v63  ;;  %6143 = vmatpush.msra.mxu2 %v7783_v34  ;;  %v7804_v56 = vunpack.i.h.bf16 %v7802_v63  ;;  %v5410_v18 = vpop.f32.mrf.mxu1 }
 0x92f   :  { %6112 = vmatpush.msrb.mxu1 %v7719_v1  ;;  %v5265_v25 = vpop.f32.mrf.mxu2  ;;  %v5005_v1 = vld [vmem:[%s12701_s4 + $0x8] sm:$0x3]  ;;  %v5268_v34 = vadd.f32 %v5263_v23, %v5088_v50  ;;  %v5411_v63 = vadd.f32 %v5410_v18, %v5387_v31  ;;  %s7890_s4 = smov 1  }
 0x930   :  { %5999 = vmatpush.msra.mxu3 %v7803_v11  ;;  %6144 = vmatpush.msra.mxu2 %v7793_v33  ;;  %v5266_v11 = vadd.f32 %v5265_v25, %v5242_v29 }
 0x931   :  { %6113 = vmatpush.msrb.mxu1 %v7734_v2  ;;  %v5089_v2 = vadd.f32 %v5086_v13, %v5005_v1  ;;  %v5416_v33 = vadd.f32 %v5411_v63, %v5268_v34 }
 0x932   :  { %5856 = vmatmul.f32.gmra.mxu1 %v6670_v42  ;;  %6000 = vmatpush.msra.mxu3 %v7804_v56 }
 0x933   :  { %6114 = vmatpush.msrb.mxu1 %v7744_v27  ;;  %6001 = vmatmul.f32.vlgmr.msra.gmra.mxu3 %v6672_v45  ;;  %v7797_v43 = vpop.permute.xlu1 %7796 }
 0x934   :  { %v7798_v48 = vunpack.i.l.bf16 %v7797_v43  ;;  %v7799_v16 = vunpack.i.h.bf16 %v7797_v43  ;;  %v7822_v12 = vpop.permute.xlu0 %7821  ;;  %v5390_v5 = vpop.f32.mrf.mxu3 }
 0x935   :  { %6115 = vmatpush.msrb.mxu1 %v7759_v54  ;;  %v7817_v26 = vpop.permute.xlu2 %7816  ;;  %v7823_v52 = vunpack.i.l.bf16 %v7822_v12  ;;  %v7824_v9 = vunpack.i.h.bf16 %v7822_v12  ;;  %v5269_v54 = vadd.f32 %v5266_v11, %v5089_v2 }
 0x936   :  { %6145 = vmatpush.msra.mxu2 %v7798_v48  ;;  %v7818_v57 = vunpack.i.l.bf16 %v7817_v26  ;;  %v7819_v38 = vunpack.i.h.bf16 %v7817_v26  ;;  %v5413_v37 = vpop.f32.mrf.mxu1 }
 0x937   :  { %6116 = vmatpush.msrb.mxu1 %v7764_v19  ;;  %v5535_v4 = vpop.f32.mrf.mxu2  ;;  %v5414_v53 = vadd.f32 %v5413_v37, %v5390_v5 }
 0x938   :  { %6146 = vmatpush.msra.mxu2 %v7808_v49 }
 0x939   :  { %6117 = vmatpush.msrb.mxu1 %v7779_v41  ;;  %v5417_v41 = vadd.f32 %v5414_v53, %v5269_v54 }
 0x93b   :  { %6118 = vmatpush.msrb.mxu1 %v7784_v39  ;;  %6004 = vmatmul.f32.gmra.mxu3 %v6674_v44  ;;  %v7812_v47 = vpop.permute.xlu1 %7811 }
 0x93c   :  { %v7813_v10 = vunpack.i.l.bf16 %v7812_v47  ;;  %v7814_v6 = vunpack.i.h.bf16 %v7812_v47  ;;  %v5558_v30 = vpop.f32.mrf.mxu3 }
 0x93d   :  { %6119 = vmatpush.msrb.mxu1 %v7794_v32  ;;  %v5559_v27 = vadd.f32 %v5558_v30, %v5535_v4 }
 0x93e   :  { %6147 = vmatpush.msra.mxu2 %v7813_v10 }
 0x93f   :  { %6120 = vmatpush.msrb.mxu1 %v7799_v16  ;;  %v5538_v0 = vpop.f32.mrf.mxu2  ;;  %v5564_v19 = vadd.f32 %v5559_v27, %v5416_v33 }
 0x940   :  { %6148 = vmatpush.msra.mxu2 %v7818_v57 }
 0x941   :  { %6121 = vmatpush.msrb.mxu1 %v7809_v40  ;;  %6149 = vmatmul.f32.vlgmr.msra.gmra.mxu2 %v6676_v20 }
 0x943   :  { %6122 = vmatpush.msrb.mxu1 %v7814_v6 }
 0x945   :  { %6123 = vmatpush.msrb.mxu1 %v7819_v38 }
 0x947   :  { %6124 = vmatpush.msrb.mxu1 %v7823_v52  ;;  %v5561_v51 = vpop.f32.mrf.mxu3 }
 0x948   :  { %v5562_v39 = vadd.f32 %v5561_v51, %v5538_v0 }
 0x949   :  { %6125 = vmatpush.msrb.mxu1 %v7824_v9  ;;  %6152 = vmatmul.f32.gmra.mxu2 %v6678_v8 }
 0x94a   :  { %6126 = vmatmul.f32.vlgmr.msrb.gmra.mxu1 %v6675_v61  ;;  %v5683_v55 = vpop.f32.mrf.mxu1  ;;  %v5565_v47 = vadd.f32 %v5562_v39, %v5417_v41 }
 0x952   :  { %6129 = vmatmul.f32.gmra.mxu1 %v6677_v35  ;;  %v5686_v46 = vpop.f32.mrf.mxu1 }
 0x959   :  { %v5706_v24 = vpop.f32.mrf.mxu2 }
 0x95a   :  { %v5707_v43 = vadd.f32 %v5706_v24, %v5683_v55 }
 0x95c   :  { %v5712_v49 = vadd.f32 %v5707_v43, %v5564_v19 }
 0x962   :  { %v5709_v7 = vpop.f32.mrf.mxu2 }
 0x963   :  { %v5710_v10 = vadd.f32 %v5709_v7, %v5686_v46 }
 0x965   :  { %v5713_v38 = vadd.f32 %v5710_v10, %v5565_v47 }
 0x97a   :  { %v5831_v28 = vpop.f32.mrf.mxu3 }
 0x982   :  { %v5834_v59 = vpop.f32.mrf.mxu3 }
 0x99a   :  { %v5979_v21 = vpop.f32.mrf.mxu2 }
 0x9a2   :  { %v5982_v42 = vpop.f32.mrf.mxu2 }
 0x9a7   :  { %v5854_v3 = vpop.f32.mrf.mxu1 }
 0x9a8   :  { %v5855_v48 = vadd.f32 %v5854_v3, %v5831_v28 }
 0x9aa   :  { %v5860_v32 = vadd.f32 %v5855_v48, %v5712_v49 }
 0x9af   :  { %v5857_v56 = vpop.f32.mrf.mxu1 }
 0x9b0   :  { %v5858_v6 = vadd.f32 %v5857_v56, %v5834_v59 }
 0x9b2   :  { %v5861_v9 = vadd.f32 %v5858_v6, %v5713_v38 }
 0x9b6   :  { %v6002_v45 = vpop.f32.mrf.mxu3 }
 0x9b7   :  { %v6003_v44 = vadd.f32 %v6002_v45, %v5979_v21 }
 0x9b9   :  { %v6008_v40 = vadd.f32 %v6003_v44, %v5860_v32 }
 0x9be   :  { %v6005_v20 = vpop.f32.mrf.mxu3 }
 0x9bf   :  { %v6006_v52 = vadd.f32 %v6005_v20, %v5982_v42 }
 0x9c1   :  { %v6009_v35 = vadd.f32 %v6006_v52, %v5861_v9 }
 0x9c4   :  { %v6150_v16 = vpop.f32.mrf.mxu2 }
 0x9c7   :  { %v6127_v26 = vpop.f32.mrf.mxu1 }
 0x9c8   :  { %v6151_v57 = vadd.f32 %v6150_v16, %v6127_v26 }
 0x9ca   :  { %v6156_v12 = vadd.f32 %v6151_v57, %v6008_v40 }
 0x9cc   :  { %6160 = vrot.lane.b32.xlu1 %v6156_v12, %s7890_s4  ;;  %v6153_v61 = vpop.f32.mrf.mxu2 }
 0x9cf   :  { %v6130_v8 = vpop.f32.mrf.mxu1 }
 0x9d0   :  { %v6154_v17 = vadd.f32 %v6153_v61, %v6130_v8 }
 0x9d2   :  { %v6157_v22 = vadd.f32 %v6154_v17, %v6009_v35 }
 0x9d4   :  { %6162 = vrot.lane.b32.xlu2 %v6157_v22, %s7890_s4 }
 0xa2e   :  { %v6163_v60 = vpop.permute.xlu2 %6162 }
 0xa2f   :  { %6169 = vst.msk [vmem:[%s12702_s5 + $0x8] sm:$0x3] %vm6168_vm14, %v6163_v60 }
 0xa3e   :  { %v6161_v62 = vpop.permute.xlu1 %6160 }
 0xa3f   :  { %6167 = vst.msk [vmem:[%s12702_s5] sm:$0xff] %vm6166_vm15, %v6161_v62 }

</bundles_post_ra>
